<compile_context>
chip_gen: v6e
topology: v6e:2x2x1
jax: 0.10.0
libtpu: 0.0.40
codegen_flags: <defaults>
</compile_context>

<pallas_src>
import functools

import jax
import jax.numpy as jnp
from jax.experimental import pallas as pl
from jax.experimental.pallas import tpu as pltpu


_VMEM_LIMIT = 32 * 1024 * 1024   # safe on v5e/v6e (128 MiB) and v7x (64 MiB)
_NEG_SLOPE = 0.2
_BN_EPS = 1e-5


def _round_up(x, m):
    return (x + m - 1) // m * m


def _row_tiling(m, cap):
    """Pick (tile_rows, num_tiles) so padding is < 8 rows per tile."""
    nt = max(1, -(-m // cap))
    tm = _round_up(-(-m // nt), 8)
    return tm, nt


def _pick_batch_tile(n, rows_per_image, target_rows=2048):
    """Largest divisor of n whose row count stays under target_rows."""
    cap = max(1, target_rows // rows_per_image)
    nb = 1
    for d in range(1, min(n, cap) + 1):
        if n % d == 0:
            nb = d
    return nb


def _pad_rows(a, mp):
    m = a.shape[0]
    return a if mp == m else jnp.pad(a, ((0, mp - m), (0, 0)))


# ----------------------------- Pallas kernels ------------------------------

def _conv_s2d_leaky_kernel(x_ref, w_ref, o_ref, *, nb, ho, wo, neg_slope):
    """Direct 4x4/s2 conv on a space-to-depth tile, fused LeakyReLU epilogue.

    x_ref: (nb, ho+1, wo+1, 4*Cin) f32   (s2d of zero-padded NHWC input)
    w_ref: (4, 4*Cin, Cout) bf16         (q = da*2+db tap ordering)
    o_ref: (nb*ho*wo, Cout) bf16
    """
    m = nb * ho * wo
    c4 = x_ref.shape[3]
    cout = w_ref.shape[2]
    acc = jnp.zeros((m, cout), jnp.float32)
    for q, (da, db) in enumerate(((0, 0), (0, 1), (1, 0), (1, 1))):
        patch = x_ref[:, da:da + ho, db:db + wo, :]          # (nb,ho,wo,c4) f32
        a = patch.reshape(m, c4).astype(jnp.bfloat16)
        acc = acc + jnp.dot(a, w_ref[q], preferred_element_type=jnp.float32)
    acc = jnp.where(acc > 0, acc, acc * neg_slope)
    o_ref[...] = acc.astype(o_ref.dtype)


def _conv_s2d_stats_kernel(x_ref, w_ref, y_ref, s1_ref, s2_ref, *, nb, ho, wo):
    """Direct 4x4/s2 conv + per-tile channel sum / sum-of-squares (for BN).

    Outputs the raw conv result (bf16) plus per-tile partial statistics so the
    grid axis can stay "parallel" (megacore-safe); partials are reduced in XLA.
    """
    m = nb * ho * wo
    c4 = x_ref.shape[3]
    cout = w_ref.shape[2]
    acc = jnp.zeros((m, cout), jnp.float32)
    for q, (da, db) in enumerate(((0, 0), (0, 1), (1, 0), (1, 1))):
        patch = x_ref[:, da:da + ho, db:db + wo, :]
        a = patch.reshape(m, c4).astype(jnp.bfloat16)
        acc = acc + jnp.dot(a, w_ref[q], preferred_element_type=jnp.float32)
    y = acc.astype(jnp.bfloat16)
    y_ref[...] = y
    yf = y.astype(jnp.float32)                      # stats from the stored bf16
    s1 = jnp.sum(yf, axis=0, keepdims=True)
    s2 = jnp.sum(yf * yf, axis=0, keepdims=True)
    s1_ref[...] = jnp.broadcast_to(s1, (8, cout))
    s2_ref[...] = jnp.broadcast_to(s2, (8, cout))


def _gemm_stats_kernel(a_ref, w_ref, y_ref, s1_ref, s2_ref):
    """im2col GEMM (layer3) + per-tile BN partial statistics (parallel-safe)."""
    acc = jnp.dot(a_ref[...], w_ref[...], preferred_element_type=jnp.float32)
    cout = acc.shape[1]
    y = acc.astype(jnp.bfloat16)
    y_ref[...] = y
    yf = y.astype(jnp.float32)
    s1_ref[...] = jnp.broadcast_to(jnp.sum(yf, 0, keepdims=True), (8, cout))
    s2_ref[...] = jnp.broadcast_to(jnp.sum(yf * yf, 0, keepdims=True), (8, cout))


def _affine_leaky_kernel(y_ref, sc_ref, sh_ref, o_ref, *, neg_slope):
    """o = leaky(y * scale + shift); scale/shift precomputed per channel."""
    v = y_ref[...].astype(jnp.float32) * sc_ref[...] + sh_ref[...]
    o_ref[...] = jnp.where(v > 0, v, v * neg_slope).astype(o_ref.dtype)


def _head_kernel(a_ref, sc_ref, sh_ref, w4_ref, w5_ref, o_ref, *, neg_slope):
    """Fused tail: BN3 affine + leaky -> conv4 GEMM -> leaky -> conv5 GEMM."""
    a = a_ref[...].astype(jnp.float32) * sc_ref[...] + sh_ref[...]
    a = jnp.where(a > 0, a, a * neg_slope)
    h = jnp.dot(a.astype(jnp.bfloat16), w4_ref[...],
                preferred_element_type=jnp.float32)
    h = jnp.where(h > 0, h, h * neg_slope)
    o_ref[...] = jnp.dot(h.astype(jnp.bfloat16), w5_ref[...],
                         preferred_element_type=jnp.float32)


# ------------------------------ kernel wrappers -----------------------------

def _compiler_params():
    return pltpu.CompilerParams(dimension_semantics=("parallel",),
                                vmem_limit_bytes=_VMEM_LIMIT)


def conv_s2d_leaky(xs, w, *, ho, wo, neg_slope=_NEG_SLOPE):
    n, hs, ws, c4 = xs.shape
    cout = w.shape[2]
    nb = _pick_batch_tile(n, ho * wo)
    return pl.pallas_call(
        functools.partial(_conv_s2d_leaky_kernel, nb=nb, ho=ho, wo=wo,
                          neg_slope=neg_slope),
        out_shape=jax.ShapeDtypeStruct((n * ho * wo, cout), jnp.bfloat16),
        grid_spec=pltpu.PrefetchScalarGridSpec(
            num_scalar_prefetch=0,
            grid=(n // nb,),
            in_specs=[pl.BlockSpec((nb, hs, ws, c4), lambda i: (i, 0, 0, 0)),
                      pl.BlockSpec((4, c4, cout), lambda i: (0, 0, 0))],
            out_specs=pl.BlockSpec((nb * ho * wo, cout), lambda i: (i, 0))),
        compiler_params=_compiler_params(),
    )(xs, w)


def conv_s2d_stats(xs, w, *, ho, wo):
    n, hs, ws, c4 = xs.shape
    cout = w.shape[2]
    nb = _pick_batch_tile(n, ho * wo)
    nt = n // nb
    y, p1, p2 = pl.pallas_call(
        functools.partial(_conv_s2d_stats_kernel, nb=nb, ho=ho, wo=wo),
        out_shape=(jax.ShapeDtypeStruct((n * ho * wo, cout), jnp.bfloat16),
                   jax.ShapeDtypeStruct((nt, 8, cout), jnp.float32),
                   jax.ShapeDtypeStruct((nt, 8, cout), jnp.float32)),
        grid_spec=pltpu.PrefetchScalarGridSpec(
            num_scalar_prefetch=0,
            grid=(nt,),
            in_specs=[pl.BlockSpec((nb, hs, ws, c4), lambda i: (i, 0, 0, 0)),
                      pl.BlockSpec((4, c4, cout), lambda i: (0, 0, 0))],
            out_specs=[pl.BlockSpec((nb * ho * wo, cout), lambda i: (i, 0)),
                       pl.BlockSpec((None, 8, cout), lambda i: (i, 0, 0)),
                       pl.BlockSpec((None, 8, cout), lambda i: (i, 0, 0))]),
        compiler_params=_compiler_params(),
    )(xs, w)
    return y, p1, p2


def gemm_stats(a, w, *, cap=512):
    m, k = a.shape
    cout = w.shape[1]
    tm, nt = _row_tiling(m, cap)
    mp = tm * nt
    a = _pad_rows(a, mp)                      # zero rows add 0 to the stats
    y, p1, p2 = pl.pallas_call(
        _gemm_stats_kernel,
        out_shape=(jax.ShapeDtypeStruct((mp, cout), jnp.bfloat16),
                   jax.ShapeDtypeStruct((nt, 8, cout), jnp.float32),
                   jax.ShapeDtypeStruct((nt, 8, cout), jnp.float32)),
        grid_spec=pltpu.PrefetchScalarGridSpec(
            num_scalar_prefetch=0,
            grid=(nt,),
            in_specs=[pl.BlockSpec((tm, k), lambda i: (i, 0)),
                      pl.BlockSpec((k, cout), lambda i: (0, 0))],
            out_specs=[pl.BlockSpec((tm, cout), lambda i: (i, 0)),
                       pl.BlockSpec((None, 8, cout), lambda i: (i, 0, 0)),
                       pl.BlockSpec((None, 8, cout), lambda i: (i, 0, 0))]),
        compiler_params=_compiler_params(),
    )(a, w)
    return (y[:m] if mp != m else y), p1, p2


def affine_leaky(y, scale, shift, *, neg_slope=_NEG_SLOPE, cap=2048):
    m, c = y.shape
    tm, nt = _row_tiling(m, cap)
    mp = tm * nt
    y = _pad_rows(y, mp)
    out = pl.pallas_call(
        functools.partial(_affine_leaky_kernel, neg_slope=neg_slope),
        out_shape=jax.ShapeDtypeStruct((mp, c), jnp.bfloat16),
        grid_spec=pltpu.PrefetchScalarGridSpec(
            num_scalar_prefetch=0,
            grid=(nt,),
            in_specs=[pl.BlockSpec((tm, c), lambda i: (i, 0)),
                      pl.BlockSpec((1, c), lambda i: (0, 0)),
                      pl.BlockSpec((1, c), lambda i: (0, 0))],
            out_specs=pl.BlockSpec((tm, c), lambda i: (i, 0))),
        compiler_params=_compiler_params(),
    )(y, scale, shift)
    return out[:m] if mp != m else out


def head(a, scale_t, shift_t, w4, w5, *, neg_slope=_NEG_SLOPE, cap=256):
    m, k = a.shape
    cmid = w4.shape[1]
    cout = w5.shape[1]
    tm, nt = _row_tiling(m, cap)
    mp = tm * nt
    a = _pad_rows(a, mp)
    out = pl.pallas_call(
        functools.partial(_head_kernel, neg_slope=neg_slope),
        out_shape=jax.ShapeDtypeStruct((mp, cout), jnp.float32),
        grid_spec=pltpu.PrefetchScalarGridSpec(
            num_scalar_prefetch=0,
            grid=(nt,),
            in_specs=[pl.BlockSpec((tm, k), lambda i: (i, 0)),
                      pl.BlockSpec((1, k), lambda i: (0, 0)),
                      pl.BlockSpec((1, k), lambda i: (0, 0)),
                      pl.BlockSpec((k, cmid), lambda i: (0, 0)),
                      pl.BlockSpec((cmid, cout), lambda i: (0, 0))],
            out_specs=pl.BlockSpec((tm, cout), lambda i: (i, 0))),
        compiler_params=_compiler_params(),
    )(a, scale_t, shift_t, w4, w5)
    return out[:m] if mp != m else out


# ------------------------------- XLA glue -----------------------------------

def _pad_s2d(x_nhwc, pad):
    """Zero-pad spatially, then 2x2 space-to-depth: (N,H,W,C)->(N,H'/2,W'/2,4C).

    Pure permutation (no inflation beyond the padding halo); channel index of
    the result is (u*2+v)*C + c for the (u,v) offset inside each 2x2 cell.
    """
    n, h, w, c = x_nhwc.shape
    if pad:
        x_nhwc = jnp.pad(x_nhwc, ((0, 0), (pad, pad), (pad, pad), (0, 0)))
    hp, wp = h + 2 * pad, w + 2 * pad
    x = x_nhwc.reshape(n, hp // 2, 2, wp // 2, 2, c)
    x = x.transpose(0, 1, 3, 2, 4, 5)
    return x.reshape(n, hp // 2, wp // 2, 4 * c)


def im2col_nhwc(x, k, s, p):
    """NHWC patch extraction (layer3 only); feature index = (i*k+j)*C + c."""
    n, h, w, c = x.shape
    if p:
        x = jnp.pad(x, ((0, 0), (p, p), (p, p), (0, 0)))
    ho = (h + 2 * p - k) // s + 1
    wo = (w + 2 * p - k) // s + 1
    cols = [x[:, i:i + s * ho:s, j:j + s * wo:s, :]
            for i in range(k) for j in range(k)]
    patches = jnp.concatenate(cols, axis=-1)
    return patches.reshape(n * ho * wo, k * k * c)


def bn_scale_shift(p1, p2, count, gamma, beta, eps=_BN_EPS):
    """Train-mode BN (biased variance) folded to y*scale + shift; tiny XLA op."""
    s1 = jnp.sum(p1[:, 0, :], axis=0)
    s2 = jnp.sum(p2[:, 0, :], axis=0)
    mean = s1 / count
    var = jnp.maximum(s2 / count - mean * mean, 0.0)
    scale = gamma * jax.lax.rsqrt(var + eps)
    shift = beta - mean * scale
    return scale.reshape(1, -1), shift.reshape(1, -1)


# ------------------------------- parameters ---------------------------------

def _conv_w_s2d(key, cout, cin):
    """4x4 conv weight rearranged for the 2x2 s2d decomposition: (4, 4Cin, Cout)."""
    w = jax.random.normal(key, (cout, cin, 4, 4), jnp.float32) * 0.05
    wt = w.transpose(2, 3, 1, 0)                 # (kh, kw, cin, cout)
    taps = []
    for da in (0, 1):
        for db in (0, 1):
            blk = wt[2 * da:2 * da + 2, 2 * db:2 * db + 2]   # (2,2,cin,cout)
            taps.append(blk.reshape(4 * cin, cout))          # (u*2+v)*cin + c
    return jnp.stack(taps).astype(jnp.bfloat16)


def _conv_w_im2col(key, cout, cin, k):
    """k x k conv weight as a GEMM matrix (k*k*Cin, Cout), channels fast."""
    w = jax.random.normal(key, (cout, cin, k, k), jnp.float32) * 0.05
    return w.transpose(2, 3, 1, 0).reshape(k * k * cin, cout).astype(jnp.bfloat16)


def init_params(input_nc, key):
    ks = jax.random.split(key, 5)
    return {
        "w1": _conv_w_s2d(ks[0], 64, input_nc),        # (4, 4*in_nc, 64)
        "w2": _conv_w_s2d(ks[1], 128, 64),             # (4, 256, 128)
        "g2": jnp.ones((128,), jnp.float32),
        "b2": jnp.zeros((128,), jnp.float32),
        "w3": _conv_w_im2col(ks[2], 256, 128, 4),      # (2048, 256)
        "g3": jnp.ones((256,), jnp.float32),
        "b3": jnp.zeros((256,), jnp.float32),
        "w4": _conv_w_im2col(ks[3], 128, 256, 4),      # (4096, 128)
        "w5": _conv_w_im2col(ks[4], 3, 128, 1),        # (128, 3)
    }


# ------------------------------- forward ------------------------------------

def d_forward(x_nchw, params):
    n, _, h, w = x_nchw.shape
    assert h == 32 and w == 32, "D requires 32x32 inputs (final squeeze)."

    # Boundary layout change only: NCHW -> NHWC (kept f32; kernels cast bf16).
    x = jnp.transpose(x_nchw, (0, 2, 3, 1))

    # layer1: Conv(in_nc->64, 4,2,1); layer2's LeakyReLU fused in the epilogue.
    xs1 = _pad_s2d(x, 1)                                      # (n,17,17,4*in_nc)
    x1 = conv_s2d_leaky(xs1, params["w1"], ho=16, wo=16)      # (n*256, 64) bf16

    # layer2: Conv(64->128, 4,2,1) + per-tile BN statistics.
    xs2 = _pad_s2d(x1.reshape(n, 16, 16, 64).astype(jnp.float32), 1)  # (n,9,9,256)
    y2, p1, p2 = conv_s2d_stats(xs2, params["w2"], ho=8, wo=8)        # (n*64,128)
    sc2, sh2 = bn_scale_shift(p1, p2, n * 64, params["g2"], params["b2"])
    x2 = affine_leaky(y2, sc2, sh2)                           # leaky(BN2) bf16

    # layer3: Conv(128->256, 4,2,1) + BN statistics (im2col GEMM, small layer).
    a3 = im2col_nhwc(x2.reshape(n, 8, 8, 128), 4, 2, 1)       # (n*16, 2048) bf16
    y3, q1, q2 = gemm_stats(a3, params["w3"])                 # (n*16, 256) bf16
    sc3, sh3 = bn_scale_shift(q1, q2, n * 16, params["g3"], params["b3"])

    # Fused tail: BN3 affine + leaky + Conv(256->128, 4,1,0) + leaky +
    # Conv(128->3, 1,1,0).  The 4x4 valid conv's im2col is a pure reshape.
    a_head = y3.reshape(n, 4 * 4 * 256)                       # (n, 4096) bf16
    out = head(a_head, jnp.tile(sc3, (1, 16)), jnp.tile(sh3, (1, 16)),
               params["w4"], params["w5"])                    # (n, 3) f32
    return out                                                # == squeeze(3).squeeze(2)


if __name__ == "__main__":
    key = jax.random.PRNGKey(0)
    k_x, k_p = jax.random.split(key)

    batch, input_nc = 2, 3
    # Spatial size must be 32: three stride-2 convs -> 4x4, then the 4x4 valid
    # conv -> 1x1 (required by the final squeeze).
    x = jax.random.normal(k_x, (batch, input_nc, 32, 32), jnp.float32)
    params = init_params(input_nc, k_p)

    fwd = jax.jit(d_forward)
    out = jax.block_until_ready(fwd(x, params))
    assert out.shape == (batch, 3), out.shape
    assert bool(jnp.all(jnp.isfinite(out)))
    print("KERNEL_OK")
</pallas_src>

<mosaic_0001>
module attributes {stable_mosaic.version = 11 : i64} {
  func.func @_conv_s2d_leaky_kernel(%arg0: i32, %arg1: memref<2x17x17x12xf32, #tpu.memory_space<vmem>>, %arg2: memref<4x12x64xbf16, #tpu.memory_space<vmem>>, %arg3: memref<512x64xbf16, #tpu.memory_space<vmem>>) attributes {dimension_semantics = [#tpu.dimension_semantics<parallel>], iteration_bounds = array<i64: 1>, scalar_prefetch = 0 : i64, scratch_operands = 0 : i64, tpu.core_type = #tpu.core_type<tc>, window_params = [{transform_indices = @transform_0, window_bounds = array<i64: 2, 17, 17, 12>}, {pipeline_mode = #tpu.pipeline_mode<synchronous>, transform_indices = @transform_1, window_bounds = array<i64: 4, 12, 64>}, {transform_indices = @transform_2, window_bounds = array<i64: 512, 64>}]} {
    %cst = arith.constant 0.000000e+00 : f32
    %0 = vector.broadcast %cst : f32 to vector<512x64xf32>
    %c0 = arith.constant 0 : index
    %c0_0 = arith.constant 0 : index
    %c0_1 = arith.constant 0 : index
    %c0_2 = arith.constant 0 : index
    %1 = vector.load %arg1[%c0, %c0_0, %c0_1, %c0_2] : memref<2x17x17x12xf32, #tpu.memory_space<vmem>>, vector<2x16x16x12xf32>
    %2 = vector.shape_cast %1 : vector<2x16x16x12xf32> to vector<512x12xf32>
    %3 = arith.truncf %2 : vector<512x12xf32> to vector<512x12xbf16>
    %c0_3 = arith.constant 0 : index
    %c0_4 = arith.constant 0 : index
    %c0_5 = arith.constant 0 : index
    %4 = vector.load %arg2[%c0_3, %c0_4, %c0_5] : memref<4x12x64xbf16, #tpu.memory_space<vmem>>, vector<1x12x64xbf16>
    %5 = vector.shape_cast %4 : vector<1x12x64xbf16> to vector<12x64xbf16>
    %cst_6 = arith.constant dense<0.000000e+00> : vector<512x64xf32>
    %6 = tpu.matmul %3, %5, %cst_6 {dimension_numbers = #tpu.dot_dimension_numbers<[1], [0], [0], [1], [0, 0, 1, 1], [], []>} : vector<512x12xbf16>, vector<12x64xbf16>, vector<512x64xf32> -> vector<512x64xf32>
    %7 = arith.addf %0, %6 : vector<512x64xf32>
    %c0_7 = arith.constant 0 : index
    %c0_8 = arith.constant 0 : index
    %c1 = arith.constant 1 : index
    %c0_9 = arith.constant 0 : index
    %8 = vector.load %arg1[%c0_7, %c0_8, %c1, %c0_9] : memref<2x17x17x12xf32, #tpu.memory_space<vmem>>, vector<2x16x16x12xf32>
    %9 = vector.shape_cast %8 : vector<2x16x16x12xf32> to vector<512x12xf32>
    %10 = arith.truncf %9 : vector<512x12xf32> to vector<512x12xbf16>
    %c1_10 = arith.constant 1 : index
    %c0_11 = arith.constant 0 : index
    %c0_12 = arith.constant 0 : index
    %11 = vector.load %arg2[%c1_10, %c0_11, %c0_12] : memref<4x12x64xbf16, #tpu.memory_space<vmem>>, vector<1x12x64xbf16>
    %12 = vector.shape_cast %11 : vector<1x12x64xbf16> to vector<12x64xbf16>
    %cst_13 = arith.constant dense<0.000000e+00> : vector<512x64xf32>
    %13 = tpu.matmul %10, %12, %cst_13 {dimension_numbers = #tpu.dot_dimension_numbers<[1], [0], [0], [1], [0, 0, 1, 1], [], []>} : vector<512x12xbf16>, vector<12x64xbf16>, vector<512x64xf32> -> vector<512x64xf32>
    %14 = arith.addf %7, %13 : vector<512x64xf32>
    %c0_14 = arith.constant 0 : index
    %c1_15 = arith.constant 1 : index
    %c0_16 = arith.constant 0 : index
    %c0_17 = arith.constant 0 : index
    %15 = vector.load %arg1[%c0_14, %c1_15, %c0_16, %c0_17] : memref<2x17x17x12xf32, #tpu.memory_space<vmem>>, vector<2x16x16x12xf32>
    %16 = vector.shape_cast %15 : vector<2x16x16x12xf32> to vector<512x12xf32>
    %17 = arith.truncf %16 : vector<512x12xf32> to vector<512x12xbf16>
    %c2 = arith.constant 2 : index
    %c0_18 = arith.constant 0 : index
    %c0_19 = arith.constant 0 : index
    %18 = vector.load %arg2[%c2, %c0_18, %c0_19] : memref<4x12x64xbf16, #tpu.memory_space<vmem>>, vector<1x12x64xbf16>
    %19 = vector.shape_cast %18 : vector<1x12x64xbf16> to vector<12x64xbf16>
    %cst_20 = arith.constant dense<0.000000e+00> : vector<512x64xf32>
    %20 = tpu.matmul %17, %19, %cst_20 {dimension_numbers = #tpu.dot_dimension_numbers<[1], [0], [0], [1], [0, 0, 1, 1], [], []>} : vector<512x12xbf16>, vector<12x64xbf16>, vector<512x64xf32> -> vector<512x64xf32>
    %21 = arith.addf %14, %20 : vector<512x64xf32>
    %c0_21 = arith.constant 0 : index
    %c1_22 = arith.constant 1 : index
    %c1_23 = arith.constant 1 : index
    %c0_24 = arith.constant 0 : index
    %22 = vector.load %arg1[%c0_21, %c1_22, %c1_23, %c0_24] : memref<2x17x17x12xf32, #tpu.memory_space<vmem>>, vector<2x16x16x12xf32>
    %23 = vector.shape_cast %22 : vector<2x16x16x12xf32> to vector<512x12xf32>
    %24 = arith.truncf %23 : vector<512x12xf32> to vector<512x12xbf16>
    %c3 = arith.constant 3 : index
    %c0_25 = arith.constant 0 : index
    %c0_26 = arith.constant 0 : index
    %25 = vector.load %arg2[%c3, %c0_25, %c0_26] : memref<4x12x64xbf16, #tpu.memory_space<vmem>>, vector<1x12x64xbf16>
    %26 = vector.shape_cast %25 : vector<1x12x64xbf16> to vector<12x64xbf16>
    %cst_27 = arith.constant dense<0.000000e+00> : vector<512x64xf32>
    %27 = tpu.matmul %24, %26, %cst_27 {dimension_numbers = #tpu.dot_dimension_numbers<[1], [0], [0], [1], [0, 0, 1, 1], [], []>} : vector<512x12xbf16>, vector<12x64xbf16>, vector<512x64xf32> -> vector<512x64xf32>
    %28 = arith.addf %21, %27 : vector<512x64xf32>
    %cst_28 = arith.constant 0.000000e+00 : f32
    %29 = vector.broadcast %cst_28 : f32 to vector<512x64xf32>
    %30 = arith.cmpf ogt, %28, %29 : vector<512x64xf32>
    %cst_29 = arith.constant 2.000000e-01 : f32
    %31 = vector.broadcast %cst_29 : f32 to vector<512x64xf32>
    %32 = arith.mulf %28, %31 : vector<512x64xf32>
    %33 = arith.select %30, %28, %32 : vector<512x64xi1>, vector<512x64xf32>
    %34 = arith.truncf %33 : vector<512x64xf32> to vector<512x64xbf16>
    %c0_30 = arith.constant 0 : index
    %c0_31 = arith.constant 0 : index
    %35 = vector.load %arg3[%c0_30, %c0_31] : memref<512x64xbf16, #tpu.memory_space<vmem>>, vector<512x64xbf16>
    tpu.vector_store %arg3[%c0_30, %c0_31], %34 {strides = array<i32>} : memref<512x64xbf16, #tpu.memory_space<vmem>>, vector<512x64xbf16>,
    return
  }
  func.func @transform_0(%arg0: i32) -> (i32, i32, i32, i32) {
    %c0_i32 = arith.constant 0 : i32
    %c0_i32_0 = arith.constant 0 : i32
    %c0_i32_1 = arith.constant 0 : i32
    %c0_i32_2 = arith.constant 0 : i32
    return %arg0, %c0_i32, %c0_i32_0, %c0_i32_1 : i32, i32, i32, i32
  }
  func.func @transform_1(%arg0: i32) -> (i32, i32, i32) {
    %c0_i32 = arith.constant 0 : i32
    %c0_i32_0 = arith.constant 0 : i32
    %c0_i32_1 = arith.constant 0 : i32
    %c0_i32_2 = arith.constant 0 : i32
    return %c0_i32, %c0_i32_0, %c0_i32_1 : i32, i32, i32
  }
  func.func @transform_2(%arg0: i32) -> (i32, i32) {
    %c0_i32 = arith.constant 0 : i32
    %c0_i32_0 = arith.constant 0 : i32
    return %arg0, %c0_i32 : i32, i32
  }
}

module attributes {stable_mosaic.version = 11 : i64} {
  func.func @_conv_s2d_stats_kernel(%arg0: i32, %arg1: memref<2x9x9x256xf32, #tpu.memory_space<vmem>>, %arg2: memref<4x256x128xbf16, #tpu.memory_space<vmem>>, %arg3: memref<128x128xbf16, #tpu.memory_space<vmem>>, %arg4: memref<1x8x128xf32, #tpu.memory_space<vmem>>, %arg5: memref<1x8x128xf32, #tpu.memory_space<vmem>>) attributes {dimension_semantics = [#tpu.dimension_semantics<parallel>], iteration_bounds = array<i64: 1>, scalar_prefetch = 0 : i64, scratch_operands = 0 : i64, tpu.core_type = #tpu.core_type<tc>, window_params = [{transform_indices = @transform_0, window_bounds = array<i64: 2, 9, 9, 256>}, {pipeline_mode = #tpu.pipeline_mode<synchronous>, transform_indices = @transform_1, window_bounds = array<i64: 4, 256, 128>}, {transform_indices = @transform_2, window_bounds = array<i64: 128, 128>}, {transform_indices = @transform_3, window_bounds = array<i64: 1, 8, 128>}, {transform_indices = @transform_4, window_bounds = array<i64: 1, 8, 128>}]} {
    %cst = arith.constant 0.000000e+00 : f32
    %0 = vector.broadcast %cst : f32 to vector<128x128xf32>
    %c0 = arith.constant 0 : index
    %c0_0 = arith.constant 0 : index
    %c0_1 = arith.constant 0 : index
    %c0_2 = arith.constant 0 : index
    %1 = vector.load %arg1[%c0, %c0_0, %c0_1, %c0_2] : memref<2x9x9x256xf32, #tpu.memory_space<vmem>>, vector<2x8x8x256xf32>
    %2 = vector.shape_cast %1 : vector<2x8x8x256xf32> to vector<128x256xf32>
    %3 = arith.truncf %2 : vector<128x256xf32> to vector<128x256xbf16>
    %c0_3 = arith.constant 0 : index
    %c0_4 = arith.constant 0 : index
    %c0_5 = arith.constant 0 : index
    %4 = vector.load %arg2[%c0_3, %c0_4, %c0_5] : memref<4x256x128xbf16, #tpu.memory_space<vmem>>, vector<1x256x128xbf16>
    %5 = vector.shape_cast %4 : vector<1x256x128xbf16> to vector<256x128xbf16>
    %cst_6 = arith.constant dense<0.000000e+00> : vector<128x128xf32>
    %6 = tpu.matmul %3, %5, %cst_6 {dimension_numbers = #tpu.dot_dimension_numbers<[1], [0], [0], [1], [0, 0, 1, 1], [], []>} : vector<128x256xbf16>, vector<256x128xbf16>, vector<128x128xf32> -> vector<128x128xf32>
    %7 = arith.addf %0, %6 : vector<128x128xf32>
    %c0_7 = arith.constant 0 : index
    %c0_8 = arith.constant 0 : index
    %c1 = arith.constant 1 : index
    %c0_9 = arith.constant 0 : index
    %8 = vector.load %arg1[%c0_7, %c0_8, %c1, %c0_9] : memref<2x9x9x256xf32, #tpu.memory_space<vmem>>, vector<2x8x8x256xf32>
    %9 = vector.shape_cast %8 : vector<2x8x8x256xf32> to vector<128x256xf32>
    %10 = arith.truncf %9 : vector<128x256xf32> to vector<128x256xbf16>
    %c1_10 = arith.constant 1 : index
    %c0_11 = arith.constant 0 : index
    %c0_12 = arith.constant 0 : index
    %11 = vector.load %arg2[%c1_10, %c0_11, %c0_12] : memref<4x256x128xbf16, #tpu.memory_space<vmem>>, vector<1x256x128xbf16>
    %12 = vector.shape_cast %11 : vector<1x256x128xbf16> to vector<256x128xbf16>
    %cst_13 = arith.constant dense<0.000000e+00> : vector<128x128xf32>
    %13 = tpu.matmul %10, %12, %cst_13 {dimension_numbers = #tpu.dot_dimension_numbers<[1], [0], [0], [1], [0, 0, 1, 1], [], []>} : vector<128x256xbf16>, vector<256x128xbf16>, vector<128x128xf32> -> vector<128x128xf32>
    %14 = arith.addf %7, %13 : vector<128x128xf32>
    %c0_14 = arith.constant 0 : index
    %c1_15 = arith.constant 1 : index
    %c0_16 = arith.constant 0 : index
    %c0_17 = arith.constant 0 : index
    %15 = vector.load %arg1[%c0_14, %c1_15, %c0_16, %c0_17] : memref<2x9x9x256xf32, #tpu.memory_space<vmem>>, vector<2x8x8x256xf32>
    %16 = vector.shape_cast %15 : vector<2x8x8x256xf32> to vector<128x256xf32>
    %17 = arith.truncf %16 : vector<128x256xf32> to vector<128x256xbf16>
    %c2 = arith.constant 2 : index
    %c0_18 = arith.constant 0 : index
    %c0_19 = arith.constant 0 : index
    %18 = vector.load %arg2[%c2, %c0_18, %c0_19] : memref<4x256x128xbf16, #tpu.memory_space<vmem>>, vector<1x256x128xbf16>
    %19 = vector.shape_cast %18 : vector<1x256x128xbf16> to vector<256x128xbf16>
    %cst_20 = arith.constant dense<0.000000e+00> : vector<128x128xf32>
    %20 = tpu.matmul %17, %19, %cst_20 {dimension_numbers = #tpu.dot_dimension_numbers<[1], [0], [0], [1], [0, 0, 1, 1], [], []>} : vector<128x256xbf16>, vector<256x128xbf16>, vector<128x128xf32> -> vector<128x128xf32>
    %21 = arith.addf %14, %20 : vector<128x128xf32>
    %c0_21 = arith.constant 0 : index
    %c1_22 = arith.constant 1 : index
    %c1_23 = arith.constant 1 : index
    %c0_24 = arith.constant 0 : index
    %22 = vector.load %arg1[%c0_21, %c1_22, %c1_23, %c0_24] : memref<2x9x9x256xf32, #tpu.memory_space<vmem>>, vector<2x8x8x256xf32>
    %23 = vector.shape_cast %22 : vector<2x8x8x256xf32> to vector<128x256xf32>
    %24 = arith.truncf %23 : vector<128x256xf32> to vector<128x256xbf16>
    %c3 = arith.constant 3 : index
    %c0_25 = arith.constant 0 : index
    %c0_26 = arith.constant 0 : index
    %25 = vector.load %arg2[%c3, %c0_25, %c0_26] : memref<4x256x128xbf16, #tpu.memory_space<vmem>>, vector<1x256x128xbf16>
    %26 = vector.shape_cast %25 : vector<1x256x128xbf16> to vector<256x128xbf16>
    %cst_27 = arith.constant dense<0.000000e+00> : vector<128x128xf32>
    %27 = tpu.matmul %24, %26, %cst_27 {dimension_numbers = #tpu.dot_dimension_numbers<[1], [0], [0], [1], [0, 0, 1, 1], [], []>} : vector<128x256xbf16>, vector<256x128xbf16>, vector<128x128xf32> -> vector<128x128xf32>
    %28 = arith.addf %21, %27 : vector<128x128xf32>
    %29 = arith.truncf %28 : vector<128x128xf32> to vector<128x128xbf16>
    %c0_28 = arith.constant 0 : index
    %c0_29 = arith.constant 0 : index
    %30 = vector.load %arg3[%c0_28, %c0_29] : memref<128x128xbf16, #tpu.memory_space<vmem>>, vector<128x128xbf16>
    tpu.vector_store %arg3[%c0_28, %c0_29], %29 {strides = array<i32>} : memref<128x128xbf16, #tpu.memory_space<vmem>>, vector<128x128xbf16>,
    %31 = arith.extf %29 : vector<128x128xbf16> to vector<128x128xf32>
    %cst_30 = arith.constant dense<0.000000e+00> : vector<128xf32>
    %32 = vector.multi_reduction <add>, %31, %cst_30 [0] : vector<128x128xf32> to vector<128xf32>
    %33 = vector.shape_cast %32 : vector<128xf32> to vector<1x128xf32>
    %34 = arith.mulf %31, %31 : vector<128x128xf32>
    %cst_31 = arith.constant dense<0.000000e+00> : vector<128xf32>
    %35 = vector.multi_reduction <add>, %34, %cst_31 [0] : vector<128x128xf32> to vector<128xf32>
    %36 = vector.shape_cast %35 : vector<128xf32> to vector<1x128xf32>
    %37 = vector.shape_cast %33 : vector<1x128xf32> to vector<1x128xf32>
    %38 = vector.broadcast %37 : vector<1x128xf32> to vector<8x128xf32>
    %c0_32 = arith.constant 0 : index
    %c0_33 = arith.constant 0 : index
    %c0_34 = arith.constant 0 : index
    %39 = vector.load %arg4[%c0_32, %c0_33, %c0_34] : memref<1x8x128xf32, #tpu.memory_space<vmem>>, vector<1x8x128xf32>
    %40 = vector.shape_cast %39 : vector<1x8x128xf32> to vector<8x128xf32>
    %41 = vector.shape_cast %38 : vector<8x128xf32> to vector<1x8x128xf32>
    tpu.vector_store %arg4[%c0_32, %c0_33, %c0_34], %41 {strides = array<i32>} : memref<1x8x128xf32, #tpu.memory_space<vmem>>, vector<1x8x128xf32>,
    %42 = vector.shape_cast %36 : vector<1x128xf32> to vector<1x128xf32>
    %43 = vector.broadcast %42 : vector<1x128xf32> to vector<8x128xf32>
    %c0_35 = arith.constant 0 : index
    %c0_36 = arith.constant 0 : index
    %c0_37 = arith.constant 0 : index
    %44 = vector.load %arg5[%c0_35, %c0_36, %c0_37] : memref<1x8x128xf32, #tpu.memory_space<vmem>>, vector<1x8x128xf32>
    %45 = vector.shape_cast %44 : vector<1x8x128xf32> to vector<8x128xf32>
    %46 = vector.shape_cast %43 : vector<8x128xf32> to vector<1x8x128xf32>
    tpu.vector_store %arg5[%c0_35, %c0_36, %c0_37], %46 {strides = array<i32>} : memref<1x8x128xf32, #tpu.memory_space<vmem>>, vector<1x8x128xf32>,
    return
  }
  func.func @transform_0(%arg0: i32) -> (i32, i32, i32, i32) {
    %c0_i32 = arith.constant 0 : i32
    %c0_i32_0 = arith.constant 0 : i32
    %c0_i32_1 = arith.constant 0 : i32
    %c0_i32_2 = arith.constant 0 : i32
    return %arg0, %c0_i32, %c0_i32_0, %c0_i32_1 : i32, i32, i32, i32
  }
  func.func @transform_1(%arg0: i32) -> (i32, i32, i32) {
    %c0_i32 = arith.constant 0 : i32
    %c0_i32_0 = arith.constant 0 : i32
    %c0_i32_1 = arith.constant 0 : i32
    %c0_i32_2 = arith.constant 0 : i32
    return %c0_i32, %c0_i32_0, %c0_i32_1 : i32, i32, i32
  }
  func.func @transform_2(%arg0: i32) -> (i32, i32) {
    %c0_i32 = arith.constant 0 : i32
    %c0_i32_0 = arith.constant 0 : i32
    return %arg0, %c0_i32 : i32, i32
  }
  func.func @transform_3(%arg0: i32) -> (i32, i32, i32) {
    %c0_i32 = arith.constant 0 : i32
    %c0_i32_0 = arith.constant 0 : i32
    %c0_i32_1 = arith.constant 0 : i32
    return %arg0, %c0_i32, %c0_i32_0 : i32, i32, i32
  }
  func.func @transform_4(%arg0: i32) -> (i32, i32, i32) {
    %c0_i32 = arith.constant 0 : i32
    %c0_i32_0 = arith.constant 0 : i32
    %c0_i32_1 = arith.constant 0 : i32
    return %arg0, %c0_i32, %c0_i32_0 : i32, i32, i32
  }
}

module attributes {stable_mosaic.version = 11 : i64} {
  func.func @_affine_leaky_kernel(%arg0: i32, %arg1: memref<128x128xbf16, #tpu.memory_space<vmem>>, %arg2: memref<1x128xf32, #tpu.memory_space<vmem>>, %arg3: memref<1x128xf32, #tpu.memory_space<vmem>>, %arg4: memref<128x128xbf16, #tpu.memory_space<vmem>>) attributes {dimension_semantics = [#tpu.dimension_semantics<parallel>], iteration_bounds = array<i64: 1>, scalar_prefetch = 0 : i64, scratch_operands = 0 : i64, tpu.core_type = #tpu.core_type<tc>, window_params = [{transform_indices = @transform_0, window_bounds = array<i64: 128, 128>}, {pipeline_mode = #tpu.pipeline_mode<synchronous>, transform_indices = @transform_1, window_bounds = array<i64: 1, 128>}, {pipeline_mode = #tpu.pipeline_mode<synchronous>, transform_indices = @transform_2, window_bounds = array<i64: 1, 128>}, {transform_indices = @transform_3, window_bounds = array<i64: 128, 128>}]} {
    %c0 = arith.constant 0 : index
    %c0_0 = arith.constant 0 : index
    %0 = vector.load %arg1[%c0, %c0_0] : memref<128x128xbf16, #tpu.memory_space<vmem>>, vector<128x128xbf16>
    %1 = arith.extf %0 : vector<128x128xbf16> to vector<128x128xf32>
    %c0_1 = arith.constant 0 : index
    %c0_2 = arith.constant 0 : index
    %2 = vector.load %arg2[%c0_1, %c0_2] : memref<1x128xf32, #tpu.memory_space<vmem>>, vector<1x128xf32>
    %3 = vector.broadcast %2 : vector<1x128xf32> to vector<128x128xf32>
    %4 = arith.mulf %1, %3 : vector<128x128xf32>
    %c0_3 = arith.constant 0 : index
    %c0_4 = arith.constant 0 : index
    %5 = vector.load %arg3[%c0_3, %c0_4] : memref<1x128xf32, #tpu.memory_space<vmem>>, vector<1x128xf32>
    %6 = vector.broadcast %5 : vector<1x128xf32> to vector<128x128xf32>
    %7 = arith.addf %4, %6 : vector<128x128xf32>
    %cst = arith.constant 0.000000e+00 : f32
    %8 = vector.broadcast %cst : f32 to vector<128x128xf32>
    %9 = arith.cmpf ogt, %7, %8 : vector<128x128xf32>
    %cst_5 = arith.constant 2.000000e-01 : f32
    %10 = vector.broadcast %cst_5 : f32 to vector<128x128xf32>
    %11 = arith.mulf %7, %10 : vector<128x128xf32>
    %12 = arith.select %9, %7, %11 : vector<128x128xi1>, vector<128x128xf32>
    %13 = arith.truncf %12 : vector<128x128xf32> to vector<128x128xbf16>
    %c0_6 = arith.constant 0 : index
    %c0_7 = arith.constant 0 : index
    %14 = vector.load %arg4[%c0_6, %c0_7] : memref<128x128xbf16, #tpu.memory_space<vmem>>, vector<128x128xbf16>
    tpu.vector_store %arg4[%c0_6, %c0_7], %13 {strides = array<i32>} : memref<128x128xbf16, #tpu.memory_space<vmem>>, vector<128x128xbf16>,
    return
  }
  func.func @transform_0(%arg0: i32) -> (i32, i32) {
    %c0_i32 = arith.constant 0 : i32
    %c0_i32_0 = arith.constant 0 : i32
    return %arg0, %c0_i32 : i32, i32
  }
  func.func @transform_1(%arg0: i32) -> (i32, i32) {
    %c0_i32 = arith.constant 0 : i32
    %c0_i32_0 = arith.constant 0 : i32
    %c0_i32_1 = arith.constant 0 : i32
    return %c0_i32, %c0_i32_0 : i32, i32
  }
  func.func @transform_2(%arg0: i32) -> (i32, i32) {
    %c0_i32 = arith.constant 0 : i32
    %c0_i32_0 = arith.constant 0 : i32
    %c0_i32_1 = arith.constant 0 : i32
    return %c0_i32, %c0_i32_0 : i32, i32
  }
  func.func @transform_3(%arg0: i32) -> (i32, i32) {
    %c0_i32 = arith.constant 0 : i32
    %c0_i32_0 = arith.constant 0 : i32
    return %arg0, %c0_i32 : i32, i32
  }
}

module attributes {stable_mosaic.version = 11 : i64} {
  func.func @_head_kernel(%arg0: i32, %arg1: memref<8x4096xbf16, #tpu.memory_space<vmem>>, %arg2: memref<1x4096xf32, #tpu.memory_space<vmem>>, %arg3: memref<1x4096xf32, #tpu.memory_space<vmem>>, %arg4: memref<4096x128xbf16, #tpu.memory_space<vmem>>, %arg5: memref<128x3xbf16, #tpu.memory_space<vmem>>, %arg6: memref<8x3xf32, #tpu.memory_space<vmem>>) attributes {dimension_semantics = [#tpu.dimension_semantics<parallel>], iteration_bounds = array<i64: 1>, scalar_prefetch = 0 : i64, scratch_operands = 0 : i64, tpu.core_type = #tpu.core_type<tc>, window_params = [{transform_indices = @transform_0, window_bounds = array<i64: 8, 4096>}, {pipeline_mode = #tpu.pipeline_mode<synchronous>, transform_indices = @transform_1, window_bounds = array<i64: 1, 4096>}, {pipeline_mode = #tpu.pipeline_mode<synchronous>, transform_indices = @transform_2, window_bounds = array<i64: 1, 4096>}, {pipeline_mode = #tpu.pipeline_mode<synchronous>, transform_indices = @transform_3, window_bounds = array<i64: 4096, 128>}, {pipeline_mode = #tpu.pipeline_mode<synchronous>, transform_indices = @transform_4, window_bounds = array<i64: 128, 3>}, {transform_indices = @transform_5, window_bounds = array<i64: 8, 3>}]} {
    %c0 = arith.constant 0 : index
    %c0_0 = arith.constant 0 : index
    %0 = vector.load %arg1[%c0, %c0_0] : memref<8x4096xbf16, #tpu.memory_space<vmem>>, vector<8x4096xbf16>
    %1 = arith.extf %0 : vector<8x4096xbf16> to vector<8x4096xf32>
    %c0_1 = arith.constant 0 : index
    %c0_2 = arith.constant 0 : index
    %2 = vector.load %arg2[%c0_1, %c0_2] : memref<1x4096xf32, #tpu.memory_space<vmem>>, vector<1x4096xf32>
    %3 = vector.broadcast %2 : vector<1x4096xf32> to vector<8x4096xf32>
    %4 = arith.mulf %1, %3 : vector<8x4096xf32>
    %c0_3 = arith.constant 0 : index
    %c0_4 = arith.constant 0 : index
    %5 = vector.load %arg3[%c0_3, %c0_4] : memref<1x4096xf32, #tpu.memory_space<vmem>>, vector<1x4096xf32>
    %6 = vector.broadcast %5 : vector<1x4096xf32> to vector<8x4096xf32>
    %7 = arith.addf %4, %6 : vector<8x4096xf32>
    %cst = arith.constant 0.000000e+00 : f32
    %8 = vector.broadcast %cst : f32 to vector<8x4096xf32>
    %9 = arith.cmpf ogt, %7, %8 : vector<8x4096xf32>
    %cst_5 = arith.constant 2.000000e-01 : f32
    %10 = vector.broadcast %cst_5 : f32 to vector<8x4096xf32>
    %11 = arith.mulf %7, %10 : vector<8x4096xf32>
    %12 = arith.select %9, %7, %11 : vector<8x4096xi1>, vector<8x4096xf32>
    %13 = arith.truncf %12 : vector<8x4096xf32> to vector<8x4096xbf16>
    %c0_6 = arith.constant 0 : index
    %c0_7 = arith.constant 0 : index
    %14 = vector.load %arg4[%c0_6, %c0_7] : memref<4096x128xbf16, #tpu.memory_space<vmem>>, vector<4096x128xbf16>
    %cst_8 = arith.constant dense<0.000000e+00> : vector<8x128xf32>
    %15 = tpu.matmul %13, %14, %cst_8 {dimension_numbers = #tpu.dot_dimension_numbers<[1], [0], [0], [1], [0, 0, 1, 1], [], []>} : vector<8x4096xbf16>, vector<4096x128xbf16>, vector<8x128xf32> -> vector<8x128xf32>
    %cst_9 = arith.constant 0.000000e+00 : f32
    %16 = vector.broadcast %cst_9 : f32 to vector<8x128xf32>
    %17 = arith.cmpf ogt, %15, %16 : vector<8x128xf32>
    %cst_10 = arith.constant 2.000000e-01 : f32
    %18 = vector.broadcast %cst_10 : f32 to vector<8x128xf32>
    %19 = arith.mulf %15, %18 : vector<8x128xf32>
    %20 = arith.select %17, %15, %19 : vector<8x128xi1>, vector<8x128xf32>
    %21 = arith.truncf %20 : vector<8x128xf32> to vector<8x128xbf16>
    %c0_11 = arith.constant 0 : index
    %c0_12 = arith.constant 0 : index
    %22 = vector.load %arg5[%c0_11, %c0_12] : memref<128x3xbf16, #tpu.memory_space<vmem>>, vector<128x3xbf16>
    %cst_13 = arith.constant dense<0.000000e+00> : vector<8x3xf32>
    %23 = tpu.matmul %21, %22, %cst_13 {dimension_numbers = #tpu.dot_dimension_numbers<[1], [0], [0], [1], [0, 0, 1, 1], [], []>} : vector<8x128xbf16>, vector<128x3xbf16>, vector<8x3xf32> -> vector<8x3xf32>
    %c0_14 = arith.constant 0 : index
    %c0_15 = arith.constant 0 : index
    %24 = vector.load %arg6[%c0_14, %c0_15] : memref<8x3xf32, #tpu.memory_space<vmem>>, vector<8x3xf32>
    tpu.vector_store %arg6[%c0_14, %c0_15], %23 {strides = array<i32>} : memref<8x3xf32, #tpu.memory_space<vmem>>, vector<8x3xf32>,
    return
  }
  func.func @transform_0(%arg0: i32) -> (i32, i32) {
    %c0_i32 = arith.constant 0 : i32
    %c0_i32_0 = arith.constant 0 : i32
    return %arg0, %c0_i32 : i32, i32
  }
  func.func @transform_1(%arg0: i32) -> (i32, i32) {
    %c0_i32 = arith.constant 0 : i32
    %c0_i32_0 = arith.constant 0 : i32
    %c0_i32_1 = arith.constant 0 : i32
    return %c0_i32, %c0_i32_0 : i32, i32
  }
  func.func @transform_2(%arg0: i32) -> (i32, i32) {
    %c0_i32 = arith.constant 0 : i32
    %c0_i32_0 = arith.constant 0 : i32
    %c0_i32_1 = arith.constant 0 : i32
    return %c0_i32, %c0_i32_0 : i32, i32
  }
  func.func @transform_3(%arg0: i32) -> (i32, i32) {
    %c0_i32 = arith.constant 0 : i32
    %c0_i32_0 = arith.constant 0 : i32
    %c0_i32_1 = arith.constant 0 : i32
    return %c0_i32, %c0_i32_0 : i32, i32
  }
  func.func @transform_4(%arg0: i32) -> (i32, i32) {
    %c0_i32 = arith.constant 0 : i32
    %c0_i32_0 = arith.constant 0 : i32
    %c0_i32_1 = arith.constant 0 : i32
    return %c0_i32, %c0_i32_0 : i32, i32
  }
  func.func @transform_5(%arg0: i32) -> (i32, i32) {
    %c0_i32 = arith.constant 0 : i32
    %c0_i32_0 = arith.constant 0 : i32
    return %arg0, %c0_i32 : i32, i32
  }
}

module attributes {stable_mosaic.version = 11 : i64} {
  func.func @_gemm_stats_kernel(%arg0: i32, %arg1: memref<32x2048xbf16, #tpu.memory_space<vmem>>, %arg2: memref<2048x256xbf16, #tpu.memory_space<vmem>>, %arg3: memref<32x256xbf16, #tpu.memory_space<vmem>>, %arg4: memref<1x8x256xf32, #tpu.memory_space<vmem>>, %arg5: memref<1x8x256xf32, #tpu.memory_space<vmem>>) attributes {dimension_semantics = [#tpu.dimension_semantics<parallel>], iteration_bounds = array<i64: 1>, scalar_prefetch = 0 : i64, scratch_operands = 0 : i64, tpu.core_type = #tpu.core_type<tc>, window_params = [{transform_indices = @transform_0, window_bounds = array<i64: 32, 2048>}, {pipeline_mode = #tpu.pipeline_mode<synchronous>, transform_indices = @transform_1, window_bounds = array<i64: 2048, 256>}, {transform_indices = @transform_2, window_bounds = array<i64: 32, 256>}, {transform_indices = @transform_3, window_bounds = array<i64: 1, 8, 256>}, {transform_indices = @transform_4, window_bounds = array<i64: 1, 8, 256>}]} {
    %c0 = arith.constant 0 : index
    %c0_0 = arith.constant 0 : index
    %0 = vector.load %arg1[%c0, %c0_0] : memref<32x2048xbf16, #tpu.memory_space<vmem>>, vector<32x2048xbf16>
    %c0_1 = arith.constant 0 : index
    %c0_2 = arith.constant 0 : index
    %1 = vector.load %arg2[%c0_1, %c0_2] : memref<2048x256xbf16, #tpu.memory_space<vmem>>, vector<2048x256xbf16>
    %cst = arith.constant dense<0.000000e+00> : vector<32x256xf32>
    %2 = tpu.matmul %0, %1, %cst {dimension_numbers = #tpu.dot_dimension_numbers<[1], [0], [0], [1], [0, 0, 1, 1], [], []>} : vector<32x2048xbf16>, vector<2048x256xbf16>, vector<32x256xf32> -> vector<32x256xf32>
    %3 = arith.truncf %2 : vector<32x256xf32> to vector<32x256xbf16>
    %c0_3 = arith.constant 0 : index
    %c0_4 = arith.constant 0 : index
    %4 = vector.load %arg3[%c0_3, %c0_4] : memref<32x256xbf16, #tpu.memory_space<vmem>>, vector<32x256xbf16>
    tpu.vector_store %arg3[%c0_3, %c0_4], %3 {strides = array<i32>} : memref<32x256xbf16, #tpu.memory_space<vmem>>, vector<32x256xbf16>,
    %5 = arith.extf %3 : vector<32x256xbf16> to vector<32x256xf32>
    %cst_5 = arith.constant dense<0.000000e+00> : vector<256xf32>
    %6 = vector.multi_reduction <add>, %5, %cst_5 [0] : vector<32x256xf32> to vector<256xf32>
    %7 = vector.shape_cast %6 : vector<256xf32> to vector<1x256xf32>
    %8 = vector.shape_cast %7 : vector<1x256xf32> to vector<1x256xf32>
    %9 = vector.broadcast %8 : vector<1x256xf32> to vector<8x256xf32>
    %c0_6 = arith.constant 0 : index
    %c0_7 = arith.constant 0 : index
    %c0_8 = arith.constant 0 : index
    %10 = vector.load %arg4[%c0_6, %c0_7, %c0_8] : memref<1x8x256xf32, #tpu.memory_space<vmem>>, vector<1x8x256xf32>
    %11 = vector.shape_cast %10 : vector<1x8x256xf32> to vector<8x256xf32>
    %12 = vector.shape_cast %9 : vector<8x256xf32> to vector<1x8x256xf32>
    tpu.vector_store %arg4[%c0_6, %c0_7, %c0_8], %12 {strides = array<i32>} : memref<1x8x256xf32, #tpu.memory_space<vmem>>, vector<1x8x256xf32>,
    %13 = arith.mulf %5, %5 : vector<32x256xf32>
    %cst_9 = arith.constant dense<0.000000e+00> : vector<256xf32>
    %14 = vector.multi_reduction <add>, %13, %cst_9 [0] : vector<32x256xf32> to vector<256xf32>
    %15 = vector.shape_cast %14 : vector<256xf32> to vector<1x256xf32>
    %16 = vector.shape_cast %15 : vector<1x256xf32> to vector<1x256xf32>
    %17 = vector.broadcast %16 : vector<1x256xf32> to vector<8x256xf32>
    %c0_10 = arith.constant 0 : index
    %c0_11 = arith.constant 0 : index
    %c0_12 = arith.constant 0 : index
    %18 = vector.load %arg5[%c0_10, %c0_11, %c0_12] : memref<1x8x256xf32, #tpu.memory_space<vmem>>, vector<1x8x256xf32>
    %19 = vector.shape_cast %18 : vector<1x8x256xf32> to vector<8x256xf32>
    %20 = vector.shape_cast %17 : vector<8x256xf32> to vector<1x8x256xf32>
    tpu.vector_store %arg5[%c0_10, %c0_11, %c0_12], %20 {strides = array<i32>} : memref<1x8x256xf32, #tpu.memory_space<vmem>>, vector<1x8x256xf32>,
    return
  }
  func.func @transform_0(%arg0: i32) -> (i32, i32) {
    %c0_i32 = arith.constant 0 : i32
    %c0_i32_0 = arith.constant 0 : i32
    return %arg0, %c0_i32 : i32, i32
  }
  func.func @transform_1(%arg0: i32) -> (i32, i32) {
    %c0_i32 = arith.constant 0 : i32
    %c0_i32_0 = arith.constant 0 : i32
    %c0_i32_1 = arith.constant 0 : i32
    return %c0_i32, %c0_i32_0 : i32, i32
  }
  func.func @transform_2(%arg0: i32) -> (i32, i32) {
    %c0_i32 = arith.constant 0 : i32
    %c0_i32_0 = arith.constant 0 : i32
    return %arg0, %c0_i32 : i32, i32
  }
  func.func @transform_3(%arg0: i32) -> (i32, i32, i32) {
    %c0_i32 = arith.constant 0 : i32
    %c0_i32_0 = arith.constant 0 : i32
    %c0_i32_1 = arith.constant 0 : i32
    return %arg0, %c0_i32, %c0_i32_0 : i32, i32, i32
  }
  func.func @transform_4(%arg0: i32) -> (i32, i32, i32) {
    %c0_i32 = arith.constant 0 : i32
    %c0_i32_0 = arith.constant 0 : i32
    %c0_i32_1 = arith.constant 0 : i32
    return %arg0, %c0_i32, %c0_i32_0 : i32, i32, i32
  }
}

</mosaic_0001>

<bundles_post_ra>
// kernel: d_forward.5
= control target key start
LH: loop header
LB: loop body
LE: loop exit
PB: predicated region body
PF: predicated region fallthrough
CT: control target
= control target key end

     0   :  { %vm311_vm0 = vcmask 1045504   ;;  %vm214_vm1 = vcmask 97280   ;;  %vm2558_vm3 = vcmask 519168   ;;  %s4684_s1 = inlined_call_operand.vmem [shape: bf16[4,12,64], index: 1, kind: input, shape index: {}]   ;;  %s4685_s0 = inlined_call_operand.vmem [shape: f32[2,17,17,12], index: 0, kind: input, shape index: {}]   ;;  %s4686_s2 = inlined_call_operand.vmem [shape: bf16[512,64], index: 2, kind: output, shape index: {}]  }
   0x1   :  { %v3421_v0 = vld [vmem:[%s4684_s1 + $0x8] sm:$0x3f]   ;;  %v3422_v1 = vld [vmem:[%s4684_s1] sm:$0x3f]   ;;  %v14_v13 = vld [vmem:[%s4685_s0 + $0x18] sm:$0xff] }
   0x2   :  { %3417 = vmatprep.subr.msk.bf16.mxu0 %vm311_vm0, %v3421_v0  ;;  %v313_v2 = vsel %vm311_vm0, %v3421_v0, 0  ;;  %v110_v3 = vld [vmem:[%s4685_s0 + $0x1] sm:$0xff]  ;;  %v111_v4 = vld [vmem:[%s4685_s0 + $0x9] sm:$0xff]  ;;  %3418 = vmatprep.subr.msk.bf16.mxu1 %vm311_vm0, %v3422_v1  ;;  %v706_v6 = vsel %vm311_vm0, %v3422_v1, 0  ;;  %v112_v9 = vld [vmem:[%s4685_s0 + $0x19] sm:$0xff] }
   0x3   :  { %v12_v5 = vld [vmem:[%s4685_s0] sm:$0xff]  ;;  %3154 = vmatpush3.bf16.msra.mxu0 %v313_v2  ;;  %v174_v7 = vpack.c.bf16 %v111_v4, %v110_v3  ;;  %v13_v8 = vld [vmem:[%s4685_s0 + $0x8] sm:$0xff]  ;;  %3220 = vmatpush3.bf16.msra.mxu1 %v706_v6  ;;  %v3423_v16 = vld [vmem:[%s4684_s1 + $0x10] sm:$0x3f]  }
   0x4   :  { %v113_v10 = vld [vmem:[%s4685_s0 + $0x21] sm:$0xff]  ;;  %v76_v11 = vpack.c.bf16 %v13_v8, %v12_v5  ;;  %v3424_v17 = vld [vmem:[%s4684_s1 + $0x18] sm:$0x3f]   ;;  %3419 = vmatprep.subr.msk.bf16.mxu0 %vm311_vm0, %v3423_v16  ;;  %v1199_v19 = vsel %vm311_vm0, %v3423_v16, 0  ;;  %v16_v21 = vld [vmem:[%s4685_s0 + $0x30] sm:$0xff] }
   0x5   :  { %v3468_v12 = vpack.c.bf16 %v113_v10, %v112_v9  ;;  %v15_v14 = vld [vmem:[%s4685_s0 + $0x20] sm:$0xff]  ;;  %3155 = vmatprep.mubr.msk.bf16.mxu0 %vm214_vm1, %v174_v7  ;;  %v114_v18 = vld [vmem:[%s4685_s0 + $0x31] sm:$0xff]  ;;  %3420 = vmatprep.subr.msk.bf16.mxu1 %vm311_vm0, %v3424_v17  ;;  %v1755_v23 = vsel %vm311_vm0, %v3424_v17, 0  ;;  %v116_v26 = vld [vmem:[%s4685_s0 + $0x49] sm:$0xff] }
   0x6   :  { %v3477_v15 = vpack.c.bf16 %v15_v14, %v14_v13  ;;  %3221 = vmatprep.mubr.msk.bf16.mxu1 %vm214_vm1, %v76_v11  ;;  %v115_v20 = vld [vmem:[%s4685_s0 + $0x39] sm:$0xff]  ;;  %v117_v27 = vld [vmem:[%s4685_s0 + $0x51] sm:$0xff]  ;;  %v18_v28 = vld [vmem:[%s4685_s0 + $0x48] sm:$0xff] }
   0x7   :  { %3156 = vmatmul.mubr.msk.bf16.vlgmr.msra.gmra.mxu0 %vm214_vm1, %v3468_v12  ;;  %v17_v22 = vld [vmem:[%s4685_s0 + $0x38] sm:$0xff]  ;;  %v3506_v24 = vpack.c.bf16 %v115_v20, %v114_v18  ;;  %v19_v29 = vld [vmem:[%s4685_s0 + $0x50] sm:$0xff]  ;;  %v118_v30 = vld [vmem:[%s4685_s0 + $0x61] sm:$0xff]  ;;  %v3532_v32 = vpack.c.bf16 %v117_v27, %v116_v26 }
   0x8   :  { %3222 = vmatmul.mubr.msk.bf16.vlgmr.msra.gmra.mxu1 %vm214_vm1, %v3477_v15  ;;  %3286 = vmatpush3.bf16.msra.mxu0 %v1199_v19  ;;  %v3508_v25 = vpack.c.bf16 %v17_v22, %v16_v21  ;;  %v119_v31 = vld [vmem:[%s4685_s0 + $0x69] sm:$0xff]  ;;  %v20_v33 = vld [vmem:[%s4685_s0 + $0x60] sm:$0xff]  ;;  %v3540_v35 = vpack.c.bf16 %v19_v29, %v18_v28  ;;  %v22_v40 = vld [vmem:[%s4685_s0 + $0x78] sm:$0xff] }
   0x9   :  { %3352 = vmatpush3.bf16.msra.mxu1 %v1755_v23  ;;  %3159 = vmatprep.mubr.msk.bf16.mxu0 %vm214_vm1, %v3506_v24  ;;  %v21_v34 = vld [vmem:[%s4685_s0 + $0x68] sm:$0xff]  ;;  %v3542_v36 = vpack.c.bf16 %v119_v31, %v118_v30  ;;  %v120_v38 = vld [vmem:[%s4685_s0 + $0x79] sm:$0xff]  ;;  %v122_v42 = vld [vmem:[%s4685_s0 + $0x91] sm:$0xff] }
   0xa   :  { %3225 = vmatprep.mubr.msk.bf16.mxu1 %vm214_vm1, %v3508_v25  ;;  %v3544_v37 = vpack.c.bf16 %v21_v34, %v20_v33  ;;  %v121_v39 = vld [vmem:[%s4685_s0 + $0x81] sm:$0xff]  ;;  %v123_v43 = vld [vmem:[%s4685_s0 + $0x99] sm:$0xff]  ;;  %v24_v44 = vld [vmem:[%s4685_s0 + $0x90] sm:$0xff] }
   0xb   :  { %v23_v41 = vld [vmem:[%s4685_s0 + $0x80] sm:$0xff]  ;;  %v25_v45 = vld [vmem:[%s4685_s0 + $0x98] sm:$0xff]  ;;  %v3578_v46 = vpack.c.bf16 %v121_v39, %v120_v38  ;;  %v3582_v48 = vpack.c.bf16 %v123_v43, %v122_v42  ;;  %v124_v50 = vld [vmem:[%s4685_s0 + $0xa9] sm:$0xff] }
   0xc   :  { %v3580_v47 = vpack.c.bf16 %v23_v41, %v22_v40  ;;  %v3584_v49 = vpack.c.bf16 %v25_v45, %v24_v44  ;;  %v125_v51 = vld [vmem:[%s4685_s0 + $0xb1] sm:$0xff]  ;;  %v26_v52 = vld [vmem:[%s4685_s0 + $0xa8] sm:$0xff]  ;;  %v28_v56 = vld [vmem:[%s4685_s0 + $0xc0] sm:$0xff] }
   0xd   :  { %v27_v53 = vld [vmem:[%s4685_s0 + $0xb0] sm:$0xff]  ;;  %v126_v54 = vld [vmem:[%s4685_s0 + $0xc1] sm:$0xff]  ;;  %v3618_v58 = vpack.c.bf16 %v125_v51, %v124_v50  ;;  %v128_v62 = vld [vmem:[%s4685_s0 + $0xd9] sm:$0xff] }
   0xe   :  { %v127_v55 = vld [vmem:[%s4685_s0 + $0xc9] sm:$0xff]  ;;  %v3620_v59 = vpack.c.bf16 %v27_v53, %v26_v52  ;;  %v129_v63 = vld [vmem:[%s4685_s0 + $0xe1] sm:$0xff]  ;;  %v30_v0 = vld [vmem:[%s4685_s0 + $0xd8] sm:$0xff] }
   0xf   :  { %3160 = vmatmul.mubr.msk.bf16.gmra.mxu0 %vm214_vm1, %v3532_v32  ;;  %v29_v57 = vld [vmem:[%s4685_s0 + $0xc8] sm:$0xff]  ;;  %v3622_v60 = vpack.c.bf16 %v127_v55, %v126_v54  ;;  %v31_v1 = vld [vmem:[%s4685_s0 + $0xe0] sm:$0xff]  ;;  %v130_v2 = vld [vmem:[%s4685_s0 + $0xf1] sm:$0xff]  ;;  %v3658_v6 = vpack.c.bf16 %v129_v63, %v128_v62 }
  0x10   :  { %3226 = vmatmul.mubr.msk.bf16.gmra.mxu1 %vm214_vm1, %v3540_v35  ;;  %3163 = vmatprep.mubr.msk.bf16.mxu0 %vm214_vm1, %v3542_v36  ;;  %v3624_v61 = vpack.c.bf16 %v29_v57, %v28_v56  ;;  %v131_v3 = vld [vmem:[%s4685_s0 + $0xf9] sm:$0xff]  ;;  %v32_v4 = vld [vmem:[%s4685_s0 + $0xf0] sm:$0xff]  ;;  %v3660_v7 = vpack.c.bf16 %v31_v1, %v30_v0  ;;  %v34_v13 = vld [vmem:[%s4685_s0 + $0x108] sm:$0xff] }
  0x11   :  { %3229 = vmatprep.mubr.msk.bf16.mxu1 %vm214_vm1, %v3544_v37  ;;  %v33_v5 = vld [vmem:[%s4685_s0 + $0xf8] sm:$0xff]  ;;  %v3662_v8 = vpack.c.bf16 %v131_v3, %v130_v2  ;;  %v132_v10 = vld [vmem:[%s4685_s0 + $0x109] sm:$0xff]  ;;  %v134_v16 = vld [vmem:[%s4685_s0 + $0x121] sm:$0xff] }
  0x12   :  { %v3664_v9 = vpack.c.bf16 %v33_v5, %v32_v4  ;;  %v133_v11 = vld [vmem:[%s4685_s0 + $0x111] sm:$0xff]  ;;  %v135_v17 = vld [vmem:[%s4685_s0 + $0x129] sm:$0xff]  ;;  %v36_v18 = vld [vmem:[%s4685_s0 + $0x120] sm:$0xff] }
  0x13   :  { %v35_v14 = vld [vmem:[%s4685_s0 + $0x110] sm:$0xff]  ;;  %v37_v19 = vld [vmem:[%s4685_s0 + $0x128] sm:$0xff]  ;;  %v3698_v20 = vpack.c.bf16 %v133_v11, %v132_v10  ;;  %v3702_v22 = vpack.c.bf16 %v135_v17, %v134_v16  ;;  %v136_v26 = vld [vmem:[%s4685_s0 + $0x139] sm:$0xff] }
  0x14   :  { %v3700_v21 = vpack.c.bf16 %v35_v14, %v34_v13  ;;  %v3704_v23 = vpack.c.bf16 %v37_v19, %v36_v18  ;;  %v137_v27 = vld [vmem:[%s4685_s0 + $0x141] sm:$0xff]  ;;  %v38_v28 = vld [vmem:[%s4685_s0 + $0x138] sm:$0xff]  ;;  %v40_v33 = vld [vmem:[%s4685_s0 + $0x150] sm:$0xff] }
  0x15   :  { %v39_v29 = vld [vmem:[%s4685_s0 + $0x140] sm:$0xff]  ;;  %v138_v30 = vld [vmem:[%s4685_s0 + $0x151] sm:$0xff]  ;;  %v3738_v38 = vpack.c.bf16 %v137_v27, %v136_v26  ;;  %v140_v42 = vld [vmem:[%s4685_s0 + $0x169] sm:$0xff] }
  0x16   :  { %v139_v31 = vld [vmem:[%s4685_s0 + $0x159] sm:$0xff]  ;;  %v3740_v39 = vpack.c.bf16 %v39_v29, %v38_v28  ;;  %v141_v43 = vld [vmem:[%s4685_s0 + $0x171] sm:$0xff]  ;;  %v42_v44 = vld [vmem:[%s4685_s0 + $0x168] sm:$0xff] }
  0x17   :  { %3164 = vmatmul.mubr.msk.bf16.gmra.mxu0 %vm214_vm1, %v3578_v46  ;;  %v41_v34 = vld [vmem:[%s4685_s0 + $0x158] sm:$0xff]  ;;  %v3742_v40 = vpack.c.bf16 %v139_v31, %v138_v30  ;;  %v43_v45 = vld [vmem:[%s4685_s0 + $0x170] sm:$0xff]  ;;  %v143_v51 = vld [vmem:[%s4685_s0 + $0x1a1] sm:$0xff]  ;;  %v3778_v54 = vpack.c.bf16 %v141_v43, %v140_v42 }
  0x18   :  { %3230 = vmatmul.mubr.msk.bf16.gmra.mxu1 %vm214_vm1, %v3580_v47  ;;  %3167 = vmatprep.mubr.msk.bf16.mxu0 %vm214_vm1, %v3582_v48  ;;  %v3744_v41 = vpack.c.bf16 %v41_v34, %v40_v33  ;;  %v142_v50 = vld [vmem:[%s4685_s0 + $0x199] sm:$0xff]  ;;  %v3780_v55 = vpack.c.bf16 %v43_v45, %v42_v44  ;;  %v144_v62 = vld [vmem:[%s4685_s0 + $0x1b1] sm:$0xff]  ;;  %v146_v2 = vld [vmem:[%s4685_s0 + $0x1c9] sm:$0xff] }
  0x19   :  { %3233 = vmatprep.mubr.msk.bf16.mxu1 %vm214_vm1, %v3584_v49  ;;  %v44_v52 = vld [vmem:[%s4685_s0 + $0x198] sm:$0xff]  ;;  %v45_v53 = vld [vmem:[%s4685_s0 + $0x1a0] sm:$0xff]  ;;  %v190_v56 = vpack.c.bf16 %v143_v51, %v142_v50  ;;  %v46_v0 = vld [vmem:[%s4685_s0 + $0x1b0] sm:$0xff] }
  0x1a   :  { %v92_v57 = vpack.c.bf16 %v45_v53, %v44_v52  ;;  %v145_v63 = vld [vmem:[%s4685_s0 + $0x1b9] sm:$0xff]  ;;  %v147_v3 = vld [vmem:[%s4685_s0 + $0x1d1] sm:$0xff]  ;;  %v48_v4 = vld [vmem:[%s4685_s0 + $0x1c8] sm:$0xff] }
  0x1b   :  { %v47_v1 = vld [vmem:[%s4685_s0 + $0x1b8] sm:$0xff]  ;;  %v49_v5 = vld [vmem:[%s4685_s0 + $0x1d0] sm:$0xff]  ;;  %v3812_v10 = vpack.c.bf16 %v145_v63, %v144_v62  ;;  %v3816_v13 = vpack.c.bf16 %v147_v3, %v146_v2  ;;  %v148_v16 = vld [vmem:[%s4685_s0 + $0x1e1] sm:$0xff] }
  0x1c   :  { %v3814_v11 = vpack.c.bf16 %v47_v1, %v46_v0  ;;  %v3818_v14 = vpack.c.bf16 %v49_v5, %v48_v4  ;;  %v149_v17 = vld [vmem:[%s4685_s0 + $0x1e9] sm:$0xff]  ;;  %v50_v18 = vld [vmem:[%s4685_s0 + $0x1e0] sm:$0xff]  ;;  %v52_v28 = vld [vmem:[%s4685_s0 + $0x1f8] sm:$0xff] }
  0x1d   :  { %v51_v19 = vld [vmem:[%s4685_s0 + $0x1e8] sm:$0xff]  ;;  %v150_v26 = vld [vmem:[%s4685_s0 + $0x1f9] sm:$0xff]  ;;  %v3852_v30 = vpack.c.bf16 %v149_v17, %v148_v16  ;;  %v152_v42 = vld [vmem:[%s4685_s0 + $0x211] sm:$0xff] }
  0x1e   :  { %v151_v27 = vld [vmem:[%s4685_s0 + $0x201] sm:$0xff]  ;;  %v3854_v31 = vpack.c.bf16 %v51_v19, %v50_v18  ;;  %v153_v43 = vld [vmem:[%s4685_s0 + $0x219] sm:$0xff]  ;;  %v54_v44 = vld [vmem:[%s4685_s0 + $0x210] sm:$0xff] }
  0x1f   :  { %3168 = vmatmul.mubr.msk.bf16.gmra.mxu0 %vm214_vm1, %v3618_v58  ;;  %v53_v29 = vld [vmem:[%s4685_s0 + $0x200] sm:$0xff]  ;;  %v3856_v33 = vpack.c.bf16 %v151_v27, %v150_v26  ;;  %v55_v45 = vld [vmem:[%s4685_s0 + $0x218] sm:$0xff]  ;;  %v154_v50 = vld [vmem:[%s4685_s0 + $0x229] sm:$0xff] }
  0x20   :  { %3234 = vmatmul.mubr.msk.bf16.gmra.mxu1 %vm214_vm1, %v3620_v59  ;;  %3171 = vmatprep.mubr.msk.bf16.mxu0 %vm214_vm1, %v3622_v60  ;;  %v3858_v34 = vpack.c.bf16 %v53_v29, %v52_v28  ;;  %v155_v51 = vld [vmem:[%s4685_s0 + $0x231] sm:$0xff]  ;;  %v56_v52 = vld [vmem:[%s4685_s0 + $0x228] sm:$0xff]  ;;  %v58_v2 = vld [vmem:[%s4685_s0 + $0x240] sm:$0xff] }
  0x21   :  { %3237 = vmatprep.mubr.msk.bf16.mxu1 %vm214_vm1, %v3624_v61  ;;  %v57_v53 = vld [vmem:[%s4685_s0 + $0x230] sm:$0xff]  ;;  %v3896_v62 = vpack.c.bf16 %v155_v51, %v154_v50  ;;  %v156_v0 = vld [vmem:[%s4685_s0 + $0x241] sm:$0xff]  ;;  %v158_v4 = vld [vmem:[%s4685_s0 + $0x259] sm:$0xff] }
  0x22   :  { %v3898_v63 = vpack.c.bf16 %v57_v53, %v56_v52  ;;  %v157_v1 = vld [vmem:[%s4685_s0 + $0x249] sm:$0xff]  ;;  %v159_v5 = vld [vmem:[%s4685_s0 + $0x261] sm:$0xff]  ;;  %v60_v16 = vld [vmem:[%s4685_s0 + $0x258] sm:$0xff] }
  0x23   :  { %v59_v3 = vld [vmem:[%s4685_s0 + $0x248] sm:$0xff]  ;;  %v61_v17 = vld [vmem:[%s4685_s0 + $0x260] sm:$0xff]  ;;  %v3932_v18 = vpack.c.bf16 %v157_v1, %v156_v0  ;;  %v3936_v26 = vpack.c.bf16 %v159_v5, %v158_v4  ;;  %v160_v28 = vld [vmem:[%s4685_s0 + $0x271] sm:$0xff] }
  0x24   :  { %v3934_v19 = vpack.c.bf16 %v59_v3, %v58_v2  ;;  %v3938_v27 = vpack.c.bf16 %v61_v17, %v60_v16  ;;  %v161_v29 = vld [vmem:[%s4685_s0 + $0x279] sm:$0xff]  ;;  %v64_v50 = vld [vmem:[%s4685_s0 + $0x288] sm:$0xff]  ;;  %v65_v51 = vld [vmem:[%s4685_s0 + $0x290] sm:$0xff] }
  0x25   :  { %v3972_v52 = vpack.c.bf16 %v161_v29, %v160_v28  ;;  %v3978_v1 = vpack.c.bf16 %v65_v51, %v64_v50  ;;  %v164_v2 = vld [vmem:[%s4685_s0 + $0x2a1] sm:$0xff]  ;;  %v165_v3 = vld [vmem:[%s4685_s0 + $0x2a9] sm:$0xff]  ;;  %v166_v16 = vld [vmem:[%s4685_s0 + $0x2b9] sm:$0xff] }
  0x26   :  { %v66_v4 = vld [vmem:[%s4685_s0 + $0x2a0] sm:$0xff]  ;;  %v67_v5 = vld [vmem:[%s4685_s0 + $0x2a8] sm:$0xff]  ;;  %v68_v28 = vld [vmem:[%s4685_s0 + $0x2b8] sm:$0xff] }
  0x27   :  { %3172 = vmatmul.mubr.msk.bf16.gmra.mxu0 %vm214_vm1, %v3658_v6  ;;  %v167_v17 = vld [vmem:[%s4685_s0 + $0x2c1] sm:$0xff]  ;;  %v168_v50 = vld [vmem:[%s4685_s0 + $0x2d1] sm:$0xff]  ;;  %v169_v51 = vld [vmem:[%s4685_s0 + $0x2d9] sm:$0xff] }
  0x28   :  { %3238 = vmatmul.mubr.msk.bf16.gmra.mxu1 %vm214_vm1, %v3660_v7  ;;  %3175 = vmatprep.mubr.msk.bf16.mxu0 %vm214_vm1, %v3662_v8  ;;  %v69_v29 = vld [vmem:[%s4685_s0 + $0x2c0] sm:$0xff] }
  0x29   :  { %3241 = vmatprep.mubr.msk.bf16.mxu1 %vm214_vm1, %v3664_v9 }
  0x2f   :  { %3176 = vmatmul.mubr.msk.bf16.gmra.mxu0 %vm214_vm1, %v3698_v20 }
  0x30   :  { %3242 = vmatmul.mubr.msk.bf16.gmra.mxu1 %vm214_vm1, %v3700_v21  ;;  %3179 = vmatprep.mubr.msk.bf16.mxu0 %vm214_vm1, %v3702_v22 }
  0x31   :  { %3245 = vmatprep.mubr.msk.bf16.mxu1 %vm214_vm1, %v3704_v23 }
  0x37   :  { %3180 = vmatmul.mubr.msk.bf16.gmra.mxu0 %vm214_vm1, %v3738_v38 }
  0x38   :  { %3246 = vmatmul.mubr.msk.bf16.gmra.mxu1 %vm214_vm1, %v3740_v39  ;;  %3183 = vmatprep.mubr.msk.bf16.mxu0 %vm214_vm1, %v3742_v40 }
  0x39   :  { %3249 = vmatprep.mubr.msk.bf16.mxu1 %vm214_vm1, %v3744_v41 }
  0x3f   :  { %3184 = vmatmul.mubr.msk.bf16.gmra.mxu0 %vm214_vm1, %v3778_v54 }
  0x40   :  { %3250 = vmatmul.mubr.msk.bf16.gmra.mxu1 %vm214_vm1, %v3780_v55  ;;  %3187 = vmatprep.mubr.msk.bf16.mxu0 %vm214_vm1, %v190_v56  ;;  %v3892_v56 = vpack.c.bf16 %v153_v43, %v152_v42  ;;  %v62_v42 = vld [vmem:[%s4685_s0 + $0x270] sm:$0xff]  ;;  %v63_v43 = vld [vmem:[%s4685_s0 + $0x278] sm:$0xff] }
  0x41   :  { %3253 = vmatprep.mubr.msk.bf16.mxu1 %vm214_vm1, %v92_v57  ;;  %v3894_v57 = vpack.c.bf16 %v55_v45, %v54_v44  ;;  %v162_v44 = vld [vmem:[%s4685_s0 + $0x289] sm:$0xff]  ;;  %v163_v45 = vld [vmem:[%s4685_s0 + $0x291] sm:$0xff]  ;;  %v3974_v53 = vpack.c.bf16 %v63_v43, %v62_v42  ;;  %v4012_v42 = vpack.c.bf16 %v165_v3, %v164_v2  ;;  %v4014_v43 = vpack.c.bf16 %v67_v5, %v66_v4 }
  0x42   :  { %v3976_v0 = vpack.c.bf16 %v163_v45, %v162_v44  ;;  %v4016_v44 = vpack.c.bf16 %v167_v17, %v166_v16  ;;  %v4018_v45 = vpack.c.bf16 %v69_v29, %v68_v28  ;;  %v70_v2 = vld [vmem:[%s4685_s0 + $0x2d0] sm:$0xff]  ;;  %v71_v3 = vld [vmem:[%s4685_s0 + $0x2d8] sm:$0xff]  ;;  %v72_v16 = vld [vmem:[%s4685_s0 + $0x2e8] sm:$0xff]  ;;  %v4052_v28 = vpack.c.bf16 %v169_v51, %v168_v50 }
  0x43   :  { %v170_v4 = vld [vmem:[%s4685_s0 + $0x2e9] sm:$0xff]  ;;  %v171_v5 = vld [vmem:[%s4685_s0 + $0x2f1] sm:$0xff]  ;;  %v4054_v29 = vpack.c.bf16 %v71_v3, %v70_v2  ;;  %v172_v50 = vld [vmem:[%s4685_s0 + $0x301] sm:$0xff] }
  0x44   :  { %4689 = vst [vmem:[#allocation2_spill] sm:$0xff] %v4016_v44  ;;  %4690 = vst [vmem:[#allocation3_spill] sm:$0xff] %v4018_v45  ;;  %v73_v17 = vld [vmem:[%s4685_s0 + $0x2f0] sm:$0xff]  ;;  %v74_v2 = vld [vmem:[%s4685_s0 + $0x300] sm:$0xff] }
  0x45   :  { %v173_v51 = vld [vmem:[%s4685_s0 + $0x309] sm:$0xff] }
  0x46   :  { %v75_v3 = vld [vmem:[%s4685_s0 + $0x308] sm:$0xff] }
  0x47   :  { %3188 = vmatmul.mubr.msk.bf16.gmra.mxu0 %vm214_vm1, %v3812_v10 }
  0x48   :  { %3254 = vmatmul.mubr.msk.bf16.gmra.mxu1 %vm214_vm1, %v3814_v11  ;;  %3191 = vmatprep.mubr.msk.bf16.mxu0 %vm214_vm1, %v3816_v13 }
  0x49   :  { %3257 = vmatprep.mubr.msk.bf16.mxu1 %vm214_vm1, %v3818_v14 }
  0x4f   :  { %3192 = vmatmul.mubr.msk.bf16.gmra.mxu0 %vm214_vm1, %v3852_v30 }
  0x50   :  { %3258 = vmatmul.mubr.msk.bf16.gmra.mxu1 %vm214_vm1, %v3854_v31  ;;  %3195 = vmatprep.mubr.msk.bf16.mxu0 %vm214_vm1, %v3856_v33 }
  0x51   :  { %3261 = vmatprep.mubr.msk.bf16.mxu1 %vm214_vm1, %v3858_v34 }
  0x57   :  { %3196 = vmatmul.mubr.msk.bf16.gmra.mxu0 %vm214_vm1, %v3892_v56 }
  0x58   :  { %3262 = vmatmul.mubr.msk.bf16.gmra.mxu1 %vm214_vm1, %v3894_v57  ;;  %3199 = vmatprep.mubr.msk.bf16.mxu0 %vm214_vm1, %v3896_v62 }
  0x59   :  { %3265 = vmatprep.mubr.msk.bf16.mxu1 %vm214_vm1, %v3898_v63 }
  0x5f   :  { %3200 = vmatmul.mubr.msk.bf16.gmra.mxu0 %vm214_vm1, %v3932_v18 }
  0x60   :  { %3266 = vmatmul.mubr.msk.bf16.gmra.mxu1 %vm214_vm1, %v3934_v19  ;;  %3203 = vmatprep.mubr.msk.bf16.mxu0 %vm214_vm1, %v3936_v26 }
  0x61   :  { %3269 = vmatprep.mubr.msk.bf16.mxu1 %vm214_vm1, %v3938_v27 }
  0x67   :  { %3204 = vmatmul.mubr.msk.bf16.gmra.mxu0 %vm214_vm1, %v3972_v52 }
  0x68   :  { %3270 = vmatmul.mubr.msk.bf16.gmra.mxu1 %vm214_vm1, %v3974_v53  ;;  %3207 = vmatprep.mubr.msk.bf16.mxu0 %vm214_vm1, %v3976_v0 }
  0x69   :  { %3273 = vmatprep.mubr.msk.bf16.mxu1 %vm214_vm1, %v3978_v1 }
  0x6f   :  { %3208 = vmatmul.mubr.msk.bf16.gmra.mxu0 %vm214_vm1, %v4012_v42 }
  0x70   :  { %3274 = vmatmul.mubr.msk.bf16.gmra.mxu1 %vm214_vm1, %v4014_v43  ;;  %3211 = vmatprep.mubr.msk.bf16.mxu0 %vm214_vm1, %v4016_v44  ;;  %v4056_v44 = vpack.c.bf16 %v171_v5, %v170_v4  ;;  %v4080_v4 = vpack.c.bf16 %v173_v51, %v172_v50  ;;  %v4082_v5 = vpack.c.bf16 %v75_v3, %v74_v2 }
  0x71   :  { %3277 = vmatprep.mubr.msk.bf16.mxu1 %vm214_vm1, %v4018_v45  ;;  %v4058_v45 = vpack.c.bf16 %v73_v17, %v72_v16 }
  0x77   :  { %3212 = vmatmul.mubr.msk.bf16.gmra.mxu0 %vm214_vm1, %v4052_v28 }
  0x78   :  { %3278 = vmatmul.mubr.msk.bf16.gmra.mxu1 %vm214_vm1, %v4054_v29  ;;  %3215 = vmatprep.mubr.msk.bf16.mxu0 %vm214_vm1, %v4056_v44 }
  0x79   :  { %3281 = vmatprep.mubr.msk.bf16.mxu1 %vm214_vm1, %v4058_v45 }
  0x7f   :  { %3216 = vmatmul.mubr.msk.bf16.gmra.mxu0 %vm214_vm1, %v4080_v4 }
  0x80   :  { %3282 = vmatmul.mubr.msk.bf16.gmra.mxu1 %vm214_vm1, %v4082_v5  ;;  %3287 = vmatprep.mubr.msk.bf16.mxu0 %vm214_vm1, %v3477_v15  ;;  %v2726_v15 = vld [vmem:[%s4685_s0 + $0x188] sm:$0xff] }
  0x81   :  { %3353 = vmatprep.mubr.msk.bf16.mxu1 %vm214_vm1, %v3468_v12  ;;  %v2725_v12 = vld [vmem:[%s4685_s0 + $0x180] sm:$0xff] }
  0x87   :  { %3288 = vmatmul.mubr.msk.bf16.vlgmr.msra.gmra.mxu0 %vm214_vm1, %v3508_v25  ;;  %v2825_v25 = vld [vmem:[%s4685_s0 + $0x189] sm:$0xff] }
  0x88   :  { %3354 = vmatmul.mubr.msk.bf16.vlgmr.msra.gmra.mxu1 %vm214_vm1, %v3506_v24  ;;  %3291 = vmatprep.mubr.msk.bf16.mxu0 %vm214_vm1, %v3540_v35  ;;  %v2824_v24 = vld [vmem:[%s4685_s0 + $0x181] sm:$0xff] }
  0x89   :  { %3357 = vmatprep.mubr.msk.bf16.mxu1 %vm214_vm1, %v3532_v32  ;;  %v1077_v32 = vpack.c.bf16 %v2726_v15, %v2725_v12  ;;  %v1633_v35 = vpack.c.bf16 %v2825_v25, %v2824_v24 }
  0x8f   :  { %3292 = vmatmul.mubr.msk.bf16.gmra.mxu0 %vm214_vm1, %v3544_v37 }
  0x90   :  { %3358 = vmatmul.mubr.msk.bf16.gmra.mxu1 %vm214_vm1, %v3542_v36  ;;  %3295 = vmatprep.mubr.msk.bf16.mxu0 %vm214_vm1, %v3580_v47 }
  0x91   :  { %3361 = vmatprep.mubr.msk.bf16.mxu1 %vm214_vm1, %v3578_v46 }
  0x97   :  { %3296 = vmatmul.mubr.msk.bf16.gmra.mxu0 %vm214_vm1, %v3584_v49 }
  0x98   :  { %3362 = vmatmul.mubr.msk.bf16.gmra.mxu1 %vm214_vm1, %v3582_v48  ;;  %3299 = vmatprep.mubr.msk.bf16.mxu0 %vm214_vm1, %v3620_v59 }
  0x99   :  { %3365 = vmatprep.mubr.msk.bf16.mxu1 %vm214_vm1, %v3618_v58 }
  0x9f   :  { %3300 = vmatmul.mubr.msk.bf16.gmra.mxu0 %vm214_vm1, %v3624_v61 }
  0xa0   :  { %3366 = vmatmul.mubr.msk.bf16.gmra.mxu1 %vm214_vm1, %v3622_v60  ;;  %3303 = vmatprep.mubr.msk.bf16.mxu0 %vm214_vm1, %v3660_v7 }
  0xa1   :  { %3369 = vmatprep.mubr.msk.bf16.mxu1 %vm214_vm1, %v3658_v6 }
  0xa7   :  { %3304 = vmatmul.mubr.msk.bf16.gmra.mxu0 %vm214_vm1, %v3664_v9 }
  0xa8   :  { %3370 = vmatmul.mubr.msk.bf16.gmra.mxu1 %vm214_vm1, %v3662_v8  ;;  %3307 = vmatprep.mubr.msk.bf16.mxu0 %vm214_vm1, %v3700_v21 }
  0xa9   :  { %3373 = vmatprep.mubr.msk.bf16.mxu1 %vm214_vm1, %v3698_v20 }
  0xaf   :  { %3308 = vmatmul.mubr.msk.bf16.gmra.mxu0 %vm214_vm1, %v3704_v23 }
  0xb0   :  { %3374 = vmatmul.mubr.msk.bf16.gmra.mxu1 %vm214_vm1, %v3702_v22  ;;  %3311 = vmatprep.mubr.msk.bf16.mxu0 %vm214_vm1, %v3740_v39 }
  0xb1   :  { %3377 = vmatprep.mubr.msk.bf16.mxu1 %vm214_vm1, %v3738_v38 }
  0xb7   :  { %3312 = vmatmul.mubr.msk.bf16.gmra.mxu0 %vm214_vm1, %v3744_v41 }
  0xb8   :  { %3378 = vmatmul.mubr.msk.bf16.gmra.mxu1 %vm214_vm1, %v3742_v40  ;;  %3315 = vmatprep.mubr.msk.bf16.mxu0 %vm214_vm1, %v3780_v55 }
  0xb9   :  { %3381 = vmatprep.mubr.msk.bf16.mxu1 %vm214_vm1, %v3778_v54 }
  0xbf   :  { %3316 = vmatmul.mubr.msk.bf16.gmra.mxu0 %vm214_vm1, %v1077_v32 }
  0xc0   :  { %3382 = vmatmul.mubr.msk.bf16.gmra.mxu1 %vm214_vm1, %v1633_v35  ;;  %3319 = vmatprep.mubr.msk.bf16.mxu0 %vm214_vm1, %v3814_v11 }
  0xc1   :  { %3385 = vmatprep.mubr.msk.bf16.mxu1 %vm214_vm1, %v3812_v10 }
  0xc7   :  { %v3157_v36 = vpop.f32.mrf.mxu0  ;;  %3320 = vmatmul.mubr.msk.bf16.gmra.mxu0 %vm214_vm1, %v3818_v14 }
  0xc8   :  { %v3223_v37 = vpop.f32.mrf.mxu1  ;;  %3386 = vmatmul.mubr.msk.bf16.gmra.mxu1 %vm214_vm1, %v3816_v13  ;;  %3323 = vmatprep.mubr.msk.bf16.mxu0 %vm214_vm1, %v3854_v31 }
  0xc9   :  { %v4172_v46 = vadd.f32 %v3223_v37, %v3157_v36  ;;  %v349_v47 = vpop.f32.mrf.mxu0  ;;  %3389 = vmatprep.mubr.msk.bf16.mxu1 %vm214_vm1, %v3852_v30 }
  0xca   :  { %v742_v48 = vpop.f32.mrf.mxu1 }
  0xcb   :  { %v4176_v49 = vadd.f32 %v742_v48, %v349_v47  ;;  %v3158_v58 = vpop.f32.mrf.mxu0 }
  0xcc   :  { %v3224_v59 = vpop.f32.mrf.mxu1 }
  0xcd   :  { %v4178_v60 = vadd.f32 %v3224_v59, %v3158_v58  ;;  %v352_v61 = vpop.f32.mrf.mxu0  ;;  %v4691_v59 = vld [vmem:[#allocation3_spill] sm:$0xff] }
  0xce   :  { %v745_v6 = vpop.f32.mrf.mxu1 }
  0xcf   :  { %v4180_v7 = vadd.f32 %v745_v6, %v352_v61  ;;  %v3161_v8 = vpop.f32.mrf.mxu0  ;;  %3324 = vmatmul.mubr.msk.bf16.gmra.mxu0 %vm214_vm1, %v3858_v34  ;;  %v4692_v61 = vld [vmem:[#allocation2_spill] sm:$0xff] }
  0xd0   :  { %v3227_v9 = vpop.f32.mrf.mxu1  ;;  %3390 = vmatmul.mubr.msk.bf16.gmra.mxu1 %vm214_vm1, %v3856_v33  ;;  %3327 = vmatprep.mubr.msk.bf16.mxu0 %vm214_vm1, %v3894_v57 }
  0xd1   :  { %v4188_v20 = vadd.f32 %v3227_v9, %v3161_v8  ;;  %v365_v21 = vpop.f32.mrf.mxu0  ;;  %3393 = vmatprep.mubr.msk.bf16.mxu1 %vm214_vm1, %v3892_v56 }
  0xd2   :  { %v758_v22 = vpop.f32.mrf.mxu1 }
  0xd3   :  { %v4192_v23 = vadd.f32 %v758_v22, %v365_v21  ;;  %v3162_v38 = vpop.f32.mrf.mxu0 }
  0xd4   :  { %v3228_v39 = vpop.f32.mrf.mxu1 }
  0xd5   :  { %v4194_v40 = vadd.f32 %v3228_v39, %v3162_v38  ;;  %v368_v41 = vpop.f32.mrf.mxu0 }
  0xd6   :  { %v761_v54 = vpop.f32.mrf.mxu1 }
  0xd7   :  { %v4196_v55 = vadd.f32 %v761_v54, %v368_v41  ;;  %v3165_v10 = vpop.f32.mrf.mxu0  ;;  %3328 = vmatmul.mubr.msk.bf16.gmra.mxu0 %vm214_vm1, %v3898_v63 }
  0xd8   :  { %v3231_v11 = vpop.f32.mrf.mxu1  ;;  %3394 = vmatmul.mubr.msk.bf16.gmra.mxu1 %vm214_vm1, %v3896_v62  ;;  %3331 = vmatprep.mubr.msk.bf16.mxu0 %vm214_vm1, %v3934_v19 }
  0xd9   :  { %v4204_v13 = vadd.f32 %v3231_v11, %v3165_v10  ;;  %v381_v14 = vpop.f32.mrf.mxu0  ;;  %3397 = vmatprep.mubr.msk.bf16.mxu1 %vm214_vm1, %v3932_v18  ;;  %v2758_v11 = vld [vmem:[%s4685_s0 + $0x320] sm:$0xff] }
  0xda   :  { %v774_v30 = vpop.f32.mrf.mxu1 }
  0xdb   :  { %v4208_v31 = vadd.f32 %v774_v30, %v381_v14  ;;  %v3166_v33 = vpop.f32.mrf.mxu0 }
  0xdc   :  { %v3232_v34 = vpop.f32.mrf.mxu1 }
  0xdd   :  { %v4210_v56 = vadd.f32 %v3232_v34, %v3166_v33  ;;  %v384_v57 = vpop.f32.mrf.mxu0 }
  0xde   :  { %v777_v63 = vpop.f32.mrf.mxu1 }
  0xdf   :  { %v4212_v16 = vadd.f32 %v777_v63, %v384_v57  ;;  %v3169_v62 = vpop.f32.mrf.mxu0  ;;  %3332 = vmatmul.mubr.msk.bf16.gmra.mxu0 %vm214_vm1, %v3938_v27 }
  0xe0   :  { %v3235_v19 = vpop.f32.mrf.mxu1  ;;  %3398 = vmatmul.mubr.msk.bf16.gmra.mxu1 %vm214_vm1, %v3936_v26  ;;  %3335 = vmatprep.mubr.msk.bf16.mxu0 %vm214_vm1, %v3974_v53 }
  0xe1   :  { %v4220_v18 = vadd.f32 %v3235_v19, %v3169_v62  ;;  %v397_v17 = vpop.f32.mrf.mxu0  ;;  %3401 = vmatprep.mubr.msk.bf16.mxu1 %vm214_vm1, %v3972_v52 }
  0xe2   :  { %v790_v50 = vpop.f32.mrf.mxu1 }
  0xe3   :  { %v4224_v51 = vadd.f32 %v790_v50, %v397_v17  ;;  %v3170_v2 = vpop.f32.mrf.mxu0 }
  0xe4   :  { %v3236_v3 = vpop.f32.mrf.mxu1 }
  0xe5   :  { %v4226_v12 = vadd.f32 %v3236_v3, %v3170_v2  ;;  %v400_v27 = vpop.f32.mrf.mxu0 }
  0xe6   :  { %v793_v15 = vpop.f32.mrf.mxu1 }
  0xe7   :  { %v4228_v24 = vadd.f32 %v793_v15, %v400_v27  ;;  %v3173_v26 = vpop.f32.mrf.mxu0  ;;  %3336 = vmatmul.mubr.msk.bf16.gmra.mxu0 %vm214_vm1, %v3978_v1 }
  0xe8   :  { %v3239_v53 = vpop.f32.mrf.mxu1  ;;  %3402 = vmatmul.mubr.msk.bf16.gmra.mxu1 %vm214_vm1, %v3976_v0  ;;  %3339 = vmatprep.mubr.msk.bf16.mxu0 %vm214_vm1, %v4014_v43 }
  0xe9   :  { %v4236_v52 = vadd.f32 %v3239_v53, %v3173_v26  ;;  %v413_v25 = vpop.f32.mrf.mxu0  ;;  %3405 = vmatprep.mubr.msk.bf16.mxu1 %vm214_vm1, %v4012_v42 }
  0xea   :  { %v806_v32 = vpop.f32.mrf.mxu1 }
  0xeb   :  { %v4240_v35 = vadd.f32 %v806_v32, %v413_v25  ;;  %v3174_v36 = vpop.f32.mrf.mxu0 }
  0xec   :  { %v3240_v37 = vpop.f32.mrf.mxu1 }
  0xed   :  { %v4242_v47 = vadd.f32 %v3240_v37, %v3174_v36  ;;  %v416_v1 = vpop.f32.mrf.mxu0 }
  0xee   :  { %v809_v48 = vpop.f32.mrf.mxu1 }
  0xef   :  { %v4244_v58 = vadd.f32 %v809_v48, %v416_v1  ;;  %v3177_v0 = vpop.f32.mrf.mxu0  ;;  %3340 = vmatmul.mubr.msk.bf16.gmra.mxu0 %vm214_vm1, %v4691_v59 }
  0xf0   :  { %v3243_v43 = vpop.f32.mrf.mxu1  ;;  %3406 = vmatmul.mubr.msk.bf16.gmra.mxu1 %vm214_vm1, %v4692_v61  ;;  %3343 = vmatprep.mubr.msk.bf16.mxu0 %vm214_vm1, %v4054_v29 }
  0xf1   :  { %v4252_v42 = vadd.f32 %v3243_v43, %v3177_v0  ;;  %v429_v6 = vpop.f32.mrf.mxu0  ;;  %3409 = vmatprep.mubr.msk.bf16.mxu1 %vm214_vm1, %v4052_v28  ;;  %v2757_v28 = vld [vmem:[%s4685_s0 + $0x318] sm:$0xff] }
  0xf2   :  { %v822_v8 = vpop.f32.mrf.mxu1  ;;  %v1093_v57 = vpack.c.bf16 %v2758_v11, %v2757_v28 }
  0xf3   :  { %v4256_v9 = vadd.f32 %v822_v8, %v429_v6  ;;  %v3178_v21 = vpop.f32.mrf.mxu0 }
  0xf4   :  { %v3244_v22 = vpop.f32.mrf.mxu1 }
  0xf5   :  { %v4258_v38 = vadd.f32 %v3244_v22, %v3178_v21  ;;  %v432_v39 = vpop.f32.mrf.mxu0 }
  0xf6   :  { %v825_v41 = vpop.f32.mrf.mxu1 }
  0xf7   :  { %v4260_v54 = vadd.f32 %v825_v41, %v432_v39  ;;  %v3181_v10 = vpop.f32.mrf.mxu0  ;;  %3344 = vmatmul.mubr.msk.bf16.gmra.mxu0 %vm214_vm1, %v4058_v45  ;;  %v2857_v45 = vld [vmem:[%s4685_s0 + $0x321] sm:$0xff] }
  0xf8   :  { %v3247_v29 = vpop.f32.mrf.mxu1  ;;  %3410 = vmatmul.mubr.msk.bf16.gmra.mxu1 %vm214_vm1, %v4056_v44  ;;  %3347 = vmatprep.mubr.msk.bf16.mxu0 %vm214_vm1, %v4082_v5  ;;  %v2856_v44 = vld [vmem:[%s4685_s0 + $0x319] sm:$0xff] }
  0xf9   :  { %v4274_v14 = vadd.f32 %v3247_v29, %v3181_v10  ;;  %v445_v30 = vpop.f32.mrf.mxu0  ;;  %3413 = vmatprep.mubr.msk.bf16.mxu1 %vm214_vm1, %v4080_v4  ;;  %v1649_v62 = vpack.c.bf16 %v2857_v45, %v2856_v44 }
  0xfa   :  { %v838_v5 = vpop.f32.mrf.mxu1 }
  0xfb   :  { %v4284_v33 = vadd.f32 %v838_v5, %v445_v30  ;;  %v3182_v34 = vpop.f32.mrf.mxu0 }
  0xfc   :  { %v3248_v63 = vpop.f32.mrf.mxu1 }
  0xfd   :  { %v4286_v19 = vadd.f32 %v3248_v63, %v3182_v34  ;;  %v448_v17 = vpop.f32.mrf.mxu0 }
  0xfe   :  { %v841_v50 = vpop.f32.mrf.mxu1 }
  0xff   :  { %v4288_v4 = vadd.f32 %v841_v50, %v448_v17  ;;  %v3185_v2 = vpop.f32.mrf.mxu0  ;;  %3348 = vmatmul.mubr.msk.bf16.gmra.mxu0 %vm214_vm1, %v1093_v57 }
 0x100   :  { %v3251_v3 = vpop.f32.mrf.mxu1  ;;  %3414 = vmatmul.mubr.msk.bf16.gmra.mxu1 %vm214_vm1, %v1649_v62 }
 0x101   :  { %v4292_v27 = vadd.f32 %v3251_v3, %v3185_v2  ;;  %v461_v15 = vpop.f32.mrf.mxu0 }
 0x102   :  { %v854_v26 = vpop.f32.mrf.mxu1 }
 0x103   :  { %v4294_v53 = vadd.f32 %v854_v26, %v461_v15  ;;  %v3186_v25 = vpop.f32.mrf.mxu0 }
 0x104   :  { %v3252_v32 = vpop.f32.mrf.mxu1 }
 0x105   :  { %v4296_v36 = vadd.f32 %v3252_v32, %v3186_v25  ;;  %v464_v37 = vpop.f32.mrf.mxu0 }
 0x106   :  { %v857_v1 = vpop.f32.mrf.mxu1 }
 0x107   :  { %v4298_v48 = vadd.f32 %v857_v1, %v464_v37  ;;  %v3189_v0 = vpop.f32.mrf.mxu0 }
 0x108   :  { %v3255_v59 = vpop.f32.mrf.mxu1 }
 0x109   :  { %v4300_v43 = vadd.f32 %v3255_v59, %v3189_v0  ;;  %v477_v61 = vpop.f32.mrf.mxu0 }
 0x10a   :  { %v870_v6 = vpop.f32.mrf.mxu1 }
 0x10b   :  { %v4302_v8 = vadd.f32 %v870_v6, %v477_v61  ;;  %v3190_v21 = vpop.f32.mrf.mxu0 }
 0x10c   :  { %v3256_v22 = vpop.f32.mrf.mxu1 }
 0x10d   :  { %v4304_v39 = vadd.f32 %v3256_v22, %v3190_v21  ;;  %v480_v41 = vpop.f32.mrf.mxu0 }
 0x10e   :  { %v873_v10 = vpop.f32.mrf.mxu1 }
 0x10f   :  { %v4306_v29 = vadd.f32 %v873_v10, %v480_v41  ;;  %v3193_v28 = vpop.f32.mrf.mxu0 }
 0x110   :  { %v3259_v11 = vpop.f32.mrf.mxu1 }
 0x111   :  { %v4308_v30 = vadd.f32 %v3259_v11, %v3193_v28  ;;  %v493_v44 = vpop.f32.mrf.mxu0 }
 0x112   :  { %v886_v45 = vpop.f32.mrf.mxu1 }
 0x113   :  { %v4310_v5 = vadd.f32 %v886_v45, %v493_v44  ;;  %v3194_v34 = vpop.f32.mrf.mxu0 }
 0x114   :  { %v3260_v57 = vpop.f32.mrf.mxu1 }
 0x115   :  { %v4312_v63 = vadd.f32 %v3260_v57, %v3194_v34  ;;  %v496_v62 = vpop.f32.mrf.mxu0 }
 0x116   :  { %v889_v17 = vpop.f32.mrf.mxu1 }
 0x117   :  { %v4314_v50 = vadd.f32 %v889_v17, %v496_v62  ;;  %v3197_v2 = vpop.f32.mrf.mxu0 }
 0x118   :  { %v3263_v3 = vpop.f32.mrf.mxu1 }
 0x119   :  { %v4316_v15 = vadd.f32 %v3263_v3, %v3197_v2  ;;  %v509_v26 = vpop.f32.mrf.mxu0 }
 0x11a   :  { %v902_v25 = vpop.f32.mrf.mxu1 }
 0x11b   :  { %v4318_v32 = vadd.f32 %v902_v25, %v509_v26  ;;  %v3198_v37 = vpop.f32.mrf.mxu0 }
 0x11c   :  { %v3264_v1 = vpop.f32.mrf.mxu1 }
 0x11d   :  { %v4320_v0 = vadd.f32 %v3264_v1, %v3198_v37  ;;  %v512_v59 = vpop.f32.mrf.mxu0 }
 0x11e   :  { %v905_v61 = vpop.f32.mrf.mxu1 }
 0x11f   :  { %v4322_v6 = vadd.f32 %v905_v61, %v512_v59  ;;  %v3201_v21 = vpop.f32.mrf.mxu0 }
 0x120   :  { %v3267_v22 = vpop.f32.mrf.mxu1 }
 0x121   :  { %v4324_v41 = vadd.f32 %v3267_v22, %v3201_v21  ;;  %v525_v10 = vpop.f32.mrf.mxu0 }
 0x122   :  { %v918_v28 = vpop.f32.mrf.mxu1 }
 0x123   :  { %v4326_v11 = vadd.f32 %v918_v28, %v525_v10  ;;  %v3202_v44 = vpop.f32.mrf.mxu0 }
 0x124   :  { %v3268_v45 = vpop.f32.mrf.mxu1 }
 0x125   :  { %v4328_v34 = vadd.f32 %v3268_v45, %v3202_v44  ;;  %v528_v57 = vpop.f32.mrf.mxu0 }
 0x126   :  { %v921_v62 = vpop.f32.mrf.mxu1 }
 0x127   :  { %v4330_v17 = vadd.f32 %v921_v62, %v528_v57  ;;  %v3205_v2 = vpop.f32.mrf.mxu0 }
 0x128   :  { %v3271_v3 = vpop.f32.mrf.mxu1 }
 0x129   :  { %4693 = vst [vmem:[#allocation3_spill] sm:$0xff] %v4330_v17  ;;  %v4332_v26 = vadd.f32 %v3271_v3, %v3205_v2  ;;  %v541_v25 = vpop.f32.mrf.mxu0 }
 0x12a   :  { %v934_v37 = vpop.f32.mrf.mxu1 }
 0x12b   :  { %4694 = vst [vmem:[#allocation2_spill] sm:$0xff] %v4332_v26  ;;  %v4334_v1 = vadd.f32 %v934_v37, %v541_v25  ;;  %v3206_v59 = vpop.f32.mrf.mxu0 }
 0x12c   :  { %v3272_v61 = vpop.f32.mrf.mxu1 }
 0x12d   :  { %4695 = vst [vmem:[#allocation4_spill] sm:$0xff] %v4334_v1  ;;  %v4336_v21 = vadd.f32 %v3272_v61, %v3206_v59  ;;  %v544_v22 = vpop.f32.mrf.mxu0 }
 0x12e   :  { %v937_v10 = vpop.f32.mrf.mxu1 }
 0x12f   :  { %4696 = vst [vmem:[#allocation5_spill] sm:$0xff] %v4336_v21  ;;  %v4338_v28 = vadd.f32 %v937_v10, %v544_v22  ;;  %v3209_v44 = vpop.f32.mrf.mxu0 }
 0x130   :  { %v3275_v45 = vpop.f32.mrf.mxu1 }
 0x131   :  { %4697 = vst [vmem:[#allocation6_spill] sm:$0xff] %v4338_v28  ;;  %v4340_v57 = vadd.f32 %v3275_v45, %v3209_v44  ;;  %v557_v62 = vpop.f32.mrf.mxu0 }
 0x132   :  { %v950_v17 = vpop.f32.mrf.mxu1 }
 0x133   :  { %4698 = vst [vmem:[#allocation7_spill] sm:$0xff] %v4340_v57  ;;  %v4342_v2 = vadd.f32 %v950_v17, %v557_v62  ;;  %v3210_v3 = vpop.f32.mrf.mxu0 }
 0x134   :  { %v3276_v26 = vpop.f32.mrf.mxu1 }
 0x135   :  { %4699 = vst [vmem:[#allocation8_spill] sm:$0xff] %v4342_v2  ;;  %v4344_v25 = vadd.f32 %v3276_v26, %v3210_v3  ;;  %v560_v37 = vpop.f32.mrf.mxu0 }
 0x136   :  { %v953_v1 = vpop.f32.mrf.mxu1 }
 0x137   :  { %4700 = vst [vmem:[#allocation9_spill] sm:$0xff] %v4344_v25  ;;  %v4346_v59 = vadd.f32 %v953_v1, %v560_v37  ;;  %v3213_v61 = vpop.f32.mrf.mxu0 }
 0x138   :  { %v3279_v21 = vpop.f32.mrf.mxu1 }
 0x139   :  { %4701 = vst [vmem:[#allocation10_spill] sm:$0xff] %v4346_v59  ;;  %v4348_v22 = vadd.f32 %v3279_v21, %v3213_v61  ;;  %v573_v10 = vpop.f32.mrf.mxu0 }
 0x13a   :  { %v966_v28 = vpop.f32.mrf.mxu1 }
 0x13b   :  { %4702 = vst [vmem:[#allocation11_spill] sm:$0xff] %v4348_v22  ;;  %v4350_v44 = vadd.f32 %v966_v28, %v573_v10  ;;  %v3214_v45 = vpop.f32.mrf.mxu0 }
 0x13c   :  { %v3280_v57 = vpop.f32.mrf.mxu1 }
 0x13d   :  { %4703 = vst [vmem:[#allocation12_spill] sm:$0xff] %v4350_v44  ;;  %v4352_v17 = vadd.f32 %v3280_v57, %v3214_v45  ;;  %v576_v62 = vpop.f32.mrf.mxu0 }
 0x13e   :  { %v969_v2 = vpop.f32.mrf.mxu1 }
 0x13f   :  { %4704 = vst [vmem:[#allocation13_spill] sm:$0xff] %v4352_v17  ;;  %v4354_v26 = vadd.f32 %v969_v2, %v576_v62  ;;  %v3217_v3 = vpop.f32.mrf.mxu0 }
 0x140   :  { %v3283_v25 = vpop.f32.mrf.mxu1 }
 0x141   :  { %4705 = vst [vmem:[#allocation14_spill] sm:$0xff] %v4354_v26  ;;  %v4356_v1 = vadd.f32 %v3283_v25, %v3217_v3  ;;  %v589_v37 = vpop.f32.mrf.mxu0 }
 0x142   :  { %v982_v59 = vpop.f32.mrf.mxu1 }
 0x143   :  { %4706 = vst [vmem:[#allocation15_spill] sm:$0xff] %v4356_v1  ;;  %v4358_v21 = vadd.f32 %v982_v59, %v589_v37  ;;  %v3218_v61 = vpop.f32.mrf.mxu0 }
 0x144   :  { %v3284_v22 = vpop.f32.mrf.mxu1 }
 0x145   :  { %4707 = vst [vmem:[#allocation16_spill] sm:$0xff] %v4358_v21  ;;  %v4360_v28 = vadd.f32 %v3284_v22, %v3218_v61  ;;  %v592_v10 = vpop.f32.mrf.mxu0 }
 0x146   :  { %v985_v44 = vpop.f32.mrf.mxu1 }
 0x147   :  { %4708 = vst [vmem:[#allocation17_spill] sm:$0xff] %v4360_v28  ;;  %v4362_v57 = vadd.f32 %v985_v44, %v592_v10  ;;  %v3289_v45 = vpop.f32.mrf.mxu0 }
 0x148   :  { %v1492_v2 = vadd.f32 %v3289_v45, %v4172_v46  ;;  %v3355_v62 = vpop.f32.mrf.mxu1 }
 0x149   :  { %4709 = vst [vmem:[#allocation18_spill] sm:$0xff] %v4362_v57  ;;  %v1235_v26 = vpop.f32.mrf.mxu0 }
 0x14a   :  { %v2048_v17 = vadd.f32 %v3355_v62, %v1492_v2  ;;  %v1490_v25 = vadd.f32 %v1235_v26, %v4176_v49  ;;  %v1791_v3 = vpop.f32.mrf.mxu1 }
 0x14b   :  { %v3290_v1 = vpop.f32.mrf.mxu0 }
 0x14c   :  { %vm2112_vm2 = vcmp.gt.f32.partialorder %v2048_v17, 0.0  ;;  %v2176_v59 = vmul.f32 0.2, %v2048_v17  ;;  %v2046_v37 = vadd.f32 %v1791_v3, %v1490_v25  ;;  %v1493_v22 = vadd.f32 %v3290_v1, %v4178_v60  ;;  %v3356_v61 = vpop.f32.mrf.mxu1 }
 0x14d   :  { %v1238_v28 = vpop.f32.mrf.mxu0 }
 0x14e   :  { %v2240_v44 = vsel %vm2112_vm2, %v2048_v17, %v2176_v59  ;;  %vm2110_vm4 = vcmp.gt.f32.partialorder %v2046_v37, 0.0  ;;  %v2174_v10 = vmul.f32 0.2, %v2046_v37  ;;  %v2049_v57 = vadd.f32 %v3356_v61, %v1493_v22  ;;  %v1794_v46 = vpop.f32.mrf.mxu1 }
 0x14f   :  { %v2959_v45 = vpack.c.bf16 %v2240_v44, %v2240_v44  ;;  %v1491_v2 = vadd.f32 %v1238_v28, %v4180_v7  ;;  %v3293_v62 = vpop.f32.mrf.mxu0 }
 0x150   :  { %v2238_v49 = vsel %vm2110_vm4, %v2046_v37, %v2174_v10  ;;  %vm2113_vm5 = vcmp.gt.f32.partialorder %v2049_v57, 0.0  ;;  %v2177_v26 = vmul.f32 0.2, %v2049_v57  ;;  %v1496_v21 = vadd.f32 %v3293_v62, %v4188_v20  ;;  %v3359_v25 = vpop.f32.mrf.mxu1 }
 0x151   :  { %2561 = vst.msk [vmem:[%s4686_s2 + $0x8] sm:$0xf] %vm2558_vm3, %v2959_v45  ;;  %v2957_v60 = vpack.c.bf16 %v2238_v49, %v2238_v49  ;;  %v2047_v17 = vadd.f32 %v1794_v46, %v1491_v2  ;;  %v1251_v1 = vpop.f32.mrf.mxu0 }
 0x152   :  { %v2241_v3 = vsel %vm2113_vm5, %v2049_v57, %v2177_v26  ;;  %v2052_v59 = vadd.f32 %v3359_v25, %v1496_v21  ;;  %v1494_v22 = vadd.f32 %v1251_v1, %v4192_v23  ;;  %v1807_v7 = vpop.f32.mrf.mxu1 }
 0x153   :  { %2559 = vst.msk [vmem:[%s4686_s2] sm:$0xf] %vm2558_vm3, %v2957_v60  ;;  %v2960_v20 = vpack.c.bf16 %v2241_v3, %v2241_v3  ;;  %vm2111_vm6 = vcmp.gt.f32.partialorder %v2047_v17, 0.0  ;;  %v2175_v28 = vmul.f32 0.2, %v2047_v17  ;;  %v3294_v37 = vpop.f32.mrf.mxu0 }
 0x154   :  { %vm2116_vm7 = vcmp.gt.f32.partialorder %v2052_v59, 0.0  ;;  %v2180_v61 = vmul.f32 0.2, %v2052_v59  ;;  %v2050_v44 = vadd.f32 %v1807_v7, %v1494_v22  ;;  %v1497_v10 = vadd.f32 %v3294_v37, %v4194_v40  ;;  %v3360_v46 = vpop.f32.mrf.mxu1 }
 0x155   :  { %2562 = vst.msk [vmem:[%s4686_s2 + $0xc] sm:$0xf] %vm2558_vm3, %v2960_v20  ;;  %v2239_v23 = vsel %vm2111_vm6, %v2047_v17, %v2175_v28  ;;  %v1254_v21 = vpop.f32.mrf.mxu0 }
 0x156   :  { %v2958_v57 = vpack.c.bf16 %v2239_v23, %v2239_v23  ;;  %v2244_v45 = vsel %vm2116_vm7, %v2052_v59, %v2180_v61  ;;  %vm2114_vm8 = vcmp.gt.f32.partialorder %v2050_v44, 0.0  ;;  %v2178_v2 = vmul.f32 0.2, %v2050_v44  ;;  %v1810_v62 = vpop.f32.mrf.mxu1 }
 0x157   :  { %v2963_v49 = vpack.c.bf16 %v2244_v45, %v2244_v45  ;;  %v2053_v26 = vadd.f32 %v3360_v46, %v1497_v10  ;;  %v1495_v25 = vadd.f32 %v1254_v21, %v4196_v55  ;;  %v3297_v60 = vpop.f32.mrf.mxu0 }
 0x158   :  { %2560 = vst.msk [vmem:[%s4686_s2 + $0x4] sm:$0xf] %vm2558_vm3, %v2958_v57  ;;  %v2242_v40 = vsel %vm2114_vm8, %v2050_v44, %v2178_v2  ;;  %v1500_v1 = vadd.f32 %v3297_v60, %v4204_v13  ;;  %v3363_v17 = vpop.f32.mrf.mxu1 }
 0x159   :  { %2565 = vst.msk [vmem:[%s4686_s2 + $0x18] sm:$0xf] %vm2558_vm3, %v2963_v49  ;;  %v2961_v3 = vpack.c.bf16 %v2242_v40, %v2242_v40  ;;  %vm2117_vm9 = vcmp.gt.f32.partialorder %v2053_v26, 0.0  ;;  %v2181_v59 = vmul.f32 0.2, %v2053_v26  ;;  %v2051_v22 = vadd.f32 %v1810_v62, %v1495_v25  ;;  %v1267_v55 = vpop.f32.mrf.mxu0 }
 0x15a   :  { %v2056_v7 = vadd.f32 %v3363_v17, %v1500_v1  ;;  %v1498_v20 = vadd.f32 %v1267_v55, %v4208_v31  ;;  %v1823_v28 = vpop.f32.mrf.mxu1 }
 0x15b   :  { %2563 = vst.msk [vmem:[%s4686_s2 + $0x10] sm:$0xf] %vm2558_vm3, %v2961_v3  ;;  %v2245_v13 = vsel %vm2117_vm9, %v2053_v26, %v2181_v59  ;;  %vm2115_vm10 = vcmp.gt.f32.partialorder %v2051_v22, 0.0  ;;  %v2179_v37 = vmul.f32 0.2, %v2051_v22  ;;  %v3298_v61 = vpop.f32.mrf.mxu0 }
 0x15c   :  { %v2964_v44 = vpack.c.bf16 %v2245_v13, %v2245_v13  ;;  %vm2120_vm11 = vcmp.gt.f32.partialorder %v2056_v7, 0.0  ;;  %v2184_v10 = vmul.f32 0.2, %v2056_v7  ;;  %v2054_v46 = vadd.f32 %v1823_v28, %v1498_v20  ;;  %v3364_v23 = vpop.f32.mrf.mxu1 }
 0x15d   :  { %v2243_v21 = vsel %vm2115_vm10, %v2051_v22, %v2179_v37  ;;  %v1501_v57 = vadd.f32 %v3298_v61, %v4210_v56  ;;  %v1270_v45 = vpop.f32.mrf.mxu0 }
 0x15e   :  { %2566 = vst.msk [vmem:[%s4686_s2 + $0x1c] sm:$0xf] %vm2558_vm3, %v2964_v44  ;;  %v2962_v31 = vpack.c.bf16 %v2243_v21, %v2243_v21  ;;  %v2248_v2 = vsel %vm2120_vm11, %v2056_v7, %v2184_v10  ;;  %vm2118_vm12 = vcmp.gt.f32.partialorder %v2054_v46, 0.0  ;;  %v2182_v62 = vmul.f32 0.2, %v2054_v46  ;;  %v1826_v49 = vpop.f32.mrf.mxu1 }
 0x15f   :  { %v2967_v26 = vpack.c.bf16 %v2248_v2, %v2248_v2  ;;  %v2057_v25 = vadd.f32 %v3364_v23, %v1501_v57  ;;  %v1499_v60 = vadd.f32 %v1270_v45, %v4212_v16  ;;  %v3301_v40 = vpop.f32.mrf.mxu0 }
 0x160   :  { %2564 = vst.msk [vmem:[%s4686_s2 + $0x14] sm:$0xf] %vm2558_vm3, %v2962_v31  ;;  %v2246_v56 = vsel %vm2118_vm12, %v2054_v46, %v2182_v62  ;;  %v1504_v1 = vadd.f32 %v3301_v40, %v4220_v18  ;;  %v3367_v17 = vpop.f32.mrf.mxu1 }
 0x161   :  { %2569 = vst.msk [vmem:[%s4686_s2 + $0x28] sm:$0xf] %vm2558_vm3, %v2967_v26  ;;  %v2965_v3 = vpack.c.bf16 %v2246_v56, %v2246_v56  ;;  %vm2121_vm13 = vcmp.gt.f32.partialorder %v2057_v25, 0.0  ;;  %v2185_v59 = vmul.f32 0.2, %v2057_v25  ;;  %v2055_v22 = vadd.f32 %v1826_v49, %v1499_v60  ;;  %v1283_v16 = vpop.f32.mrf.mxu0 }
 0x162   :  { %v2060_v55 = vadd.f32 %v3367_v17, %v1504_v1  ;;  %v1502_v7 = vadd.f32 %v1283_v16, %v4224_v51  ;;  %v1839_v20 = vpop.f32.mrf.mxu1 }
 0x163   :  { %2567 = vst.msk [vmem:[%s4686_s2 + $0x20] sm:$0xf] %vm2558_vm3, %v2965_v3  ;;  %v2249_v18 = vsel %vm2121_vm13, %v2057_v25, %v2185_v59  ;;  %vm2119_vm14 = vcmp.gt.f32.partialorder %v2055_v22, 0.0  ;;  %v2183_v28 = vmul.f32 0.2, %v2055_v22  ;;  %v3302_v13 = vpop.f32.mrf.mxu0 }
 0x164   :  { %v2968_v37 = vpack.c.bf16 %v2249_v18, %v2249_v18  ;;  %vm2124_vm15 = vcmp.gt.f32.partialorder %v2060_v55, 0.0  ;;  %v2188_v61 = vmul.f32 0.2, %v2060_v55  ;;  %v2058_v44 = vadd.f32 %v1839_v20, %v1502_v7  ;;  %v3368_v10 = vpop.f32.mrf.mxu1 }
 0x165   :  { %v2247_v46 = vsel %vm2119_vm14, %v2055_v22, %v2183_v28  ;;  %v1505_v23 = vadd.f32 %v3302_v13, %v4226_v12  ;;  %v1286_v21 = vpop.f32.mrf.mxu0 }
 0x166   :  { %2570 = vst.msk [vmem:[%s4686_s2 + $0x2c] sm:$0xf] %vm2558_vm3, %v2968_v37  ;;  %v2966_v51 = vpack.c.bf16 %v2247_v46, %v2247_v46  ;;  %v2252_v57 = vsel %vm2124_vm15, %v2060_v55, %v2188_v61  ;;  %vm2122_vm0 = vcmp.gt.f32.partialorder %v2058_v44, 0.0  ;;  %v2186_v45 = vmul.f32 0.2, %v2058_v44  ;;  %v1842_v31 = vpop.f32.mrf.mxu1 }
 0x167   :  { %v2971_v2 = vpack.c.bf16 %v2252_v57, %v2252_v57  ;;  %v2061_v62 = vadd.f32 %v3368_v10, %v1505_v23  ;;  %v1503_v49 = vadd.f32 %v1286_v21, %v4228_v24  ;;  %v3305_v26 = vpop.f32.mrf.mxu0 }
 0x168   :  { %2568 = vst.msk [vmem:[%s4686_s2 + $0x24] sm:$0xf] %vm2558_vm3, %v2966_v51  ;;  %v2250_v12 = vsel %vm2122_vm0, %v2058_v44, %v2186_v45  ;;  %v1508_v25 = vadd.f32 %v3305_v26, %v4236_v52  ;;  %v3371_v60 = vpop.f32.mrf.mxu1 }
 0x169   :  { %2573 = vst.msk [vmem:[%s4686_s2 + $0x38] sm:$0xf] %vm2558_vm3, %v2971_v2  ;;  %v2969_v40 = vpack.c.bf16 %v2250_v12, %v2250_v12  ;;  %vm2125_vm1 = vcmp.gt.f32.partialorder %v2061_v62, 0.0  ;;  %v2189_v56 = vmul.f32 0.2, %v2061_v62  ;;  %v2059_v1 = vadd.f32 %v1842_v31, %v1503_v49  ;;  %v1299_v24 = vpop.f32.mrf.mxu0 }
 0x16a   :  { %v2064_v17 = vadd.f32 %v3371_v60, %v1508_v25  ;;  %v1506_v3 = vadd.f32 %v1299_v24, %v4240_v35  ;;  %v1855_v59 = vpop.f32.mrf.mxu1 }
 0x16b   :  { %2571 = vst.msk [vmem:[%s4686_s2 + $0x30] sm:$0xf] %vm2558_vm3, %v2969_v40  ;;  %v2253_v52 = vsel %vm2125_vm1, %v2061_v62, %v2189_v56  ;;  %vm2123_vm2 = vcmp.gt.f32.partialorder %v2059_v1, 0.0  ;;  %v2187_v22 = vmul.f32 0.2, %v2059_v1  ;;  %v3306_v16 = vpop.f32.mrf.mxu0 }
 0x16c   :  { %v2972_v55 = vpack.c.bf16 %v2253_v52, %v2253_v52  ;;  %vm2128_vm4 = vcmp.gt.f32.partialorder %v2064_v17, 0.0  ;;  %v2192_v7 = vmul.f32 0.2, %v2064_v17  ;;  %v2062_v20 = vadd.f32 %v1855_v59, %v1506_v3  ;;  %v3372_v18 = vpop.f32.mrf.mxu1 }
 0x16d   :  { %v2251_v28 = vsel %vm2123_vm2, %v2059_v1, %v2187_v22  ;;  %v1509_v13 = vadd.f32 %v3306_v16, %v4242_v47  ;;  %v1302_v37 = vpop.f32.mrf.mxu0 }
 0x16e   :  { %2574 = vst.msk [vmem:[%s4686_s2 + $0x3c] sm:$0xf] %vm2558_vm3, %v2972_v55  ;;  %v2970_v35 = vpack.c.bf16 %v2251_v28, %v2251_v28  ;;  %v2256_v61 = vsel %vm2128_vm4, %v2064_v17, %v2192_v7  ;;  %vm2126_vm5 = vcmp.gt.f32.partialorder %v2062_v20, 0.0  ;;  %v2190_v44 = vmul.f32 0.2, %v2062_v20  ;;  %v1858_v10 = vpop.f32.mrf.mxu1 }
 0x16f   :  { %v2975_v46 = vpack.c.bf16 %v2256_v61, %v2256_v61  ;;  %v2065_v23 = vadd.f32 %v3372_v18, %v1509_v13  ;;  %v1507_v21 = vadd.f32 %v1302_v37, %v4244_v58  ;;  %v3309_v51 = vpop.f32.mrf.mxu0 }
 0x170   :  { %2572 = vst.msk [vmem:[%s4686_s2 + $0x34] sm:$0xf] %vm2558_vm3, %v2970_v35  ;;  %v2254_v47 = vsel %vm2126_vm5, %v2062_v20, %v2190_v44  ;;  %v1512_v57 = vadd.f32 %v3309_v51, %v4252_v42  ;;  %v3375_v45 = vpop.f32.mrf.mxu1 }
 0x171   :  { %2577 = vst.msk [vmem:[%s4686_s2 + $0x48] sm:$0xf] %vm2558_vm3, %v2975_v46  ;;  %v2973_v31 = vpack.c.bf16 %v2254_v47, %v2254_v47  ;;  %vm2129_vm6 = vcmp.gt.f32.partialorder %v2065_v23, 0.0  ;;  %v2193_v2 = vmul.f32 0.2, %v2065_v23  ;;  %v2063_v62 = vadd.f32 %v1858_v10, %v1507_v21  ;;  %v1315_v58 = vpop.f32.mrf.mxu0 }
 0x172   :  { %v2068_v49 = vadd.f32 %v3375_v45, %v1512_v57  ;;  %v1510_v26 = vadd.f32 %v1315_v58, %v4256_v9  ;;  %v1871_v12 = vpop.f32.mrf.mxu1 }
 0x173   :  { %2575 = vst.msk [vmem:[%s4686_s2 + $0x40] sm:$0xf] %vm2558_vm3, %v2973_v31  ;;  %v2257_v42 = vsel %vm2129_vm6, %v2065_v23, %v2193_v2  ;;  %vm2127_vm7 = vcmp.gt.f32.partialorder %v2063_v62, 0.0  ;;  %v2191_v25 = vmul.f32 0.2, %v2063_v62  ;;  %v3310_v60 = vpop.f32.mrf.mxu0 }
 0x174   :  { %v2976_v40 = vpack.c.bf16 %v2257_v42, %v2257_v42  ;;  %vm2132_vm8 = vcmp.gt.f32.partialorder %v2068_v49, 0.0  ;;  %v2196_v56 = vmul.f32 0.2, %v2068_v49  ;;  %v2066_v1 = vadd.f32 %v1871_v12, %v1510_v26  ;;  %v3376_v24 = vpop.f32.mrf.mxu1 }
 0x175   :  { %v2255_v17 = vsel %vm2127_vm7, %v2063_v62, %v2191_v25  ;;  %v1513_v3 = vadd.f32 %v3310_v60, %v4258_v38  ;;  %v1318_v59 = vpop.f32.mrf.mxu0 }
 0x176   :  { %2578 = vst.msk [vmem:[%s4686_s2 + $0x4c] sm:$0xf] %vm2558_vm3, %v2976_v40  ;;  %v2974_v9 = vpack.c.bf16 %v2255_v17, %v2255_v17  ;;  %v2260_v52 = vsel %vm2132_vm8, %v2068_v49, %v2196_v56  ;;  %vm2130_vm9 = vcmp.gt.f32.partialorder %v2066_v1, 0.0  ;;  %v2194_v22 = vmul.f32 0.2, %v2066_v1  ;;  %v1874_v16 = vpop.f32.mrf.mxu1 }
 0x177   :  { %v2979_v55 = vpack.c.bf16 %v2260_v52, %v2260_v52  ;;  %v2069_v7 = vadd.f32 %v3376_v24, %v1513_v3  ;;  %v1511_v20 = vadd.f32 %v1318_v59, %v4260_v54  ;;  %v3313_v18 = vpop.f32.mrf.mxu0 }
 0x178   :  { %2576 = vst.msk [vmem:[%s4686_s2 + $0x44] sm:$0xf] %vm2558_vm3, %v2974_v9  ;;  %v2258_v38 = vsel %vm2130_vm9, %v2066_v1, %v2194_v22  ;;  %v1516_v28 = vadd.f32 %v3313_v18, %v4274_v14  ;;  %v3379_v13 = vpop.f32.mrf.mxu1 }
 0x179   :  { %2581 = vst.msk [vmem:[%s4686_s2 + $0x58] sm:$0xf] %vm2558_vm3, %v2979_v55  ;;  %v2977_v37 = vpack.c.bf16 %v2258_v38, %v2258_v38  ;;  %vm2133_vm10 = vcmp.gt.f32.partialorder %v2069_v7, 0.0  ;;  %v2197_v35 = vmul.f32 0.2, %v2069_v7  ;;  %v2067_v61 = vadd.f32 %v1874_v16, %v1511_v20  ;;  %v1331_v54 = vpop.f32.mrf.mxu0 }
 0x17a   :  { %v2072_v44 = vadd.f32 %v3379_v13, %v1516_v28  ;;  %v1514_v10 = vadd.f32 %v1331_v54, %v4284_v33  ;;  %v1887_v46 = vpop.f32.mrf.mxu1 }
 0x17b   :  { %2579 = vst.msk [vmem:[%s4686_s2 + $0x50] sm:$0xf] %vm2558_vm3, %v2977_v37  ;;  %v2261_v14 = vsel %vm2133_vm10, %v2069_v7, %v2197_v35  ;;  %vm2131_vm11 = vcmp.gt.f32.partialorder %v2067_v61, 0.0  ;;  %v2195_v23 = vmul.f32 0.2, %v2067_v61  ;;  %v3314_v21 = vpop.f32.mrf.mxu0 }
 0x17c   :  { %v2980_v51 = vpack.c.bf16 %v2261_v14, %v2261_v14  ;;  %vm2136_vm12 = vcmp.gt.f32.partialorder %v2072_v44, 0.0  ;;  %v2200_v47 = vmul.f32 0.2, %v2072_v44  ;;  %v2070_v57 = vadd.f32 %v1887_v46, %v1514_v10  ;;  %v3380_v45 = vpop.f32.mrf.mxu1 }
 0x17d   :  { %v2259_v31 = vsel %vm2131_vm11, %v2067_v61, %v2195_v23  ;;  %v1517_v2 = vadd.f32 %v3314_v21, %v4286_v19  ;;  %v1334_v62 = vpop.f32.mrf.mxu0 }
 0x17e   :  { %2582 = vst.msk [vmem:[%s4686_s2 + $0x5c] sm:$0xf] %vm2558_vm3, %v2980_v51  ;;  %v2978_v33 = vpack.c.bf16 %v2259_v31, %v2259_v31  ;;  %v2264_v58 = vsel %vm2136_vm12, %v2072_v44, %v2200_v47  ;;  %vm2134_vm13 = vcmp.gt.f32.partialorder %v2070_v57, 0.0  ;;  %v2198_v49 = vmul.f32 0.2, %v2070_v57  ;;  %v1890_v26 = vpop.f32.mrf.mxu1 }
 0x17f   :  { %v2983_v12 = vpack.c.bf16 %v2264_v58, %v2264_v58  ;;  %v2073_v42 = vadd.f32 %v3380_v45, %v1517_v2  ;;  %v1515_v25 = vadd.f32 %v1334_v62, %v4288_v4  ;;  %v3317_v60 = vpop.f32.mrf.mxu0 }
 0x180   :  { %2580 = vst.msk [vmem:[%s4686_s2 + $0x54] sm:$0xf] %vm2558_vm3, %v2978_v33  ;;  %v2262_v19 = vsel %vm2134_vm13, %v2070_v57, %v2198_v49  ;;  %v1520_v40 = vadd.f32 %v3317_v60, %v4292_v27  ;;  %v3383_v56 = vpop.f32.mrf.mxu1 }
 0x181   :  { %2585 = vst.msk [vmem:[%s4686_s2 + $0x68] sm:$0xf] %vm2558_vm3, %v2983_v12  ;;  %v2981_v1 = vpack.c.bf16 %v2262_v19, %v2262_v19  ;;  %vm2137_vm14 = vcmp.gt.f32.partialorder %v2073_v42, 0.0  ;;  %v2201_v24 = vmul.f32 0.2, %v2073_v42  ;;  %v2071_v17 = vadd.f32 %v1890_v26, %v1515_v25  ;;  %v1347_v4 = vpop.f32.mrf.mxu0 }
 0x182   :  { %v2076_v3 = vadd.f32 %v3383_v56, %v1520_v40  ;;  %v1518_v59 = vadd.f32 %v1347_v4, %v4294_v53  ;;  %v1903_v9 = vpop.f32.mrf.mxu1 }
 0x183   :  { %2583 = vst.msk [vmem:[%s4686_s2 + $0x60] sm:$0xf] %vm2558_vm3, %v2981_v1  ;;  %v2265_v27 = vsel %vm2137_vm14, %v2073_v42, %v2201_v24  ;;  %vm2135_vm15 = vcmp.gt.f32.partialorder %v2071_v17, 0.0  ;;  %v2199_v52 = vmul.f32 0.2, %v2071_v17  ;;  %v3318_v22 = vpop.f32.mrf.mxu0 }
 0x184   :  { %v2984_v16 = vpack.c.bf16 %v2265_v27, %v2265_v27  ;;  %vm2140_vm0 = vcmp.gt.f32.partialorder %v2076_v3, 0.0  ;;  %v2204_v55 = vmul.f32 0.2, %v2076_v3  ;;  %v2074_v7 = vadd.f32 %v1903_v9, %v1518_v59  ;;  %v3384_v20 = vpop.f32.mrf.mxu1 }
 0x185   :  { %v2263_v18 = vsel %vm2135_vm15, %v2071_v17, %v2199_v52  ;;  %v1521_v38 = vadd.f32 %v3318_v22, %v4296_v36  ;;  %v1350_v28 = vpop.f32.mrf.mxu0 }
 0x186   :  { %2586 = vst.msk [vmem:[%s4686_s2 + $0x6c] sm:$0xf] %vm2558_vm3, %v2984_v16  ;;  %v2982_v53 = vpack.c.bf16 %v2263_v18, %v2263_v18  ;;  %v2268_v13 = vsel %vm2140_vm0, %v2076_v3, %v2204_v55  ;;  %vm2138_vm1 = vcmp.gt.f32.partialorder %v2074_v7, 0.0  ;;  %v2202_v37 = vmul.f32 0.2, %v2074_v7  ;;  %v1906_v35 = vpop.f32.mrf.mxu1 }
 0x187   :  { %v2987_v61 = vpack.c.bf16 %v2268_v13, %v2268_v13  ;;  %v2077_v54 = vadd.f32 %v3384_v20, %v1521_v38  ;;  %v1519_v44 = vadd.f32 %v1350_v28, %v4298_v48  ;;  %v3321_v10 = vpop.f32.mrf.mxu0 }
 0x188   :  { %2584 = vst.msk [vmem:[%s4686_s2 + $0x64] sm:$0xf] %vm2558_vm3, %v2982_v53  ;;  %v2266_v36 = vsel %vm2138_vm1, %v2074_v7, %v2202_v37  ;;  %v1524_v46 = vadd.f32 %v3321_v10, %v4300_v43  ;;  %v3387_v14 = vpop.f32.mrf.mxu1 }
 0x189   :  { %2589 = vst.msk [vmem:[%s4686_s2 + $0x78] sm:$0xf] %vm2558_vm3, %v2987_v61  ;;  %v2985_v23 = vpack.c.bf16 %v2266_v36, %v2266_v36  ;;  %vm2141_vm2 = vcmp.gt.f32.partialorder %v2077_v54, 0.0  ;;  %v2205_v21 = vmul.f32 0.2, %v2077_v54  ;;  %v2075_v51 = vadd.f32 %v1906_v35, %v1519_v44  ;;  %v1363_v48 = vpop.f32.mrf.mxu0 }
 0x18a   :  { %v2080_v47 = vadd.f32 %v3387_v14, %v1524_v46  ;;  %v1522_v57 = vadd.f32 %v1363_v48, %v4302_v8  ;;  %v1919_v45 = vpop.f32.mrf.mxu1 }
 0x18b   :  { %2587 = vst.msk [vmem:[%s4686_s2 + $0x70] sm:$0xf] %vm2558_vm3, %v2985_v23  ;;  %v2269_v43 = vsel %vm2141_vm2, %v2077_v54, %v2205_v21  ;;  %vm2139_vm4 = vcmp.gt.f32.partialorder %v2075_v51, 0.0  ;;  %v2203_v31 = vmul.f32 0.2, %v2075_v51  ;;  %v3322_v2 = vpop.f32.mrf.mxu0 }
 0x18c   :  { %v2988_v62 = vpack.c.bf16 %v2269_v43, %v2269_v43  ;;  %vm2144_vm5 = vcmp.gt.f32.partialorder %v2080_v47, 0.0  ;;  %v2208_v33 = vmul.f32 0.2, %v2080_v47  ;;  %v2078_v58 = vadd.f32 %v1919_v45, %v1522_v57  ;;  %v3388_v49 = vpop.f32.mrf.mxu1 }
 0x18d   :  { %v2267_v26 = vsel %vm2139_vm4, %v2075_v51, %v2203_v31  ;;  %v1525_v12 = vadd.f32 %v3322_v2, %v4304_v39  ;;  %v1366_v42 = vpop.f32.mrf.mxu0 }
 0x18e   :  { %2590 = vst.msk [vmem:[%s4686_s2 + $0x7c] sm:$0xf] %vm2558_vm3, %v2988_v62  ;;  %v2986_v8 = vpack.c.bf16 %v2267_v26, %v2267_v26  ;;  %v2272_v25 = vsel %vm2144_vm5, %v2080_v47, %v2208_v33  ;;  %vm2142_vm6 = vcmp.gt.f32.partialorder %v2078_v58, 0.0  ;;  %v2206_v60 = vmul.f32 0.2, %v2078_v58  ;;  %v1922_v19 = vpop.f32.mrf.mxu1 }
 0x18f   :  { %v2991_v40 = vpack.c.bf16 %v2272_v25, %v2272_v25  ;;  %v2081_v56 = vadd.f32 %v3388_v49, %v1525_v12  ;;  %v1523_v1 = vadd.f32 %v1366_v42, %v4306_v29  ;;  %v3325_v24 = vpop.f32.mrf.mxu0 }
 0x190   :  { %2588 = vst.msk [vmem:[%s4686_s2 + $0x74] sm:$0xf] %vm2558_vm3, %v2986_v8  ;;  %v2270_v39 = vsel %vm2142_vm6, %v2078_v58, %v2206_v60  ;;  %v1528_v17 = vadd.f32 %v3325_v24, %v4308_v30  ;;  %v3391_v4 = vpop.f32.mrf.mxu1 }
 0x191   :  { %2593 = vst.msk [vmem:[%s4686_s2 + $0x88] sm:$0xf] %vm2558_vm3, %v2991_v40  ;;  %v2989_v3 = vpack.c.bf16 %v2270_v39, %v2270_v39  ;;  %vm2145_vm7 = vcmp.gt.f32.partialorder %v2081_v56, 0.0  ;;  %v2209_v59 = vmul.f32 0.2, %v2081_v56  ;;  %v2079_v9 = vadd.f32 %v1922_v19, %v1523_v1  ;;  %v1379_v29 = vpop.f32.mrf.mxu0 }
 0x192   :  { %v2084_v27 = vadd.f32 %v3391_v4, %v1528_v17  ;;  %v1526_v52 = vadd.f32 %v1379_v29, %v4310_v5  ;;  %v1935_v22 = vpop.f32.mrf.mxu1 }
 0x193   :  { %2591 = vst.msk [vmem:[%s4686_s2 + $0x80] sm:$0xf] %vm2558_vm3, %v2989_v3  ;;  %v2273_v30 = vsel %vm2145_vm7, %v2081_v56, %v2209_v59  ;;  %vm2143_vm8 = vcmp.gt.f32.partialorder %v2079_v9, 0.0  ;;  %v2207_v16 = vmul.f32 0.2, %v2079_v9  ;;  %v3326_v55 = vpop.f32.mrf.mxu0 }
 0x194   :  { %v2992_v7 = vpack.c.bf16 %v2273_v30, %v2273_v30  ;;  %vm2148_vm9 = vcmp.gt.f32.partialorder %v2084_v27, 0.0  ;;  %v2212_v20 = vmul.f32 0.2, %v2084_v27  ;;  %v2082_v18 = vadd.f32 %v1935_v22, %v1526_v52  ;;  %v3392_v38 = vpop.f32.mrf.mxu1 }
 0x195   :  { %v2271_v28 = vsel %vm2143_vm8, %v2079_v9, %v2207_v16  ;;  %v1529_v53 = vadd.f32 %v3326_v55, %v4312_v63  ;;  %v1382_v13 = vpop.f32.mrf.mxu0 }
 0x196   :  { %2594 = vst.msk [vmem:[%s4686_s2 + $0x8c] sm:$0xf] %vm2558_vm3, %v2992_v7  ;;  %v2990_v5 = vpack.c.bf16 %v2271_v28, %v2271_v28  ;;  %v2276_v37 = vsel %vm2148_vm9, %v2084_v27, %v2212_v20  ;;  %vm2146_vm10 = vcmp.gt.f32.partialorder %v2082_v18, 0.0  ;;  %v2210_v35 = vmul.f32 0.2, %v2082_v18  ;;  %v1938_v61 = vpop.f32.mrf.mxu1 }
 0x197   :  { %v2995_v54 = vpack.c.bf16 %v2276_v37, %v2276_v37  ;;  %v2085_v44 = vadd.f32 %v3392_v38, %v1529_v53  ;;  %v1527_v10 = vadd.f32 %v1382_v13, %v4314_v50  ;;  %v3329_v36 = vpop.f32.mrf.mxu0  ;;  %v4710_v13 = vld [vmem:[#allocation3_spill] sm:$0xff] }
 0x198   :  { %2592 = vst.msk [vmem:[%s4686_s2 + $0x84] sm:$0xf] %vm2558_vm3, %v2990_v5  ;;  %v2274_v63 = vsel %vm2146_vm10, %v2082_v18, %v2210_v35  ;;  %v1532_v46 = vadd.f32 %v3329_v36, %v4316_v15  ;;  %v3395_v14 = vpop.f32.mrf.mxu1  ;;  %v4711_v35 = vld [vmem:[#allocation2_spill] sm:$0xff] }
 0x199   :  { %2597 = vst.msk [vmem:[%s4686_s2 + $0x98] sm:$0xf] %vm2558_vm3, %v2995_v54  ;;  %v2993_v23 = vpack.c.bf16 %v2274_v63, %v2274_v63  ;;  %vm2149_vm11 = vcmp.gt.f32.partialorder %v2085_v44, 0.0  ;;  %v2213_v21 = vmul.f32 0.2, %v2085_v44  ;;  %v2083_v51 = vadd.f32 %v1938_v61, %v1527_v10  ;;  %v1395_v50 = vpop.f32.mrf.mxu0 }
 0x19a   :  { %v2088_v48 = vadd.f32 %v3395_v14, %v1532_v46  ;;  %v1530_v47 = vadd.f32 %v1395_v50, %v4318_v32  ;;  %v1951_v57 = vpop.f32.mrf.mxu1  ;;  %v4712_v14 = vld [vmem:[#allocation4_spill] sm:$0xff] }
 0x19b   :  { %2595 = vst.msk [vmem:[%s4686_s2 + $0x90] sm:$0xf] %vm2558_vm3, %v2993_v23  ;;  %v2277_v15 = vsel %vm2149_vm11, %v2085_v44, %v2213_v21  ;;  %vm2147_vm12 = vcmp.gt.f32.partialorder %v2083_v51, 0.0  ;;  %v2211_v45 = vmul.f32 0.2, %v2083_v51  ;;  %v3330_v43 = vpop.f32.mrf.mxu0 }
 0x19c   :  { %v2996_v31 = vpack.c.bf16 %v2277_v15, %v2277_v15  ;;  %vm2152_vm13 = vcmp.gt.f32.partialorder %v2088_v48, 0.0  ;;  %v2216_v2 = vmul.f32 0.2, %v2088_v48  ;;  %v2086_v62 = vadd.f32 %v1951_v57, %v1530_v47  ;;  %v3396_v33 = vpop.f32.mrf.mxu1 }
 0x19d   :  { %v2275_v58 = vsel %vm2147_vm12, %v2083_v51, %v2211_v45  ;;  %v1533_v49 = vadd.f32 %v3330_v43, %v4320_v0  ;;  %v1398_v26 = vpop.f32.mrf.mxu0 }
 0x19e   :  { %2598 = vst.msk [vmem:[%s4686_s2 + $0x9c] sm:$0xf] %vm2558_vm3, %v2996_v31  ;;  %v2994_v32 = vpack.c.bf16 %v2275_v58, %v2275_v58  ;;  %v2280_v12 = vsel %vm2152_vm13, %v2088_v48, %v2216_v2  ;;  %vm2150_vm14 = vcmp.gt.f32.partialorder %v2086_v62, 0.0  ;;  %v2214_v42 = vmul.f32 0.2, %v2086_v62  ;;  %v1954_v8 = vpop.f32.mrf.mxu1  ;;  %v4713_v31 = vld [vmem:[#allocation5_spill] sm:$0xff] }
 0x19f   :  { %v2999_v25 = vpack.c.bf16 %v2280_v12, %v2280_v12  ;;  %v2089_v60 = vadd.f32 %v3396_v33, %v1533_v49  ;;  %v1531_v19 = vadd.f32 %v1398_v26, %v4322_v6  ;;  %v3333_v40 = vpop.f32.mrf.mxu0 }
 0x1a0   :  { %2596 = vst.msk [vmem:[%s4686_s2 + $0x94] sm:$0xf] %vm2558_vm3, %v2994_v32  ;;  %v2278_v0 = vsel %vm2150_vm14, %v2086_v62, %v2214_v42  ;;  %v1536_v56 = vadd.f32 %v3333_v40, %v4324_v41  ;;  %v3399_v1 = vpop.f32.mrf.mxu1  ;;  %v4714_v42 = vld [vmem:[#allocation6_spill] sm:$0xff] }
 0x1a1   :  { %2601 = vst.msk [vmem:[%s4686_s2 + $0xa8] sm:$0xf] %vm2558_vm3, %v2999_v25  ;;  %v2997_v24 = vpack.c.bf16 %v2278_v0, %v2278_v0  ;;  %vm2153_vm15 = vcmp.gt.f32.partialorder %v2089_v60, 0.0  ;;  %v2217_v39 = vmul.f32 0.2, %v2089_v60  ;;  %v2087_v17 = vadd.f32 %v1954_v8, %v1531_v19  ;;  %v1411_v6 = vpop.f32.mrf.mxu0  ;;  %v4715_v19 = vld [vmem:[#allocation7_spill] sm:$0xff] }
 0x1a2   :  { %v2092_v4 = vadd.f32 %v3399_v1, %v1536_v56  ;;  %v1534_v3 = vadd.f32 %v1411_v6, %v4326_v11  ;;  %v1967_v59 = vpop.f32.mrf.mxu1  ;;  %v4716_v6 = vld [vmem:[#allocation8_spill] sm:$0xff] }
 0x1a3   :  { %2599 = vst.msk [vmem:[%s4686_s2 + $0xa0] sm:$0xf] %vm2558_vm3, %v2997_v24  ;;  %v2281_v41 = vsel %vm2153_vm15, %v2089_v60, %v2217_v39  ;;  %vm2151_vm0 = vcmp.gt.f32.partialorder %v2087_v17, 0.0  ;;  %v2215_v9 = vmul.f32 0.2, %v2087_v17  ;;  %v3334_v29 = vpop.f32.mrf.mxu0 }
 0x1a4   :  { %v3000_v27 = vpack.c.bf16 %v2281_v41, %v2281_v41  ;;  %vm2156_vm1 = vcmp.gt.f32.partialorder %v2092_v4, 0.0  ;;  %v2220_v52 = vmul.f32 0.2, %v2092_v4  ;;  %v2090_v22 = vadd.f32 %v1967_v59, %v1534_v3  ;;  %v3400_v30 = vpop.f32.mrf.mxu1 }
 0x1a5   :  { %v2279_v16 = vsel %vm2151_vm0, %v2087_v17, %v2215_v9  ;;  %v1537_v55 = vadd.f32 %v3334_v29, %v4328_v34  ;;  %v1414_v7 = vpop.f32.mrf.mxu0 }
 0x1a6   :  { %2602 = vst.msk [vmem:[%s4686_s2 + $0xac] sm:$0xf] %vm2558_vm3, %v3000_v27  ;;  %v2998_v11 = vpack.c.bf16 %v2279_v16, %v2279_v16  ;;  %v2284_v20 = vsel %vm2156_vm1, %v2092_v4, %v2220_v52  ;;  %vm2154_vm2 = vcmp.gt.f32.partialorder %v2090_v22, 0.0  ;;  %v2218_v18 = vmul.f32 0.2, %v2090_v22  ;;  %v1970_v38 = vpop.f32.mrf.mxu1  ;;  %v4717_v16 = vld [vmem:[#allocation9_spill] sm:$0xff] }
 0x1a7   :  { %v3003_v28 = vpack.c.bf16 %v2284_v20, %v2284_v20  ;;  %v2093_v53 = vadd.f32 %v3400_v30, %v1537_v55  ;;  %v1535_v5 = vadd.f32 %v1414_v7, %v4710_v13  ;;  %v3337_v37 = vpop.f32.mrf.mxu0  ;;  %v4718_v13 = vld [vmem:[#allocation10_spill] sm:$0xff] }
 0x1a8   :  { %2600 = vst.msk [vmem:[%s4686_s2 + $0xa4] sm:$0xf] %vm2558_vm3, %v2998_v11  ;;  %v2282_v34 = vsel %vm2154_vm2, %v2090_v22, %v2218_v18  ;;  %v1540_v61 = vadd.f32 %v3337_v37, %v4711_v35  ;;  %v3403_v54 = vpop.f32.mrf.mxu1  ;;  %v4719_v35 = vld [vmem:[#allocation11_spill] sm:$0xff] }
 0x1a9   :  { %2605 = vst.msk [vmem:[%s4686_s2 + $0xb8] sm:$0xf] %vm2558_vm3, %v3003_v28  ;;  %v3001_v44 = vpack.c.bf16 %v2282_v34, %v2282_v34  ;;  %vm2157_vm4 = vcmp.gt.f32.partialorder %v2093_v53, 0.0  ;;  %v2221_v10 = vmul.f32 0.2, %v2093_v53  ;;  %v2091_v36 = vadd.f32 %v1970_v38, %v1535_v5  ;;  %v1427_v63 = vpop.f32.mrf.mxu0 }
 0x1aa   :  { %v2096_v46 = vadd.f32 %v3403_v54, %v1540_v61  ;;  %v1538_v23 = vadd.f32 %v1427_v63, %v4712_v14  ;;  %v1983_v21 = vpop.f32.mrf.mxu1  ;;  %v4720_v14 = vld [vmem:[#allocation12_spill] sm:$0xff] }
 0x1ab   :  { %2603 = vst.msk [vmem:[%s4686_s2 + $0xb0] sm:$0xf] %vm2558_vm3, %v3001_v44  ;;  %v2285_v51 = vsel %vm2157_vm4, %v2093_v53, %v2221_v10  ;;  %vm2155_vm5 = vcmp.gt.f32.partialorder %v2091_v36, 0.0  ;;  %v2219_v50 = vmul.f32 0.2, %v2091_v36  ;;  %v3338_v48 = vpop.f32.mrf.mxu0 }
 0x1ac   :  { %v3004_v47 = vpack.c.bf16 %v2285_v51, %v2285_v51  ;;  %vm2160_vm6 = vcmp.gt.f32.partialorder %v2096_v46, 0.0  ;;  %v2224_v57 = vmul.f32 0.2, %v2096_v46  ;;  %v2094_v15 = vadd.f32 %v1983_v21, %v1538_v23  ;;  %v3404_v45 = vpop.f32.mrf.mxu1 }
 0x1ad   :  { %v2283_v43 = vsel %vm2155_vm5, %v2091_v36, %v2219_v50  ;;  %v1541_v2 = vadd.f32 %v3338_v48, %v4713_v31  ;;  %v1430_v62 = vpop.f32.mrf.mxu0  ;;  %v4721_v31 = vld [vmem:[#allocation13_spill] sm:$0xff] }
 0x1ae   :  { %2606 = vst.msk [vmem:[%s4686_s2 + $0xbc] sm:$0xf] %vm2558_vm3, %v3004_v47  ;;  %v3002_v33 = vpack.c.bf16 %v2283_v43, %v2283_v43  ;;  %v2288_v58 = vsel %vm2160_vm6, %v2096_v46, %v2224_v57  ;;  %vm2158_vm7 = vcmp.gt.f32.partialorder %v2094_v15, 0.0  ;;  %v2222_v49 = vmul.f32 0.2, %v2094_v15  ;;  %v1986_v26 = vpop.f32.mrf.mxu1 }
 0x1af   :  { %v3007_v32 = vpack.c.bf16 %v2288_v58, %v2288_v58  ;;  %v2097_v12 = vadd.f32 %v3404_v45, %v1541_v2  ;;  %v1539_v8 = vadd.f32 %v1430_v62, %v4714_v42  ;;  %v3341_v25 = vpop.f32.mrf.mxu0  ;;  %v4722_v42 = vld [vmem:[#allocation14_spill] sm:$0xff] }
 0x1b0   :  { %2604 = vst.msk [vmem:[%s4686_s2 + $0xb4] sm:$0xf] %vm2558_vm3, %v3002_v33  ;;  %v2286_v60 = vsel %vm2158_vm7, %v2094_v15, %v2222_v49  ;;  %v1544_v40 = vadd.f32 %v3341_v25, %v4715_v19  ;;  %v3407_v0 = vpop.f32.mrf.mxu1  ;;  %v4723_v19 = vld [vmem:[#allocation15_spill] sm:$0xff] }
 0x1b1   :  { %2609 = vst.msk [vmem:[%s4686_s2 + $0xc8] sm:$0xf] %vm2558_vm3, %v3007_v32  ;;  %v3005_v56 = vpack.c.bf16 %v2286_v60, %v2286_v60  ;;  %vm2161_vm8 = vcmp.gt.f32.partialorder %v2097_v12, 0.0  ;;  %v2225_v1 = vmul.f32 0.2, %v2097_v12  ;;  %v2095_v24 = vadd.f32 %v1986_v26, %v1539_v8  ;;  %v1443_v39 = vpop.f32.mrf.mxu0 }
 0x1b2   :  { %v2100_v17 = vadd.f32 %v3407_v0, %v1544_v40  ;;  %v1542_v4 = vadd.f32 %v1443_v39, %v4716_v6  ;;  %v1999_v3 = vpop.f32.mrf.mxu1  ;;  %v4724_v6 = vld [vmem:[#allocation16_spill] sm:$0xff] }
 0x1b3   :  { %2607 = vst.msk [vmem:[%s4686_s2 + $0xc0] sm:$0xf] %vm2558_vm3, %v3005_v56  ;;  %v2289_v59 = vsel %vm2161_vm8, %v2097_v12, %v2225_v1  ;;  %vm2159_vm9 = vcmp.gt.f32.partialorder %v2095_v24, 0.0  ;;  %v2223_v41 = vmul.f32 0.2, %v2095_v24  ;;  %v3342_v9 = vpop.f32.mrf.mxu0 }
 0x1b4   :  { %v3008_v29 = vpack.c.bf16 %v2289_v59, %v2289_v59  ;;  %vm2164_vm10 = vcmp.gt.f32.partialorder %v2100_v17, 0.0  ;;  %v2228_v27 = vmul.f32 0.2, %v2100_v17  ;;  %v2098_v52 = vadd.f32 %v1999_v3, %v1542_v4  ;;  %v3408_v22 = vpop.f32.mrf.mxu1 }
 0x1b5   :  { %v2287_v30 = vsel %vm2159_vm9, %v2095_v24, %v2223_v41  ;;  %v1545_v55 = vadd.f32 %v3342_v9, %v4717_v16  ;;  %v1446_v7 = vpop.f32.mrf.mxu0  ;;  %v4725_v16 = vld [vmem:[#allocation17_spill] sm:$0xff] }
 0x1b6   :  { %2610 = vst.msk [vmem:[%s4686_s2 + $0xcc] sm:$0xf] %vm2558_vm3, %v3008_v29  ;;  %v3006_v11 = vpack.c.bf16 %v2287_v30, %v2287_v30  ;;  %v2292_v20 = vsel %vm2164_vm10, %v2100_v17, %v2228_v27  ;;  %vm2162_vm11 = vcmp.gt.f32.partialorder %v2098_v52, 0.0  ;;  %v2226_v18 = vmul.f32 0.2, %v2098_v52  ;;  %v2002_v38 = vpop.f32.mrf.mxu1 }
 0x1b7   :  { %v3011_v28 = vpack.c.bf16 %v2292_v20, %v2292_v20  ;;  %v2101_v53 = vadd.f32 %v3408_v22, %v1545_v55  ;;  %v1543_v5 = vadd.f32 %v1446_v7, %v4718_v13  ;;  %v3345_v37 = vpop.f32.mrf.mxu0 }
 0x1b8   :  { %2608 = vst.msk [vmem:[%s4686_s2 + $0xc4] sm:$0xf] %vm2558_vm3, %v3006_v11  ;;  %v2290_v34 = vsel %vm2162_vm11, %v2098_v52, %v2226_v18  ;;  %v1548_v61 = vadd.f32 %v3345_v37, %v4719_v35  ;;  %v3411_v54 = vpop.f32.mrf.mxu1 }
 0x1b9   :  { %2613 = vst.msk [vmem:[%s4686_s2 + $0xd8] sm:$0xf] %vm2558_vm3, %v3011_v28  ;;  %v3009_v44 = vpack.c.bf16 %v2290_v34, %v2290_v34  ;;  %vm2165_vm12 = vcmp.gt.f32.partialorder %v2101_v53, 0.0  ;;  %v2229_v10 = vmul.f32 0.2, %v2101_v53  ;;  %v2099_v36 = vadd.f32 %v2002_v38, %v1543_v5  ;;  %v1459_v63 = vpop.f32.mrf.mxu0 }
 0x1ba   :  { %v2104_v46 = vadd.f32 %v3411_v54, %v1548_v61  ;;  %v1546_v23 = vadd.f32 %v1459_v63, %v4720_v14  ;;  %v2015_v21 = vpop.f32.mrf.mxu1 }
 0x1bb   :  { %2611 = vst.msk [vmem:[%s4686_s2 + $0xd0] sm:$0xf] %vm2558_vm3, %v3009_v44  ;;  %v2293_v51 = vsel %vm2165_vm12, %v2101_v53, %v2229_v10  ;;  %vm2163_vm13 = vcmp.gt.f32.partialorder %v2099_v36, 0.0  ;;  %v2227_v50 = vmul.f32 0.2, %v2099_v36  ;;  %v3346_v48 = vpop.f32.mrf.mxu0  ;;  %v4726_v53 = vld [vmem:[#allocation18_spill] sm:$0xff] }
 0x1bc   :  { %v3012_v47 = vpack.c.bf16 %v2293_v51, %v2293_v51  ;;  %vm2168_vm14 = vcmp.gt.f32.partialorder %v2104_v46, 0.0  ;;  %v2232_v57 = vmul.f32 0.2, %v2104_v46  ;;  %v2102_v15 = vadd.f32 %v2015_v21, %v1546_v23  ;;  %v3412_v45 = vpop.f32.mrf.mxu1 }
 0x1bd   :  { %v2291_v43 = vsel %vm2163_vm13, %v2099_v36, %v2227_v50  ;;  %v1549_v2 = vadd.f32 %v3346_v48, %v4721_v31  ;;  %v1462_v62 = vpop.f32.mrf.mxu0 }
 0x1be   :  { %2614 = vst.msk [vmem:[%s4686_s2 + $0xdc] sm:$0xf] %vm2558_vm3, %v3012_v47  ;;  %v3010_v33 = vpack.c.bf16 %v2291_v43, %v2291_v43  ;;  %v2296_v58 = vsel %vm2168_vm14, %v2104_v46, %v2232_v57  ;;  %vm2166_vm15 = vcmp.gt.f32.partialorder %v2102_v15, 0.0  ;;  %v2230_v49 = vmul.f32 0.2, %v2102_v15  ;;  %v2018_v26 = vpop.f32.mrf.mxu1 }
 0x1bf   :  { %v3015_v32 = vpack.c.bf16 %v2296_v58, %v2296_v58  ;;  %v2105_v12 = vadd.f32 %v3412_v45, %v1549_v2  ;;  %v1547_v8 = vadd.f32 %v1462_v62, %v4722_v42  ;;  %v3349_v25 = vpop.f32.mrf.mxu0 }
 0x1c0   :  { %2612 = vst.msk [vmem:[%s4686_s2 + $0xd4] sm:$0xf] %vm2558_vm3, %v3010_v33  ;;  %v2294_v60 = vsel %vm2166_vm15, %v2102_v15, %v2230_v49  ;;  %v1552_v40 = vadd.f32 %v3349_v25, %v4723_v19  ;;  %v3415_v0 = vpop.f32.mrf.mxu1 }
 0x1c1   :  { %2617 = vst.msk [vmem:[%s4686_s2 + $0xe8] sm:$0xf] %vm2558_vm3, %v3015_v32  ;;  %v3013_v56 = vpack.c.bf16 %v2294_v60, %v2294_v60  ;;  %vm2169_vm0 = vcmp.gt.f32.partialorder %v2105_v12, 0.0  ;;  %v2233_v1 = vmul.f32 0.2, %v2105_v12  ;;  %v2103_v24 = vadd.f32 %v2018_v26, %v1547_v8  ;;  %v1475_v39 = vpop.f32.mrf.mxu0 }
 0x1c2   :  { %v2108_v17 = vadd.f32 %v3415_v0, %v1552_v40  ;;  %v1550_v4 = vadd.f32 %v1475_v39, %v4724_v6  ;;  %v2031_v3 = vpop.f32.mrf.mxu1 }
 0x1c3   :  { %2615 = vst.msk [vmem:[%s4686_s2 + $0xe0] sm:$0xf] %vm2558_vm3, %v3013_v56  ;;  %v2297_v59 = vsel %vm2169_vm0, %v2105_v12, %v2233_v1  ;;  %vm2167_vm1 = vcmp.gt.f32.partialorder %v2103_v24, 0.0  ;;  %v2231_v41 = vmul.f32 0.2, %v2103_v24  ;;  %v3350_v9 = vpop.f32.mrf.mxu0 }
 0x1c4   :  { %v3016_v29 = vpack.c.bf16 %v2297_v59, %v2297_v59  ;;  %vm2172_vm2 = vcmp.gt.f32.partialorder %v2108_v17, 0.0  ;;  %v2236_v27 = vmul.f32 0.2, %v2108_v17  ;;  %v2106_v52 = vadd.f32 %v2031_v3, %v1550_v4  ;;  %v3416_v22 = vpop.f32.mrf.mxu1 }
 0x1c5   :  { %v2295_v30 = vsel %vm2167_vm1, %v2103_v24, %v2231_v41  ;;  %v1553_v55 = vadd.f32 %v3350_v9, %v4725_v16  ;;  %v1478_v7 = vpop.f32.mrf.mxu0 }
 0x1c6   :  { %2618 = vst.msk [vmem:[%s4686_s2 + $0xec] sm:$0xf] %vm2558_vm3, %v3016_v29  ;;  %v3014_v11 = vpack.c.bf16 %v2295_v30, %v2295_v30  ;;  %v2300_v20 = vsel %vm2172_vm2, %v2108_v17, %v2236_v27  ;;  %vm2170_vm4 = vcmp.gt.f32.partialorder %v2106_v52, 0.0  ;;  %v2234_v18 = vmul.f32 0.2, %v2106_v52  ;;  %v2034_v37 = vpop.f32.mrf.mxu1 }
 0x1c7   :  { %v3019_v38 = vpack.c.bf16 %v2300_v20, %v2300_v20  ;;  %v2109_v28 = vadd.f32 %v3416_v22, %v1553_v55  ;;  %v1551_v13 = vadd.f32 %v1478_v7, %v4726_v53 }
 0x1c8   :  { %2616 = vst.msk [vmem:[%s4686_s2 + $0xe4] sm:$0xf] %vm2558_vm3, %v3014_v11  ;;  %v2298_v5 = vsel %vm2170_vm4, %v2106_v52, %v2234_v18 }
 0x1c9   :  { %2621 = vst.msk [vmem:[%s4686_s2 + $0xf8] sm:$0xf] %vm2558_vm3, %v3019_v38  ;;  %v3017_v34 = vpack.c.bf16 %v2298_v5, %v2298_v5  ;;  %vm2173_vm5 = vcmp.gt.f32.partialorder %v2109_v28, 0.0  ;;  %v2237_v35 = vmul.f32 0.2, %v2109_v28  ;;  %v2107_v61 = vadd.f32 %v2034_v37, %v1551_v13 }
 0x1cb   :  { %2619 = vst.msk [vmem:[%s4686_s2 + $0xf0] sm:$0xf] %vm2558_vm3, %v3017_v34  ;;  %v2301_v54 = vsel %vm2173_vm5, %v2109_v28, %v2237_v35  ;;  %vm2171_vm6 = vcmp.gt.f32.partialorder %v2107_v61, 0.0  ;;  %v2235_v44 = vmul.f32 0.2, %v2107_v61 }
 0x1cc   :  { %v3020_v10 = vpack.c.bf16 %v2301_v54, %v2301_v54 }
 0x1cd   :  { %v2299_v36 = vsel %vm2171_vm6, %v2107_v61, %v2235_v44 }
 0x1ce   :  { %2622 = vst.msk [vmem:[%s4686_s2 + $0xfc] sm:$0xf] %vm2558_vm3, %v3020_v10  ;;  %v3018_v63 = vpack.c.bf16 %v2299_v36, %v2299_v36 }
 0x1d0   :  { %2620 = vst.msk [vmem:[%s4686_s2 + $0xf4] sm:$0xf] %vm2558_vm3, %v3018_v63 }

// kernel: d_forward.6
= control target key start
LH: loop header
LB: loop body
LE: loop exit
PB: predicated region body
PF: predicated region fallthrough
CT: control target
= control target key end

     0   :  { %vm223_vm0 = vcmask 1046528   ;;  %s3450_s1 = inlined_call_operand.vmem [shape: bf16[4,256,128], index: 1, kind: input, shape index: {}]   ;;  %s3451_s0 = inlined_call_operand.vmem [shape: f32[2,9,9,256], index: 0, kind: input, shape index: {}]   ;;  %s3452_s2 = inlined_call_operand.vmem [shape: bf16[128,128], index: 2, kind: output, shape index: {0}]   ;;  %s3453_s3 = inlined_call_operand.vmem [shape: f32[1,8,128], index: 3, kind: output, shape index: {1}]   ;;  %s3454_s4 = inlined_call_operand.vmem [shape: f32[1,8,128], index: 4, kind: output, shape index: {2}]  }
   0x1   :  { %v2351_v0 = vld [vmem:[%s3450_s1 + $0xf8] sm:$0xff]   ;;  %v2355_v4 = vld [vmem:[%s3450_s1 + $0xf0] sm:$0xff]   ;;  %v2359_v8 = vld [vmem:[%s3450_s1 + $0xe8] sm:$0xff]  }
   0x2   :  { %v2352_v1 = vld [vmem:[%s3450_s1 + $0x78] sm:$0xff]   ;;  %2095 = vmatprep.subr.bf16.mxu0 %v2351_v0  ;;  %v2356_v5 = vld [vmem:[%s3450_s1 + $0x70] sm:$0xff]   ;;  %v2360_v9 = vld [vmem:[%s3450_s1 + $0x68] sm:$0xff]  }
   0x3   :  { %v2353_v2 = vld [vmem:[%s3450_s1 + $0xb8] sm:$0xff]   ;;  %2159 = vmatprep.subr.bf16.mxu1 %v2352_v1  ;;  %v2357_v6 = vld [vmem:[%s3450_s1 + $0xb0] sm:$0xff]   ;;  %v2361_v10 = vld [vmem:[%s3450_s1 + $0xa8] sm:$0xff]  }
   0x4   :  { %v2354_v3 = vld [vmem:[%s3450_s1 + $0x38] sm:$0xff]   ;;  %2096 = vmatpush3.bf16.msra.mxu0 %v2353_v2  ;;  %v2358_v7 = vld [vmem:[%s3450_s1 + $0x30] sm:$0xff]   ;;  %v2362_v11 = vld [vmem:[%s3450_s1 + $0x28] sm:$0xff]  }
   0x5   :  { %2160 = vmatpush3.bf16.msra.mxu1 %v2354_v3  ;;  %2097 = vmatprep.subr.bf16.mxu0 %v2355_v4  ;;  %v2363_v12 = vld [vmem:[%s3450_s1 + $0xe0] sm:$0xff]   ;;  %v2367_v16 = vld [vmem:[%s3450_s1 + $0xd8] sm:$0xff]   ;;  %v2371_v20 = vld [vmem:[%s3450_s1 + $0xd0] sm:$0xff]  }
   0x6   :  { %2161 = vmatprep.subr.bf16.mxu1 %v2356_v5  ;;  %v2364_v13 = vld [vmem:[%s3450_s1 + $0x60] sm:$0xff]   ;;  %v2368_v17 = vld [vmem:[%s3450_s1 + $0x58] sm:$0xff]   ;;  %v2372_v21 = vld [vmem:[%s3450_s1 + $0x50] sm:$0xff]  }
   0x7   :  { %v2365_v14 = vld [vmem:[%s3450_s1 + $0xa0] sm:$0xff]   ;;  %v2369_v18 = vld [vmem:[%s3450_s1 + $0x98] sm:$0xff]   ;;  %v2373_v22 = vld [vmem:[%s3450_s1 + $0x90] sm:$0xff]  }
   0x8   :  { %2098 = vmatpush3.bf16.msra.mxu0 %v2357_v6  ;;  %v2366_v15 = vld [vmem:[%s3450_s1 + $0x20] sm:$0xff]   ;;  %v2370_v19 = vld [vmem:[%s3450_s1 + $0x18] sm:$0xff]   ;;  %v2374_v23 = vld [vmem:[%s3450_s1 + $0x10] sm:$0xff]  }
   0x9   :  { %2162 = vmatpush3.bf16.msra.mxu1 %v2358_v7  ;;  %2099 = vmatprep.subr.bf16.mxu0 %v2359_v8  ;;  %v2375_v24 = vld [vmem:[%s3450_s1 + $0xc8] sm:$0xff]   ;;  %v2379_v28 = vld [vmem:[%s3450_s1 + $0xc0] sm:$0xff]   ;;  %v98_v33 = vld [vmem:[%s3451_s0 + $0x18] sm:$0x1] }
   0xa   :  { %2163 = vmatprep.subr.bf16.mxu1 %v2360_v9  ;;  %v2376_v25 = vld [vmem:[%s3450_s1 + $0x48] sm:$0xff]   ;;  %v2380_v29 = vld [vmem:[%s3450_s1 + $0x40] sm:$0xff]   ;;  %v102_v35 = vld [vmem:[%s3451_s0 + $0x38] sm:$0x1]  ;;  %v228_v37 = vrot.slane %v98_v33, 1 }
   0xb   :  { %v2377_v26 = vld [vmem:[%s3450_s1 + $0x88] sm:$0xff]   ;;  %v2381_v30 = vld [vmem:[%s3450_s1 + $0x80] sm:$0xff]   ;;  %v234_v40 = vrot.slane %v102_v35, 1  ;;  %v97_v43 = vld [vmem:[%s3451_s0 + $0x10] sm:$0x1] }
   0xc   :  { %2100 = vmatpush3.bf16.msra.mxu0 %v2361_v10  ;;  %v2378_v27 = vld [vmem:[%s3450_s1 + $0x8] sm:$0xff]   ;;  %v2382_v31 = vld [vmem:[%s3450_s1] sm:$0xff]   ;;  %v101_v47 = vld [vmem:[%s3451_s0 + $0x30] sm:$0x1]  ;;  %v225_v49 = vrot.slane %v97_v43, 1 }
   0xd   :  { %2164 = vmatpush3.bf16.msra.mxu1 %v2362_v11  ;;  %2101 = vmatprep.subr.bf16.mxu0 %v2363_v12  ;;  %v96_v32 = vld [vmem:[%s3451_s0 + $0x8] sm:$0xfe]  ;;  %v95_v42 = vld [vmem:[%s3451_s0] sm:$0xfe]  ;;  %v231_v52 = vrot.slane %v101_v47, 1  ;;  %v2383_v58 = vld [vmem:[%s3450_s1 + $0x178] sm:$0xff]  }
   0xe   :  { %2165 = vmatprep.subr.bf16.mxu1 %v2364_v13  ;;  %v100_v34 = vld [vmem:[%s3451_s0 + $0x28] sm:$0xfe]  ;;  %v227_v36 = vrot.slane %v96_v32, 1  ;;  %v99_v46 = vld [vmem:[%s3451_s0 + $0x20] sm:$0xfe]  ;;  %v224_v48 = vrot.slane %v95_v42, 1 }
   0xf   :  { %v233_v38 = vrot.slane %v100_v34, 1  ;;  %v16_v39 = vld [vmem:[%s3451_s0 + $0x8] sm:$0xff]  ;;  %v230_v51 = vrot.slane %v99_v46, 1  ;;  %v15_v53 = vld [vmem:[%s3451_s0] sm:$0xff]  ;;  %v2384_v60 = vld [vmem:[%s3450_s1 + $0x138] sm:$0xff]  }
  0x10   :  { %2102 = vmatpush3.bf16.msra.mxu0 %v2365_v14  ;;  %v2554_v41 = vld [vmem:[%s3451_s0 + $0x28] sm:$0xff]  ;;  %v229_v44 = vsel %vm223_vm0, %v227_v36, %v228_v37  ;;  %v2577_v54 = vld [vmem:[%s3451_s0 + $0x20] sm:$0xff]  ;;  %v226_v56 = vsel %vm223_vm0, %v224_v48, %v225_v49  ;;  %v2385_v62 = vld [vmem:[%s3450_s1 + $0x1f8] sm:$0xff]  }
  0x11   :  { %2166 = vmatpush3.bf16.msra.mxu1 %v2366_v15  ;;  %2103 = vmatprep.subr.bf16.mxu0 %v2367_v16  ;;  %v48_v45 = vpack.c.bf16 %v2554_v41, %v16_v39  ;;  %v235_v50 = vsel %vm223_vm0, %v233_v38, %v234_v40  ;;  %v47_v57 = vpack.c.bf16 %v2577_v54, %v15_v53  ;;  %v2386_v63 = vld [vmem:[%s3450_s1 + $0x1b8] sm:$0xff]   ;;  %v104_v0 = vld [vmem:[%s3451_s0 + $0x48] sm:$0xfe]  ;;  %v103_v11 = vld [vmem:[%s3451_s0 + $0x40] sm:$0xfe] }
  0x12   :  { %2167 = vmatprep.subr.bf16.mxu1 %v2368_v17  ;;  %v353_v55 = vpack.c.bf16 %v235_v50, %v229_v44  ;;  %v232_v59 = vsel %vm223_vm0, %v230_v51, %v231_v52  ;;  %v106_v1 = vld [vmem:[%s3451_s0 + $0x58] sm:$0x1]  ;;  %v108_v2 = vld [vmem:[%s3451_s0 + $0x68] sm:$0xfe]  ;;  %v239_v4 = vrot.slane %v104_v0, 1  ;;  %v236_v17 = vrot.slane %v103_v11, 1 }
  0x13   :  { %722 = vmatprep.mubr.bf16.mxu1 %v48_v45  ;;  %v352_v61 = vpack.c.bf16 %v232_v59, %v226_v56  ;;  %v110_v3 = vld [vmem:[%s3451_s0 + $0x78] sm:$0x1]  ;;  %v240_v5 = vrot.slane %v106_v1, 1  ;;  %v245_v6 = vrot.slane %v108_v2, 1  ;;  %v2609_v8 = vld [vmem:[%s3451_s0 + $0x48] sm:$0xff]  ;;  %v2699_v53 = vld [vmem:[%s3451_s0 + $0x80] sm:$0xff] }
  0x14   :  { %2104 = vmatpush3.bf16.msra.mxu0 %v2369_v18  ;;  %529 = vmatprep.mubr.bf16.mxu0 %v353_v55  ;;  %v246_v7 = vrot.slane %v110_v3, 1  ;;  %v2614_v9 = vld [vmem:[%s3451_s0 + $0x68] sm:$0xff]  ;;  %v105_v12 = vld [vmem:[%s3451_s0 + $0x50] sm:$0x1]  ;;  %v107_v13 = vld [vmem:[%s3451_s0 + $0x60] sm:$0xfe] }
  0x15   :  { %2168 = vmatpush3.bf16.msra.mxu1 %v2370_v19  ;;  %2105 = vmatprep.subr.bf16.mxu0 %v2371_v20  ;;  %v50_v10 = vpack.c.bf16 %v2614_v9, %v2609_v8  ;;  %v241_v14 = vsel %vm223_vm0, %v239_v4, %v240_v5  ;;  %v109_v16 = vld [vmem:[%s3451_s0 + $0x70] sm:$0x1]  ;;  %v237_v18 = vrot.slane %v105_v12, 1  ;;  %v2635_v19 = vld [vmem:[%s3451_s0 + $0x40] sm:$0xff]  ;;  %v112_v32 = vld [vmem:[%s3451_s0 + $0x88] sm:$0xfe] }
  0x16   :  { %2169 = vmatprep.subr.bf16.mxu1 %v2372_v21  ;;  %v247_v15 = vsel %vm223_vm0, %v245_v6, %v246_v7  ;;  %v2640_v20 = vld [vmem:[%s3451_s0 + $0x60] sm:$0xff]  ;;  %v114_v33 = vld [vmem:[%s3451_s0 + $0x98] sm:$0x1]  ;;  %v116_v34 = vld [vmem:[%s3451_s0 + $0xa8] sm:$0xfe]  ;;  %v251_v36 = vrot.slane %v112_v32, 1 }
  0x17   :  { %v355_v21 = vpack.c.bf16 %v247_v15, %v241_v14  ;;  %v118_v35 = vld [vmem:[%s3451_s0 + $0xb8] sm:$0x1]  ;;  %v252_v37 = vrot.slane %v114_v33, 1  ;;  %v257_v38 = vrot.slane %v116_v34, 1  ;;  %v2673_v40 = vld [vmem:[%s3451_s0 + $0x88] sm:$0xff]  ;;  %v2704_v55 = vld [vmem:[%s3451_s0 + $0xa0] sm:$0xff] }
  0x18   :  { %2106 = vmatpush3.bf16.msra.mxu0 %v2373_v22  ;;  %v242_v22 = vrot.slane %v107_v13, 1  ;;  %v258_v39 = vrot.slane %v118_v35, 1  ;;  %v2678_v42 = vld [vmem:[%s3451_s0 + $0xa8] sm:$0xff]  ;;  %v111_v43 = vld [vmem:[%s3451_s0 + $0x80] sm:$0xfe]  ;;  %v51_v59 = vpack.c.bf16 %v2704_v55, %v2699_v53 }
  0x19   :  { %2170 = vmatpush3.bf16.msra.mxu1 %v2374_v23  ;;  %2107 = vmatprep.subr.bf16.mxu0 %v2375_v24  ;;  %v243_v23 = vrot.slane %v109_v16, 1  ;;  %v49_v24 = vpack.c.bf16 %v2640_v20, %v2635_v19  ;;  %v253_v44 = vsel %vm223_vm0, %v251_v36, %v252_v37  ;;  %v52_v45 = vpack.c.bf16 %v2678_v42, %v2673_v40  ;;  %v113_v46 = vld [vmem:[%s3451_s0 + $0x90] sm:$0x1]  ;;  %v115_v47 = vld [vmem:[%s3451_s0 + $0xa0] sm:$0xfe]  ;;  %v2391_v56 = vld [vmem:[%s3450_s1 + $0x168] sm:$0xff]  }
  0x1a   :  { %2171 = vmatprep.subr.bf16.mxu1 %v2376_v25  ;;  %v238_v25 = vsel %vm223_vm0, %v236_v17, %v237_v18  ;;  %v117_v48 = vld [vmem:[%s3451_s0 + $0xb0] sm:$0x1]  ;;  %v259_v49 = vsel %vm223_vm0, %v257_v38, %v258_v39  ;;  %v248_v50 = vrot.slane %v111_v43, 1  ;;  %v249_v51 = vrot.slane %v113_v46, 1  ;;  %v2394_v1 = vld [vmem:[%s3450_s1 + $0x1a8] sm:$0xff]   ;;  %v2395_v32 = vld [vmem:[%s3450_s1 + $0x160] sm:$0xff]  }
  0x1b   :  { %v254_v52 = vrot.slane %v115_v47, 1  ;;  %v120_v2 = vld [vmem:[%s3451_s0 + $0xc8] sm:$0xfe]  ;;  %v122_v3 = vld [vmem:[%s3451_s0 + $0xd8] sm:$0x1]  ;;  %v2396_v34 = vld [vmem:[%s3450_s1 + $0x120] sm:$0xff]  }
  0x1c   :  { %2108 = vmatpush3.bf16.msra.mxu0 %v2377_v26  ;;  %v2387_v26 = vld [vmem:[%s3450_s1 + $0x170] sm:$0xff]   ;;  %v124_v4 = vld [vmem:[%s3451_s0 + $0xe8] sm:$0xfe]  ;;  %v126_v5 = vld [vmem:[%s3451_s0 + $0xf8] sm:$0x1]  ;;  %v263_v6 = vrot.slane %v120_v2, 1 }
  0x1d   :  { %2172 = vmatpush3.bf16.msra.mxu1 %v2378_v27  ;;  %2109 = vmatprep.subr.bf16.mxu0 %v2379_v28  ;;  %v244_v27 = vsel %vm223_vm0, %v242_v22, %v243_v23  ;;  %v2388_v28 = vld [vmem:[%s3450_s1 + $0x130] sm:$0xff]   ;;  %v264_v7 = vrot.slane %v122_v3, 1  ;;  %v270_v11 = vrot.slane %v126_v5, 1  ;;  %v2737_v12 = vld [vmem:[%s3451_s0 + $0xc8] sm:$0xff]  ;;  %v119_v15 = vld [vmem:[%s3451_s0 + $0xc0] sm:$0xfe] }
  0x1e   :  { %2173 = vmatprep.subr.bf16.mxu1 %v2380_v29  ;;  %v354_v29 = vpack.c.bf16 %v244_v27, %v238_v25  ;;  %v2742_v13 = vld [vmem:[%s3451_s0 + $0xe8] sm:$0xff]  ;;  %v121_v16 = vld [vmem:[%s3451_s0 + $0xd0] sm:$0x1]  ;;  %v123_v17 = vld [vmem:[%s3451_s0 + $0xe0] sm:$0xfe]  ;;  %v260_v23 = vrot.slane %v119_v15, 1 }
  0x1f   :  { %v54_v14 = vpack.c.bf16 %v2742_v13, %v2737_v12  ;;  %v265_v18 = vsel %vm223_vm0, %v263_v6, %v264_v7  ;;  %v125_v22 = vld [vmem:[%s3451_s0 + $0xf0] sm:$0x1]  ;;  %v2763_v25 = vld [vmem:[%s3451_s0 + $0xc0] sm:$0xff]  ;;  %v128_v38 = vld [vmem:[%s3451_s0 + $0x128] sm:$0xfe] }
  0x20   :  { %2110 = vmatpush3.bf16.msra.mxu0 %v2381_v30  ;;  %v2389_v30 = vld [vmem:[%s3450_s1 + $0x1f0] sm:$0xff]   ;;  %v2397_v36 = vld [vmem:[%s3450_s1 + $0x1e0] sm:$0xff]   ;;  %v130_v39 = vld [vmem:[%s3451_s0 + $0x138] sm:$0x1] }
  0x21   :  { %2174 = vmatpush3.bf16.msra.mxu1 %v2382_v31  ;;  %2223 = vmatprep.subr.bf16.mxu0 %v2383_v58  ;;  %v2390_v31 = vld [vmem:[%s3450_s1 + $0x1b0] sm:$0xff]   ;;  %v255_v58 = vrot.slane %v117_v48, 1  ;;  %v2398_v37 = vld [vmem:[%s3450_s1 + $0x1a0] sm:$0xff]   ;;  %v132_v43 = vld [vmem:[%s3451_s0 + $0x148] sm:$0xfe]  ;;  %v276_v46 = vrot.slane %v130_v39, 1 }
  0x22   :  { %2287 = vmatprep.subr.bf16.mxu1 %v2385_v62  ;;  %v281_v47 = vrot.slane %v132_v43, 1  ;;  %v2399_v2 = vld [vmem:[%s3450_s1 + $0x158] sm:$0xff]   ;;  %v2885_v39 = vld [vmem:[%s3451_s0 + $0x160] sm:$0xff] }
  0x23   :  { %530 = vmatmul.mubr.bf16.vlgmr.msra.gmra.mxu0 %v352_v61  ;;  %v250_v61 = vsel %vm223_vm0, %v248_v50, %v249_v51  ;;  %v256_v62 = vsel %vm223_vm0, %v254_v52, %v255_v58  ;;  %v2804_v50 = vld [vmem:[%s3451_s0 + $0x148] sm:$0xff]  ;;  %v127_v51 = vld [vmem:[%s3451_s0 + $0x120] sm:$0xfe]  ;;  %v2400_v6 = vld [vmem:[%s3450_s1 + $0x118] sm:$0xff]  }
  0x24   :  { %723 = vmatmul.mubr.bf16.vlgmr.msra.gmra.mxu1 %v47_v57  ;;  %2224 = vmatpush3.bf16.msra.mxu0 %v2384_v60  ;;  %v357_v57 = vpack.c.bf16 %v259_v49, %v253_v44  ;;  %v2392_v60 = vld [vmem:[%s3450_s1 + $0x128] sm:$0xff]   ;;  %v356_v0 = vpack.c.bf16 %v256_v62, %v250_v61  ;;  %v134_v44 = vld [vmem:[%s3451_s0 + $0x158] sm:$0x1]  ;;  %v131_v58 = vld [vmem:[%s3451_s0 + $0x140] sm:$0xfe]  ;;  %v272_v61 = vrot.slane %v127_v51, 1 }
  0x25   :  { %2288 = vmatpush3.bf16.msra.mxu1 %v2386_v63  ;;  %730 = vmatprep.mubr.bf16.mxu1 %v50_v10  ;;  %v2393_v63 = vld [vmem:[%s3450_s1 + $0x1e8] sm:$0xff]   ;;  %v269_v10 = vrot.slane %v124_v4, 1  ;;  %v282_v48 = vrot.slane %v134_v44, 1  ;;  %v2402_v15 = vld [vmem:[%s3450_s1 + $0x198] sm:$0xff]   ;;  %v2890_v43 = vld [vmem:[%s3451_s0 + $0x180] sm:$0xff] }
  0x26   :  { %537 = vmatprep.mubr.bf16.mxu0 %v355_v21  ;;  %2225 = vmatprep.subr.bf16.mxu0 %v2387_v26  ;;  %v2768_v26 = vld [vmem:[%s3451_s0 + $0xe0] sm:$0xff]  ;;  %v32_v49 = vld [vmem:[%s3451_s0 + $0x128] sm:$0xff] }
  0x27   :  { %2289 = vmatprep.subr.bf16.mxu1 %v2389_v30  ;;  %v271_v21 = vsel %vm223_vm0, %v269_v10, %v270_v11  ;;  %v53_v30 = vpack.c.bf16 %v2768_v26, %v2763_v25  ;;  %v2401_v11 = vld [vmem:[%s3450_s1 + $0x1d8] sm:$0xff]  }
  0x28   :  { %2226 = vmatpush3.bf16.msra.mxu0 %v2388_v28  ;;  %v359_v27 = vpack.c.bf16 %v271_v21, %v265_v18  ;;  %v266_v28 = vrot.slane %v123_v17, 1  ;;  %v138_v17 = vld [vmem:[%s3451_s0 + $0x178] sm:$0x1]  ;;  %v140_v18 = vld [vmem:[%s3451_s0 + $0x188] sm:$0xfe] }
  0x29   :  { %2290 = vmatpush3.bf16.msra.mxu1 %v2390_v31  ;;  %2227 = vmatprep.subr.bf16.mxu0 %v2391_v56  ;;  %v56_v56 = vpack.c.bf16 %v2804_v50, %v32_v49  ;;  %v142_v21 = vld [vmem:[%s3451_s0 + $0x198] sm:$0x1]  ;;  %v2403_v49 = vld [vmem:[%s3450_s1 + $0x150] sm:$0xff]  }
  0x2a   :  { %2291 = vmatprep.subr.bf16.mxu1 %v2393_v63  ;;  %v278_v63 = vrot.slane %v131_v58, 1  ;;  %v2406_v58 = vld [vmem:[%s3450_s1 + $0x190] sm:$0xff]  }
  0x2b   :  { %538 = vmatmul.mubr.bf16.gmra.mxu0 %v354_v29  ;;  %v267_v29 = vrot.slane %v125_v22, 1 }
  0x2c   :  { %731 = vmatmul.mubr.bf16.gmra.mxu1 %v49_v24  ;;  %545 = vmatprep.mubr.bf16.mxu0 %v357_v57  ;;  %v261_v24 = vrot.slane %v121_v16, 1  ;;  %v129_v57 = vld [vmem:[%s3451_s0 + $0x130] sm:$0x1]  ;;  %v136_v16 = vld [vmem:[%s3451_s0 + $0x168] sm:$0xfe] }
  0x2d   :  { %738 = vmatprep.mubr.bf16.mxu1 %v52_v45  ;;  %2228 = vmatpush3.bf16.msra.mxu0 %v2392_v60  ;;  %v268_v33 = vsel %vm223_vm0, %v266_v28, %v267_v29  ;;  %v275_v45 = vrot.slane %v128_v38, 1  ;;  %v283_v60 = vsel %vm223_vm0, %v281_v47, %v282_v48  ;;  %v273_v62 = vrot.slane %v129_v57, 1  ;;  %v2859_v28 = vld [vmem:[%s3451_s0 + $0x168] sm:$0xff]  ;;  %v2405_v57 = vld [vmem:[%s3450_s1 + $0x1d0] sm:$0xff]  }
  0x2e   :  { %2292 = vmatpush3.bf16.msra.mxu1 %v2394_v1  ;;  %v262_v31 = vsel %vm223_vm0, %v260_v23, %v261_v24  ;;  %2229 = vmatprep.subr.bf16.mxu0 %v2395_v32  ;;  %v2827_v1 = vld [vmem:[%s3451_s0 + $0x140] sm:$0xff]  ;;  %v287_v22 = vrot.slane %v136_v16, 1  ;;  %v288_v23 = vrot.slane %v138_v17, 1  ;;  %v293_v24 = vrot.slane %v140_v18, 1  ;;  %v2864_v29 = vld [vmem:[%s3451_s0 + $0x188] sm:$0xff] }
  0x2f   :  { %v358_v35 = vpack.c.bf16 %v268_v33, %v262_v31  ;;  %2293 = vmatprep.subr.bf16.mxu1 %v2397_v36  ;;  %v277_v52 = vsel %vm223_vm0, %v275_v45, %v276_v46  ;;  %v274_v7 = vsel %vm223_vm0, %v272_v61, %v273_v62  ;;  %v135_v31 = vld [vmem:[%s3451_s0 + $0x160] sm:$0xfe]  ;;  %v137_v32 = vld [vmem:[%s3451_s0 + $0x170] sm:$0x1]  ;;  %v57_v47 = vpack.c.bf16 %v2890_v43, %v2885_v39  ;;  %v148_v61 = vld [vmem:[%s3451_s0 + $0x1c8] sm:$0xfe] }
  0x30   :  { %v361_v3 = vpack.c.bf16 %v283_v60, %v277_v52  ;;  %v139_v33 = vld [vmem:[%s3451_s0 + $0x180] sm:$0xfe]  ;;  %v141_v36 = vld [vmem:[%s3451_s0 + $0x190] sm:$0x1]  ;;  %v285_v38 = vrot.slane %v137_v32, 1  ;;  %v2408_v32 = vld [vmem:[%s3450_s1 + $0x108] sm:$0xff]  }
  0x31   :  { %2230 = vmatpush3.bf16.msra.mxu0 %v2396_v34  ;;  %v289_v34 = vsel %vm223_vm0, %v287_v22, %v288_v23  ;;  %v290_v45 = vrot.slane %v139_v33, 1  ;;  %v291_v46 = vrot.slane %v141_v36, 1  ;;  %v2404_v52 = vld [vmem:[%s3450_s1 + $0x110] sm:$0xff]   ;;  %v146_v60 = vld [vmem:[%s3451_s0 + $0x1b8] sm:$0x1]  ;;  %v2949_v22 = vld [vmem:[%s3451_s0 + $0x1a0] sm:$0xff] }
  0x32   :  { %2294 = vmatpush3.bf16.msra.mxu1 %v2398_v37  ;;  %2231 = vmatprep.subr.bf16.mxu0 %v2399_v2  ;;  %v284_v37 = vrot.slane %v135_v31, 1  ;;  %v150_v62 = vld [vmem:[%s3451_s0 + $0x1d8] sm:$0x1]  ;;  %v305_v2 = vrot.slane %v148_v61, 1  ;;  %v2954_v23 = vld [vmem:[%s3451_s0 + $0x1c0] sm:$0xff] }
  0x33   :  { %546 = vmatmul.mubr.bf16.gmra.mxu0 %v356_v0  ;;  %v31_v0 = vld [vmem:[%s3451_s0 + $0x120] sm:$0xff]  ;;  %2295 = vmatprep.subr.bf16.mxu1 %v2401_v11  ;;  %v292_v51 = vsel %vm223_vm0, %v290_v45, %v291_v46  ;;  %v145_v11 = vld [vmem:[%s3451_s0 + $0x1b0] sm:$0x1]  ;;  %v59_v31 = vpack.c.bf16 %v2954_v23, %v2949_v22  ;;  %v156_v45 = vld [vmem:[%s3451_s0 + $0x208] sm:$0xfe] }
  0x34   :  { %739 = vmatmul.mubr.bf16.gmra.mxu1 %v51_v59  ;;  %553 = vmatprep.mubr.bf16.mxu0 %v359_v27  ;;  %v133_v59 = vld [vmem:[%s3451_s0 + $0x150] sm:$0x1]  ;;  %v55_v5 = vpack.c.bf16 %v2827_v1, %v31_v0  ;;  %v294_v27 = vrot.slane %v142_v21, 1  ;;  %v286_v48 = vsel %vm223_vm0, %v284_v37, %v285_v38  ;;  %v300_v0 = vrot.slane %v146_v60, 1  ;;  %v2410_v37 = vld [vmem:[%s3450_s1 + $0x188] sm:$0xff]  }
  0x35   :  { %746 = vmatprep.mubr.bf16.mxu1 %v54_v14  ;;  %v279_v4 = vrot.slane %v133_v59, 1  ;;  %2232 = vmatpush3.bf16.msra.mxu0 %v2400_v6  ;;  %v144_v59 = vld [vmem:[%s3451_s0 + $0x1a8] sm:$0xfe]  ;;  %v143_v6 = vld [vmem:[%s3451_s0 + $0x1a0] sm:$0xfe]  ;;  %v297_v18 = vrot.slane %v145_v11, 1 }
  0x36   :  { %2296 = vmatpush3.bf16.msra.mxu1 %v2402_v15  ;;  %2233 = vmatprep.subr.bf16.mxu0 %v2403_v49  ;;  %v149_v15 = vld [vmem:[%s3451_s0 + $0x1d0] sm:$0x1]  ;;  %v296_v17 = vrot.slane %v143_v6, 1  ;;  %v152_v38 = vld [vmem:[%s3451_s0 + $0x1e8] sm:$0xfe]  ;;  %v317_v49 = vrot.slane %v156_v45, 1 }
  0x37   :  { %v280_v10 = vsel %vm223_vm0, %v278_v63, %v279_v4  ;;  %2297 = vmatprep.subr.bf16.mxu1 %v2405_v57  ;;  %v299_v63 = vrot.slane %v144_v59, 1  ;;  %v2923_v4 = vld [vmem:[%s3451_s0 + $0x1a8] sm:$0xff]  ;;  %v158_v46 = vld [vmem:[%s3451_s0 + $0x218] sm:$0x1]  ;;  %v153_v59 = vld [vmem:[%s3451_s0 + $0x1f0] sm:$0x1] }
  0x38   :  { %v360_v14 = vpack.c.bf16 %v280_v10, %v274_v7  ;;  %v298_v33 = vsel %vm223_vm0, %v296_v17, %v297_v18  ;;  %v155_v60 = vld [vmem:[%s3451_s0 + $0x200] sm:$0xfe] }
  0x39   :  { %2234 = vmatpush3.bf16.msra.mxu0 %v2404_v52  ;;  %v301_v7 = vsel %vm223_vm0, %v299_v63, %v300_v0  ;;  %v2987_v52 = vld [vmem:[%s3451_s0 + $0x1e8] sm:$0xff]  ;;  %v157_v63 = vld [vmem:[%s3451_s0 + $0x210] sm:$0x1]  ;;  %v3018_v6 = vld [vmem:[%s3451_s0 + $0x200] sm:$0xff] }
  0x3a   :  { %2298 = vmatpush3.bf16.msra.mxu1 %v2406_v58  ;;  %v151_v58 = vld [vmem:[%s3451_s0 + $0x1e0] sm:$0xfe]  ;;  %v315_v11 = vrot.slane %v157_v63, 1  ;;  %v1917_v63 = vld [vmem:[%s3451_s0 + $0x88] sm:$0xfe] }
  0x3b   :  { %554 = vmatmul.mubr.bf16.gmra.mxu0 %v358_v35  ;;  %v295_v35 = vsel %vm223_vm0, %v293_v24, %v294_v27  ;;  %v2407_v24 = vld [vmem:[%s3450_s1 + $0x148] sm:$0xff]   ;;  %v308_v0 = vrot.slane %v151_v58, 1  ;;  %v2412_v18 = vld [vmem:[%s3450_s1 + $0x100] sm:$0xff]  }
  0x3c   :  { %747 = vmatmul.mubr.bf16.gmra.mxu1 %v53_v30  ;;  %561 = vmatprep.mubr.bf16.mxu0 %v361_v3  ;;  %v58_v30 = vpack.c.bf16 %v2864_v29, %v2859_v28  ;;  %v363_v44 = vpack.c.bf16 %v295_v35, %v289_v34  ;;  %v306_v3 = vrot.slane %v150_v62, 1  ;;  %v2409_v35 = vld [vmem:[%s3450_s1 + $0x1c8] sm:$0xff]   ;;  %v1908_v45 = vld [vmem:[%s3451_s0 + $0x40] sm:$0xfe] }
  0x3d   :  { %754 = vmatprep.mubr.bf16.mxu1 %v56_v56  ;;  %v362_v56 = vpack.c.bf16 %v292_v51, %v286_v48  ;;  %2235 = vmatprep.subr.bf16.mxu0 %v2407_v24  ;;  %v318_v51 = vrot.slane %v158_v46, 1  ;;  %v1910_v46 = vld [vmem:[%s3451_s0 + $0x50] sm:$0x1] }
  0x3e   :  { %v307_v16 = vsel %vm223_vm0, %v305_v2, %v306_v3  ;;  %2236 = vmatpush3.bf16.msra.mxu0 %v2408_v32  ;;  %2299 = vmatprep.subr.bf16.mxu1 %v2409_v35  ;;  %v309_v2 = vrot.slane %v153_v59, 1  ;;  %v3013_v3 = vld [vmem:[%s3451_s0 + $0x1e0] sm:$0xff]  ;;  %v1907_v32 = vld [vmem:[%s3451_s0 + $0x38] sm:$0x1]  ;;  %v1213_v58 = vrot.slane %v1910_v46, 1 }
  0x3f   :  { %v365_v27 = vpack.c.bf16 %v307_v16, %v301_v7  ;;  %2300 = vmatpush3.bf16.msra.mxu1 %v2410_v37  ;;  %v319_v62 = vsel %vm223_vm0, %v317_v49, %v318_v51  ;;  %v2411_v16 = vld [vmem:[%s3450_s1 + $0x140] sm:$0xff]   ;;  %v820_v51 = vpack.c.bf16 %v2635_v19, %v2577_v54  ;;  %v1913_v59 = vld [vmem:[%s3451_s0 + $0x68] sm:$0xfe]  ;;  %v1919_v54 = vld [vmem:[%s3451_s0 + $0x98] sm:$0x1] }
  0x40   :  { %2237 = vmatprep.subr.bf16.mxu0 %v2411_v16  ;;  %v1904_v37 = vld [vmem:[%s3451_s0 + $0x20] sm:$0xfe]  ;;  %v1221_v19 = vrot.slane %v1913_v59, 1  ;;  %v822_v59 = vpack.c.bf16 %v2699_v53, %v2640_v20 }
  0x42   :  { %2238 = vmatpush3.bf16.msra.mxu0 %v2412_v18  ;;  %v1916_v18 = vld [vmem:[%s3451_s0 + $0x80] sm:$0xfe] }
  0x43   :  { %562 = vmatmul.mubr.bf16.gmra.mxu0 %v360_v14  ;;  %v147_v14 = vld [vmem:[%s3451_s0 + $0x1c0] sm:$0xfe] }
  0x44   :  { %755 = vmatmul.mubr.bf16.gmra.mxu1 %v55_v5  ;;  %569 = vmatprep.mubr.bf16.mxu0 %v363_v44  ;;  %v2928_v5 = vld [vmem:[%s3451_s0 + $0x1c8] sm:$0xff]  ;;  %v302_v21 = vrot.slane %v147_v14, 1  ;;  %v154_v44 = vld [vmem:[%s3451_s0 + $0x1f8] sm:$0x1]  ;;  %v61_v14 = vpack.c.bf16 %v3018_v6, %v3013_v3 }
  0x45   :  { %762 = vmatprep.mubr.bf16.mxu1 %v58_v30  ;;  %v60_v10 = vpack.c.bf16 %v2928_v5, %v2923_v4  ;;  %v303_v30 = vrot.slane %v149_v15, 1  ;;  %v312_v48 = vrot.slane %v154_v44, 1  ;;  %v310_v15 = vsel %vm223_vm0, %v308_v0, %v309_v2 }
  0x47   :  { %v304_v34 = vsel %vm223_vm0, %v302_v21, %v303_v30  ;;  %v821_v21 = vpack.c.bf16 %v2609_v8, %v2554_v41  ;;  %v2414_v30 = vld [vmem:[%s3450_s1 + $0x180] sm:$0xff]   ;;  %v1909_v41 = vld [vmem:[%s3451_s0 + $0x48] sm:$0xfe]  ;;  %v1911_v8 = vld [vmem:[%s3451_s0 + $0x58] sm:$0x1] }
  0x48   :  { %v364_v36 = vpack.c.bf16 %v304_v34, %v298_v33  ;;  %v1210_v34 = vrot.slane %v1907_v32, 1  ;;  %v1215_v35 = vrot.slane %v1909_v41, 1  ;;  %v1923_v32 = vld [vmem:[%s3451_s0 + $0xb8] sm:$0x1] }
  0x4b   :  { %570 = vmatmul.mubr.bf16.gmra.mxu0 %v362_v56  ;;  %v2992_v56 = vld [vmem:[%s3451_s0 + $0x208] sm:$0xff] }
  0x4c   :  { %763 = vmatmul.mubr.bf16.gmra.mxu1 %v57_v47  ;;  %577 = vmatprep.mubr.bf16.mxu0 %v365_v27  ;;  %v311_v47 = vrot.slane %v152_v38, 1  ;;  %v62_v57 = vpack.c.bf16 %v2992_v56, %v2987_v52  ;;  %v2413_v27 = vld [vmem:[%s3450_s1 + $0x1c0] sm:$0xff]   ;;  %v1906_v38 = vld [vmem:[%s3451_s0 + $0x30] sm:$0x1] }
  0x4d   :  { %770 = vmatprep.mubr.bf16.mxu1 %v60_v10  ;;  %v314_v10 = vrot.slane %v155_v60, 1  ;;  %2301 = vmatprep.subr.bf16.mxu1 %v2413_v27  ;;  %v1915_v60 = vld [vmem:[%s3451_s0 + $0x78] sm:$0x1]  ;;  %v1224_v27 = vrot.slane %v1916_v18, 1 }
  0x4e   :  { %v313_v61 = vsel %vm223_vm0, %v311_v47, %v312_v48  ;;  %2302 = vmatpush3.bf16.msra.mxu1 %v2414_v30  ;;  %v1206_v47 = vrot.slane %v1904_v37, 1  ;;  %v1207_v48 = vrot.slane %v1906_v38, 1  ;;  %v1222_v0 = vrot.slane %v1915_v60, 1 }
  0x4f   :  { %v367_v7 = vpack.c.bf16 %v319_v62, %v313_v61  ;;  %v316_v17 = vsel %vm223_vm0, %v314_v10, %v315_v11  ;;  %v1227_v10 = vrot.slane %v1917_v63, 1  ;;  %v1228_v11 = vrot.slane %v1919_v54, 1  ;;  %v1933_v63 = vld [vmem:[%s3451_s0 + $0x108] sm:$0xfe]  ;;  %v1935_v54 = vld [vmem:[%s3451_s0 + $0x118] sm:$0x1] }
  0x50   :  { %v366_v24 = vpack.c.bf16 %v316_v17, %v310_v15  ;;  %v1208_v62 = vsel %vm223_vm0, %v1206_v47, %v1207_v48  ;;  %v1914_v15 = vld [vmem:[%s3451_s0 + $0x70] sm:$0x1]  ;;  %v1223_v17 = vsel %vm223_vm0, %v1221_v19, %v1222_v0  ;;  %v1924_v48 = vld [vmem:[%s3451_s0 + $0xc0] sm:$0xfe] }
  0x51   :  { %v1922_v47 = vld [vmem:[%s3451_s0 + $0xb0] sm:$0x1] }
  0x52   :  { %v1231_v0 = vrot.slane %v1922_v47, 1  ;;  %v1938_v47 = vld [vmem:[%s3451_s0 + $0x150] sm:$0x1] }
  0x53   :  { %578 = vmatmul.mubr.bf16.gmra.mxu0 %v364_v36  ;;  %v1216_v36 = vrot.slane %v1911_v8, 1  ;;  %v1925_v8 = vld [vmem:[%s3451_s0 + $0xc8] sm:$0xfe] }
  0x54   :  { %771 = vmatmul.mubr.bf16.gmra.mxu1 %v59_v31  ;;  %585 = vmatprep.mubr.bf16.mxu0 %v367_v7  ;;  %v1905_v31 = vld [vmem:[%s3451_s0 + $0x28] sm:$0xfe]  ;;  %v823_v7 = vpack.c.bf16 %v2673_v40, %v2614_v9  ;;  %v1918_v9 = vld [vmem:[%s3451_s0 + $0x90] sm:$0x1]  ;;  %v1239_v38 = vrot.slane %v1925_v8, 1 }
  0x55   :  { %778 = vmatprep.mubr.bf16.mxu1 %v62_v57  ;;  %v1209_v33 = vrot.slane %v1905_v31, 1  ;;  %v1217_v49 = vsel %vm223_vm0, %v1215_v35, %v1216_v36  ;;  %v1212_v57 = vrot.slane %v1908_v45, 1  ;;  %v1225_v30 = vrot.slane %v1918_v9, 1  ;;  %v1921_v31 = vld [vmem:[%s3451_s0 + $0xa8] sm:$0xfe] }
  0x56   :  { %v1234_v35 = vrot.slane %v1923_v32, 1  ;;  %v1920_v45 = vld [vmem:[%s3451_s0 + $0xa0] sm:$0xfe] }
  0x57   :  { %v1211_v44 = vsel %vm223_vm0, %v1209_v33, %v1210_v34  ;;  %v1214_v2 = vsel %vm223_vm0, %v1212_v57, %v1213_v58  ;;  %v1927_v33 = vld [vmem:[%s3451_s0 + $0xd8] sm:$0x1]  ;;  %v1233_v34 = vrot.slane %v1921_v31, 1  ;;  %v1226_v37 = vsel %vm223_vm0, %v1224_v27, %v1225_v30  ;;  %v1929_v58 = vld [vmem:[%s3451_s0 + $0xe8] sm:$0xfe] }
  0x58   :  { %v1335_v61 = vpack.c.bf16 %v1217_v49, %v1211_v44  ;;  %v1334_v16 = vpack.c.bf16 %v1214_v2, %v1208_v62  ;;  %v1240_v44 = vrot.slane %v1927_v33, 1  ;;  %v1926_v49 = vld [vmem:[%s3451_s0 + $0xd0] sm:$0x1]  ;;  %v1230_v57 = vrot.slane %v1920_v45, 1  ;;  %v1931_v62 = vld [vmem:[%s3451_s0 + $0xf8] sm:$0x1] }
  0x59   :  { %v1235_v46 = vsel %vm223_vm0, %v1233_v34, %v1234_v35  ;;  %v1236_v2 = vrot.slane %v1924_v48, 1  ;;  %v1237_v20 = vrot.slane %v1926_v49, 1  ;;  %v1245_v53 = vrot.slane %v1929_v58, 1  ;;  %v1932_v9 = vld [vmem:[%s3451_s0 + $0x100] sm:$0xfe] }
  0x5a   :  { %v1941_v27 = vld [vmem:[%s3451_s0 + $0x168] sm:$0xfe]  ;;  %v1943_v30 = vld [vmem:[%s3451_s0 + $0x178] sm:$0x1]  ;;  %v824_v31 = vpack.c.bf16 %v2763_v25, %v2704_v55  ;;  %v1248_v35 = vrot.slane %v1932_v9, 1  ;;  %v1838_v55 = vld [vmem:[%s3451_s0 + $0x100] sm:$0xff] }
  0x5b   :  { %586 = vmatmul.mubr.bf16.gmra.mxu0 %v366_v24  ;;  %v1229_v24 = vsel %vm223_vm0, %v1227_v10, %v1228_v11  ;;  %v1251_v10 = vrot.slane %v1933_v63, 1  ;;  %v1238_v11 = vsel %vm223_vm0, %v1236_v2, %v1237_v20  ;;  %v1264_v45 = vrot.slane %v1943_v30, 1  ;;  %v1945_v58 = vld [vmem:[%s3451_s0 + $0x188] sm:$0xfe]  ;;  %v1955_v9 = vld [vmem:[%s3451_s0 + $0x1d8] sm:$0x1] }
  0x5c   :  { %779 = vmatmul.mubr.bf16.gmra.mxu1 %v61_v14  ;;  %997 = vmatprep.mubr.bf16.mxu0 %v821_v21  ;;  %v1912_v14 = vld [vmem:[%s3451_s0 + $0x60] sm:$0xfe]  ;;  %v1219_v21 = vrot.slane %v1914_v15, 1  ;;  %v1337_v41 = vpack.c.bf16 %v1229_v24, %v1223_v17  ;;  %v1939_v24 = vld [vmem:[%s3451_s0 + $0x158] sm:$0x1]  ;;  %v1255_v2 = vrot.slane %v1938_v47, 1  ;;  %v831_v30 = vpack.c.bf16 %v2923_v4, %v2864_v29 }
  0x5d   :  { %1511 = vmatprep.mubr.bf16.mxu1 %v1335_v61  ;;  %v1218_v40 = vrot.slane %v1912_v14, 1  ;;  %v825_v61 = vpack.c.bf16 %v2737_v12, %v2678_v42  ;;  %v1252_v42 = vrot.slane %v1935_v54, 1  ;;  %v1232_v12 = vsel %vm223_vm0, %v1230_v57, %v1231_v0  ;;  %v1839_v14 = vld [vmem:[%s3451_s0 + $0x108] sm:$0xff]  ;;  %v1928_v15 = vld [vmem:[%s3451_s0 + $0xe0] sm:$0xfe] }
  0x5e   :  { %v1338_v32 = vpack.c.bf16 %v1238_v11, %v1232_v12  ;;  %v1242_v8 = vrot.slane %v1928_v15, 1  ;;  %v1942_v57 = vld [vmem:[%s3451_s0 + $0x170] sm:$0x1]  ;;  %v829_v54 = vpack.c.bf16 %v2859_v28, %v2804_v50  ;;  %v1944_v50 = vld [vmem:[%s3451_s0 + $0x180] sm:$0xfe] }
  0x5f   :  { %v1220_v36 = vsel %vm223_vm0, %v1218_v40, %v1219_v21  ;;  %v1253_v18 = vsel %vm223_vm0, %v1251_v10, %v1252_v42  ;;  %v1934_v40 = vld [vmem:[%s3451_s0 + $0x110] sm:$0x1]  ;;  %v1937_v21 = vld [vmem:[%s3451_s0 + $0x148] sm:$0xfe]  ;;  %v1952_v29 = vld [vmem:[%s3451_s0 + $0x1c0] sm:$0xfe] }
  0x60   :  { %v1336_v60 = vpack.c.bf16 %v1226_v37, %v1220_v36  ;;  %v1249_v36 = vrot.slane %v1934_v40, 1  ;;  %v1257_v37 = vrot.slane %v1937_v21, 1  ;;  %v1946_v28 = vld [vmem:[%s3451_s0 + $0x190] sm:$0x1]  ;;  %v1957_v40 = vld [vmem:[%s3451_s0 + $0x1e8] sm:$0xfe] }
  0x61   :  { %v1959_v21 = vld [vmem:[%s3451_s0 + $0x1f8] sm:$0x1] }
  0x62   :  { %v1967_v47 = vld [vmem:[%s3451_s0 + $0x238] sm:$0x1] }
  0x63   :  { %998 = vmatmul.mubr.bf16.vlgmr.msra.gmra.mxu0 %v820_v51  ;;  %v1241_v51 = vsel %vm223_vm0, %v1239_v38, %v1240_v44  ;;  %v1258_v38 = vrot.slane %v1939_v24, 1  ;;  %v1263_v44 = vrot.slane %v1941_v27, 1  ;;  %v828_v24 = vpack.c.bf16 %v2885_v39, %v2827_v1  ;;  %v1954_v39 = vld [vmem:[%s3451_s0 + $0x1d0] sm:$0x1] }
  0x64   :  { %1512 = vmatmul.mubr.bf16.vlgmr.msra.gmra.mxu1 %v1334_v16  ;;  %1005 = vmatprep.mubr.bf16.mxu0 %v823_v7  ;;  %v1339_v19 = vpack.c.bf16 %v1241_v51, %v1235_v46  ;;  %v1246_v7 = vrot.slane %v1931_v62, 1  ;;  %v1930_v16 = vld [vmem:[%s3451_s0 + $0xf0] sm:$0x1]  ;;  %v1936_v46 = vld [vmem:[%s3451_s0 + $0x140] sm:$0xfe]  ;;  %v826_v62 = vpack.c.bf16 %v1838_v55, %v2768_v26 }
  0x65   :  { %1519 = vmatprep.mubr.bf16.mxu1 %v1337_v41  ;;  %v827_v41 = vpack.c.bf16 %v1839_v14, %v2742_v13  ;;  %v1243_v34 = vrot.slane %v1930_v16, 1  ;;  %v1250_v13 = vsel %vm223_vm0, %v1248_v35, %v1249_v36  ;;  %v1259_v48 = vsel %vm223_vm0, %v1257_v37, %v1258_v38  ;;  %v1940_v51 = vld [vmem:[%s3451_s0 + $0x160] sm:$0xfe]  ;;  %v1958_v55 = vld [vmem:[%s3451_s0 + $0x1f0] sm:$0x1] }
  0x66   :  { %v1247_v17 = vsel %vm223_vm0, %v1245_v53, %v1246_v7  ;;  %v1265_v49 = vsel %vm223_vm0, %v1263_v44, %v1264_v45  ;;  %v1260_v20 = vrot.slane %v1940_v51, 1  ;;  %v1261_v53 = vrot.slane %v1942_v57, 1  ;;  %v1948_v16 = vld [vmem:[%s3451_s0 + $0x1a0] sm:$0xfe] }
  0x67   :  { %v1341_v33 = vpack.c.bf16 %v1253_v18, %v1247_v17  ;;  %v1244_v25 = vsel %vm223_vm0, %v1242_v8, %v1243_v34  ;;  %v1343_v0 = vpack.c.bf16 %v1265_v49, %v1259_v48  ;;  %v1269_v7 = vrot.slane %v1945_v58, 1  ;;  %v1950_v17 = vld [vmem:[%s3451_s0 + $0x1b0] sm:$0x1]  ;;  %v1953_v18 = vld [vmem:[%s3451_s0 + $0x1c8] sm:$0xfe] }
  0x68   :  { %v1340_v63 = vpack.c.bf16 %v1250_v13, %v1244_v25  ;;  %v1262_v26 = vsel %vm223_vm0, %v1260_v20, %v1261_v53  ;;  %v1272_v8 = vrot.slane %v1948_v16, 1  ;;  %v1281_v34 = vrot.slane %v1953_v18, 1  ;;  %v1956_v45 = vld [vmem:[%s3451_s0 + $0x1e0] sm:$0xfe]  ;;  %v1961_v25 = vld [vmem:[%s3451_s0 + $0x208] sm:$0xfe] }
  0x69   :  { %v1282_v35 = vrot.slane %v1955_v9, 1  ;;  %v1287_v36 = vrot.slane %v1957_v40, 1  ;;  %v1288_v37 = vrot.slane %v1959_v21, 1  ;;  %v1963_v13 = vld [vmem:[%s3451_s0 + $0x218] sm:$0x1]  ;;  %v830_v48 = vpack.c.bf16 %v2949_v22, %v2890_v43 }
  0x6a   :  { %v833_v51 = vpack.c.bf16 %v2987_v52, %v2928_v5  ;;  %v1278_v57 = vrot.slane %v1952_v29, 1  ;;  %v1855_v5 = vld [vmem:[%s3451_s0 + $0x228] sm:$0xff]  ;;  %v1960_v22 = vld [vmem:[%s3451_s0 + $0x200] sm:$0xfe]  ;;  %v1962_v20 = vld [vmem:[%s3451_s0 + $0x210] sm:$0x1] }
  0x6b   :  { %1006 = vmatmul.mubr.bf16.gmra.mxu0 %v822_v59  ;;  %v1947_v59 = vld [vmem:[%s3451_s0 + $0x198] sm:$0x1]  ;;  %v1283_v4 = vsel %vm223_vm0, %v1281_v34, %v1282_v35  ;;  %v1289_v44 = vsel %vm223_vm0, %v1287_v36, %v1288_v37  ;;  %v1964_v53 = vld [vmem:[%s3451_s0 + $0x220] sm:$0xfe] }
  0x6c   :  { %1520 = vmatmul.mubr.bf16.gmra.mxu1 %v1336_v60  ;;  %1013 = vmatprep.mubr.bf16.mxu0 %v825_v61  ;;  %v1949_v60 = vld [vmem:[%s3451_s0 + $0x1a8] sm:$0xfe]  ;;  %v1951_v61 = vld [vmem:[%s3451_s0 + $0x1b8] sm:$0x1]  ;;  %v1270_v10 = vrot.slane %v1947_v59, 1  ;;  %v1347_v58 = vpack.c.bf16 %v1289_v44, %v1283_v4  ;;  %v1279_v59 = vrot.slane %v1954_v39, 1 }
  0x6d   :  { %1527 = vmatprep.mubr.bf16.mxu1 %v1339_v19  ;;  %v1254_v19 = vrot.slane %v1936_v46, 1  ;;  %v1275_v42 = vrot.slane %v1949_v60, 1  ;;  %v1276_v12 = vrot.slane %v1951_v61, 1  ;;  %v1965_v46 = vld [vmem:[%s3451_s0 + $0x228] sm:$0xfe]  ;;  %v1284_v60 = vrot.slane %v1956_v45, 1 }
  0x6e   :  { %v1271_v14 = vsel %vm223_vm0, %v1269_v7, %v1270_v10  ;;  %v1285_v61 = vrot.slane %v1958_v55, 1  ;;  %v1966_v7 = vld [vmem:[%s3451_s0 + $0x230] sm:$0x1]  ;;  %v832_v10 = vpack.c.bf16 %v3013_v3, %v2954_v23 }
  0x6f   :  { %v1256_v11 = vsel %vm223_vm0, %v1254_v19, %v1255_v2  ;;  %v1277_v15 = vsel %vm223_vm0, %v1275_v42, %v1276_v12  ;;  %v1300_v19 = vrot.slane %v1967_v47, 1  ;;  %v835_v12 = vpack.c.bf16 %v1855_v5, %v2992_v56 }
  0x70   :  { %v1342_v27 = vpack.c.bf16 %v1262_v26, %v1256_v11  ;;  %v1286_v43 = vsel %vm223_vm0, %v1284_v60, %v1285_v61  ;;  %v1290_v11 = vrot.slane %v1960_v22, 1 }
  0x73   :  { %1014 = vmatmul.mubr.bf16.gmra.mxu0 %v824_v31  ;;  %v1266_v31 = vrot.slane %v1944_v50, 1  ;;  %v1291_v50 = vrot.slane %v1962_v20, 1 }
  0x74   :  { %1528 = vmatmul.mubr.bf16.gmra.mxu1 %v1338_v32  ;;  %1021 = vmatprep.mubr.bf16.mxu0 %v827_v41  ;;  %v1345_v32 = vpack.c.bf16 %v1277_v15, %v1271_v14  ;;  %v1267_v41 = vrot.slane %v1946_v28, 1  ;;  %v1296_v28 = vrot.slane %v1964_v53, 1  ;;  %v1297_v14 = vrot.slane %v1966_v7, 1  ;;  %v1854_v15 = vld [vmem:[%s3451_s0 + $0x220] sm:$0xff] }
  0x75   :  { %1535 = vmatprep.mubr.bf16.mxu1 %v1341_v33  ;;  %v1273_v33 = vrot.slane %v1950_v17, 1  ;;  %v1292_v16 = vsel %vm223_vm0, %v1290_v11, %v1291_v50  ;;  %v834_v3 = vpack.c.bf16 %v1854_v15, %v3018_v6 }
  0x76   :  { %v1268_v38 = vsel %vm223_vm0, %v1266_v31, %v1267_v41  ;;  %v1298_v23 = vsel %vm223_vm0, %v1296_v28, %v1297_v14 }
  0x77   :  { %v1274_v1 = vsel %vm223_vm0, %v1272_v8, %v1273_v33  ;;  %v1348_v56 = vpack.c.bf16 %v1298_v23, %v1292_v16 }
  0x78   :  { %v1344_v49 = vpack.c.bf16 %v1274_v1, %v1268_v38 }
  0x7b   :  { %1022 = vmatmul.mubr.bf16.gmra.mxu0 %v826_v62  ;;  %v1293_v62 = vrot.slane %v1961_v25, 1 }
  0x7c   :  { %1536 = vmatmul.mubr.bf16.gmra.mxu1 %v1340_v63  ;;  %1029 = vmatprep.mubr.bf16.mxu0 %v829_v54  ;;  %v1294_v63 = vrot.slane %v1963_v13, 1  ;;  %v1299_v54 = vrot.slane %v1965_v46, 1 }
  0x7d   :  { %1543 = vmatprep.mubr.bf16.mxu1 %v1343_v0  ;;  %v1280_v0 = vsel %vm223_vm0, %v1278_v57, %v1279_v59 }
  0x7e   :  { %v1295_v52 = vsel %vm223_vm0, %v1293_v62, %v1294_v63  ;;  %v1301_v2 = vsel %vm223_vm0, %v1299_v54, %v1300_v19  ;;  %v1346_v42 = vpack.c.bf16 %v1286_v43, %v1280_v0 }
  0x7f   :  { %v1349_v26 = vpack.c.bf16 %v1301_v2, %v1295_v52 }
  0x83   :  { %1030 = vmatmul.mubr.bf16.gmra.mxu0 %v828_v24 }
  0x84   :  { %1544 = vmatmul.mubr.bf16.gmra.mxu1 %v1342_v27  ;;  %1037 = vmatprep.mubr.bf16.mxu0 %v831_v30 }
  0x85   :  { %1551 = vmatprep.mubr.bf16.mxu1 %v1345_v32 }
  0x8b   :  { %1038 = vmatmul.mubr.bf16.gmra.mxu0 %v830_v48 }
  0x8c   :  { %1552 = vmatmul.mubr.bf16.gmra.mxu1 %v1344_v49  ;;  %1045 = vmatprep.mubr.bf16.mxu0 %v833_v51 }
  0x8d   :  { %1559 = vmatprep.mubr.bf16.mxu1 %v1347_v58 }
  0x93   :  { %1046 = vmatmul.mubr.bf16.gmra.mxu0 %v832_v10 }
  0x94   :  { %1560 = vmatmul.mubr.bf16.gmra.mxu1 %v1346_v42  ;;  %1053 = vmatprep.mubr.bf16.mxu0 %v835_v12 }
  0x95   :  { %1567 = vmatprep.mubr.bf16.mxu1 %v1349_v26 }
  0x9b   :  { %1054 = vmatmul.mubr.bf16.gmra.mxu0 %v834_v3 }
  0x9c   :  { %1568 = vmatmul.mubr.bf16.gmra.mxu1 %v1348_v56 }
  0xe3   :  { %v2111_v18 = vpop.f32.mrf.mxu0 }
  0xe4   :  { %v2175_v17 = vpop.f32.mrf.mxu1 }
  0xe5   :  { %v2112_v21 = vpop.f32.mrf.mxu0 }
  0xe6   :  { %v2176_v9 = vpop.f32.mrf.mxu1  ;;  %v2113_v27 = vadd.f32 %v2112_v21, %v2111_v18 }
  0xe7   :  { %v2177_v40 = vadd.f32 %v2176_v9, %v2175_v17  ;;  %v3302_v30 = vpop.f32.mrf.mxu0 }
  0xe8   :  { %v3300_v24 = vpop.f32.mrf.mxu1 }
  0xe9   :  { %v3306_v32 = vadd.f32 %v2177_v40, %v2113_v27  ;;  %v3308_v41 = vpop.f32.mrf.mxu0 }
  0xea   :  { %v3304_v31 = vpop.f32.mrf.mxu1 }
  0xeb   :  { %v2117_v33 = vpop.f32.mrf.mxu0 }
  0xec   :  { %v2181_v6 = vpop.f32.mrf.mxu1 }
  0xed   :  { %v2118_v36 = vpop.f32.mrf.mxu0 }
  0xee   :  { %v2182_v8 = vpop.f32.mrf.mxu1  ;;  %v2119_v37 = vadd.f32 %v2118_v36, %v2117_v33 }
  0xef   :  { %v2183_v34 = vadd.f32 %v2182_v8, %v2181_v6  ;;  %v3314_v1 = vpop.f32.mrf.mxu0 }
  0xf0   :  { %v3310_v35 = vpop.f32.mrf.mxu1 }
  0xf1   :  { %v3316_v29 = vadd.f32 %v2183_v34, %v2119_v37  ;;  %v3318_v39 = vpop.f32.mrf.mxu0 }
  0xf2   :  { %v3312_v38 = vpop.f32.mrf.mxu1 }
  0xf3   :  { %v2123_v45 = vpop.f32.mrf.mxu0 }
  0xf4   :  { %v2187_v4 = vpop.f32.mrf.mxu1 }
  0xf5   :  { %v2124_v13 = vpop.f32.mrf.mxu0 }
  0xf6   :  { %v2188_v44 = vpop.f32.mrf.mxu1  ;;  %v2125_v46 = vadd.f32 %v2124_v13, %v2123_v45 }
  0xf7   :  { %v2189_v55 = vadd.f32 %v2188_v44, %v2187_v4  ;;  %v3324_v48 = vpop.f32.mrf.mxu0 }
  0xf8   :  { %v3320_v25 = vpop.f32.mrf.mxu1 }
  0xf9   :  { %v3326_v49 = vadd.f32 %v2189_v55, %v2125_v46  ;;  %v3328_v57 = vpop.f32.mrf.mxu0 }
  0xfa   :  { %v3322_v47 = vpop.f32.mrf.mxu1 }
  0xfb   :  { %v2129_v59 = vpop.f32.mrf.mxu0 }
  0xfc   :  { %v2193_v51 = vpop.f32.mrf.mxu1 }
  0xfd   :  { %v2130_v62 = vpop.f32.mrf.mxu0 }
  0xfe   :  { %v2194_v58 = vpop.f32.mrf.mxu1  ;;  %v2131_v63 = vadd.f32 %v2130_v62, %v2129_v59 }
  0xff   :  { %v2195_v60 = vadd.f32 %v2194_v58, %v2193_v51  ;;  %v3334_v19 = vpop.f32.mrf.mxu0 }
 0x100   :  { %v3330_v61 = vpop.f32.mrf.mxu1 }
 0x101   :  { %v3336_v0 = vadd.f32 %v2195_v60, %v2131_v63  ;;  %v3338_v43 = vpop.f32.mrf.mxu0 }
 0x102   :  { %v3332_v54 = vpop.f32.mrf.mxu1 }
 0x103   :  { %v2135_v52 = vpop.f32.mrf.mxu0 }
 0x104   :  { %v2199_v5 = vpop.f32.mrf.mxu1 }
 0x105   :  { %v2136_v53 = vpop.f32.mrf.mxu0 }
 0x106   :  { %v2200_v22 = vpop.f32.mrf.mxu1  ;;  %v2137_v7 = vadd.f32 %v2136_v53, %v2135_v52  ;;  %v2116_v53 = vadd.f32 %v3308_v41, %v3302_v30  ;;  %v2186_v30 = vadd.f32 %v3312_v38, %v3310_v35 }
 0x107   :  { %v2201_v2 = vadd.f32 %v2200_v22, %v2199_v5  ;;  %v3344_v42 = vpop.f32.mrf.mxu0 }
 0x108   :  { %v3340_v20 = vpop.f32.mrf.mxu1 }
 0x109   :  { %v3346_v12 = vadd.f32 %v2201_v2, %v2137_v7  ;;  %v3348_v26 = vpop.f32.mrf.mxu0  ;;  %v2180_v7 = vadd.f32 %v3304_v31, %v3300_v24  ;;  %v2122_v24 = vadd.f32 %v3318_v39, %v3314_v1 }
 0x10a   :  { %v3342_v10 = vpop.f32.mrf.mxu1 }
 0x10b   :  { %v2141_v28 = vpop.f32.mrf.mxu0 }
 0x10c   :  { %v2205_v11 = vpop.f32.mrf.mxu1 }
 0x10d   :  { %v2142_v16 = vpop.f32.mrf.mxu0 }
 0x10e   :  { %v2206_v50 = vpop.f32.mrf.mxu1  ;;  %v2143_v23 = vadd.f32 %v2142_v16, %v2141_v28 }
 0x10f   :  { %v2207_v14 = vadd.f32 %v2206_v50, %v2205_v11  ;;  %v3354_v56 = vpop.f32.mrf.mxu0 }
 0x110   :  { %v3350_v15 = vpop.f32.mrf.mxu1 }
 0x111   :  { %v3356_v17 = vadd.f32 %v2207_v14, %v2143_v23  ;;  %v3358_v18 = vpop.f32.mrf.mxu0  ;;  %v728_v23 = vadd.f32 %v2180_v7, %v2116_v53  ;;  %v736_v53 = vadd.f32 %v2186_v30, %v2122_v24 }
 0x112   :  { %v3352_v3 = vpop.f32.mrf.mxu1 }
 0x113   :  { %v2147_v21 = vpop.f32.mrf.mxu0 }
 0x114   :  { %v2211_v9 = vpop.f32.mrf.mxu1 }
 0x115   :  { %v2148_v8 = vpop.f32.mrf.mxu0 }
 0x116   :  { %v2212_v40 = vpop.f32.mrf.mxu1  ;;  %v2149_v33 = vadd.f32 %v2148_v8, %v2147_v21 }
 0x117   :  { %v2213_v27 = vadd.f32 %v2212_v40, %v2211_v9  ;;  %v3364_v36 = vpop.f32.mrf.mxu0 }
 0x118   :  { %v3360_v6 = vpop.f32.mrf.mxu1 }
 0x119   :  { %v3366_v37 = vadd.f32 %v2213_v27, %v2149_v33  ;;  %v3368_v44 = vpop.f32.mrf.mxu0 }
 0x11a   :  { %v3362_v34 = vpop.f32.mrf.mxu1 }
 0x11b   :  { %v2153_v55 = vpop.f32.mrf.mxu0 }
 0x11c   :  { %v2217_v4 = vpop.f32.mrf.mxu1 }
 0x11d   :  { %v2154_v51 = vpop.f32.mrf.mxu0 }
 0x11e   :  { %v2218_v45 = vpop.f32.mrf.mxu1  ;;  %v2155_v58 = vadd.f32 %v2154_v51, %v2153_v55 }
 0x11f   :  { %v2219_v13 = vadd.f32 %v2218_v45, %v2217_v4  ;;  %v3372_v59 = vpop.f32.mrf.mxu0 }
 0x120   :  { %v3370_v46 = vpop.f32.mrf.mxu1 }
 0x121   :  { %v3376_v62 = vadd.f32 %v2219_v13, %v2155_v58  ;;  %v3378_v63 = vpop.f32.mrf.mxu0 }
 0x122   :  { %v3374_v60 = vpop.f32.mrf.mxu1 }
 0x123   :  { %v2239_v5 = vpop.f32.mrf.mxu0 }
 0x124   :  { %v2303_v22 = vpop.f32.mrf.mxu1 }
 0x125   :  { %v2240_v52 = vpop.f32.mrf.mxu0 }
 0x126   :  { %v2304_v2 = vpop.f32.mrf.mxu1  ;;  %v2241_v11 = vadd.f32 %v2240_v52, %v2239_v5 }
 0x127   :  { %v2242_v50 = vpop.f32.mrf.mxu0  ;;  %v2305_v8 = vadd.f32 %v2304_v2, %v2303_v22 }
 0x128   :  { %v2306_v28 = vpop.f32.mrf.mxu1  ;;  %v1062_v9 = vadd.f32 %v2241_v11, %v3306_v32 }
 0x129   :  { %v2243_v14 = vpop.f32.mrf.mxu0 }
 0x12a   :  { %v2307_v16 = vpop.f32.mrf.mxu1  ;;  %v2244_v40 = vadd.f32 %v2243_v14, %v2242_v50  ;;  %v1576_v31 = vadd.f32 %v2305_v8, %v1062_v9  ;;  %v2192_v14 = vadd.f32 %v3322_v47, %v3320_v25 }
 0x12b   :  { %v2245_v21 = vpop.f32.mrf.mxu0  ;;  %v2308_v4 = vadd.f32 %v2307_v16, %v2306_v28  ;;  %v2128_v28 = vadd.f32 %v3328_v57, %v3324_v48 }
 0x12c   :  { %v2309_v27 = vpop.f32.mrf.mxu1  ;;  %v1063_v33 = vadd.f32 %v2244_v40, %v728_v23 }
 0x12d   :  { %v2246_v41 = vpop.f32.mrf.mxu0 }
 0x12e   :  { %v2310_v45 = vpop.f32.mrf.mxu1  ;;  %v1577_v55 = vadd.f32 %v2308_v4, %v1063_v33  ;;  %v2247_v13 = vadd.f32 %v2246_v41, %v2245_v21  ;;  %v744_v41 = vadd.f32 %v2192_v14, %v2128_v28 }
 0x12f   :  { %v2248_v51 = vpop.f32.mrf.mxu0  ;;  %v2311_v39 = vadd.f32 %v2310_v45, %v2309_v27 }
 0x130   :  { %v2312_v58 = vpop.f32.mrf.mxu1  ;;  %v1592_v32 = vpack.c.bf16 %v1577_v55, %v1576_v31  ;;  %v1064_v35 = vadd.f32 %v2247_v13, %v3316_v29 }
 0x131   :  { %v2249_v5 = vpop.f32.mrf.mxu0 }
 0x132   :  { %v2313_v52 = vpop.f32.mrf.mxu1  ;;  %2052 = vst [vmem:[%s3452_s2] sm:$0xff] %v1592_v32   ;;  %v2250_v38 = vadd.f32 %v2249_v5, %v2248_v51  ;;  %v1672_v22 = vunpack.c.l.bf16 %v1592_v32  ;;  %v1673_v2 = vunpack.c.h.bf16 %v1592_v32  ;;  %v1578_v9 = vadd.f32 %v2311_v39, %v1064_v35 }
 0x133   :  { %v2251_v7 = vpop.f32.mrf.mxu0  ;;  %v2314_v50 = vadd.f32 %v2313_v52, %v2312_v58 }
 0x134   :  { %v2315_v1 = vpop.f32.mrf.mxu1  ;;  %v1065_v11 = vadd.f32 %v2250_v38, %v736_v53  ;;  %v1709_v29 = vmul.f32 %v1672_v22, %v1672_v22  ;;  %v1710_v8 = vmul.f32 %v1673_v2, %v1673_v2  ;;  %v1688_v31 = vadd.f32 %v1673_v2, %v1672_v22 }
 0x135   :  { %v2252_v16 = vpop.f32.mrf.mxu0  ;;  %v2198_v53 = vadd.f32 %v3332_v54, %v3330_v61 }
 0x136   :  { %v2316_v23 = vpop.f32.mrf.mxu1  ;;  %v1579_v40 = vadd.f32 %v2314_v50, %v1065_v11  ;;  %v2253_v21 = vadd.f32 %v2252_v16, %v2251_v7  ;;  %v1725_v57 = vadd.f32 %v1710_v8, %v1709_v29 }
 0x137   :  { %v2254_v33 = vpop.f32.mrf.mxu0  ;;  %v2317_v55 = vadd.f32 %v2316_v23, %v2315_v1 }
 0x138   :  { %v2318_v4 = vpop.f32.mrf.mxu1  ;;  %v1593_v30 = vpack.c.bf16 %v1579_v40, %v1578_v9  ;;  %v1066_v27 = vadd.f32 %v2253_v21, %v3326_v49  ;;  %v2134_v49 = vadd.f32 %v3338_v43, %v3334_v19 }
 0x139   :  { %v2255_v45 = vpop.f32.mrf.mxu0 }
 0x13a   :  { %v2319_v24 = vpop.f32.mrf.mxu1  ;;  %2088 = vst [vmem:[%s3452_s2 + $0x8] sm:$0xff] %v1593_v30   ;;  %v1674_v25 = vunpack.c.l.bf16 %v1593_v30  ;;  %v1675_v47 = vunpack.c.h.bf16 %v1593_v30  ;;  %v2256_v48 = vadd.f32 %v2255_v45, %v2254_v33  ;;  %v1580_v38 = vadd.f32 %v2317_v55, %v1066_v27 }
 0x13b   :  { %v2257_v13 = vpop.f32.mrf.mxu0  ;;  %v2320_v52 = vadd.f32 %v2319_v24, %v2318_v4  ;;  %v752_v19 = vadd.f32 %v2198_v53, %v2134_v49  ;;  %v2204_v27 = vadd.f32 %v3342_v10, %v3340_v20 }
 0x13c   :  { %v2321_v51 = vpop.f32.mrf.mxu1  ;;  %v1689_v58 = vadd.f32 %v1688_v31, %v1674_v25  ;;  %v1711_v32 = vmul.f32 %v1674_v25, %v1674_v25  ;;  %v1067_v5 = vadd.f32 %v2256_v48, %v744_v41  ;;  %v1712_v35 = vmul.f32 %v1675_v47, %v1675_v47 }
 0x13d   :  { %v2258_v22 = vpop.f32.mrf.mxu0 }
 0x13e   :  { %v2322_v2 = vpop.f32.mrf.mxu1  ;;  %v1690_v7 = vadd.f32 %v1689_v58, %v1675_v47  ;;  %v1726_v39 = vadd.f32 %v1725_v57, %v1711_v32  ;;  %v1581_v11 = vadd.f32 %v2320_v52, %v1067_v5  ;;  %v2259_v1 = vadd.f32 %v2258_v22, %v2257_v13 }
 0x13f   :  { %v2260_v50 = vpop.f32.mrf.mxu0  ;;  %v2323_v21 = vadd.f32 %v2322_v2, %v2321_v51 }
 0x140   :  { %v2324_v28 = vpop.f32.mrf.mxu1  ;;  %v1727_v14 = vadd.f32 %v1726_v39, %v1712_v35  ;;  %v1594_v16 = vpack.c.bf16 %v1581_v11, %v1580_v38  ;;  %v1068_v23 = vadd.f32 %v2259_v1, %v3336_v0  ;;  %v2140_v0 = vadd.f32 %v3348_v26, %v3344_v42 }
 0x141   :  { %v2261_v9 = vpop.f32.mrf.mxu0  ;;  %v2210_v11 = vadd.f32 %v3352_v3, %v3350_v15 }
 0x142   :  { %v2325_v40 = vpop.f32.mrf.mxu1  ;;  %2089 = vst [vmem:[%s3452_s2 + $0x10] sm:$0xff] %v1594_v16   ;;  %v1676_v61 = vunpack.c.l.bf16 %v1594_v16  ;;  %v1677_v54 = vunpack.c.h.bf16 %v1594_v16  ;;  %v2262_v43 = vadd.f32 %v2261_v9, %v2260_v50  ;;  %v1582_v24 = vadd.f32 %v2323_v21, %v1068_v23 }
 0x143   :  { %v2263_v29 = vpop.f32.mrf.mxu0  ;;  %v2326_v41 = vadd.f32 %v2325_v40, %v2324_v28  ;;  %v760_v42 = vadd.f32 %v2204_v27, %v2140_v0 }
 0x144   :  { %v2327_v8 = vpop.f32.mrf.mxu1  ;;  %v1691_v33 = vadd.f32 %v1690_v7, %v1676_v61  ;;  %v1713_v4 = vmul.f32 %v1676_v61, %v1676_v61  ;;  %v1069_v30 = vadd.f32 %v2262_v43, %v752_v19  ;;  %v1714_v45 = vmul.f32 %v1677_v54, %v1677_v54 }
 0x145   :  { %v2264_v31 = vpop.f32.mrf.mxu0 }
 0x146   :  { %v2328_v25 = vpop.f32.mrf.mxu1  ;;  %v1692_v47 = vadd.f32 %v1691_v33, %v1677_v54  ;;  %v1728_v48 = vadd.f32 %v1727_v14, %v1713_v4  ;;  %v1583_v57 = vadd.f32 %v2326_v41, %v1069_v30  ;;  %v2265_v55 = vadd.f32 %v2264_v31, %v2263_v29 }
 0x147   :  { %v2266_v13 = vpop.f32.mrf.mxu0  ;;  %v2329_v53 = vadd.f32 %v2328_v25, %v2327_v8 }
 0x148   :  { %v2330_v51 = vpop.f32.mrf.mxu1  ;;  %v1729_v58 = vadd.f32 %v1728_v48, %v1714_v45  ;;  %v1595_v32 = vpack.c.bf16 %v1583_v57, %v1582_v24  ;;  %v1070_v5 = vadd.f32 %v2265_v55, %v3346_v12  ;;  %v2146_v12 = vadd.f32 %v3358_v18, %v3354_v56 }
 0x149   :  { %v2267_v52 = vpop.f32.mrf.mxu0  ;;  %v2216_v24 = vadd.f32 %v3362_v34, %v3360_v6 }
 0x14a   :  { %v2331_v49 = vpop.f32.mrf.mxu1  ;;  %2090 = vst [vmem:[%s3452_s2 + $0x18] sm:$0xff] %v1595_v32   ;;  %v1678_v20 = vunpack.c.l.bf16 %v1595_v32  ;;  %v1679_v10 = vunpack.c.h.bf16 %v1595_v32  ;;  %v2268_v26 = vadd.f32 %v2267_v52, %v2266_v13  ;;  %v1584_v50 = vadd.f32 %v2329_v53, %v1070_v5 }
 0x14b   :  { %v2269_v35 = vpop.f32.mrf.mxu0  ;;  %v2332_v39 = vadd.f32 %v2331_v49, %v2330_v51  ;;  %v768_v56 = vadd.f32 %v2210_v11, %v2146_v12 }
 0x14c   :  { %v2333_v38 = vpop.f32.mrf.mxu1  ;;  %v1693_v22 = vadd.f32 %v1692_v47, %v1678_v20  ;;  %v1715_v2 = vmul.f32 %v1678_v20, %v1678_v20  ;;  %v1071_v7 = vadd.f32 %v2268_v26, %v760_v42  ;;  %v1716_v1 = vmul.f32 %v1679_v10, %v1679_v10 }
 0x14d   :  { %v2270_v28 = vpop.f32.mrf.mxu0 }
 0x14e   :  { %v2334_v14 = vpop.f32.mrf.mxu1  ;;  %v1694_v16 = vadd.f32 %v1693_v22, %v1679_v10  ;;  %v1730_v23 = vadd.f32 %v1729_v58, %v1715_v2  ;;  %v1585_v9 = vadd.f32 %v2332_v39, %v1071_v7  ;;  %v2271_v40 = vadd.f32 %v2270_v28, %v2269_v35 }
 0x14f   :  { %v2272_v19 = vpop.f32.mrf.mxu0  ;;  %v2335_v33 = vadd.f32 %v2334_v14, %v2333_v38  ;;  %v2222_v7 = vadd.f32 %v3374_v60, %v3370_v46 }
 0x150   :  { %v2336_v61 = vpop.f32.mrf.mxu1  ;;  %v1731_v54 = vadd.f32 %v1730_v23, %v1716_v1  ;;  %v1596_v43 = vpack.c.bf16 %v1585_v9, %v1584_v50  ;;  %v1072_v21 = vadd.f32 %v2271_v40, %v3356_v17  ;;  %v2152_v17 = vadd.f32 %v3368_v44, %v3364_v36 }
 0x151   :  { %v2273_v29 = vpop.f32.mrf.mxu0 }
 0x152   :  { %v2337_v8 = vpop.f32.mrf.mxu1  ;;  %2091 = vst [vmem:[%s3452_s2 + $0x20] sm:$0xff] %v1596_v43   ;;  %v1680_v15 = vunpack.c.l.bf16 %v1596_v43  ;;  %v1681_v3 = vunpack.c.h.bf16 %v1596_v43  ;;  %v2274_v18 = vadd.f32 %v2273_v29, %v2272_v19  ;;  %v1586_v25 = vadd.f32 %v2335_v33, %v1072_v21 }
 0x153   :  { %v2275_v4 = vpop.f32.mrf.mxu0  ;;  %v2338_v45 = vadd.f32 %v2337_v8, %v2336_v61  ;;  %v776_v36 = vadd.f32 %v2216_v24, %v2152_v17 }
 0x154   :  { %v2339_v30 = vpop.f32.mrf.mxu1  ;;  %v1695_v41 = vadd.f32 %v1694_v16, %v1680_v15  ;;  %v1717_v0 = vmul.f32 %v1680_v15, %v1680_v15  ;;  %v1073_v27 = vadd.f32 %v2274_v18, %v768_v56  ;;  %v1718_v31 = vmul.f32 %v1681_v3, %v1681_v3 }
 0x155   :  { %v2276_v47 = vpop.f32.mrf.mxu0 }
 0x156   :  { %v2340_v48 = vpop.f32.mrf.mxu1  ;;  %v1696_v57 = vadd.f32 %v1695_v41, %v1681_v3  ;;  %v1732_v55 = vadd.f32 %v1731_v54, %v1717_v0  ;;  %v1587_v13 = vadd.f32 %v2338_v45, %v1073_v27  ;;  %v2277_v51 = vadd.f32 %v2276_v47, %v2275_v4 }
 0x157   :  { %v2278_v58 = vpop.f32.mrf.mxu0  ;;  %v2341_v10 = vadd.f32 %v2340_v48, %v2339_v30 }
 0x158   :  { %v2342_v32 = vpop.f32.mrf.mxu1  ;;  %v1733_v5 = vadd.f32 %v1732_v55, %v1718_v31  ;;  %v1597_v52 = vpack.c.bf16 %v1587_v13, %v1586_v25  ;;  %v1074_v49 = vadd.f32 %v2277_v51, %v3366_v37  ;;  %v2158_v37 = vadd.f32 %v3378_v63, %v3372_v59 }
 0x159   :  { %v2279_v42 = vpop.f32.mrf.mxu0 }
 0x15a   :  { %v2343_v20 = vpop.f32.mrf.mxu1  ;;  %2092 = vst [vmem:[%s3452_s2 + $0x28] sm:$0xff] %v1597_v52   ;;  %v1682_v6 = vunpack.c.l.bf16 %v1597_v52  ;;  %v1683_v34 = vunpack.c.h.bf16 %v1597_v52  ;;  %v2280_v44 = vadd.f32 %v2279_v42, %v2278_v58  ;;  %v1588_v12 = vadd.f32 %v2341_v10, %v1074_v49 }
 0x15b   :  { %v2281_v26 = vpop.f32.mrf.mxu0  ;;  %v2344_v2 = vadd.f32 %v2343_v20, %v2342_v32  ;;  %v784_v59 = vadd.f32 %v2222_v7, %v2158_v37 }
 0x15c   :  { %v2345_v53 = vpop.f32.mrf.mxu1  ;;  %v1697_v35 = vadd.f32 %v1696_v57, %v1682_v6  ;;  %v1719_v38 = vmul.f32 %v1682_v6, %v1682_v6  ;;  %v1075_v22 = vadd.f32 %v2280_v44, %v776_v36  ;;  %v1720_v39 = vmul.f32 %v1683_v34, %v1683_v34 }
 0x15d   :  { %v2282_v11 = vpop.f32.mrf.mxu0 }
 0x15e   :  { %v2346_v1 = vpop.f32.mrf.mxu1  ;;  %v1698_v50 = vadd.f32 %v1697_v35, %v1683_v34  ;;  %v1734_v28 = vadd.f32 %v1733_v5, %v1719_v38  ;;  %v1589_v14 = vadd.f32 %v2344_v2, %v1075_v22  ;;  %v2283_v16 = vadd.f32 %v2282_v11, %v2281_v26 }
 0x15f   :  { %v2284_v23 = vpop.f32.mrf.mxu0  ;;  %v2347_v21 = vadd.f32 %v2346_v1, %v2345_v53 }
 0x160   :  { %v2348_v9 = vpop.f32.mrf.mxu1  ;;  %v1735_v40 = vadd.f32 %v1734_v28, %v1720_v39  ;;  %v1598_v19 = vpack.c.bf16 %v1589_v14, %v1588_v12  ;;  %v1076_v61 = vadd.f32 %v2283_v16, %v3376_v62 }
 0x161   :  { %v2285_v54 = vpop.f32.mrf.mxu0 }
 0x162   :  { %v2349_v43 = vpop.f32.mrf.mxu1  ;;  %2093 = vst [vmem:[%s3452_s2 + $0x30] sm:$0xff] %v1598_v19   ;;  %v1684_v46 = vunpack.c.l.bf16 %v1598_v19  ;;  %v1685_v60 = vunpack.c.h.bf16 %v1598_v19  ;;  %v2286_v63 = vadd.f32 %v2285_v54, %v2284_v23  ;;  %v1590_v3 = vadd.f32 %v2347_v21, %v1076_v61 }
 0x163   :  { %v2350_v15 = vadd.f32 %v2349_v43, %v2348_v9 }
 0x164   :  { %v1699_v29 = vadd.f32 %v1698_v50, %v1684_v46  ;;  %v1721_v8 = vmul.f32 %v1684_v46, %v1684_v46  ;;  %v1077_v56 = vadd.f32 %v2286_v63, %v784_v59  ;;  %v1722_v33 = vmul.f32 %v1685_v60, %v1685_v60 }
 0x166   :  { %v1700_v18 = vadd.f32 %v1699_v29, %v1685_v60  ;;  %v1736_v4 = vadd.f32 %v1735_v40, %v1721_v8  ;;  %v1591_v62 = vadd.f32 %v2350_v15, %v1077_v56 }
 0x168   :  { %v1737_v30 = vadd.f32 %v1736_v4, %v1722_v33  ;;  %v1599_v41 = vpack.c.bf16 %v1591_v62, %v1590_v3 }
 0x16a   :  { %2094 = vst [vmem:[%s3452_s2 + $0x38] sm:$0xff] %v1599_v41   ;;  %v1686_v0 = vunpack.c.l.bf16 %v1599_v41  ;;  %v1687_v27 = vunpack.c.h.bf16 %v1599_v41 }
 0x16c   :  { %v1701_v45 = vadd.f32 %v1700_v18, %v1686_v0  ;;  %v1723_v17 = vmul.f32 %v1686_v0, %v1686_v0  ;;  %v1724_v31 = vmul.f32 %v1687_v27, %v1687_v27 }
 0x16e   :  { %v1702_v24 = vadd.f32 %v1701_v45, %v1687_v27  ;;  %v1738_v25 = vadd.f32 %v1737_v30, %v1723_v17 }
 0x170   :  { %v1703_v47 = vrot.slane %v1702_v24, 4  ;;  %v1739_v48 = vadd.f32 %v1738_v25, %v1724_v31 }
 0x172   :  { %v1704_v57 = vadd.f32 %v1703_v47, %v1702_v24  ;;  %v1740_v55 = vrot.slane %v1739_v48, 4 }
 0x174   :  { %v1705_v13 = vrot.slane %v1704_v57, 2  ;;  %v1741_v51 = vadd.f32 %v1740_v55, %v1739_v48 }
 0x176   :  { %v1706_v58 = vadd.f32 %v1705_v13, %v1704_v57  ;;  %v1742_v32 = vrot.slane %v1741_v51, 2 }
 0x178   :  { %v1707_v5 = vrot.slane %v1706_v58, 1  ;;  %v1743_v52 = vadd.f32 %v1742_v32, %v1741_v51 }
 0x17a   :  { %v1708_v49 = vadd.f32 %v1707_v5, %v1706_v58  ;;  %v1744_v42 = vrot.slane %v1743_v52, 1 }
 0x17c   :  { %v1745_v20 = vadd.f32 %v1744_v42, %v1743_v52  ;;  %1746 = vst [vmem:[%s3453_s3] sm:$0xff] %v1708_v49 }
 0x17e   :  { %1747 = vst [vmem:[%s3454_s4] sm:$0xff] %v1745_v20 }

// kernel: d_forward.7
= control target key start
LH: loop header
LB: loop body
LE: loop exit
PB: predicated region body
PF: predicated region fallthrough
CT: control target
= control target key end

     0   :  { %s455_s0 = inlined_call_operand.vmem [shape: bf16[128,128], index: 0, kind: input, shape index: {}]   ;;  %s456_s1 = inlined_call_operand.vmem [shape: f32[1,128], index: 1, kind: input, shape index: {}]   ;;  %s457_s2 = inlined_call_operand.vmem [shape: f32[1,128], index: 2, kind: input, shape index: {}]   ;;  %s458_s3 = inlined_call_operand.vmem [shape: bf16[128,128], index: 3, kind: output, shape index: {}]  }
   0x1   :  { %v259_v0 = vld [vmem:[%s455_s0] sm:$0xff]   ;;  %v330_v4 = vld [vmem:[%s455_s0 + $0x8] sm:$0xff]   ;;  %v331_v5 = vld [vmem:[%s455_s0 + $0x10] sm:$0xff]  }
   0x2   :  { %v370_v1 = vld [vmem:[%s456_s1] ss:$0 sm:$0xff]  ;;  %v260_v2 = vunpack.c.l.bf16 %v259_v0  ;;  %v261_v3 = vunpack.c.h.bf16 %v259_v0  ;;  %v332_v6 = vld [vmem:[%s455_s0 + $0x18] sm:$0xff]   ;;  %v264_v8 = vunpack.c.l.bf16 %v330_v4  ;;  %v265_v9 = vunpack.c.h.bf16 %v330_v4  ;;  %v334_v35 = vld [vmem:[%s455_s0 + $0x28] sm:$0xff]  }
   0x3   :  { %v384_v7 = vld [vmem:[%s457_s2] ss:$0 sm:$0xff]  ;;  %v268_v10 = vunpack.c.l.bf16 %v331_v5  ;;  %v269_v11 = vunpack.c.h.bf16 %v331_v5  ;;  %v272_v14 = vunpack.c.l.bf16 %v332_v6  ;;  %v273_v15 = vunpack.c.h.bf16 %v332_v6  ;;  %v335_v48 = vld [vmem:[%s455_s0 + $0x30] sm:$0xff]   ;;  %v336_v4 = vld [vmem:[%s455_s0 + $0x38] sm:$0xff]  }
   0x4   :  { %v53_v12 = vmul.f32 %v260_v2, %v370_v1  ;;  %v54_v13 = vmul.f32 %v261_v3, %v370_v1  ;;  %v55_v16 = vmul.f32 %v264_v8, %v370_v1  ;;  %v56_v17 = vmul.f32 %v265_v9, %v370_v1  ;;  %v333_v34 = vld [vmem:[%s455_s0 + $0x20] sm:$0xff]  }
   0x5   :  { %v57_v18 = vmul.f32 %v268_v10, %v370_v1  ;;  %v58_v19 = vmul.f32 %v269_v11, %v370_v1  ;;  %v59_v22 = vmul.f32 %v272_v14, %v370_v1  ;;  %v60_v23 = vmul.f32 %v273_v15, %v370_v1 }
   0x6   :  { %v76_v20 = vadd.f32 %v384_v7, %v53_v12  ;;  %v77_v21 = vadd.f32 %v384_v7, %v54_v13  ;;  %v78_v24 = vadd.f32 %v384_v7, %v55_v16  ;;  %v79_v25 = vadd.f32 %v384_v7, %v56_v17 }
   0x7   :  { %v80_v26 = vadd.f32 %v384_v7, %v57_v18  ;;  %v81_v27 = vadd.f32 %v384_v7, %v58_v19  ;;  %v82_v42 = vadd.f32 %v384_v7, %v59_v22  ;;  %v83_v43 = vadd.f32 %v384_v7, %v60_v23 }
   0x8   :  { %vm92_vm0 = vcmp.gt.f32.partialorder %v76_v20, 0.0  ;;  %vm93_vm1 = vcmp.gt.f32.partialorder %v77_v21, 0.0  ;;  %v108_v28 = vmul.f32 0.2, %v76_v20  ;;  %v109_v29 = vmul.f32 0.2, %v77_v21 }
   0x9   :  { %vm94_vm2 = vcmp.gt.f32.partialorder %v78_v24, 0.0  ;;  %vm95_vm3 = vcmp.gt.f32.partialorder %v79_v25, 0.0  ;;  %v110_v30 = vmul.f32 0.2, %v78_v24  ;;  %v111_v31 = vmul.f32 0.2, %v79_v25 }
   0xa   :  { %v124_v32 = vsel %vm92_vm0, %v76_v20, %v108_v28  ;;  %v125_v33 = vsel %vm93_vm1, %v77_v21, %v109_v29  ;;  %vm96_vm4 = vcmp.gt.f32.partialorder %v80_v26, 0.0  ;;  %vm97_vm5 = vcmp.gt.f32.partialorder %v81_v27, 0.0 }
   0xb   :  { %v293_v36 = vpack.c.bf16 %v125_v33, %v124_v32  ;;  %v126_v37 = vsel %vm94_vm2, %v78_v24, %v110_v30  ;;  %v127_v38 = vsel %vm95_vm3, %v79_v25, %v111_v31  ;;  %v112_v39 = vmul.f32 0.2, %v80_v26 }
   0xc   :  { %v298_v40 = vpack.c.bf16 %v127_v38, %v126_v37  ;;  %v113_v41 = vmul.f32 0.2, %v81_v27  ;;  %v276_v45 = vunpack.c.l.bf16 %v333_v34  ;;  %v277_v46 = vunpack.c.h.bf16 %v333_v34 }
   0xd   :  { %294 = vst [vmem:[%s458_s3] sm:$0xff] %v293_v36   ;;  %v128_v44 = vsel %vm96_vm4, %v80_v26, %v112_v39  ;;  %v280_v47 = vunpack.c.l.bf16 %v334_v35  ;;  %vm98_vm6 = vcmp.gt.f32.partialorder %v82_v42, 0.0  ;;  %vm99_vm7 = vcmp.gt.f32.partialorder %v83_v43, 0.0 }
   0xe   :  { %337 = vst [vmem:[%s458_s3 + $0x8] sm:$0xff] %v298_v40   ;;  %v129_v49 = vsel %vm97_vm5, %v81_v27, %v113_v41  ;;  %v114_v50 = vmul.f32 0.2, %v82_v42  ;;  %v115_v52 = vmul.f32 0.2, %v83_v43  ;;  %v61_v53 = vmul.f32 %v276_v45, %v370_v1 }
   0xf   :  { %v303_v51 = vpack.c.bf16 %v129_v49, %v128_v44  ;;  %v62_v54 = vmul.f32 %v277_v46, %v370_v1  ;;  %v281_v56 = vunpack.c.h.bf16 %v334_v35  ;;  %v63_v57 = vmul.f32 %v280_v47, %v370_v1 }
  0x10   :  { %v130_v55 = vsel %vm98_vm6, %v82_v42, %v114_v50  ;;  %v284_v58 = vunpack.c.l.bf16 %v335_v48  ;;  %v131_v59 = vsel %vm99_vm7, %v83_v43, %v115_v52  ;;  %v84_v60 = vadd.f32 %v384_v7, %v61_v53 }
  0x11   :  { %338 = vst [vmem:[%s458_s3 + $0x10] sm:$0xff] %v303_v51   ;;  %v85_v61 = vadd.f32 %v384_v7, %v62_v54  ;;  %v285_v62 = vunpack.c.h.bf16 %v335_v48  ;;  %v308_v63 = vpack.c.bf16 %v131_v59, %v130_v55  ;;  %v64_v0 = vmul.f32 %v281_v56, %v370_v1 }
  0x12   :  { %v86_v2 = vadd.f32 %v384_v7, %v63_v57  ;;  %v65_v3 = vmul.f32 %v284_v58, %v370_v1  ;;  %vm100_vm8 = vcmp.gt.f32.partialorder %v84_v60, 0.0  ;;  %v116_v5 = vmul.f32 0.2, %v84_v60 }
  0x13   :  { %vm101_vm9 = vcmp.gt.f32.partialorder %v85_v61, 0.0  ;;  %v117_v6 = vmul.f32 0.2, %v85_v61  ;;  %339 = vst [vmem:[%s458_s3 + $0x18] sm:$0xff] %v308_v63   ;;  %v87_v8 = vadd.f32 %v384_v7, %v64_v0  ;;  %v66_v10 = vmul.f32 %v285_v62, %v370_v1 }
  0x14   :  { %vm102_vm10 = vcmp.gt.f32.partialorder %v86_v2, 0.0  ;;  %v118_v9 = vmul.f32 0.2, %v86_v2  ;;  %v132_v11 = vsel %vm100_vm8, %v84_v60, %v116_v5  ;;  %v88_v13 = vadd.f32 %v384_v7, %v65_v3 }
  0x15   :  { %v133_v12 = vsel %vm101_vm9, %v85_v61, %v117_v6  ;;  %v288_v14 = vunpack.c.l.bf16 %v336_v4  ;;  %vm103_vm11 = vcmp.gt.f32.partialorder %v87_v8, 0.0  ;;  %v119_v16 = vmul.f32 0.2, %v87_v8 }
  0x16   :  { %v313_v15 = vpack.c.bf16 %v133_v12, %v132_v11  ;;  %v134_v17 = vsel %vm102_vm10, %v86_v2, %v118_v9  ;;  %v89_v18 = vadd.f32 %v384_v7, %v66_v10  ;;  %vm104_vm12 = vcmp.gt.f32.partialorder %v88_v13, 0.0 }
  0x17   :  { %v120_v19 = vmul.f32 0.2, %v88_v13  ;;  %v289_v20 = vunpack.c.h.bf16 %v336_v4  ;;  %v135_v21 = vsel %vm103_vm11, %v87_v8, %v119_v16  ;;  %v67_v22 = vmul.f32 %v288_v14, %v370_v1 }
  0x18   :  { %340 = vst [vmem:[%s458_s3 + $0x20] sm:$0xff] %v313_v15   ;;  %v318_v23 = vpack.c.bf16 %v135_v21, %v134_v17  ;;  %vm105_vm13 = vcmp.gt.f32.partialorder %v89_v18, 0.0  ;;  %v121_v24 = vmul.f32 0.2, %v89_v18 }
  0x19   :  { %v136_v25 = vsel %vm104_vm12, %v88_v13, %v120_v19  ;;  %v68_v26 = vmul.f32 %v289_v20, %v370_v1  ;;  %v90_v27 = vadd.f32 %v384_v7, %v67_v22 }
  0x1a   :  { %341 = vst [vmem:[%s458_s3 + $0x28] sm:$0xff] %v318_v23   ;;  %v137_v28 = vsel %vm105_vm13, %v89_v18, %v121_v24 }
  0x1b   :  { %v323_v29 = vpack.c.bf16 %v137_v28, %v136_v25  ;;  %v91_v30 = vadd.f32 %v384_v7, %v68_v26  ;;  %vm106_vm14 = vcmp.gt.f32.partialorder %v90_v27, 0.0  ;;  %v122_v31 = vmul.f32 0.2, %v90_v27 }
  0x1d   :  { %342 = vst [vmem:[%s458_s3 + $0x30] sm:$0xff] %v323_v29   ;;  %vm107_vm15 = vcmp.gt.f32.partialorder %v91_v30, 0.0  ;;  %v123_v32 = vmul.f32 0.2, %v91_v30  ;;  %v138_v33 = vsel %vm106_vm14, %v90_v27, %v122_v31 }
  0x1f   :  { %v139_v1 = vsel %vm107_vm15, %v91_v30, %v123_v32 }
  0x20   :  { %v328_v34 = vpack.c.bf16 %v139_v1, %v138_v33 }
  0x22   :  { %343 = vst [vmem:[%s458_s3 + $0x38] sm:$0xff] %v328_v34  }

// kernel: d_forward.8
= control target key start
LH: loop header
LB: loop body
LE: loop exit
PB: predicated region body
PF: predicated region fallthrough
CT: control target
= control target key end

     0   :  { %s3906_s1 = inlined_call_operand.vmem [shape: bf16[2048,256], index: 1, kind: input, shape index: {}]   ;;  %s3907_s0 = inlined_call_operand.vmem [shape: bf16[32,2048], index: 0, kind: input, shape index: {}]   ;;  %s3908_s2 = inlined_call_operand.vmem [shape: bf16[32,256], index: 2, kind: output, shape index: {0}]   ;;  %s3909_s3 = inlined_call_operand.vmem [shape: f32[1,8,256], index: 3, kind: output, shape index: {1}]   ;;  %s3910_s4 = inlined_call_operand.vmem [shape: f32[1,8,256], index: 4, kind: output, shape index: {2}]  }
   0x1   :  { %v2558_v0 = vld [vmem:[%s3906_s1 + $0x74] ss:$8 sps:$4 sm:$0xff]   ;;  %v2562_v2 = vld [vmem:[%s3906_s1 + $0x70] ss:$8 sps:$4 sm:$0xff]   ;;  %v2564_v4 = vld [vmem:[%s3906_s1 + $0x64] ss:$8 sps:$4 sm:$0xff]  }
   0x2   :  { %v2560_v1 = vld [vmem:[%s3906_s1 + $0x174] ss:$8 sps:$4 sm:$0xff]   ;;  %1742 = vmatprep.subr.bf16.mxu0 %v2558_v0  ;;  %v2563_v3 = vld [vmem:[%s3906_s1 + $0x170] ss:$8 sps:$4 sm:$0xff]   ;;  %v2566_v5 = vld [vmem:[%s3906_s1 + $0x164] ss:$8 sps:$4 sm:$0xff]  }
   0x3   :  { %1795 = vmatprep.subr.bf16.mxu1 %v2560_v1  ;;  %1743 = vmatpush1.bf16.msra.mxu0 %v2562_v2  ;;  %v2568_v6 = vld [vmem:[%s3906_s1 + $0x60] ss:$8 sps:$4 sm:$0xff]   ;;  %v2570_v8 = vld [vmem:[%s3906_s1 + $0x54] ss:$8 sps:$4 sm:$0xff]   ;;  %v2574_v10 = vld [vmem:[%s3906_s1 + $0x50] ss:$8 sps:$4 sm:$0xff]  }
   0x4   :  { %1796 = vmatpush1.bf16.msra.mxu1 %v2563_v3  ;;  %1744 = vmatprep.subr.bf16.mxu0 %v2564_v4  ;;  %v2569_v7 = vld [vmem:[%s3906_s1 + $0x160] ss:$8 sps:$4 sm:$0xff]   ;;  %v2572_v9 = vld [vmem:[%s3906_s1 + $0x154] ss:$8 sps:$4 sm:$0xff]   ;;  %v2575_v11 = vld [vmem:[%s3906_s1 + $0x150] ss:$8 sps:$4 sm:$0xff]  }
   0x5   :  { %1797 = vmatprep.subr.bf16.mxu1 %v2566_v5  ;;  %v2576_v12 = vld [vmem:[%s3906_s1 + $0x44] ss:$8 sps:$4 sm:$0xff]   ;;  %v2580_v14 = vld [vmem:[%s3906_s1 + $0x40] ss:$8 sps:$4 sm:$0xff]   ;;  %v2582_v16 = vld [vmem:[%s3906_s1 + $0x34] ss:$8 sps:$4 sm:$0xff]  }
   0x6   :  { %v2578_v13 = vld [vmem:[%s3906_s1 + $0x144] ss:$8 sps:$4 sm:$0xff]   ;;  %v2581_v15 = vld [vmem:[%s3906_s1 + $0x140] ss:$8 sps:$4 sm:$0xff]   ;;  %v2584_v17 = vld [vmem:[%s3906_s1 + $0x134] ss:$8 sps:$4 sm:$0xff]  }
   0x7   :  { %1745 = vmatpush1.bf16.msra.mxu0 %v2568_v6  ;;  %v2586_v18 = vld [vmem:[%s3906_s1 + $0x30] ss:$8 sps:$4 sm:$0xff]   ;;  %v2588_v20 = vld [vmem:[%s3906_s1 + $0x24] ss:$8 sps:$4 sm:$0xff]   ;;  %v2592_v22 = vld [vmem:[%s3906_s1 + $0x20] ss:$8 sps:$4 sm:$0xff]  }
   0x8   :  { %1798 = vmatpush1.bf16.msra.mxu1 %v2569_v7  ;;  %1746 = vmatprep.subr.bf16.mxu0 %v2570_v8  ;;  %v2587_v19 = vld [vmem:[%s3906_s1 + $0x130] ss:$8 sps:$4 sm:$0xff]   ;;  %v2590_v21 = vld [vmem:[%s3906_s1 + $0x124] ss:$8 sps:$4 sm:$0xff]   ;;  %v2593_v23 = vld [vmem:[%s3906_s1 + $0x120] ss:$8 sps:$4 sm:$0xff]  }
   0x9   :  { %1799 = vmatprep.subr.bf16.mxu1 %v2572_v9  ;;  %v2594_v24 = vld [vmem:[%s3906_s1 + $0x14] ss:$8 sps:$4 sm:$0xff]   ;;  %v2598_v26 = vld [vmem:[%s3906_s1 + $0x10] ss:$8 sps:$4 sm:$0xff]   ;;  %v2600_v28 = vld [vmem:[%s3906_s1 + $0x4] ss:$8 sps:$4 sm:$0xff]  }
   0xa   :  { %v2596_v25 = vld [vmem:[%s3906_s1 + $0x114] ss:$8 sps:$4 sm:$0xff]   ;;  %v2599_v27 = vld [vmem:[%s3906_s1 + $0x110] ss:$8 sps:$4 sm:$0xff]   ;;  %v2602_v29 = vld [vmem:[%s3906_s1 + $0x104] ss:$8 sps:$4 sm:$0xff]  }
   0xb   :  { %1747 = vmatpush1.bf16.msra.mxu0 %v2574_v10  ;;  %v2604_v30 = vld [vmem:[%s3906_s1] ss:$8 sps:$4 sm:$0xff]   ;;  %v2606_v32 = vld [vmem:[%s3906_s1 + $0xf4] ss:$8 sps:$4 sm:$0xff]   ;;  %v2610_v34 = vld [vmem:[%s3906_s1 + $0xf0] ss:$8 sps:$4 sm:$0xff]  }
   0xc   :  { %1800 = vmatpush1.bf16.msra.mxu1 %v2575_v11  ;;  %1748 = vmatprep.subr.bf16.mxu0 %v2576_v12  ;;  %v2605_v31 = vld [vmem:[%s3906_s1 + $0x100] ss:$8 sps:$4 sm:$0xff]   ;;  %v2608_v33 = vld [vmem:[%s3906_s1 + $0x1f4] ss:$8 sps:$4 sm:$0xff]   ;;  %v2611_v35 = vld [vmem:[%s3906_s1 + $0x1f0] ss:$8 sps:$4 sm:$0xff]  }
   0xd   :  { %1801 = vmatprep.subr.bf16.mxu1 %v2578_v13  ;;  %v2612_v36 = vld [vmem:[%s3906_s1 + $0xe4] ss:$8 sps:$4 sm:$0xff]   ;;  %v2616_v38 = vld [vmem:[%s3906_s1 + $0xe0] ss:$8 sps:$4 sm:$0xff]   ;;  %v2618_v40 = vld [vmem:[%s3906_s1 + $0xd4] ss:$8 sps:$4 sm:$0xff]  }
   0xe   :  { %v2614_v37 = vld [vmem:[%s3906_s1 + $0x1e4] ss:$8 sps:$4 sm:$0xff]   ;;  %v2617_v39 = vld [vmem:[%s3906_s1 + $0x1e0] ss:$8 sps:$4 sm:$0xff]   ;;  %v2620_v41 = vld [vmem:[%s3906_s1 + $0x1d4] ss:$8 sps:$4 sm:$0xff]  }
   0xf   :  { %1749 = vmatpush1.bf16.msra.mxu0 %v2580_v14  ;;  %v2622_v42 = vld [vmem:[%s3906_s1 + $0xd0] ss:$8 sps:$4 sm:$0xff]   ;;  %v2624_v44 = vld [vmem:[%s3906_s1 + $0xc4] ss:$8 sps:$4 sm:$0xff]   ;;  %v2628_v46 = vld [vmem:[%s3906_s1 + $0xc0] ss:$8 sps:$4 sm:$0xff]  }
  0x10   :  { %1802 = vmatpush1.bf16.msra.mxu1 %v2581_v15  ;;  %1750 = vmatprep.subr.bf16.mxu0 %v2582_v16  ;;  %v2623_v43 = vld [vmem:[%s3906_s1 + $0x1d0] ss:$8 sps:$4 sm:$0xff]   ;;  %v2626_v45 = vld [vmem:[%s3906_s1 + $0x1c4] ss:$8 sps:$4 sm:$0xff]   ;;  %v2629_v47 = vld [vmem:[%s3906_s1 + $0x1c0] ss:$8 sps:$4 sm:$0xff]  }
  0x11   :  { %1803 = vmatprep.subr.bf16.mxu1 %v2584_v17  ;;  %v14_v48 = vld [vmem:[%s3907_s0] sm:$0xff]  ;;  %v15_v50 = vld [vmem:[%s3907_s0 + $0x8] sm:$0xff]  ;;  %v2630_v52 = vld [vmem:[%s3906_s1 + $0xb4] ss:$8 sps:$4 sm:$0xff]  }
  0x12   :  { %v22_v49 = vld [vmem:[%s3907_s0 + $0x40] sm:$0xff]  ;;  %v23_v51 = vld [vmem:[%s3907_s0 + $0x48] sm:$0xff]  ;;  %v2632_v54 = vld [vmem:[%s3906_s1 + $0x1b4] ss:$8 sps:$4 sm:$0xff]  }
  0x13   :  { %1751 = vmatpush1.bf16.msra.mxu0 %v2586_v18  ;;  %v2263_v53 = vcombine.high %v14_v48, %v22_v49  ;;  %v2265_v55 = vcombine.high %v15_v50, %v23_v51  ;;  %v2634_v56 = vld [vmem:[%s3906_s1 + $0xb0] ss:$8 sps:$4 sm:$0xff]   ;;  %v2636_v58 = vld [vmem:[%s3906_s1 + $0xa4] ss:$8 sps:$4 sm:$0xff]   ;;  %v2640_v60 = vld [vmem:[%s3906_s1 + $0xa0] ss:$8 sps:$4 sm:$0xff]   ;;  %v2262_v8 = vcombine.low %v14_v48, %v22_v49  ;;  %v2264_v9 = vcombine.low %v15_v50, %v23_v51 }
  0x14   :  { %1804 = vmatpush1.bf16.msra.mxu1 %v2587_v19  ;;  %1752 = vmatprep.subr.bf16.mxu0 %v2588_v20  ;;  %v2635_v57 = vld [vmem:[%s3906_s1 + $0x1b0] ss:$8 sps:$4 sm:$0xff]   ;;  %v2638_v59 = vld [vmem:[%s3906_s1 + $0x1a4] ss:$8 sps:$4 sm:$0xff]   ;;  %v2641_v61 = vld [vmem:[%s3906_s1 + $0x1a0] ss:$8 sps:$4 sm:$0xff]  }
  0x15   :  { %1805 = vmatprep.subr.bf16.mxu1 %v2590_v21  ;;  %1774 = vmatprep.mubr.bf16.mxu0 %v2263_v53  ;;  %v2642_v62 = vld [vmem:[%s3906_s1 + $0x94] ss:$8 sps:$4 sm:$0xff]   ;;  %v2646_v0 = vld [vmem:[%s3906_s1 + $0x90] ss:$8 sps:$4 sm:$0xff]   ;;  %v2648_v2 = vld [vmem:[%s3906_s1 + $0x84] ss:$8 sps:$4 sm:$0xff]  }
  0x16   :  { %1827 = vmatprep.mubr.bf16.mxu1 %v2265_v55  ;;  %v2644_v63 = vld [vmem:[%s3906_s1 + $0x194] ss:$8 sps:$4 sm:$0xff]   ;;  %v2647_v1 = vld [vmem:[%s3906_s1 + $0x190] ss:$8 sps:$4 sm:$0xff]   ;;  %v2650_v3 = vld [vmem:[%s3906_s1 + $0x184] ss:$8 sps:$4 sm:$0xff]  }
  0x17   :  { %1753 = vmatpush1.bf16.msra.mxu0 %v2592_v22  ;;  %v2652_v4 = vld [vmem:[%s3906_s1 + $0x80] ss:$8 sps:$4 sm:$0xff]   ;;  %v2656_v6 = vld [vmem:[%s3906_s1 + $0x274] ss:$8 sps:$4 sm:$0xff]   ;;  %v2654_v10 = vld [vmem:[%s3906_s1 + $0x270] ss:$8 sps:$4 sm:$0xff]  }
  0x18   :  { %1806 = vmatpush1.bf16.msra.mxu1 %v2593_v23  ;;  %1754 = vmatprep.subr.bf16.mxu0 %v2594_v24  ;;  %v2653_v5 = vld [vmem:[%s3906_s1 + $0x180] ss:$8 sps:$4 sm:$0xff]   ;;  %v2659_v7 = vld [vmem:[%s3906_s1 + $0x374] ss:$8 sps:$4 sm:$0xff]   ;;  %v2657_v11 = vld [vmem:[%s3906_s1 + $0x370] ss:$8 sps:$4 sm:$0xff]  }
  0x19   :  { %1807 = vmatprep.subr.bf16.mxu1 %v2596_v25  ;;  %v2662_v12 = vld [vmem:[%s3906_s1 + $0x264] ss:$8 sps:$4 sm:$0xff]   ;;  %v2660_v14 = vld [vmem:[%s3906_s1 + $0x260] ss:$8 sps:$4 sm:$0xff]   ;;  %v2668_v16 = vld [vmem:[%s3906_s1 + $0x254] ss:$8 sps:$4 sm:$0xff]  }
  0x1a   :  { %v2665_v13 = vld [vmem:[%s3906_s1 + $0x364] ss:$8 sps:$4 sm:$0xff]   ;;  %v2663_v15 = vld [vmem:[%s3906_s1 + $0x360] ss:$8 sps:$4 sm:$0xff]   ;;  %v2671_v17 = vld [vmem:[%s3906_s1 + $0x354] ss:$8 sps:$4 sm:$0xff]  }
  0x1b   :  { %1755 = vmatpush1.bf16.msra.mxu0 %v2598_v26  ;;  %v2666_v18 = vld [vmem:[%s3906_s1 + $0x250] ss:$8 sps:$4 sm:$0xff]   ;;  %v2674_v20 = vld [vmem:[%s3906_s1 + $0x244] ss:$8 sps:$4 sm:$0xff]   ;;  %v2672_v22 = vld [vmem:[%s3906_s1 + $0x240] ss:$8 sps:$4 sm:$0xff]  }
  0x1c   :  { %1808 = vmatpush1.bf16.msra.mxu1 %v2599_v27  ;;  %1756 = vmatprep.subr.bf16.mxu0 %v2600_v28  ;;  %v2669_v19 = vld [vmem:[%s3906_s1 + $0x350] ss:$8 sps:$4 sm:$0xff]   ;;  %v2677_v21 = vld [vmem:[%s3906_s1 + $0x344] ss:$8 sps:$4 sm:$0xff]   ;;  %v2675_v23 = vld [vmem:[%s3906_s1 + $0x340] ss:$8 sps:$4 sm:$0xff]  }
  0x1d   :  { %1809 = vmatprep.subr.bf16.mxu1 %v2602_v29  ;;  %v2680_v24 = vld [vmem:[%s3906_s1 + $0x234] ss:$8 sps:$4 sm:$0xff]   ;;  %v2678_v26 = vld [vmem:[%s3906_s1 + $0x230] ss:$8 sps:$4 sm:$0xff]   ;;  %v30_v28 = vld [vmem:[%s3907_s0 + $0x80] sm:$0xff] }
  0x1e   :  { %v2683_v25 = vld [vmem:[%s3906_s1 + $0x334] ss:$8 sps:$4 sm:$0xff]   ;;  %v2681_v27 = vld [vmem:[%s3906_s1 + $0x330] ss:$8 sps:$4 sm:$0xff]   ;;  %v38_v29 = vld [vmem:[%s3907_s0 + $0xc0] sm:$0xff] }
  0x1f   :  { %1757 = vmatpush1.bf16.msra.mxu0 %v2604_v30  ;;  %v31_v30 = vld [vmem:[%s3907_s0 + $0x88] sm:$0xff]  ;;  %v3286_v48 = vld [vmem:[%s3907_s0 + $0x18] sm:$0xff] }
  0x20   :  { %1810 = vmatpush1.bf16.msra.mxu1 %v2605_v31  ;;  %1758 = vmatprep.subr.bf16.mxu0 %v2606_v32  ;;  %v39_v31 = vld [vmem:[%s3907_s0 + $0xc8] sm:$0xff]  ;;  %v3293_v50 = vld [vmem:[%s3907_s0 + $0x58] sm:$0xff] }
  0x21   :  { %1811 = vmatprep.subr.bf16.mxu1 %v2608_v33  ;;  %v2686_v32 = vld [vmem:[%s3906_s1 + $0x224] ss:$8 sps:$4 sm:$0xff]   ;;  %v2279_v33 = vcombine.high %v30_v28, %v38_v29  ;;  %v2269_v51 = vcombine.high %v3286_v48, %v3293_v50  ;;  %v2699_v53 = vld [vmem:[%s3906_s1 + $0x300] ss:$8 sps:$4 sm:$0xff]   ;;  %v2707_v55 = vld [vmem:[%s3906_s1 + $0x3f4] ss:$8 sps:$4 sm:$0xff]  }
  0x23   :  { %1759 = vmatpush2.bf16.msra.mxu0 %v2610_v34  ;;  %v2281_v34 = vcombine.high %v31_v30, %v39_v31 }
  0x24   :  { %1812 = vmatpush2.bf16.msra.mxu1 %v2611_v35  ;;  %1760 = vmatprep.subr.bf16.mxu0 %v2612_v36  ;;  %v2278_v35 = vcombine.low %v30_v28, %v38_v29  ;;  %v2689_v36 = vld [vmem:[%s3906_s1 + $0x324] ss:$8 sps:$4 sm:$0xff]   ;;  %v2268_v29 = vcombine.low %v3286_v48, %v3293_v50 }
  0x25   :  { %1813 = vmatprep.subr.bf16.mxu1 %v2614_v37  ;;  %v2280_v37 = vcombine.low %v31_v30, %v39_v31  ;;  %v33_v30 = vld [vmem:[%s3907_s0 + $0x98] sm:$0xff]  ;;  %v2770_v48 = vld [vmem:[%s3906_s1 + $0x444] ss:$8 sps:$4 sm:$0xff]  }
  0x26   :  { %v41_v31 = vld [vmem:[%s3907_s0 + $0xd8] sm:$0xff] }
  0x27   :  { %1761 = vmatpush2.bf16.msra.mxu0 %v2616_v38  ;;  %v2684_v38 = vld [vmem:[%s3906_s1 + $0x220] ss:$8 sps:$4 sm:$0xff]  }
  0x28   :  { %1814 = vmatpush2.bf16.msra.mxu1 %v2617_v39  ;;  %1762 = vmatprep.subr.bf16.mxu0 %v2618_v40  ;;  %v2687_v39 = vld [vmem:[%s3906_s1 + $0x320] ss:$8 sps:$4 sm:$0xff]   ;;  %v2692_v40 = vld [vmem:[%s3906_s1 + $0x214] ss:$8 sps:$4 sm:$0xff]  }
  0x29   :  { %1815 = vmatprep.subr.bf16.mxu1 %v2620_v41  ;;  %v2695_v41 = vld [vmem:[%s3906_s1 + $0x314] ss:$8 sps:$4 sm:$0xff]  }
  0x2b   :  { %1763 = vmatpush2.bf16.msra.mxu0 %v2622_v42  ;;  %v2690_v42 = vld [vmem:[%s3906_s1 + $0x210] ss:$8 sps:$4 sm:$0xff]  }
  0x2c   :  { %1816 = vmatpush2.bf16.msra.mxu1 %v2623_v43  ;;  %1764 = vmatprep.subr.bf16.mxu0 %v2624_v44  ;;  %v2693_v43 = vld [vmem:[%s3906_s1 + $0x310] ss:$8 sps:$4 sm:$0xff]   ;;  %v2698_v44 = vld [vmem:[%s3906_s1 + $0x204] ss:$8 sps:$4 sm:$0xff]  }
  0x2d   :  { %1817 = vmatprep.subr.bf16.mxu1 %v2626_v45  ;;  %v2701_v45 = vld [vmem:[%s3906_s1 + $0x304] ss:$8 sps:$4 sm:$0xff]  }
  0x2f   :  { %1765 = vmatpush2.bf16.msra.mxu0 %v2628_v46  ;;  %v3276_v46 = vld [vmem:[%s3907_s0 + $0x10] sm:$0xff] }
  0x30   :  { %1818 = vmatpush2.bf16.msra.mxu1 %v2629_v47  ;;  %1766 = vmatprep.subr.bf16.mxu0 %v2630_v52  ;;  %v3281_v47 = vld [vmem:[%s3907_s0 + $0x50] sm:$0xff]  ;;  %v2696_v52 = vld [vmem:[%s3906_s1 + $0x200] ss:$8 sps:$4 sm:$0xff]  }
  0x31   :  { %1819 = vmatprep.subr.bf16.mxu1 %v2632_v54  ;;  %v2267_v49 = vcombine.high %v3276_v46, %v3281_v47  ;;  %v2704_v54 = vld [vmem:[%s3906_s1 + $0x2f4] ss:$8 sps:$4 sm:$0xff]   ;;  %v2266_v28 = vcombine.low %v3276_v46, %v3281_v47  ;;  %v3464_v46 = vld [vmem:[%s3907_s0 + $0x28] sm:$0xff] }
  0x32   :  { %v3469_v47 = vld [vmem:[%s3907_s0 + $0x68] sm:$0xff] }
  0x33   :  { %1767 = vmatpush2.bf16.msra.mxu0 %v2634_v56  ;;  %v2702_v56 = vld [vmem:[%s3906_s1 + $0x2f0] ss:$8 sps:$4 sm:$0xff]  }
  0x34   :  { %1820 = vmatpush2.bf16.msra.mxu1 %v2635_v57  ;;  %1768 = vmatprep.subr.bf16.mxu0 %v2636_v58  ;;  %v2705_v57 = vld [vmem:[%s3906_s1 + $0x3f0] ss:$8 sps:$4 sm:$0xff]   ;;  %v2710_v58 = vld [vmem:[%s3906_s1 + $0x2e4] ss:$8 sps:$4 sm:$0xff]  }
  0x35   :  { %1821 = vmatprep.subr.bf16.mxu1 %v2638_v59  ;;  %v2713_v59 = vld [vmem:[%s3906_s1 + $0x3e4] ss:$8 sps:$4 sm:$0xff]  }
  0x37   :  { %1769 = vmatpush2.bf16.msra.mxu0 %v2640_v60  ;;  %v2708_v60 = vld [vmem:[%s3906_s1 + $0x2e0] ss:$8 sps:$4 sm:$0xff]  }
  0x38   :  { %1822 = vmatpush2.bf16.msra.mxu1 %v2641_v61  ;;  %1770 = vmatprep.subr.bf16.mxu0 %v2642_v62  ;;  %v2711_v61 = vld [vmem:[%s3906_s1 + $0x3e0] ss:$8 sps:$4 sm:$0xff]   ;;  %v2716_v62 = vld [vmem:[%s3906_s1 + $0x2d4] ss:$8 sps:$4 sm:$0xff]  }
  0x39   :  { %1823 = vmatprep.subr.bf16.mxu1 %v2644_v63  ;;  %v2719_v63 = vld [vmem:[%s3906_s1 + $0x3d4] ss:$8 sps:$4 sm:$0xff]  }
  0x3b   :  { %1771 = vmatpush2.bf16.msra.mxu0 %v2646_v0  ;;  %v2714_v0 = vld [vmem:[%s3906_s1 + $0x2d0] ss:$8 sps:$4 sm:$0xff]  }
  0x3c   :  { %1824 = vmatpush2.bf16.msra.mxu1 %v2647_v1  ;;  %1772 = vmatprep.subr.bf16.mxu0 %v2648_v2  ;;  %v2717_v1 = vld [vmem:[%s3906_s1 + $0x3d0] ss:$8 sps:$4 sm:$0xff]   ;;  %v2722_v2 = vld [vmem:[%s3906_s1 + $0x2c4] ss:$8 sps:$4 sm:$0xff]  }
  0x3d   :  { %1825 = vmatprep.subr.bf16.mxu1 %v2650_v3  ;;  %v2725_v3 = vld [vmem:[%s3906_s1 + $0x3c4] ss:$8 sps:$4 sm:$0xff]  }
  0x3f   :  { %1773 = vmatpush2.bf16.msra.mxu0 %v2652_v4  ;;  %v2720_v4 = vld [vmem:[%s3906_s1 + $0x2c0] ss:$8 sps:$4 sm:$0xff]  }
  0x40   :  { %1826 = vmatpush2.bf16.msra.mxu1 %v2653_v5  ;;  %1848 = vmatprep.subr.bf16.mxu0 %v2656_v6  ;;  %v2723_v5 = vld [vmem:[%s3906_s1 + $0x3c0] ss:$8 sps:$4 sm:$0xff]   ;;  %v2728_v6 = vld [vmem:[%s3906_s1 + $0x2b4] ss:$8 sps:$4 sm:$0xff]  }
  0x41   :  { %1901 = vmatprep.subr.bf16.mxu1 %v2659_v7  ;;  %v2731_v7 = vld [vmem:[%s3906_s1 + $0x3b4] ss:$8 sps:$4 sm:$0xff]  }
  0x42   :  { %1775 = vmatmul.mubr.bf16.vlgmr.msra.gmra.mxu0 %v2262_v8  ;;  %v2726_v8 = vld [vmem:[%s3906_s1 + $0x2b0] ss:$8 sps:$4 sm:$0xff]  }
  0x43   :  { %1828 = vmatmul.mubr.bf16.vlgmr.msra.gmra.mxu1 %v2264_v9  ;;  %1849 = vmatpush1.bf16.msra.mxu0 %v2654_v10  ;;  %v2729_v9 = vld [vmem:[%s3906_s1 + $0x3b0] ss:$8 sps:$4 sm:$0xff]   ;;  %v2734_v10 = vld [vmem:[%s3906_s1 + $0x2a4] ss:$8 sps:$4 sm:$0xff]  }
  0x44   :  { %1902 = vmatpush1.bf16.msra.mxu1 %v2657_v11  ;;  %1850 = vmatprep.subr.bf16.mxu0 %v2662_v12  ;;  %v2737_v11 = vld [vmem:[%s3906_s1 + $0x3a4] ss:$8 sps:$4 sm:$0xff]   ;;  %v2732_v12 = vld [vmem:[%s3906_s1 + $0x2a0] ss:$8 sps:$4 sm:$0xff]  }
  0x45   :  { %1903 = vmatprep.subr.bf16.mxu1 %v2665_v13  ;;  %1784 = vmatprep.mubr.bf16.mxu0 %v2279_v33  ;;  %v2735_v13 = vld [vmem:[%s3906_s1 + $0x3a0] ss:$8 sps:$4 sm:$0xff]   ;;  %v2761_v33 = vld [vmem:[%s3906_s1 + $0x564] ss:$8 sps:$4 sm:$0xff]  }
  0x46   :  { %1837 = vmatprep.mubr.bf16.mxu1 %v2281_v34 }
  0x47   :  { %1851 = vmatpush1.bf16.msra.mxu0 %v2660_v14  ;;  %v2740_v14 = vld [vmem:[%s3906_s1 + $0x294] ss:$8 sps:$4 sm:$0xff]  }
  0x48   :  { %1904 = vmatpush1.bf16.msra.mxu1 %v2663_v15  ;;  %1852 = vmatprep.subr.bf16.mxu0 %v2668_v16  ;;  %v2743_v15 = vld [vmem:[%s3906_s1 + $0x394] ss:$8 sps:$4 sm:$0xff]   ;;  %v2738_v16 = vld [vmem:[%s3906_s1 + $0x290] ss:$8 sps:$4 sm:$0xff]  }
  0x49   :  { %1905 = vmatprep.subr.bf16.mxu1 %v2671_v17  ;;  %v2741_v17 = vld [vmem:[%s3906_s1 + $0x390] ss:$8 sps:$4 sm:$0xff]  }
  0x4a   :  { %1785 = vmatmul.mubr.bf16.gmra.mxu0 %v2278_v35  ;;  %v2285_v35 = vcombine.high %v33_v30, %v41_v31 }
  0x4b   :  { %1853 = vmatpush1.bf16.msra.mxu0 %v2666_v18  ;;  %1838 = vmatmul.mubr.bf16.gmra.mxu1 %v2280_v37  ;;  %v2746_v18 = vld [vmem:[%s3906_s1 + $0x284] ss:$8 sps:$4 sm:$0xff]   ;;  %v2759_v37 = vld [vmem:[%s3906_s1 + $0x560] ss:$8 sps:$4 sm:$0xff]  }
  0x4c   :  { %1906 = vmatpush1.bf16.msra.mxu1 %v2669_v19  ;;  %1854 = vmatprep.subr.bf16.mxu0 %v2674_v20  ;;  %v2749_v19 = vld [vmem:[%s3906_s1 + $0x384] ss:$8 sps:$4 sm:$0xff]   ;;  %v2744_v20 = vld [vmem:[%s3906_s1 + $0x280] ss:$8 sps:$4 sm:$0xff]  }
  0x4d   :  { %1907 = vmatprep.subr.bf16.mxu1 %v2677_v21  ;;  %1880 = vmatprep.mubr.bf16.mxu0 %v2267_v49  ;;  %v2747_v21 = vld [vmem:[%s3906_s1 + $0x380] ss:$8 sps:$4 sm:$0xff]   ;;  %v2773_v49 = vld [vmem:[%s3906_s1 + $0x544] ss:$8 sps:$4 sm:$0xff]  }
  0x4e   :  { %1933 = vmatprep.mubr.bf16.mxu1 %v2269_v51  ;;  %v2273_v51 = vcombine.high %v3464_v46, %v3469_v47 }
  0x4f   :  { %1855 = vmatpush1.bf16.msra.mxu0 %v2672_v22  ;;  %v2752_v22 = vld [vmem:[%s3906_s1 + $0x474] ss:$8 sps:$4 sm:$0xff]  }
  0x50   :  { %1908 = vmatpush1.bf16.msra.mxu1 %v2675_v23  ;;  %1856 = vmatprep.subr.bf16.mxu0 %v2680_v24  ;;  %v2755_v23 = vld [vmem:[%s3906_s1 + $0x574] ss:$8 sps:$4 sm:$0xff]   ;;  %v2750_v24 = vld [vmem:[%s3906_s1 + $0x470] ss:$8 sps:$4 sm:$0xff]  }
  0x51   :  { %1909 = vmatprep.subr.bf16.mxu1 %v2683_v25  ;;  %v2753_v25 = vld [vmem:[%s3906_s1 + $0x570] ss:$8 sps:$4 sm:$0xff]  }
  0x53   :  { %1857 = vmatpush1.bf16.msra.mxu0 %v2678_v26  ;;  %v32_v26 = vld [vmem:[%s3907_s0 + $0x90] sm:$0xff] }
  0x54   :  { %1910 = vmatpush1.bf16.msra.mxu1 %v2681_v27  ;;  %1858 = vmatprep.subr.bf16.mxu0 %v2686_v32  ;;  %v40_v27 = vld [vmem:[%s3907_s0 + $0xd0] sm:$0xff]  ;;  %v2758_v32 = vld [vmem:[%s3906_s1 + $0x464] ss:$8 sps:$4 sm:$0xff]  }
  0x55   :  { %1911 = vmatprep.subr.bf16.mxu1 %v2689_v36  ;;  %v2283_v34 = vcombine.high %v32_v26, %v40_v27  ;;  %v2756_v36 = vld [vmem:[%s3906_s1 + $0x460] ss:$8 sps:$4 sm:$0xff]  }
  0x57   :  { %1859 = vmatpush1.bf16.msra.mxu0 %v2684_v38  ;;  %v2764_v38 = vld [vmem:[%s3906_s1 + $0x454] ss:$8 sps:$4 sm:$0xff]  }
  0x58   :  { %1912 = vmatpush1.bf16.msra.mxu1 %v2687_v39  ;;  %1860 = vmatprep.subr.bf16.mxu0 %v2692_v40  ;;  %v2767_v39 = vld [vmem:[%s3906_s1 + $0x554] ss:$8 sps:$4 sm:$0xff]   ;;  %v2762_v40 = vld [vmem:[%s3906_s1 + $0x450] ss:$8 sps:$4 sm:$0xff]  }
  0x59   :  { %1913 = vmatprep.subr.bf16.mxu1 %v2695_v41  ;;  %v2765_v41 = vld [vmem:[%s3906_s1 + $0x550] ss:$8 sps:$4 sm:$0xff]  }
  0x5b   :  { %1861 = vmatpush1.bf16.msra.mxu0 %v2690_v42  ;;  %v3454_v42 = vld [vmem:[%s3907_s0 + $0x20] sm:$0xff] }
  0x5c   :  { %1914 = vmatpush1.bf16.msra.mxu1 %v2693_v43  ;;  %1862 = vmatprep.subr.bf16.mxu0 %v2698_v44  ;;  %v3459_v43 = vld [vmem:[%s3907_s0 + $0x60] sm:$0xff]  ;;  %v2282_v44 = vcombine.low %v32_v26, %v40_v27 }
  0x5d   :  { %1915 = vmatprep.subr.bf16.mxu1 %v2701_v45  ;;  %v2284_v45 = vcombine.low %v33_v30, %v41_v31  ;;  %v2271_v50 = vcombine.high %v3454_v42, %v3459_v43  ;;  %v2830_v26 = vld [vmem:[%s3906_s1 + $0x4a4] ss:$8 sps:$4 sm:$0xff]   ;;  %v2836_v30 = vld [vmem:[%s3906_s1 + $0x494] ss:$8 sps:$4 sm:$0xff]  }
  0x5e   :  { %v2833_v27 = vld [vmem:[%s3906_s1 + $0x5a4] ss:$8 sps:$4 sm:$0xff]   ;;  %v2839_v31 = vld [vmem:[%s3906_s1 + $0x594] ss:$8 sps:$4 sm:$0xff]  }
  0x5f   :  { %1863 = vmatpush1.bf16.msra.mxu0 %v2696_v52  ;;  %v2768_v52 = vld [vmem:[%s3906_s1 + $0x440] ss:$8 sps:$4 sm:$0xff]  }
  0x60   :  { %1916 = vmatpush1.bf16.msra.mxu1 %v2699_v53  ;;  %1864 = vmatprep.subr.bf16.mxu0 %v2704_v54  ;;  %v2771_v53 = vld [vmem:[%s3906_s1 + $0x540] ss:$8 sps:$4 sm:$0xff]   ;;  %v2776_v54 = vld [vmem:[%s3906_s1 + $0x434] ss:$8 sps:$4 sm:$0xff]  }
  0x61   :  { %1917 = vmatprep.subr.bf16.mxu1 %v2707_v55  ;;  %v2779_v55 = vld [vmem:[%s3906_s1 + $0x534] ss:$8 sps:$4 sm:$0xff]  }
  0x63   :  { %1865 = vmatpush2.bf16.msra.mxu0 %v2702_v56  ;;  %v2774_v56 = vld [vmem:[%s3906_s1 + $0x430] ss:$8 sps:$4 sm:$0xff]  }
  0x64   :  { %1918 = vmatpush2.bf16.msra.mxu1 %v2705_v57  ;;  %1866 = vmatprep.subr.bf16.mxu0 %v2710_v58  ;;  %v2777_v57 = vld [vmem:[%s3906_s1 + $0x530] ss:$8 sps:$4 sm:$0xff]   ;;  %v2782_v58 = vld [vmem:[%s3906_s1 + $0x424] ss:$8 sps:$4 sm:$0xff]  }
  0x65   :  { %1919 = vmatprep.subr.bf16.mxu1 %v2713_v59  ;;  %v2785_v59 = vld [vmem:[%s3906_s1 + $0x524] ss:$8 sps:$4 sm:$0xff]  }
  0x67   :  { %1867 = vmatpush2.bf16.msra.mxu0 %v2708_v60  ;;  %v2780_v60 = vld [vmem:[%s3906_s1 + $0x420] ss:$8 sps:$4 sm:$0xff]  }
  0x68   :  { %1920 = vmatpush2.bf16.msra.mxu1 %v2711_v61  ;;  %1868 = vmatprep.subr.bf16.mxu0 %v2716_v62  ;;  %v2783_v61 = vld [vmem:[%s3906_s1 + $0x520] ss:$8 sps:$4 sm:$0xff]   ;;  %v2788_v62 = vld [vmem:[%s3906_s1 + $0x414] ss:$8 sps:$4 sm:$0xff]  }
  0x69   :  { %1921 = vmatprep.subr.bf16.mxu1 %v2719_v63  ;;  %v2791_v63 = vld [vmem:[%s3906_s1 + $0x514] ss:$8 sps:$4 sm:$0xff]  }
  0x6b   :  { %1869 = vmatpush2.bf16.msra.mxu0 %v2714_v0  ;;  %v2786_v0 = vld [vmem:[%s3906_s1 + $0x410] ss:$8 sps:$4 sm:$0xff]  }
  0x6c   :  { %1922 = vmatpush2.bf16.msra.mxu1 %v2717_v1  ;;  %1870 = vmatprep.subr.bf16.mxu0 %v2722_v2  ;;  %v2789_v1 = vld [vmem:[%s3906_s1 + $0x510] ss:$8 sps:$4 sm:$0xff]   ;;  %v2794_v2 = vld [vmem:[%s3906_s1 + $0x404] ss:$8 sps:$4 sm:$0xff]  }
  0x6d   :  { %1923 = vmatprep.subr.bf16.mxu1 %v2725_v3  ;;  %v2797_v3 = vld [vmem:[%s3906_s1 + $0x504] ss:$8 sps:$4 sm:$0xff]  }
  0x6f   :  { %1871 = vmatpush2.bf16.msra.mxu0 %v2720_v4  ;;  %v2792_v4 = vld [vmem:[%s3906_s1 + $0x400] ss:$8 sps:$4 sm:$0xff]  }
  0x70   :  { %1924 = vmatpush2.bf16.msra.mxu1 %v2723_v5  ;;  %1872 = vmatprep.subr.bf16.mxu0 %v2728_v6  ;;  %v2795_v5 = vld [vmem:[%s3906_s1 + $0x500] ss:$8 sps:$4 sm:$0xff]   ;;  %v2800_v6 = vld [vmem:[%s3906_s1 + $0x4f4] ss:$8 sps:$4 sm:$0xff]  }
  0x71   :  { %1925 = vmatprep.subr.bf16.mxu1 %v2731_v7  ;;  %v2803_v7 = vld [vmem:[%s3906_s1 + $0x5f4] ss:$8 sps:$4 sm:$0xff]  }
  0x73   :  { %1873 = vmatpush2.bf16.msra.mxu0 %v2726_v8  ;;  %v2798_v8 = vld [vmem:[%s3906_s1 + $0x4f0] ss:$8 sps:$4 sm:$0xff]  }
  0x74   :  { %1926 = vmatpush2.bf16.msra.mxu1 %v2729_v9  ;;  %1874 = vmatprep.subr.bf16.mxu0 %v2734_v10  ;;  %v2801_v9 = vld [vmem:[%s3906_s1 + $0x5f0] ss:$8 sps:$4 sm:$0xff]   ;;  %v2806_v10 = vld [vmem:[%s3906_s1 + $0x4e4] ss:$8 sps:$4 sm:$0xff]  }
  0x75   :  { %1927 = vmatprep.subr.bf16.mxu1 %v2737_v11  ;;  %v2809_v11 = vld [vmem:[%s3906_s1 + $0x5e4] ss:$8 sps:$4 sm:$0xff]  }
  0x77   :  { %1875 = vmatpush2.bf16.msra.mxu0 %v2732_v12  ;;  %v2804_v12 = vld [vmem:[%s3906_s1 + $0x4e0] ss:$8 sps:$4 sm:$0xff]  }
  0x78   :  { %1928 = vmatpush2.bf16.msra.mxu1 %v2735_v13  ;;  %1876 = vmatprep.subr.bf16.mxu0 %v2740_v14  ;;  %v2807_v13 = vld [vmem:[%s3906_s1 + $0x5e0] ss:$8 sps:$4 sm:$0xff]   ;;  %v2812_v14 = vld [vmem:[%s3906_s1 + $0x4d4] ss:$8 sps:$4 sm:$0xff]  }
  0x79   :  { %1929 = vmatprep.subr.bf16.mxu1 %v2743_v15  ;;  %v2815_v15 = vld [vmem:[%s3906_s1 + $0x5d4] ss:$8 sps:$4 sm:$0xff]  }
  0x7b   :  { %1877 = vmatpush2.bf16.msra.mxu0 %v2738_v16  ;;  %v2810_v16 = vld [vmem:[%s3906_s1 + $0x4d0] ss:$8 sps:$4 sm:$0xff]  }
  0x7c   :  { %1930 = vmatpush2.bf16.msra.mxu1 %v2741_v17  ;;  %1878 = vmatprep.subr.bf16.mxu0 %v2746_v18  ;;  %v2813_v17 = vld [vmem:[%s3906_s1 + $0x5d0] ss:$8 sps:$4 sm:$0xff]   ;;  %v2818_v18 = vld [vmem:[%s3906_s1 + $0x4c4] ss:$8 sps:$4 sm:$0xff]  }
  0x7d   :  { %1931 = vmatprep.subr.bf16.mxu1 %v2749_v19  ;;  %v2821_v19 = vld [vmem:[%s3906_s1 + $0x5c4] ss:$8 sps:$4 sm:$0xff]  }
  0x7f   :  { %1879 = vmatpush2.bf16.msra.mxu0 %v2744_v20  ;;  %v2816_v20 = vld [vmem:[%s3906_s1 + $0x4c0] ss:$8 sps:$4 sm:$0xff]  }
  0x80   :  { %1932 = vmatpush2.bf16.msra.mxu1 %v2747_v21  ;;  %1954 = vmatprep.subr.bf16.mxu0 %v2752_v22  ;;  %v2819_v21 = vld [vmem:[%s3906_s1 + $0x5c0] ss:$8 sps:$4 sm:$0xff]   ;;  %v2824_v22 = vld [vmem:[%s3906_s1 + $0x4b4] ss:$8 sps:$4 sm:$0xff]  }
  0x81   :  { %2007 = vmatprep.subr.bf16.mxu1 %v2755_v23  ;;  %v2827_v23 = vld [vmem:[%s3906_s1 + $0x5b4] ss:$8 sps:$4 sm:$0xff]  }
  0x82   :  { %1881 = vmatmul.mubr.bf16.vlgmr.msra.gmra.mxu0 %v2266_v28  ;;  %v2828_v28 = vld [vmem:[%s3906_s1 + $0x4a0] ss:$8 sps:$4 sm:$0xff]  }
  0x83   :  { %1934 = vmatmul.mubr.bf16.vlgmr.msra.gmra.mxu1 %v2268_v29  ;;  %1955 = vmatpush1.bf16.msra.mxu0 %v2750_v24  ;;  %v2822_v24 = vld [vmem:[%s3906_s1 + $0x4b0] ss:$8 sps:$4 sm:$0xff]   ;;  %v2831_v29 = vld [vmem:[%s3906_s1 + $0x5a0] ss:$8 sps:$4 sm:$0xff]  }
  0x84   :  { %2008 = vmatpush1.bf16.msra.mxu1 %v2753_v25  ;;  %1956 = vmatprep.subr.bf16.mxu0 %v2758_v32  ;;  %v2825_v25 = vld [vmem:[%s3906_s1 + $0x5b0] ss:$8 sps:$4 sm:$0xff]  }
  0x85   :  { %2009 = vmatprep.subr.bf16.mxu1 %v2761_v33  ;;  %1890 = vmatprep.mubr.bf16.mxu0 %v2283_v34  ;;  %v2834_v32 = vld [vmem:[%s3906_s1 + $0x490] ss:$8 sps:$4 sm:$0xff]   ;;  %v2842_v34 = vld [vmem:[%s3906_s1 + $0x484] ss:$8 sps:$4 sm:$0xff]  }
  0x86   :  { %1943 = vmatprep.mubr.bf16.mxu1 %v2285_v35  ;;  %v2837_v33 = vld [vmem:[%s3906_s1 + $0x590] ss:$8 sps:$4 sm:$0xff]   ;;  %v2845_v35 = vld [vmem:[%s3906_s1 + $0x584] ss:$8 sps:$4 sm:$0xff]  }
  0x87   :  { %1957 = vmatpush1.bf16.msra.mxu0 %v2756_v36  ;;  %v2840_v36 = vld [vmem:[%s3906_s1 + $0x480] ss:$8 sps:$4 sm:$0xff]  }
  0x88   :  { %2010 = vmatpush1.bf16.msra.mxu1 %v2759_v37  ;;  %1958 = vmatprep.subr.bf16.mxu0 %v2764_v38  ;;  %v2843_v37 = vld [vmem:[%s3906_s1 + $0x580] ss:$8 sps:$4 sm:$0xff]   ;;  %v2848_v38 = vld [vmem:[%s3906_s1 + $0x674] ss:$8 sps:$4 sm:$0xff]  }
  0x89   :  { %2011 = vmatprep.subr.bf16.mxu1 %v2767_v39  ;;  %v2851_v39 = vld [vmem:[%s3906_s1 + $0x774] ss:$8 sps:$4 sm:$0xff]  }
  0x8a   :  { %1891 = vmatmul.mubr.bf16.gmra.mxu0 %v2282_v44  ;;  %v2272_v44 = vcombine.low %v3464_v46, %v3469_v47  ;;  %v2854_v46 = vld [vmem:[%s3906_s1 + $0x664] ss:$8 sps:$4 sm:$0xff]  }
  0x8b   :  { %1944 = vmatmul.mubr.bf16.gmra.mxu1 %v2284_v45  ;;  %1959 = vmatpush1.bf16.msra.mxu0 %v2762_v40  ;;  %v34_v40 = vld [vmem:[%s3907_s0 + $0xa0] sm:$0xff] }
  0x8c   :  { %2012 = vmatpush1.bf16.msra.mxu1 %v2765_v41  ;;  %1960 = vmatprep.subr.bf16.mxu0 %v2770_v48  ;;  %v2270_v41 = vcombine.low %v3454_v42, %v3459_v43  ;;  %v42_v45 = vld [vmem:[%s3907_s0 + $0xe0] sm:$0xff]  ;;  %v35_v48 = vld [vmem:[%s3907_s0 + $0xa8] sm:$0xff]  ;;  %v2846_v42 = vld [vmem:[%s3906_s1 + $0x670] ss:$8 sps:$4 sm:$0xff]  }
  0x8d   :  { %2013 = vmatprep.subr.bf16.mxu1 %v2773_v49  ;;  %1986 = vmatprep.mubr.bf16.mxu0 %v2271_v50  ;;  %v43_v49 = vld [vmem:[%s3907_s0 + $0xe8] sm:$0xff]  ;;  %v2849_v43 = vld [vmem:[%s3906_s1 + $0x770] ss:$8 sps:$4 sm:$0xff]   ;;  %v2287_v50 = vcombine.high %v34_v40, %v42_v45 }
  0x8e   :  { %2039 = vmatprep.mubr.bf16.mxu1 %v2273_v51  ;;  %v2857_v47 = vld [vmem:[%s3906_s1 + $0x764] ss:$8 sps:$4 sm:$0xff]   ;;  %v2289_v51 = vcombine.high %v35_v48, %v43_v49 }
  0x8f   :  { %1961 = vmatpush1.bf16.msra.mxu0 %v2768_v52  ;;  %v2852_v52 = vld [vmem:[%s3906_s1 + $0x660] ss:$8 sps:$4 sm:$0xff]  }
  0x90   :  { %2014 = vmatpush1.bf16.msra.mxu1 %v2771_v53  ;;  %1962 = vmatprep.subr.bf16.mxu0 %v2776_v54  ;;  %v2855_v53 = vld [vmem:[%s3906_s1 + $0x760] ss:$8 sps:$4 sm:$0xff]   ;;  %v2860_v54 = vld [vmem:[%s3906_s1 + $0x654] ss:$8 sps:$4 sm:$0xff]  }
  0x91   :  { %2015 = vmatprep.subr.bf16.mxu1 %v2779_v55  ;;  %v2863_v55 = vld [vmem:[%s3906_s1 + $0x754] ss:$8 sps:$4 sm:$0xff]  }
  0x93   :  { %1963 = vmatpush1.bf16.msra.mxu0 %v2774_v56  ;;  %v3680_v56 = vld [vmem:[%s3907_s0 + $0x30] sm:$0xff] }
  0x94   :  { %2016 = vmatpush1.bf16.msra.mxu1 %v2777_v57  ;;  %1964 = vmatprep.subr.bf16.mxu0 %v2782_v58  ;;  %v2286_v57 = vcombine.low %v34_v40, %v42_v45  ;;  %v2288_v58 = vcombine.low %v35_v48, %v43_v49  ;;  %v2918_v40 = vld [vmem:[%s3906_s1 + $0x6b0] ss:$8 sps:$4 sm:$0xff]   ;;  %v2929_v45 = vld [vmem:[%s3906_s1 + $0x7a4] ss:$8 sps:$4 sm:$0xff]   ;;  %v2924_v48 = vld [vmem:[%s3906_s1 + $0x6a0] ss:$8 sps:$4 sm:$0xff]  }
  0x95   :  { %2017 = vmatprep.subr.bf16.mxu1 %v2785_v59  ;;  %v3685_v59 = vld [vmem:[%s3907_s0 + $0x70] sm:$0xff]  ;;  %v2927_v49 = vld [vmem:[%s3906_s1 + $0x7a0] ss:$8 sps:$4 sm:$0xff]  }
  0x97   :  { %1965 = vmatpush1.bf16.msra.mxu0 %v2780_v60  ;;  %v3690_v60 = vld [vmem:[%s3907_s0 + $0x38] sm:$0xff] }
  0x98   :  { %2018 = vmatpush1.bf16.msra.mxu1 %v2783_v61  ;;  %1966 = vmatprep.subr.bf16.mxu0 %v2788_v62  ;;  %v3695_v61 = vld [vmem:[%s3907_s0 + $0x78] sm:$0xff] }
  0x99   :  { %2019 = vmatprep.subr.bf16.mxu1 %v2791_v63  ;;  %v2858_v62 = vld [vmem:[%s3906_s1 + $0x650] ss:$8 sps:$4 sm:$0xff]  }
  0x9a   :  { %v2861_v63 = vld [vmem:[%s3906_s1 + $0x750] ss:$8 sps:$4 sm:$0xff]  }
  0x9b   :  { %1967 = vmatpush1.bf16.msra.mxu0 %v2786_v0  ;;  %v2866_v0 = vld [vmem:[%s3906_s1 + $0x644] ss:$8 sps:$4 sm:$0xff]  }
  0x9c   :  { %2020 = vmatpush1.bf16.msra.mxu1 %v2789_v1  ;;  %1968 = vmatprep.subr.bf16.mxu0 %v2794_v2  ;;  %v2869_v1 = vld [vmem:[%s3906_s1 + $0x744] ss:$8 sps:$4 sm:$0xff]   ;;  %v2275_v2 = vcombine.high %v3680_v56, %v3685_v59 }
  0x9d   :  { %2021 = vmatprep.subr.bf16.mxu1 %v2797_v3  ;;  %v2277_v3 = vcombine.high %v3690_v60, %v3695_v61 }
  0x9f   :  { %1969 = vmatpush1.bf16.msra.mxu0 %v2792_v4  ;;  %v2864_v4 = vld [vmem:[%s3906_s1 + $0x640] ss:$8 sps:$4 sm:$0xff]  }
  0xa0   :  { %2022 = vmatpush1.bf16.msra.mxu1 %v2795_v5  ;;  %1970 = vmatprep.subr.bf16.mxu0 %v2800_v6  ;;  %v2867_v5 = vld [vmem:[%s3906_s1 + $0x740] ss:$8 sps:$4 sm:$0xff]   ;;  %v2872_v6 = vld [vmem:[%s3906_s1 + $0x634] ss:$8 sps:$4 sm:$0xff]  }
  0xa1   :  { %2023 = vmatprep.subr.bf16.mxu1 %v2803_v7  ;;  %v2875_v7 = vld [vmem:[%s3906_s1 + $0x734] ss:$8 sps:$4 sm:$0xff]  }
  0xa3   :  { %1971 = vmatpush2.bf16.msra.mxu0 %v2798_v8  ;;  %v2870_v8 = vld [vmem:[%s3906_s1 + $0x630] ss:$8 sps:$4 sm:$0xff]  }
  0xa4   :  { %2024 = vmatpush2.bf16.msra.mxu1 %v2801_v9  ;;  %1972 = vmatprep.subr.bf16.mxu0 %v2806_v10  ;;  %v2873_v9 = vld [vmem:[%s3906_s1 + $0x730] ss:$8 sps:$4 sm:$0xff]   ;;  %v2878_v10 = vld [vmem:[%s3906_s1 + $0x624] ss:$8 sps:$4 sm:$0xff]  }
  0xa5   :  { %2025 = vmatprep.subr.bf16.mxu1 %v2809_v11  ;;  %v2881_v11 = vld [vmem:[%s3906_s1 + $0x724] ss:$8 sps:$4 sm:$0xff]  }
  0xa7   :  { %1973 = vmatpush2.bf16.msra.mxu0 %v2804_v12  ;;  %v2876_v12 = vld [vmem:[%s3906_s1 + $0x620] ss:$8 sps:$4 sm:$0xff]  }
  0xa8   :  { %2026 = vmatpush2.bf16.msra.mxu1 %v2807_v13  ;;  %1974 = vmatprep.subr.bf16.mxu0 %v2812_v14  ;;  %v2879_v13 = vld [vmem:[%s3906_s1 + $0x720] ss:$8 sps:$4 sm:$0xff]   ;;  %v2884_v14 = vld [vmem:[%s3906_s1 + $0x614] ss:$8 sps:$4 sm:$0xff]  }
  0xa9   :  { %2027 = vmatprep.subr.bf16.mxu1 %v2815_v15  ;;  %v2887_v15 = vld [vmem:[%s3906_s1 + $0x714] ss:$8 sps:$4 sm:$0xff]  }
  0xab   :  { %1975 = vmatpush2.bf16.msra.mxu0 %v2810_v16  ;;  %v2882_v16 = vld [vmem:[%s3906_s1 + $0x610] ss:$8 sps:$4 sm:$0xff]  }
  0xac   :  { %2028 = vmatpush2.bf16.msra.mxu1 %v2813_v17  ;;  %1976 = vmatprep.subr.bf16.mxu0 %v2818_v18  ;;  %v2885_v17 = vld [vmem:[%s3906_s1 + $0x710] ss:$8 sps:$4 sm:$0xff]   ;;  %v2890_v18 = vld [vmem:[%s3906_s1 + $0x604] ss:$8 sps:$4 sm:$0xff]  }
  0xad   :  { %2029 = vmatprep.subr.bf16.mxu1 %v2821_v19  ;;  %v2893_v19 = vld [vmem:[%s3906_s1 + $0x704] ss:$8 sps:$4 sm:$0xff]  }
  0xaf   :  { %1977 = vmatpush2.bf16.msra.mxu0 %v2816_v20  ;;  %v2888_v20 = vld [vmem:[%s3906_s1 + $0x600] ss:$8 sps:$4 sm:$0xff]  }
  0xb0   :  { %2030 = vmatpush2.bf16.msra.mxu1 %v2819_v21  ;;  %1978 = vmatprep.subr.bf16.mxu0 %v2824_v22  ;;  %v2891_v21 = vld [vmem:[%s3906_s1 + $0x700] ss:$8 sps:$4 sm:$0xff]   ;;  %v2896_v22 = vld [vmem:[%s3906_s1 + $0x6f4] ss:$8 sps:$4 sm:$0xff]  }
  0xb1   :  { %2031 = vmatprep.subr.bf16.mxu1 %v2827_v23  ;;  %v2899_v23 = vld [vmem:[%s3906_s1 + $0x7f4] ss:$8 sps:$4 sm:$0xff]  }
  0xb3   :  { %1979 = vmatpush2.bf16.msra.mxu0 %v2822_v24  ;;  %v2894_v24 = vld [vmem:[%s3906_s1 + $0x6f0] ss:$8 sps:$4 sm:$0xff]  }
  0xb4   :  { %2032 = vmatpush2.bf16.msra.mxu1 %v2825_v25  ;;  %1980 = vmatprep.subr.bf16.mxu0 %v2830_v26  ;;  %v2897_v25 = vld [vmem:[%s3906_s1 + $0x7f0] ss:$8 sps:$4 sm:$0xff]   ;;  %v2902_v26 = vld [vmem:[%s3906_s1 + $0x6e4] ss:$8 sps:$4 sm:$0xff]  }
  0xb5   :  { %2033 = vmatprep.subr.bf16.mxu1 %v2833_v27  ;;  %v2905_v27 = vld [vmem:[%s3906_s1 + $0x7e4] ss:$8 sps:$4 sm:$0xff]  }
  0xb7   :  { %1981 = vmatpush2.bf16.msra.mxu0 %v2828_v28  ;;  %v2900_v28 = vld [vmem:[%s3906_s1 + $0x6e0] ss:$8 sps:$4 sm:$0xff]  }
  0xb8   :  { %2034 = vmatpush2.bf16.msra.mxu1 %v2831_v29  ;;  %1982 = vmatprep.subr.bf16.mxu0 %v2836_v30  ;;  %v2903_v29 = vld [vmem:[%s3906_s1 + $0x7e0] ss:$8 sps:$4 sm:$0xff]   ;;  %v2908_v30 = vld [vmem:[%s3906_s1 + $0x6d4] ss:$8 sps:$4 sm:$0xff]  }
  0xb9   :  { %2035 = vmatprep.subr.bf16.mxu1 %v2839_v31  ;;  %v2911_v31 = vld [vmem:[%s3906_s1 + $0x7d4] ss:$8 sps:$4 sm:$0xff]  }
  0xbb   :  { %1983 = vmatpush2.bf16.msra.mxu0 %v2834_v32  ;;  %v2906_v32 = vld [vmem:[%s3906_s1 + $0x6d0] ss:$8 sps:$4 sm:$0xff]  }
  0xbc   :  { %2036 = vmatpush2.bf16.msra.mxu1 %v2837_v33  ;;  %1984 = vmatprep.subr.bf16.mxu0 %v2842_v34  ;;  %v2909_v33 = vld [vmem:[%s3906_s1 + $0x7d0] ss:$8 sps:$4 sm:$0xff]   ;;  %v2914_v34 = vld [vmem:[%s3906_s1 + $0x6c4] ss:$8 sps:$4 sm:$0xff]  }
  0xbd   :  { %2037 = vmatprep.subr.bf16.mxu1 %v2845_v35  ;;  %v2917_v35 = vld [vmem:[%s3906_s1 + $0x7c4] ss:$8 sps:$4 sm:$0xff]  }
  0xbf   :  { %1985 = vmatpush2.bf16.msra.mxu0 %v2840_v36  ;;  %v2912_v36 = vld [vmem:[%s3906_s1 + $0x6c0] ss:$8 sps:$4 sm:$0xff]  }
  0xc0   :  { %2038 = vmatpush2.bf16.msra.mxu1 %v2843_v37  ;;  %2060 = vmatprep.subr.bf16.mxu0 %v2848_v38  ;;  %v2915_v37 = vld [vmem:[%s3906_s1 + $0x7c0] ss:$8 sps:$4 sm:$0xff]   ;;  %v2920_v38 = vld [vmem:[%s3906_s1 + $0x6b4] ss:$8 sps:$4 sm:$0xff]  }
  0xc1   :  { %2113 = vmatprep.subr.bf16.mxu1 %v2851_v39  ;;  %v2923_v39 = vld [vmem:[%s3906_s1 + $0x7b4] ss:$8 sps:$4 sm:$0xff]  }
  0xc2   :  { %1987 = vmatmul.mubr.bf16.vlgmr.msra.gmra.mxu0 %v2270_v41  ;;  %v2921_v41 = vld [vmem:[%s3906_s1 + $0x7b0] ss:$8 sps:$4 sm:$0xff]  }
  0xc3   :  { %2040 = vmatmul.mubr.bf16.vlgmr.msra.gmra.mxu1 %v2272_v44  ;;  %2061 = vmatpush1.bf16.msra.mxu0 %v2846_v42  ;;  %v2926_v44 = vld [vmem:[%s3906_s1 + $0x6a4] ss:$8 sps:$4 sm:$0xff]   ;;  %v2932_v42 = vld [vmem:[%s3906_s1 + $0x694] ss:$8 sps:$4 sm:$0xff]  }
  0xc4   :  { %2114 = vmatpush1.bf16.msra.mxu1 %v2849_v43  ;;  %2062 = vmatprep.subr.bf16.mxu0 %v2854_v46  ;;  %v2935_v43 = vld [vmem:[%s3906_s1 + $0x794] ss:$8 sps:$4 sm:$0xff]   ;;  %v2930_v46 = vld [vmem:[%s3906_s1 + $0x690] ss:$8 sps:$4 sm:$0xff]  }
  0xc5   :  { %2115 = vmatprep.subr.bf16.mxu1 %v2857_v47  ;;  %1996 = vmatprep.mubr.bf16.mxu0 %v2287_v50  ;;  %v2933_v47 = vld [vmem:[%s3906_s1 + $0x790] ss:$8 sps:$4 sm:$0xff]   ;;  %v2938_v50 = vld [vmem:[%s3906_s1 + $0x684] ss:$8 sps:$4 sm:$0xff]  }
  0xc6   :  { %2049 = vmatprep.mubr.bf16.mxu1 %v2289_v51  ;;  %v2941_v51 = vld [vmem:[%s3906_s1 + $0x784] ss:$8 sps:$4 sm:$0xff]  }
  0xc7   :  { %2063 = vmatpush1.bf16.msra.mxu0 %v2852_v52  ;;  %v2936_v52 = vld [vmem:[%s3906_s1 + $0x680] ss:$8 sps:$4 sm:$0xff]  }
  0xc8   :  { %2116 = vmatpush1.bf16.msra.mxu1 %v2855_v53  ;;  %2064 = vmatprep.subr.bf16.mxu0 %v2860_v54  ;;  %v2939_v53 = vld [vmem:[%s3906_s1 + $0x780] ss:$8 sps:$4 sm:$0xff]   ;;  %v36_v54 = vld [vmem:[%s3907_s0 + $0xb0] sm:$0xff] }
  0xc9   :  { %2117 = vmatprep.subr.bf16.mxu1 %v2863_v55  ;;  %v44_v55 = vld [vmem:[%s3907_s0 + $0xf0] sm:$0xff] }
  0xca   :  { %1997 = vmatmul.mubr.bf16.gmra.mxu0 %v2286_v57  ;;  %v37_v57 = vld [vmem:[%s3907_s0 + $0xb8] sm:$0xff] }
  0xcb   :  { %2050 = vmatmul.mubr.bf16.gmra.mxu1 %v2288_v58  ;;  %2065 = vmatpush1.bf16.msra.mxu0 %v2858_v62  ;;  %v45_v58 = vld [vmem:[%s3907_s0 + $0xf8] sm:$0xff]  ;;  %v2274_v62 = vcombine.low %v3680_v56, %v3685_v59 }
  0xcc   :  { %2118 = vmatpush1.bf16.msra.mxu1 %v2861_v63  ;;  %2066 = vmatprep.subr.bf16.mxu0 %v2866_v0  ;;  %v2276_v63 = vcombine.low %v3690_v60, %v3695_v61  ;;  %v2291_v0 = vcombine.high %v36_v54, %v44_v55 }
  0xcd   :  { %2119 = vmatprep.subr.bf16.mxu1 %v2869_v1  ;;  %2092 = vmatprep.mubr.bf16.mxu0 %v2275_v2  ;;  %v2293_v1 = vcombine.high %v37_v57, %v45_v58  ;;  %v2290_v2 = vcombine.low %v36_v54, %v44_v55 }
  0xce   :  { %2145 = vmatprep.mubr.bf16.mxu1 %v2277_v3  ;;  %v2292_v3 = vcombine.low %v37_v57, %v45_v58 }
  0xcf   :  { %2067 = vmatpush1.bf16.msra.mxu0 %v2864_v4 }
  0xd0   :  { %2120 = vmatpush1.bf16.msra.mxu1 %v2867_v5  ;;  %2068 = vmatprep.subr.bf16.mxu0 %v2872_v6 }
  0xd1   :  { %2121 = vmatprep.subr.bf16.mxu1 %v2875_v7 }
  0xd3   :  { %2069 = vmatpush1.bf16.msra.mxu0 %v2870_v8 }
  0xd4   :  { %2122 = vmatpush1.bf16.msra.mxu1 %v2873_v9  ;;  %2070 = vmatprep.subr.bf16.mxu0 %v2878_v10 }
  0xd5   :  { %2123 = vmatprep.subr.bf16.mxu1 %v2881_v11 }
  0xd7   :  { %2071 = vmatpush1.bf16.msra.mxu0 %v2876_v12 }
  0xd8   :  { %2124 = vmatpush1.bf16.msra.mxu1 %v2879_v13  ;;  %2072 = vmatprep.subr.bf16.mxu0 %v2884_v14 }
  0xd9   :  { %2125 = vmatprep.subr.bf16.mxu1 %v2887_v15 }
  0xdb   :  { %2073 = vmatpush1.bf16.msra.mxu0 %v2882_v16 }
  0xdc   :  { %2126 = vmatpush1.bf16.msra.mxu1 %v2885_v17  ;;  %2074 = vmatprep.subr.bf16.mxu0 %v2890_v18 }
  0xdd   :  { %2127 = vmatprep.subr.bf16.mxu1 %v2893_v19 }
  0xdf   :  { %2075 = vmatpush1.bf16.msra.mxu0 %v2888_v20 }
  0xe0   :  { %2128 = vmatpush1.bf16.msra.mxu1 %v2891_v21  ;;  %2076 = vmatprep.subr.bf16.mxu0 %v2896_v22 }
  0xe1   :  { %2129 = vmatprep.subr.bf16.mxu1 %v2899_v23 }
  0xe3   :  { %2077 = vmatpush2.bf16.msra.mxu0 %v2894_v24 }
  0xe4   :  { %2130 = vmatpush2.bf16.msra.mxu1 %v2897_v25  ;;  %2078 = vmatprep.subr.bf16.mxu0 %v2902_v26 }
  0xe5   :  { %2131 = vmatprep.subr.bf16.mxu1 %v2905_v27 }
  0xe7   :  { %2079 = vmatpush2.bf16.msra.mxu0 %v2900_v28 }
  0xe8   :  { %2132 = vmatpush2.bf16.msra.mxu1 %v2903_v29  ;;  %2080 = vmatprep.subr.bf16.mxu0 %v2908_v30 }
  0xe9   :  { %2133 = vmatprep.subr.bf16.mxu1 %v2911_v31 }
  0xeb   :  { %2081 = vmatpush2.bf16.msra.mxu0 %v2906_v32 }
  0xec   :  { %2134 = vmatpush2.bf16.msra.mxu1 %v2909_v33  ;;  %2082 = vmatprep.subr.bf16.mxu0 %v2914_v34 }
  0xed   :  { %2135 = vmatprep.subr.bf16.mxu1 %v2917_v35 }
  0xef   :  { %2083 = vmatpush2.bf16.msra.mxu0 %v2912_v36 }
  0xf0   :  { %2136 = vmatpush2.bf16.msra.mxu1 %v2915_v37  ;;  %2084 = vmatprep.subr.bf16.mxu0 %v2920_v38 }
  0xf1   :  { %2137 = vmatprep.subr.bf16.mxu1 %v2923_v39 }
  0xf3   :  { %2085 = vmatpush2.bf16.msra.mxu0 %v2918_v40 }
  0xf4   :  { %2138 = vmatpush2.bf16.msra.mxu1 %v2921_v41  ;;  %2086 = vmatprep.subr.bf16.mxu0 %v2926_v44 }
  0xf5   :  { %2139 = vmatprep.subr.bf16.mxu1 %v2929_v45 }
  0xf7   :  { %2087 = vmatpush2.bf16.msra.mxu0 %v2924_v48 }
  0xf8   :  { %2140 = vmatpush2.bf16.msra.mxu1 %v2927_v49  ;;  %2088 = vmatprep.subr.bf16.mxu0 %v2932_v42 }
  0xf9   :  { %2141 = vmatprep.subr.bf16.mxu1 %v2935_v43 }
  0xfb   :  { %2089 = vmatpush2.bf16.msra.mxu0 %v2930_v46 }
  0xfc   :  { %2142 = vmatpush2.bf16.msra.mxu1 %v2933_v47  ;;  %2090 = vmatprep.subr.bf16.mxu0 %v2938_v50 }
  0xfd   :  { %2143 = vmatprep.subr.bf16.mxu1 %v2941_v51 }
  0xff   :  { %2091 = vmatpush2.bf16.msra.mxu0 %v2936_v52 }
 0x100   :  { %2144 = vmatpush2.bf16.msra.mxu1 %v2939_v53 }
 0x102   :  { %2093 = vmatmul.mubr.bf16.vlgmr.msra.gmra.mxu0 %v2274_v62  ;;  %v1776_v4 = vpop.f32.mrf.mxu0 }
 0x103   :  { %2146 = vmatmul.mubr.bf16.vlgmr.msra.gmra.mxu1 %v2276_v63  ;;  %2102 = vmatprep.mubr.bf16.mxu0 %v2291_v0  ;;  %v1829_v5 = vpop.f32.mrf.mxu1 }
 0x104   :  { %2155 = vmatprep.mubr.bf16.mxu1 %v2293_v1  ;;  %v1778_v6 = vpop.f32.mrf.mxu0  ;;  %v1830_v44 = vadd.f32 %v1829_v5, %v1776_v4 }
 0x105   :  { %v1831_v7 = vpop.f32.mrf.mxu1 }
 0x106   :  { %v1780_v56 = vpop.f32.mrf.mxu0  ;;  %v1832_v45 = vadd.f32 %v1831_v7, %v1778_v6 }
 0x107   :  { %v1833_v59 = vpop.f32.mrf.mxu1 }
 0x108   :  { %v1782_v8 = vpop.f32.mrf.mxu0  ;;  %v1834_v43 = vadd.f32 %v1833_v59, %v1780_v56 }
 0x109   :  { %v1835_v61 = vpop.f32.mrf.mxu1 }
 0x10a   :  { %2103 = vmatmul.mubr.bf16.gmra.mxu0 %v2290_v2  ;;  %v1786_v60 = vpop.f32.mrf.mxu0  ;;  %v1836_v47 = vadd.f32 %v1835_v61, %v1782_v8 }
 0x10b   :  { %2156 = vmatmul.mubr.bf16.gmra.mxu1 %v2292_v3  ;;  %v1839_v9 = vpop.f32.mrf.mxu1 }
 0x10c   :  { %v1788_v10 = vpop.f32.mrf.mxu0  ;;  %v1840_v58 = vadd.f32 %v1839_v9, %v1786_v60 }
 0x10d   :  { %v1841_v11 = vpop.f32.mrf.mxu1 }
 0x10e   :  { %v1790_v12 = vpop.f32.mrf.mxu0  ;;  %v1842_v0 = vadd.f32 %v1841_v11, %v1788_v10 }
 0x10f   :  { %v1843_v13 = vpop.f32.mrf.mxu1 }
 0x110   :  { %v1792_v14 = vpop.f32.mrf.mxu0  ;;  %v1844_v7 = vadd.f32 %v1843_v13, %v1790_v12 }
 0x111   :  { %v1845_v16 = vpop.f32.mrf.mxu1 }
 0x112   :  { %v1846_v61 = vadd.f32 %v1845_v16, %v1792_v14 }
 0x142   :  { %v1882_v15 = vpop.f32.mrf.mxu0 }
 0x143   :  { %v1935_v17 = vpop.f32.mrf.mxu1  ;;  %v1883_v48 = vadd.f32 %v1882_v15, %v1830_v44 }
 0x144   :  { %v1884_v18 = vpop.f32.mrf.mxu0 }
 0x145   :  { %v1937_v19 = vpop.f32.mrf.mxu1  ;;  %v1885_v46 = vadd.f32 %v1884_v18, %v1832_v45  ;;  %v1936_v50 = vadd.f32 %v1935_v17, %v1883_v48 }
 0x146   :  { %v1886_v20 = vpop.f32.mrf.mxu0 }
 0x147   :  { %v1939_v21 = vpop.f32.mrf.mxu1  ;;  %v1887_v51 = vadd.f32 %v1886_v20, %v1834_v43  ;;  %v1938_v54 = vadd.f32 %v1937_v19, %v1885_v46 }
 0x148   :  { %v1888_v22 = vpop.f32.mrf.mxu0 }
 0x149   :  { %v1941_v23 = vpop.f32.mrf.mxu1  ;;  %v1889_v55 = vadd.f32 %v1888_v22, %v1836_v47  ;;  %v1940_v62 = vadd.f32 %v1939_v21, %v1887_v51 }
 0x14a   :  { %v1892_v24 = vpop.f32.mrf.mxu0 }
 0x14b   :  { %v1945_v25 = vpop.f32.mrf.mxu1  ;;  %v1893_v1 = vadd.f32 %v1892_v24, %v1840_v58  ;;  %v1942_v4 = vadd.f32 %v1941_v23, %v1889_v55 }
 0x14c   :  { %v1894_v26 = vpop.f32.mrf.mxu0 }
 0x14d   :  { %v1947_v27 = vpop.f32.mrf.mxu1  ;;  %v1895_v56 = vadd.f32 %v1894_v26, %v1842_v0  ;;  %v1946_v19 = vadd.f32 %v1945_v25, %v1893_v1 }
 0x14e   :  { %v1896_v28 = vpop.f32.mrf.mxu0 }
 0x14f   :  { %v1949_v29 = vpop.f32.mrf.mxu1  ;;  %v1897_v20 = vadd.f32 %v1896_v28, %v1844_v7  ;;  %v1948_v22 = vadd.f32 %v1947_v27, %v1895_v56 }
 0x150   :  { %v1898_v30 = vpop.f32.mrf.mxu0 }
 0x151   :  { %v3879_v31 = vpop.f32.mrf.mxu1  ;;  %v1899_v21 = vadd.f32 %v1898_v30, %v1846_v61 }
 0x153   :  { %v1952_v25 = vadd.f32 %v3879_v31, %v1899_v21 }
 0x182   :  { %v1988_v32 = vpop.f32.mrf.mxu0 }
 0x183   :  { %v2041_v33 = vpop.f32.mrf.mxu1  ;;  %v1989_v57 = vadd.f32 %v1988_v32, %v1936_v50 }
 0x184   :  { %v1990_v34 = vpop.f32.mrf.mxu0 }
 0x185   :  { %v2043_v35 = vpop.f32.mrf.mxu1  ;;  %v1991_v63 = vadd.f32 %v1990_v34, %v1938_v54  ;;  %v2042_v5 = vadd.f32 %v2041_v33, %v1989_v57  ;;  %v1950_v34 = vadd.f32 %v1949_v29, %v1897_v20 }
 0x186   :  { %v1992_v36 = vpop.f32.mrf.mxu0 }
 0x187   :  { %v2045_v37 = vpop.f32.mrf.mxu1  ;;  %v1993_v6 = vadd.f32 %v1992_v36, %v1940_v62  ;;  %v2044_v15 = vadd.f32 %v2043_v35, %v1991_v63 }
 0x188   :  { %v1994_v38 = vpop.f32.mrf.mxu0 }
 0x189   :  { %v2047_v39 = vpop.f32.mrf.mxu1  ;;  %v1995_v17 = vadd.f32 %v1994_v38, %v1942_v4  ;;  %v2046_v10 = vadd.f32 %v2045_v37, %v1993_v6 }
 0x18a   :  { %v1998_v40 = vpop.f32.mrf.mxu0 }
 0x18b   :  { %v2051_v41 = vpop.f32.mrf.mxu1  ;;  %v1999_v24 = vadd.f32 %v1998_v40, %v1946_v19  ;;  %v2048_v33 = vadd.f32 %v2047_v39, %v1995_v17 }
 0x18c   :  { %v2000_v49 = vpop.f32.mrf.mxu0 }
 0x18d   :  { %v2053_v42 = vpop.f32.mrf.mxu1  ;;  %v2001_v14 = vadd.f32 %v2000_v49, %v1948_v22  ;;  %v2052_v30 = vadd.f32 %v2051_v41, %v1999_v24 }
 0x18e   :  { %v2002_v52 = vpop.f32.mrf.mxu0 }
 0x18f   :  { %v2055_v53 = vpop.f32.mrf.mxu1  ;;  %v2003_v37 = vadd.f32 %v2002_v52, %v1950_v34  ;;  %v2054_v29 = vadd.f32 %v2053_v42, %v2001_v14 }
 0x190   :  { %v2004_v2 = vpop.f32.mrf.mxu0 }
 0x191   :  { %v2057_v3 = vpop.f32.mrf.mxu1  ;;  %v2005_v40 = vadd.f32 %v2004_v2, %v1952_v25  ;;  %v2056_v47 = vadd.f32 %v2055_v53, %v2003_v37 }
 0x193   :  { %v2058_v52 = vadd.f32 %v2057_v3, %v2005_v40 }
 0x1c2   :  { %v2094_v59 = vpop.f32.mrf.mxu0 }
 0x1c3   :  { %v2147_v8 = vpop.f32.mrf.mxu1  ;;  %v2095_v18 = vadd.f32 %v2094_v59, %v2042_v5 }
 0x1c4   :  { %v2096_v60 = vpop.f32.mrf.mxu0 }
 0x1c5   :  { %v2149_v9 = vpop.f32.mrf.mxu1  ;;  %v2097_v11 = vadd.f32 %v2096_v60, %v2044_v15  ;;  %v2148_v12 = vadd.f32 %v2147_v8, %v2095_v18 }
 0x1c6   :  { %v2098_v23 = vpop.f32.mrf.mxu0 }
 0x1c7   :  { %v2151_v32 = vpop.f32.mrf.mxu1  ;;  %v2150_v13 = vadd.f32 %v2149_v9, %v2097_v11  ;;  %v2099_v26 = vadd.f32 %v2098_v23, %v2046_v10 }
 0x1c8   :  { %v2100_v16 = vpop.f32.mrf.mxu0 }
 0x1c9   :  { %v2153_v35 = vpop.f32.mrf.mxu1  ;;  %v2554_v28 = vpack.c.bf16 %v2150_v13, %v2148_v12  ;;  %v2152_v36 = vadd.f32 %v2151_v32, %v2099_v26  ;;  %v2101_v38 = vadd.f32 %v2100_v16, %v2048_v33 }
 0x1ca   :  { %v2104_v44 = vpop.f32.mrf.mxu0 }
 0x1cb   :  { %v2157_v27 = vpop.f32.mrf.mxu1  ;;  %2190 = vst [vmem:[%s3908_s2] sm:$0xff] %v2554_v28  ;;  %v2166_v39 = vpack.c.bf16 %v2152_v36, %v2148_v12  ;;  %v2154_v45 = vadd.f32 %v2153_v35, %v2101_v38  ;;  %v2105_v48 = vadd.f32 %v2104_v44, %v2052_v30 }
 0x1cc   :  { %v2106_v49 = vpop.f32.mrf.mxu0 }
 0x1cd   :  { %v2159_v43 = vpop.f32.mrf.mxu1  ;;  %v2167_v46 = vpack.c.bf16 %v2154_v45, %v2150_v13  ;;  %v2555_v31 = vpack.c.bf16 %v2154_v45, %v2152_v36  ;;  %v2107_v50 = vadd.f32 %v2106_v49, %v2054_v29  ;;  %v2194_v54 = vunpack.c.l.bf16 %v2166_v39 }
 0x1ce   :  { %v2108_v51 = vpop.f32.mrf.mxu0  ;;  %v2196_v55 = vunpack.c.h.bf16 %v2166_v39  ;;  %v2158_v57 = vadd.f32 %v2157_v27, %v2105_v48 }
 0x1cf   :  { %v2161_v41 = vpop.f32.mrf.mxu1  ;;  %2191 = vst [vmem:[%s3908_s2 + $0x8] sm:$0xff] %v2555_v31  ;;  %v2160_v58 = vadd.f32 %v2159_v43, %v2107_v50  ;;  %v2109_v62 = vadd.f32 %v2108_v51, %v2056_v47  ;;  %v2195_v63 = vunpack.c.l.bf16 %v2167_v46  ;;  %v2197_v0 = vunpack.c.h.bf16 %v2167_v46 }
 0x1d0   :  { %v2110_v42 = vpop.f32.mrf.mxu0  ;;  %v2222_v6 = vmul.f32 %v2194_v54, %v2194_v54  ;;  %v2224_v7 = vmul.f32 %v2196_v55, %v2196_v55  ;;  %v2202_v15 = vadd.f32 %v2196_v55, %v2194_v54 }
 0x1d1   :  { %v2111_v1 = vadd.f32 %v2110_v42, %v2058_v52  ;;  %v2556_v2 = vpack.c.bf16 %v2160_v58, %v2158_v57  ;;  %v2162_v4 = vadd.f32 %v2161_v41, %v2109_v62  ;;  %v2163_v53 = vpop.f32.mrf.mxu1  ;;  %v2223_v56 = vmul.f32 %v2195_v63, %v2195_v63 }
 0x1d2   :  { %v2225_v59 = vmul.f32 %v2197_v0, %v2197_v0  ;;  %v2211_v19 = vadd.f32 %v2197_v0, %v2195_v63  ;;  %v2230_v9 = vadd.f32 %v2224_v7, %v2222_v6 }
 0x1d3   :  { %v2164_v5 = vadd.f32 %v2163_v53, %v2111_v1  ;;  %2192 = vst [vmem:[%s3908_s2 + $0x10] sm:$0xff] %v2556_v2  ;;  %v2168_v3 = vpack.c.bf16 %v2162_v4, %v2158_v57 }
 0x1d4   :  { %v2239_v11 = vadd.f32 %v2225_v59, %v2223_v56 }
 0x1d5   :  { %v2169_v8 = vpack.c.bf16 %v2164_v5, %v2160_v58  ;;  %v2557_v61 = vpack.c.bf16 %v2164_v5, %v2162_v4  ;;  %v2198_v17 = vunpack.c.l.bf16 %v2168_v3  ;;  %v2200_v18 = vunpack.c.h.bf16 %v2168_v3 }
 0x1d7   :  { %2193 = vst [vmem:[%s3908_s2 + $0x18] sm:$0xff] %v2557_v61  ;;  %v2199_v20 = vunpack.c.l.bf16 %v2169_v8  ;;  %v2201_v60 = vunpack.c.h.bf16 %v2169_v8  ;;  %v2203_v21 = vadd.f32 %v2202_v15, %v2198_v17  ;;  %v2226_v10 = vmul.f32 %v2198_v17, %v2198_v17 }
 0x1d8   :  { %v2228_v32 = vmul.f32 %v2200_v18, %v2200_v18 }
 0x1d9   :  { %v2212_v22 = vadd.f32 %v2211_v19, %v2199_v20  ;;  %v2227_v24 = vmul.f32 %v2199_v20, %v2199_v20  ;;  %v2204_v23 = vadd.f32 %v2203_v21, %v2200_v18  ;;  %v2231_v33 = vadd.f32 %v2230_v9, %v2226_v10 }
 0x1da   :  { %v2229_v13 = vmul.f32 %v2201_v60, %v2201_v60 }
 0x1db   :  { %v2213_v12 = vadd.f32 %v2212_v22, %v2201_v60  ;;  %v2240_v26 = vadd.f32 %v2239_v11, %v2227_v24  ;;  %v2205_v34 = vrot.slane %v2204_v23, 4  ;;  %v2232_v14 = vadd.f32 %v2231_v33, %v2228_v32 }
 0x1dd   :  { %v2214_v16 = vrot.slane %v2213_v12, 4  ;;  %v2241_v35 = vadd.f32 %v2240_v26, %v2229_v13  ;;  %v2206_v25 = vadd.f32 %v2205_v34, %v2204_v23  ;;  %v2233_v28 = vrot.slane %v2232_v14, 4 }
 0x1df   :  { %v2215_v36 = vadd.f32 %v2214_v16, %v2213_v12  ;;  %v2242_v38 = vrot.slane %v2241_v35, 4  ;;  %v2207_v30 = vrot.slane %v2206_v25, 2  ;;  %v2234_v37 = vadd.f32 %v2233_v28, %v2232_v14 }
 0x1e1   :  { %v2216_v44 = vrot.slane %v2215_v36, 2  ;;  %v2243_v27 = vadd.f32 %v2242_v38, %v2241_v35  ;;  %v2208_v40 = vadd.f32 %v2207_v30, %v2206_v25  ;;  %v2235_v39 = vrot.slane %v2234_v37, 2 }
 0x1e3   :  { %v2217_v45 = vadd.f32 %v2216_v44, %v2215_v36  ;;  %v2244_v29 = vrot.slane %v2243_v27, 2  ;;  %v2209_v48 = vrot.slane %v2208_v40, 1  ;;  %v2236_v49 = vadd.f32 %v2235_v39, %v2234_v37 }
 0x1e5   :  { %v2218_v43 = vrot.slane %v2217_v45, 1  ;;  %v2245_v46 = vadd.f32 %v2244_v29, %v2243_v27  ;;  %v2210_v31 = vadd.f32 %v2209_v48, %v2208_v40  ;;  %v2237_v47 = vrot.slane %v2236_v49, 1 }
 0x1e7   :  { %v2219_v50 = vadd.f32 %v2218_v43, %v2217_v45  ;;  %v2246_v51 = vrot.slane %v2245_v46, 1  ;;  %2220 = vst [vmem:[%s3909_s3] sm:$0xff] %v2210_v31  ;;  %v2238_v41 = vadd.f32 %v2237_v47, %v2236_v49 }
 0x1e9   :  { %2221 = vst [vmem:[%s3909_s3 + $0x8] sm:$0xff] %v2219_v50  ;;  %v2247_v52 = vadd.f32 %v2246_v51, %v2245_v46  ;;  %2248 = vst [vmem:[%s3910_s4] sm:$0xff] %v2238_v41 }
 0x1eb   :  { %2249 = vst [vmem:[%s3910_s4 + $0x8] sm:$0xff] %v2247_v52 }

// kernel: d_forward.9
= control target key start
LH: loop header
LB: loop body
LE: loop exit
PB: predicated region body
PF: predicated region fallthrough
CT: control target
= control target key end

     0   :  { %v77_v21 = vlaneseq  ;;  %s5382_s3 = inlined_call_operand.vmem [shape: bf16[4096,128], index: 3, kind: input, shape index: {}]   ;;  %s5383_s0 = inlined_call_operand.vmem [shape: bf16[8,4096], index: 0, kind: input, shape index: {}]   ;;  %s5384_s1 = inlined_call_operand.vmem [shape: f32[1,4096], index: 1, kind: input, shape index: {}]   ;;  %s5385_s2 = inlined_call_operand.vmem [shape: f32[1,4096], index: 2, kind: input, shape index: {}]   ;;  %s5386_s4 = inlined_call_operand.vmem [shape: bf16[128,3], index: 4, kind: input, shape index: {}]   ;;  %s5387_s5 = inlined_call_operand.vmem [shape: f32[8,3], index: 5, kind: output, shape index: {}]  }
   0x1   :  { %v4046_v0 = vld [vmem:[%s5382_s3 + $0x78] sm:$0xff]   ;;  %v4050_v4 = vld [vmem:[%s5382_s3 + $0x70] sm:$0xff]   ;;  %v4054_v8 = vld [vmem:[%s5382_s3 + $0x68] sm:$0xff]  }
   0x2   :  { %v4047_v1 = vld [vmem:[%s5382_s3 + $0xf8] sm:$0xff]   ;;  %3663 = vmatprep.subr.bf16.mxu0 %v4046_v0  ;;  %v4051_v5 = vld [vmem:[%s5382_s3 + $0xf0] sm:$0xff]   ;;  %v4055_v9 = vld [vmem:[%s5382_s3 + $0xe8] sm:$0xff]   ;;  %v4417_v26 = vshrl.u32 %v77_v21, 7 }
   0x3   :  { %v4048_v2 = vld [vmem:[%s5382_s3 + $0x38] sm:$0xff]   ;;  %3685 = vmatprep.subr.bf16.mxu1 %v4047_v1  ;;  %v4052_v6 = vld [vmem:[%s5382_s3 + $0x30] sm:$0xff]   ;;  %v4056_v10 = vld [vmem:[%s5382_s3 + $0x28] sm:$0xff]  }
   0x4   :  { %v4049_v3 = vld [vmem:[%s5382_s3 + $0xb8] sm:$0xff]   ;;  %3664 = vmatpush3.bf16.msra.mxu0 %v4048_v2  ;;  %v4053_v7 = vld [vmem:[%s5382_s3 + $0xb0] sm:$0xff]   ;;  %v4057_v11 = vld [vmem:[%s5382_s3 + $0xa8] sm:$0xff]   ;;  %v4432_v31 = vsub.s32 1, %v4417_v26  ;;  %v4438_v33 = vsub.s32 3, %v4417_v26  ;;  %v4444_v35 = vsub.s32 0, %v4417_v26 }
   0x5   :  { %3686 = vmatpush3.bf16.msra.mxu1 %v4049_v3  ;;  %3665 = vmatprep.subr.bf16.mxu0 %v4050_v4  ;;  %v4058_v12 = vld [vmem:[%s5382_s3 + $0x60] sm:$0xff]   ;;  %v4062_v16 = vld [vmem:[%s5382_s3 + $0x58] sm:$0xff]   ;;  %v4066_v20 = vld [vmem:[%s5382_s3 + $0x50] sm:$0xff]   ;;  %v4450_v37 = vsub.s32 2, %v4417_v26 }
   0x6   :  { %3687 = vmatprep.subr.bf16.mxu1 %v4051_v5  ;;  %v4059_v13 = vld [vmem:[%s5382_s3 + $0xe0] sm:$0xff]   ;;  %v4063_v17 = vld [vmem:[%s5382_s3 + $0xd8] sm:$0xff]   ;;  %v4067_v22 = vld [vmem:[%s5382_s3 + $0xd0] sm:$0xff]  }
   0x7   :  { %v4060_v14 = vld [vmem:[%s5382_s3 + $0x20] sm:$0xff]   ;;  %v4064_v18 = vld [vmem:[%s5382_s3 + $0x18] sm:$0xff]   ;;  %v4068_v23 = vld [vmem:[%s5382_s3 + $0x10] sm:$0xff]  }
   0x8   :  { %3666 = vmatpush3.bf16.msra.mxu0 %v4052_v6  ;;  %v4061_v15 = vld [vmem:[%s5382_s3 + $0xa0] sm:$0xff]   ;;  %v4065_v19 = vld [vmem:[%s5382_s3 + $0x98] sm:$0xff]   ;;  %v4069_v24 = vld [vmem:[%s5382_s3 + $0x90] sm:$0xff]  }
   0x9   :  { %3688 = vmatpush3.bf16.msra.mxu1 %v4053_v7  ;;  %3667 = vmatprep.subr.bf16.mxu0 %v4054_v8  ;;  %v4070_v25 = vld [vmem:[%s5382_s3 + $0x48] sm:$0xff]   ;;  %v4074_v30 = vld [vmem:[%s5382_s3 + $0x40] sm:$0xff]   ;;  %v4078_v50 = vld [vmem:[%s5382_s3 + $0x178] sm:$0xff]  }
   0xa   :  { %3689 = vmatprep.subr.bf16.mxu1 %v4055_v9  ;;  %v4071_v27 = vld [vmem:[%s5382_s3 + $0xc8] sm:$0xff]   ;;  %v4075_v32 = vld [vmem:[%s5382_s3 + $0xc0] sm:$0xff]   ;;  %v4079_v55 = vld [vmem:[%s5382_s3 + $0x1f8] sm:$0xff]  }
   0xb   :  { %v4072_v28 = vld [vmem:[%s5382_s3 + $0x8] sm:$0xff]   ;;  %v4076_v34 = vld [vmem:[%s5382_s3] sm:$0xff]   ;;  %v4080_v4 = vld [vmem:[%s5382_s3 + $0x138] sm:$0xff]  }
   0xc   :  { %3668 = vmatpush3.bf16.msra.mxu0 %v4056_v10  ;;  %v4073_v29 = vld [vmem:[%s5382_s3 + $0x88] sm:$0xff]   ;;  %v4077_v36 = vld [vmem:[%s5382_s3 + $0x80] sm:$0xff]   ;;  %v4081_v8 = vld [vmem:[%s5382_s3 + $0x1b8] sm:$0xff]  }
   0xd   :  { %3690 = vmatpush3.bf16.msra.mxu1 %v4057_v11  ;;  %3669 = vmatprep.subr.bf16.mxu0 %v4058_v12  ;;  %v21_v38 = vld [vmem:[%s5383_s0] sm:$0xff]  ;;  %v22_v45 = vld [vmem:[%s5383_s0 + $0x8] sm:$0xff]  ;;  %v4082_v9 = vld [vmem:[%s5382_s3 + $0x170] sm:$0xff]  }
   0xe   :  { %3691 = vmatprep.subr.bf16.mxu1 %v4059_v13  ;;  %v4458_v39 = vld [vmem:[%s5384_s1] sm:$0xff]  ;;  %v37_v41 = vunpack.c.l.bf16 %v21_v38  ;;  %v38_v42 = vunpack.c.h.bf16 %v21_v38  ;;  %v39_v46 = vunpack.c.l.bf16 %v22_v45  ;;  %v40_v47 = vunpack.c.h.bf16 %v22_v45  ;;  %v4089_v21 = vld [vmem:[%s5382_s3 + $0x1a8] sm:$0xff]  }
   0xf   :  { %v4463_v40 = vld [vmem:[%s5385_s2] sm:$0xff]  ;;  %v84_v43 = vrot.slane %v4458_v39, %v4432_v31  ;;  %v92_v48 = vrot.slane %v4458_v39, %v4438_v33  ;;  %v80_v52 = vrot.slane %v4458_v39, %v4444_v35  ;;  %v88_v54 = vrot.slane %v4458_v39, %v4450_v37  ;;  %v4102_v45 = vld [vmem:[%s5382_s3 + $0x148] sm:$0xff]  }
  0x10   :  { %3670 = vmatpush3.bf16.msra.mxu0 %v4060_v14  ;;  %v284_v44 = vrot.slane %v4463_v40, %v4432_v31  ;;  %v292_v49 = vrot.slane %v4463_v40, %v4438_v33  ;;  %v280_v53 = vrot.slane %v4463_v40, %v4444_v35  ;;  %v288_v57 = vrot.slane %v4463_v40, %v4450_v37  ;;  %v4083_v14 = vld [vmem:[%s5382_s3 + $0x1f0] sm:$0xff]  }
  0x11   :  { %3692 = vmatpush3.bf16.msra.mxu1 %v4061_v15  ;;  %3671 = vmatprep.subr.bf16.mxu0 %v4062_v16  ;;  %v238_v51 = vmul.f32 %v84_v43, %v38_v42  ;;  %v240_v56 = vmul.f32 %v92_v48, %v40_v47  ;;  %v237_v59 = vmul.f32 %v80_v52, %v37_v41  ;;  %v4084_v16 = vld [vmem:[%s5382_s3 + $0x130] sm:$0xff]   ;;  %v4554_v38 = vsub.s32 7, %v4417_v26  ;;  %v4104_v47 = vld [vmem:[%s5382_s3 + $0x108] sm:$0xff]  }
  0x12   :  { %3693 = vmatprep.subr.bf16.mxu1 %v4063_v17  ;;  %v239_v60 = vmul.f32 %v88_v54, %v39_v46  ;;  %v4085_v17 = vld [vmem:[%s5382_s3 + $0x1b0] sm:$0xff]   ;;  %v4560_v42 = vsub.s32 4, %v4417_v26  ;;  %v4103_v46 = vld [vmem:[%s5382_s3 + $0x1c8] sm:$0xff]  }
  0x13   :  { %v438_v58 = vadd.f32 %v284_v44, %v238_v51  ;;  %v440_v61 = vadd.f32 %v292_v49, %v240_v56  ;;  %v437_v63 = vadd.f32 %v280_v53, %v237_v59  ;;  %v4100_v41 = vld [vmem:[%s5382_s3 + $0x110] sm:$0xff]   ;;  %v4566_v44 = vsub.s32 6, %v4417_v26  ;;  %v4105_v49 = vld [vmem:[%s5382_s3 + $0x188] sm:$0xff]   ;;  %v4107_v59 = vld [vmem:[%s5382_s3 + $0x1c0] sm:$0xff]  }
  0x14   :  { %3672 = vmatpush3.bf16.msra.mxu0 %v4064_v18  ;;  %v439_v0 = vadd.f32 %v288_v57, %v239_v60  ;;  %v4086_v18 = vld [vmem:[%s5382_s3 + $0x168] sm:$0xff]   ;;  %v4101_v43 = vld [vmem:[%s5382_s3 + $0x190] sm:$0xff]   ;;  %v96_v48 = vrot.slane %v4458_v39, %v4560_v42  ;;  %v108_v52 = vrot.slane %v4458_v39, %v4554_v38  ;;  %v24_v57 = vld [vmem:[%s5383_s0 + $0x18] sm:$0xff] }
  0x15   :  { %3694 = vmatpush3.bf16.msra.mxu1 %v4065_v19  ;;  %3673 = vmatprep.subr.bf16.mxu0 %v4066_v20  ;;  %vm470_vm0 = vcmp.gt.f32.partialorder %v438_v58, 0.0  ;;  %v502_v62 = vmul.f32 0.2, %v438_v58  ;;  %vm472_vm1 = vcmp.gt.f32.partialorder %v440_v61, 0.0  ;;  %v504_v1 = vmul.f32 0.2, %v440_v61 }
  0x16   :  { %3695 = vmatprep.subr.bf16.mxu1 %v4067_v22  ;;  %vm469_vm2 = vcmp.gt.f32.partialorder %v437_v63, 0.0  ;;  %v501_v3 = vmul.f32 0.2, %v437_v63  ;;  %vm471_vm3 = vcmp.gt.f32.partialorder %v439_v0, 0.0  ;;  %v503_v7 = vmul.f32 0.2, %v439_v0 }
  0x17   :  { %v534_v2 = vsel %vm470_vm0, %v438_v58, %v502_v62  ;;  %v536_v6 = vsel %vm472_vm1, %v440_v61, %v504_v1  ;;  %v4087_v19 = vld [vmem:[%s5382_s3 + $0x1e8] sm:$0xff]   ;;  %v4090_v22 = vld [vmem:[%s5382_s3 + $0x160] sm:$0xff]   ;;  %v23_v51 = vld [vmem:[%s5383_s0 + $0x10] sm:$0xff]  ;;  %v104_v53 = vrot.slane %v4458_v39, %v4566_v44  ;;  %v296_v58 = vrot.slane %v4463_v40, %v4560_v42 }
  0x18   :  { %3674 = vmatpush3.bf16.msra.mxu0 %v4068_v23  ;;  %v566_v5 = vpack.c.bf16 %v534_v2, %v534_v2  ;;  %v568_v10 = vpack.c.bf16 %v536_v6, %v536_v6  ;;  %v533_v11 = vsel %vm469_vm2, %v437_v63, %v501_v3  ;;  %v535_v13 = vsel %vm471_vm3, %v439_v0, %v503_v7  ;;  %v4088_v20 = vld [vmem:[%s5382_s3 + $0x128] sm:$0xff]   ;;  %v4091_v23 = vld [vmem:[%s5382_s3 + $0x1e0] sm:$0xff]  }
  0x19   :  { %3696 = vmatpush3.bf16.msra.mxu1 %v4069_v24  ;;  %3675 = vmatprep.subr.bf16.mxu0 %v4070_v25  ;;  %v565_v12 = vpack.c.bf16 %v533_v11, %v533_v11  ;;  %v567_v15 = vpack.c.bf16 %v535_v13, %v535_v13  ;;  %v4092_v24 = vld [vmem:[%s5382_s3 + $0x120] sm:$0xff]   ;;  %v41_v54 = vunpack.c.l.bf16 %v23_v51  ;;  %v44_v60 = vunpack.c.h.bf16 %v24_v57 }
  0x1a   :  { %3697 = vmatprep.subr.bf16.mxu1 %v4071_v27  ;;  %2677 = vmatprep.mubr.bf16.mxu0 %v566_v5  ;;  %v4093_v25 = vld [vmem:[%s5382_s3 + $0x1a0] sm:$0xff]   ;;  %v4094_v27 = vld [vmem:[%s5382_s3 + $0x158] sm:$0xff]   ;;  %v308_v61 = vrot.slane %v4463_v40, %v4554_v38  ;;  %v304_v62 = vrot.slane %v4463_v40, %v4566_v44 }
  0x1b   :  { %2717 = vmatprep.mubr.bf16.mxu1 %v568_v10  ;;  %v4108_v63 = vld [vmem:[%s5382_s3 + $0x100] sm:$0xff]   ;;  %v241_v1 = vmul.f32 %v96_v48, %v41_v54  ;;  %v244_v3 = vmul.f32 %v108_v52, %v44_v60  ;;  %v4128_v48 = vld [vmem:[%s5382_s3 + $0x218] sm:$0xff]   ;;  %v4132_v52 = vld [vmem:[%s5382_s3 + $0x210] sm:$0xff]  }
  0x1c   :  { %3676 = vmatpush3.bf16.msra.mxu0 %v4072_v28  ;;  %v4095_v28 = vld [vmem:[%s5382_s3 + $0x1d8] sm:$0xff]   ;;  %v4109_v2 = vld [vmem:[%s5382_s3 + $0x180] sm:$0xff]   ;;  %v4134_v54 = vld [vmem:[%s5382_s3 + $0x248] sm:$0xff]  }
  0x1d   :  { %3698 = vmatpush3.bf16.msra.mxu1 %v4073_v29  ;;  %3677 = vmatprep.subr.bf16.mxu0 %v4074_v30  ;;  %v4096_v29 = vld [vmem:[%s5382_s3 + $0x118] sm:$0xff]   ;;  %v441_v6 = vadd.f32 %v296_v58, %v241_v1  ;;  %v444_v7 = vadd.f32 %v308_v61, %v244_v3  ;;  %v4138_v58 = vld [vmem:[%s5382_s3 + $0x240] sm:$0xff]   ;;  %v4710_v60 = vld [vmem:[%s5384_s1 + $0x8] sm:$0xff] }
  0x1e   :  { %3699 = vmatprep.subr.bf16.mxu1 %v4075_v32  ;;  %v4097_v30 = vld [vmem:[%s5382_s3 + $0x198] sm:$0xff]   ;;  %v4098_v32 = vld [vmem:[%s5382_s3 + $0x150] sm:$0xff]   ;;  %v26_v1 = vld [vmem:[%s5383_s0 + $0x28] sm:$0xff] }
  0x1f   :  { %vm473_vm5 = vcmp.gt.f32.partialorder %v441_v6, 0.0  ;;  %v505_v11 = vmul.f32 0.2, %v441_v6  ;;  %vm476_vm6 = vcmp.gt.f32.partialorder %v444_v7, 0.0  ;;  %v4140_v3 = vld [vmem:[%s5382_s3 + $0x200] sm:$0xff]  }
  0x20   :  { %3678 = vmatpush3.bf16.msra.mxu0 %v4076_v34  ;;  %v4548_v34 = vsub.s32 5, %v4417_v26 }
  0x21   :  { %3700 = vmatpush3.bf16.msra.mxu1 %v4077_v36  ;;  %3707 = vmatprep.subr.bf16.mxu0 %v4078_v50  ;;  %v4099_v36 = vld [vmem:[%s5382_s3 + $0x1d0] sm:$0xff]   ;;  %v4106_v50 = vld [vmem:[%s5382_s3 + $0x140] sm:$0xff]  }
  0x22   :  { %3729 = vmatprep.subr.bf16.mxu1 %v4079_v55  ;;  %v100_v26 = vrot.slane %v4458_v39, %v4548_v34  ;;  %v42_v55 = vunpack.c.h.bf16 %v23_v51  ;;  %v300_v56 = vrot.slane %v4463_v40, %v4548_v34  ;;  %v43_v39 = vunpack.c.l.bf16 %v24_v57  ;;  %v4110_v40 = vld [vmem:[%s5382_s3 + $0x278] sm:$0xff]   ;;  %v4131_v51 = vld [vmem:[%s5382_s3 + $0x2d0] sm:$0xff]   ;;  %v4137_v57 = vld [vmem:[%s5382_s3 + $0x288] sm:$0xff]  }
  0x23   :  { %2678 = vmatmul.mubr.bf16.vlgmr.msra.gmra.mxu0 %v565_v12  ;;  %v508_v12 = vmul.f32 0.2, %v444_v7 }
  0x24   :  { %2718 = vmatmul.mubr.bf16.vlgmr.msra.gmra.mxu1 %v567_v15  ;;  %3708 = vmatpush3.bf16.msra.mxu0 %v4080_v4  ;;  %v242_v0 = vmul.f32 %v100_v26, %v42_v55  ;;  %v243_v4 = vmul.f32 %v104_v53, %v43_v39  ;;  %v4127_v26 = vld [vmem:[%s5382_s3 + $0x2d8] sm:$0xff]   ;;  %v4133_v53 = vld [vmem:[%s5382_s3 + $0x290] sm:$0xff]   ;;  %v4135_v55 = vld [vmem:[%s5382_s3 + $0x2c8] sm:$0xff]  }
  0x25   :  { %3730 = vmatpush3.bf16.msra.mxu1 %v4081_v8  ;;  %3709 = vmatprep.subr.bf16.mxu0 %v4082_v9  ;;  %v4111_v9 = vld [vmem:[%s5382_s3 + $0x2f8] sm:$0xff]   ;;  %v25_v39 = vld [vmem:[%s5383_s0 + $0x20] sm:$0xff] }
  0x26   :  { %3731 = vmatprep.subr.bf16.mxu1 %v4083_v14  ;;  %v442_v5 = vadd.f32 %v300_v56, %v242_v0  ;;  %v443_v8 = vadd.f32 %v304_v62, %v243_v4  ;;  %v4112_v14 = vld [vmem:[%s5382_s3 + $0x238] sm:$0xff]   ;;  %v4136_v56 = vld [vmem:[%s5382_s3 + $0x208] sm:$0xff]   ;;  %v45_v61 = vunpack.c.l.bf16 %v25_v39  ;;  %v46_v62 = vunpack.c.h.bf16 %v25_v39 }
  0x27   :  { %v4717_v0 = vld [vmem:[%s5385_s2 + $0x8] sm:$0xff]  ;;  %v4160_v39 = vld [vmem:[%s5382_s3 + $0x318] sm:$0xff]  }
  0x28   :  { %3710 = vmatpush3.bf16.msra.mxu0 %v4084_v16  ;;  %vm474_vm4 = vcmp.gt.f32.partialorder %v442_v5, 0.0  ;;  %v506_v10 = vmul.f32 0.2, %v442_v5  ;;  %vm475_vm7 = vcmp.gt.f32.partialorder %v443_v8, 0.0  ;;  %v507_v13 = vmul.f32 0.2, %v443_v8 }
  0x29   :  { %3732 = vmatpush3.bf16.msra.mxu1 %v4085_v17  ;;  %3711 = vmatprep.subr.bf16.mxu0 %v4086_v18  ;;  %v537_v16 = vsel %vm473_vm5, %v441_v6, %v505_v11  ;;  %v4113_v17 = vld [vmem:[%s5382_s3 + $0x2b8] sm:$0xff]   ;;  %v316_v4 = vrot.slane %v4717_v0, %v4432_v31  ;;  %v48_v6 = vunpack.c.h.bf16 %v26_v1  ;;  %v120_v11 = vrot.slane %v4710_v60, %v4450_v37 }
  0x2a   :  { %3733 = vmatprep.subr.bf16.mxu1 %v4087_v19  ;;  %v538_v15 = vsel %vm474_vm4, %v442_v5, %v506_v10  ;;  %v540_v19 = vsel %vm476_vm6, %v444_v7, %v508_v12  ;;  %v47_v5 = vunpack.c.l.bf16 %v26_v1  ;;  %v4141_v7 = vld [vmem:[%s5382_s3 + $0x280] sm:$0xff]   ;;  %v312_v10 = vrot.slane %v4717_v0, %v4444_v35  ;;  %v4164_v1 = vld [vmem:[%s5382_s3 + $0x310] sm:$0xff]  }
  0x2b   :  { %v570_v18 = vpack.c.bf16 %v538_v15, %v538_v15 }
  0x2c   :  { %3712 = vmatpush3.bf16.msra.mxu0 %v4088_v20  ;;  %v569_v20 = vpack.c.bf16 %v537_v16, %v537_v16 }
  0x2d   :  { %3734 = vmatpush3.bf16.msra.mxu1 %v4089_v21  ;;  %3713 = vmatprep.subr.bf16.mxu0 %v4090_v22  ;;  %v539_v21 = vsel %vm475_vm7, %v443_v8, %v507_v13  ;;  %v4114_v22 = vld [vmem:[%s5382_s3 + $0x270] sm:$0xff]   ;;  %v320_v13 = vrot.slane %v4717_v0, %v4450_v37 }
  0x2e   :  { %3735 = vmatprep.subr.bf16.mxu1 %v4091_v23  ;;  %v572_v23 = vpack.c.bf16 %v540_v19, %v540_v19  ;;  %2757 = vmatprep.mubr.bf16.mxu0 %v570_v18  ;;  %v4143_v18 = vld [vmem:[%s5382_s3 + $0x3f8] sm:$0xff]  }
  0x30   :  { %3714 = vmatpush3.bf16.msra.mxu0 %v4092_v24  ;;  %v571_v24 = vpack.c.bf16 %v539_v21, %v539_v21  ;;  %2797 = vmatprep.mubr.bf16.mxu1 %v572_v23 }
  0x31   :  { %3736 = vmatpush3.bf16.msra.mxu1 %v4093_v25  ;;  %3715 = vmatprep.subr.bf16.mxu0 %v4094_v27  ;;  %v4115_v25 = vld [vmem:[%s5382_s3 + $0x2f0] sm:$0xff]  }
  0x32   :  { %3737 = vmatprep.subr.bf16.mxu1 %v4095_v28  ;;  %v4116_v27 = vld [vmem:[%s5382_s3 + $0x230] sm:$0xff]  }
  0x33   :  { %v4117_v28 = vld [vmem:[%s5382_s3 + $0x2b0] sm:$0xff]  }
  0x34   :  { %3716 = vmatpush3.bf16.msra.mxu0 %v4096_v29  ;;  %v4118_v29 = vld [vmem:[%s5382_s3 + $0x268] sm:$0xff]  }
  0x35   :  { %3738 = vmatpush3.bf16.msra.mxu1 %v4097_v30  ;;  %3717 = vmatprep.subr.bf16.mxu0 %v4098_v32  ;;  %v4119_v30 = vld [vmem:[%s5382_s3 + $0x2e8] sm:$0xff]  }
  0x36   :  { %3739 = vmatprep.subr.bf16.mxu1 %v4099_v36  ;;  %v4120_v32 = vld [vmem:[%s5382_s3 + $0x228] sm:$0xff]  }
  0x37   :  { %v4121_v36 = vld [vmem:[%s5382_s3 + $0x2a8] sm:$0xff]  }
  0x38   :  { %3718 = vmatpush3.bf16.msra.mxu0 %v4100_v41  ;;  %v4122_v41 = vld [vmem:[%s5382_s3 + $0x260] sm:$0xff]  }
  0x39   :  { %3740 = vmatpush3.bf16.msra.mxu1 %v4101_v43  ;;  %3719 = vmatprep.subr.bf16.mxu0 %v4102_v45  ;;  %v4123_v43 = vld [vmem:[%s5382_s3 + $0x2e0] sm:$0xff]  }
  0x3a   :  { %3741 = vmatprep.subr.bf16.mxu1 %v4103_v46  ;;  %v4124_v45 = vld [vmem:[%s5382_s3 + $0x220] sm:$0xff]  }
  0x3b   :  { %v4125_v46 = vld [vmem:[%s5382_s3 + $0x2a0] sm:$0xff]  }
  0x3c   :  { %3720 = vmatpush3.bf16.msra.mxu0 %v4104_v47  ;;  %v4126_v47 = vld [vmem:[%s5382_s3 + $0x258] sm:$0xff]  }
  0x3d   :  { %3742 = vmatpush3.bf16.msra.mxu1 %v4105_v49  ;;  %3721 = vmatprep.subr.bf16.mxu0 %v4106_v50  ;;  %v4129_v49 = vld [vmem:[%s5382_s3 + $0x298] sm:$0xff]   ;;  %v4130_v50 = vld [vmem:[%s5382_s3 + $0x250] sm:$0xff]  }
  0x3e   :  { %3743 = vmatprep.subr.bf16.mxu1 %v4107_v59  ;;  %v4139_v59 = vld [vmem:[%s5382_s3 + $0x2c0] sm:$0xff]  }
  0x40   :  { %3722 = vmatpush3.bf16.msra.mxu0 %v4108_v63  ;;  %v116_v63 = vrot.slane %v4710_v60, %v4432_v31 }
  0x41   :  { %3744 = vmatpush3.bf16.msra.mxu1 %v4109_v2  ;;  %3751 = vmatprep.subr.bf16.mxu0 %v4110_v40  ;;  %v124_v2 = vrot.slane %v4710_v60, %v4438_v33  ;;  %v324_v40 = vrot.slane %v4717_v0, %v4438_v33 }
  0x42   :  { %3773 = vmatprep.subr.bf16.mxu1 %v4111_v9  ;;  %v246_v8 = vmul.f32 %v116_v63, %v46_v62  ;;  %v112_v9 = vrot.slane %v4710_v60, %v4444_v35  ;;  %v4162_v62 = vld [vmem:[%s5382_s3 + $0x350] sm:$0xff]  }
  0x43   :  { %2758 = vmatmul.mubr.bf16.vlgmr.msra.gmra.mxu0 %v569_v20  ;;  %v248_v12 = vmul.f32 %v124_v2, %v48_v6  ;;  %v4163_v63 = vld [vmem:[%s5382_s3 + $0x3d0] sm:$0xff]   ;;  %v132_v6 = vrot.slane %v4710_v60, %v4548_v34 }
  0x44   :  { %2798 = vmatmul.mubr.bf16.vlgmr.msra.gmra.mxu1 %v571_v24  ;;  %3752 = vmatpush3.bf16.msra.mxu0 %v4112_v14  ;;  %v4142_v14 = vld [vmem:[%s5382_s3 + $0x378] sm:$0xff]   ;;  %v446_v15 = vadd.f32 %v316_v4, %v246_v8  ;;  %v245_v16 = vmul.f32 %v112_v9, %v45_v61  ;;  %v4165_v2 = vld [vmem:[%s5382_s3 + $0x390] sm:$0xff]   ;;  %v4167_v4 = vld [vmem:[%s5382_s3 + $0x3c8] sm:$0xff]   ;;  %v136_v8 = vrot.slane %v4710_v60, %v4566_v44 }
  0x45   :  { %3774 = vmatpush3.bf16.msra.mxu1 %v4113_v17  ;;  %3753 = vmatprep.subr.bf16.mxu0 %v4114_v22  ;;  %v247_v17 = vmul.f32 %v120_v11, %v47_v5  ;;  %v448_v19 = vadd.f32 %v324_v40, %v248_v12  ;;  %v4161_v61 = vld [vmem:[%s5382_s3 + $0x398] sm:$0xff]   ;;  %v4168_v5 = vld [vmem:[%s5382_s3 + $0x308] sm:$0xff]   ;;  %v140_v40 = vrot.slane %v4710_v60, %v4554_v38 }
  0x46   :  { %3775 = vmatprep.subr.bf16.mxu1 %v4115_v25  ;;  %vm478_vm8 = vcmp.gt.f32.partialorder %v446_v15, 0.0  ;;  %v510_v20 = vmul.f32 0.2, %v446_v15  ;;  %v445_v21 = vadd.f32 %v312_v10, %v245_v16  ;;  %v4169_v9 = vld [vmem:[%s5382_s3 + $0x388] sm:$0xff]   ;;  %v27_v10 = vld [vmem:[%s5383_s0 + $0x30] sm:$0xff]  ;;  %v332_v11 = vrot.slane %v4717_v0, %v4548_v34  ;;  %v28_v12 = vld [vmem:[%s5383_s0 + $0x38] sm:$0xff] }
  0x47   :  { %v447_v22 = vadd.f32 %v320_v13, %v247_v17  ;;  %vm480_vm9 = vcmp.gt.f32.partialorder %v448_v19, 0.0  ;;  %v512_v23 = vmul.f32 0.2, %v448_v19  ;;  %v340_v13 = vrot.slane %v4717_v0, %v4554_v38 }
  0x48   :  { %3754 = vmatpush3.bf16.msra.mxu0 %v4116_v27  ;;  %v542_v24 = vsel %vm478_vm8, %v446_v15, %v510_v20  ;;  %vm477_vm10 = vcmp.gt.f32.partialorder %v445_v21, 0.0  ;;  %v509_v25 = vmul.f32 0.2, %v445_v21  ;;  %v4144_v27 = vld [vmem:[%s5382_s3 + $0x338] sm:$0xff]   ;;  %v49_v15 = vunpack.c.l.bf16 %v27_v10 }
  0x49   :  { %3776 = vmatpush3.bf16.msra.mxu1 %v4117_v28  ;;  %3755 = vmatprep.subr.bf16.mxu0 %v4118_v29  ;;  %vm479_vm11 = vcmp.gt.f32.partialorder %v447_v22, 0.0  ;;  %v574_v28 = vpack.c.bf16 %v542_v24, %v542_v24  ;;  %v544_v29 = vsel %vm480_vm9, %v448_v19, %v512_v23  ;;  %v50_v16 = vunpack.c.h.bf16 %v27_v10  ;;  %v4171_v19 = vld [vmem:[%s5382_s3 + $0x3c0] sm:$0xff]   ;;  %v4196_v10 = vld [vmem:[%s5382_s3 + $0x410] sm:$0xff]  }
  0x4a   :  { %3777 = vmatprep.subr.bf16.mxu1 %v4119_v30  ;;  %v511_v30 = vmul.f32 0.2, %v447_v22  ;;  %v51_v17 = vunpack.c.l.bf16 %v28_v12  ;;  %v336_v20 = vrot.slane %v4717_v0, %v4566_v44 }
  0x4b   :  { %2837 = vmatprep.mubr.bf16.mxu0 %v574_v28 }
  0x4c   :  { %3756 = vmatpush3.bf16.msra.mxu0 %v4120_v32  ;;  %v576_v32 = vpack.c.bf16 %v544_v29, %v544_v29 }
  0x4d   :  { %3778 = vmatpush3.bf16.msra.mxu1 %v4121_v36  ;;  %3757 = vmatprep.subr.bf16.mxu0 %v4122_v41  ;;  %v541_v36 = vsel %vm477_vm10, %v445_v21, %v509_v25  ;;  %v4145_v41 = vld [vmem:[%s5382_s3 + $0x3b8] sm:$0xff]   ;;  %v4172_v21 = vld [vmem:[%s5382_s3 + $0x300] sm:$0xff]   ;;  %v251_v25 = vmul.f32 %v136_v8, %v51_v17  ;;  %v4194_v8 = vld [vmem:[%s5382_s3 + $0x450] sm:$0xff]  }
  0x4e   :  { %3779 = vmatprep.subr.bf16.mxu1 %v4123_v43  ;;  %v573_v43 = vpack.c.bf16 %v541_v36, %v541_v36  ;;  %2877 = vmatprep.mubr.bf16.mxu1 %v576_v32  ;;  %v4175_v36 = vld [vmem:[%s5382_s3 + $0x4f8] sm:$0xff]   ;;  %v29_v17 = vld [vmem:[%s5383_s0 + $0x40] sm:$0xff] }
  0x4f   :  { %v451_v32 = vadd.f32 %v336_v20, %v251_v25  ;;  %v4204_v20 = vld [vmem:[%s5382_s3 + $0x400] sm:$0xff]   ;;  %v30_v25 = vld [vmem:[%s5383_s0 + $0x48] sm:$0xff] }
  0x50   :  { %3758 = vmatpush3.bf16.msra.mxu0 %v4124_v45  ;;  %v543_v45 = vsel %vm479_vm11, %v447_v22, %v511_v30  ;;  %v250_v22 = vmul.f32 %v132_v6, %v50_v16  ;;  %v4191_v6 = vld [vmem:[%s5382_s3 + $0x4d8] sm:$0xff]   ;;  %v4203_v16 = vld [vmem:[%s5382_s3 + $0x4c0] sm:$0xff]  }
  0x51   :  { %3780 = vmatpush3.bf16.msra.mxu1 %v4125_v46  ;;  %3759 = vmatprep.subr.bf16.mxu0 %v4126_v47  ;;  %v4146_v46 = vld [vmem:[%s5382_s3 + $0x370] sm:$0xff]   ;;  %v575_v47 = vpack.c.bf16 %v543_v45, %v543_v45  ;;  %vm483_vm15 = vcmp.gt.f32.partialorder %v451_v32, 0.0 }
  0x52   :  { %3781 = vmatprep.subr.bf16.mxu1 %v4127_v26  ;;  %v4147_v26 = vld [vmem:[%s5382_s3 + $0x3f0] sm:$0xff]   ;;  %v450_v28 = vadd.f32 %v332_v11, %v250_v22  ;;  %v54_v22 = vunpack.c.h.bf16 %v29_v17 }
  0x53   :  { %v4197_v11 = vld [vmem:[%s5382_s3 + $0x490] sm:$0xff]  }
  0x54   :  { %3760 = vmatpush3.bf16.msra.mxu0 %v4128_v48  ;;  %v4148_v48 = vld [vmem:[%s5382_s3 + $0x330] sm:$0xff]   ;;  %vm482_vm12 = vcmp.gt.f32.partialorder %v450_v28, 0.0 }
  0x55   :  { %3782 = vmatpush3.bf16.msra.mxu1 %v4129_v49  ;;  %3761 = vmatprep.subr.bf16.mxu0 %v4130_v50  ;;  %v4149_v49 = vld [vmem:[%s5382_s3 + $0x3b0] sm:$0xff]   ;;  %v4150_v50 = vld [vmem:[%s5382_s3 + $0x368] sm:$0xff]  }
  0x56   :  { %3783 = vmatprep.subr.bf16.mxu1 %v4131_v51  ;;  %v4151_v51 = vld [vmem:[%s5382_s3 + $0x3e8] sm:$0xff]  }
  0x58   :  { %3762 = vmatpush3.bf16.msra.mxu0 %v4132_v52  ;;  %v4152_v52 = vld [vmem:[%s5382_s3 + $0x328] sm:$0xff]  }
  0x59   :  { %3784 = vmatpush3.bf16.msra.mxu1 %v4133_v53  ;;  %3763 = vmatprep.subr.bf16.mxu0 %v4134_v54  ;;  %v4153_v53 = vld [vmem:[%s5382_s3 + $0x3a8] sm:$0xff]   ;;  %v4154_v54 = vld [vmem:[%s5382_s3 + $0x360] sm:$0xff]  }
  0x5a   :  { %3785 = vmatprep.subr.bf16.mxu1 %v4135_v55  ;;  %v4155_v55 = vld [vmem:[%s5382_s3 + $0x3e0] sm:$0xff]  }
  0x5c   :  { %3764 = vmatpush3.bf16.msra.mxu0 %v4136_v56  ;;  %v4156_v56 = vld [vmem:[%s5382_s3 + $0x320] sm:$0xff]  }
  0x5d   :  { %3786 = vmatpush3.bf16.msra.mxu1 %v4137_v57  ;;  %3765 = vmatprep.subr.bf16.mxu0 %v4138_v58  ;;  %v4157_v57 = vld [vmem:[%s5382_s3 + $0x3a0] sm:$0xff]   ;;  %v4158_v58 = vld [vmem:[%s5382_s3 + $0x358] sm:$0xff]  }
  0x5e   :  { %3787 = vmatprep.subr.bf16.mxu1 %v4139_v59  ;;  %v4159_v59 = vld [vmem:[%s5382_s3 + $0x3d8] sm:$0xff]  }
  0x60   :  { %3766 = vmatpush3.bf16.msra.mxu0 %v4140_v3  ;;  %v4166_v3 = vld [vmem:[%s5382_s3 + $0x348] sm:$0xff]  }
  0x61   :  { %3788 = vmatpush3.bf16.msra.mxu1 %v4141_v7  ;;  %3795 = vmatprep.subr.bf16.mxu0 %v4142_v14  ;;  %v128_v7 = vrot.slane %v4710_v60, %v4560_v42  ;;  %v328_v60 = vrot.slane %v4717_v0, %v4560_v42  ;;  %v4170_v14 = vld [vmem:[%s5382_s3 + $0x340] sm:$0xff]   ;;  %v4174_v0 = vld [vmem:[%s5382_s3 + $0x478] sm:$0xff]  }
  0x62   :  { %3817 = vmatprep.subr.bf16.mxu1 %v4143_v18  ;;  %v52_v18 = vunpack.c.h.bf16 %v28_v12  ;;  %v4198_v12 = vld [vmem:[%s5382_s3 + $0x448] sm:$0xff]  }
  0x63   :  { %2838 = vmatmul.mubr.bf16.vlgmr.msra.gmra.mxu0 %v573_v43  ;;  %v249_v24 = vmul.f32 %v128_v7, %v49_v15  ;;  %v4193_v7 = vld [vmem:[%s5382_s3 + $0x498] sm:$0xff]   ;;  %v4202_v15 = vld [vmem:[%s5382_s3 + $0x440] sm:$0xff]  }
  0x64   :  { %2878 = vmatmul.mubr.bf16.vlgmr.msra.gmra.mxu1 %v575_v47  ;;  %3796 = vmatpush3.bf16.msra.mxu0 %v4144_v27  ;;  %v252_v23 = vmul.f32 %v140_v40, %v52_v18  ;;  %v4173_v27 = vld [vmem:[%s5382_s3 + $0x380] sm:$0xff]   ;;  %v4176_v47 = vld [vmem:[%s5382_s3 + $0x438] sm:$0xff]   ;;  %v4956_v18 = vld [vmem:[%s5384_s1 + $0x10] sm:$0xff] }
  0x65   :  { %3818 = vmatpush3.bf16.msra.mxu1 %v4145_v41  ;;  %3797 = vmatprep.subr.bf16.mxu0 %v4146_v46  ;;  %v449_v30 = vadd.f32 %v328_v60, %v249_v24  ;;  %v514_v41 = vmul.f32 0.2, %v450_v28  ;;  %v515_v46 = vmul.f32 0.2, %v451_v32  ;;  %v4192_v40 = vld [vmem:[%s5382_s3 + $0x418] sm:$0xff]   ;;  %v4200_v60 = vld [vmem:[%s5382_s3 + $0x408] sm:$0xff]  }
  0x66   :  { %3819 = vmatprep.subr.bf16.mxu1 %v4147_v26  ;;  %v452_v29 = vadd.f32 %v340_v13, %v252_v23  ;;  %v4199_v13 = vld [vmem:[%s5382_s3 + $0x4c8] sm:$0xff]   ;;  %v148_v23 = vrot.slane %v4956_v18, %v4432_v31 }
  0x67   :  { %vm481_vm14 = vcmp.gt.f32.partialorder %v449_v30, 0.0  ;;  %v513_v45 = vmul.f32 0.2, %v449_v30  ;;  %v546_v26 = vsel %vm482_vm12, %v450_v28, %v514_v41  ;;  %v55_v28 = vunpack.c.l.bf16 %v30_v25 }
  0x68   :  { %3798 = vmatpush3.bf16.msra.mxu0 %v4148_v48  ;;  %vm484_vm13 = vcmp.gt.f32.partialorder %v452_v29, 0.0  ;;  %v516_v43 = vmul.f32 0.2, %v452_v29 }
  0x69   :  { %3820 = vmatpush3.bf16.msra.mxu1 %v4149_v49  ;;  %3799 = vmatprep.subr.bf16.mxu0 %v4150_v50  ;;  %v4177_v49 = vld [vmem:[%s5382_s3 + $0x4b8] sm:$0xff]   ;;  %v578_v50 = vpack.c.bf16 %v546_v26, %v546_v26 }
  0x6a   :  { %3821 = vmatprep.subr.bf16.mxu1 %v4151_v51  ;;  %v548_v48 = vsel %vm484_vm13, %v452_v29, %v516_v43  ;;  %v56_v29 = vunpack.c.h.bf16 %v30_v25  ;;  %v4206_v43 = vld [vmem:[%s5382_s3 + $0x578] sm:$0xff]   ;;  %v4230_v25 = vld [vmem:[%s5382_s3 + $0x548] sm:$0xff]  }
  0x6b   :  { %v580_v51 = vpack.c.bf16 %v548_v48, %v548_v48  ;;  %2917 = vmatprep.mubr.bf16.mxu0 %v578_v50  ;;  %v4207_v26 = vld [vmem:[%s5382_s3 + $0x5f8] sm:$0xff]  }
  0x6c   :  { %3800 = vmatpush3.bf16.msra.mxu0 %v4152_v52  ;;  %v545_v52 = vsel %vm481_vm14, %v449_v30, %v513_v45  ;;  %v156_v30 = vrot.slane %v4956_v18, %v4438_v33 }
  0x6d   :  { %3822 = vmatpush3.bf16.msra.mxu1 %v4153_v53  ;;  %3801 = vmatprep.subr.bf16.mxu0 %v4154_v54  ;;  %v547_v53 = vsel %vm483_vm15, %v451_v32, %v515_v46  ;;  %v4178_v54 = vld [vmem:[%s5382_s3 + $0x470] sm:$0xff]   ;;  %v254_v32 = vmul.f32 %v148_v23, %v54_v22  ;;  %v152_v46 = vrot.slane %v4956_v18, %v4450_v37 }
  0x6e   :  { %3823 = vmatprep.subr.bf16.mxu1 %v4155_v55  ;;  %v577_v55 = vpack.c.bf16 %v545_v52, %v545_v52  ;;  %2957 = vmatprep.mubr.bf16.mxu1 %v580_v51  ;;  %v256_v45 = vmul.f32 %v156_v30, %v56_v29  ;;  %v4227_v22 = vld [vmem:[%s5382_s3 + $0x5d0] sm:$0xff]   ;;  %v164_v29 = vrot.slane %v4956_v18, %v4548_v34 }
  0x6f   :  { %v255_v51 = vmul.f32 %v152_v46, %v55_v28  ;;  %v4228_v23 = vld [vmem:[%s5382_s3 + $0x510] sm:$0xff]   ;;  %v4232_v28 = vld [vmem:[%s5382_s3 + $0x508] sm:$0xff]   ;;  %v160_v30 = vrot.slane %v4956_v18, %v4560_v42 }
  0x70   :  { %3802 = vmatpush3.bf16.msra.mxu0 %v4156_v56  ;;  %v579_v56 = vpack.c.bf16 %v547_v53, %v547_v53 }
  0x71   :  { %3824 = vmatpush3.bf16.msra.mxu1 %v4157_v57  ;;  %3803 = vmatprep.subr.bf16.mxu0 %v4158_v58  ;;  %v4179_v57 = vld [vmem:[%s5382_s3 + $0x4f0] sm:$0xff]  }
  0x72   :  { %3825 = vmatprep.subr.bf16.mxu1 %v4159_v59  ;;  %v4180_v58 = vld [vmem:[%s5382_s3 + $0x430] sm:$0xff]  }
  0x73   :  { %v4181_v59 = vld [vmem:[%s5382_s3 + $0x4b0] sm:$0xff]  }
  0x74   :  { %3804 = vmatpush3.bf16.msra.mxu0 %v4160_v39  ;;  %v4182_v39 = vld [vmem:[%s5382_s3 + $0x468] sm:$0xff]  }
  0x75   :  { %3826 = vmatpush3.bf16.msra.mxu1 %v4161_v61  ;;  %3805 = vmatprep.subr.bf16.mxu0 %v4162_v62  ;;  %v4183_v61 = vld [vmem:[%s5382_s3 + $0x4e8] sm:$0xff]  }
  0x76   :  { %3827 = vmatprep.subr.bf16.mxu1 %v4163_v63  ;;  %v4184_v62 = vld [vmem:[%s5382_s3 + $0x428] sm:$0xff]  }
  0x77   :  { %v4185_v63 = vld [vmem:[%s5382_s3 + $0x4a8] sm:$0xff]  }
  0x78   :  { %3806 = vmatpush3.bf16.msra.mxu0 %v4164_v1  ;;  %v4186_v1 = vld [vmem:[%s5382_s3 + $0x460] sm:$0xff]  }
  0x79   :  { %3828 = vmatpush3.bf16.msra.mxu1 %v4165_v2  ;;  %3807 = vmatprep.subr.bf16.mxu0 %v4166_v3  ;;  %v4187_v2 = vld [vmem:[%s5382_s3 + $0x4e0] sm:$0xff]  }
  0x7a   :  { %3829 = vmatprep.subr.bf16.mxu1 %v4167_v4  ;;  %v4188_v3 = vld [vmem:[%s5382_s3 + $0x420] sm:$0xff]  }
  0x7b   :  { %v4189_v4 = vld [vmem:[%s5382_s3 + $0x4a0] sm:$0xff]  }
  0x7c   :  { %3808 = vmatpush3.bf16.msra.mxu0 %v4168_v5  ;;  %v4190_v5 = vld [vmem:[%s5382_s3 + $0x458] sm:$0xff]  }
  0x7d   :  { %3830 = vmatpush3.bf16.msra.mxu1 %v4169_v9  ;;  %3809 = vmatprep.subr.bf16.mxu0 %v4170_v14  ;;  %v4195_v9 = vld [vmem:[%s5382_s3 + $0x4d0] sm:$0xff]   ;;  %v4201_v14 = vld [vmem:[%s5382_s3 + $0x488] sm:$0xff]  }
  0x7e   :  { %3831 = vmatprep.subr.bf16.mxu1 %v4171_v19  ;;  %v4961_v19 = vld [vmem:[%s5385_s2 + $0x10] sm:$0xff] }
  0x7f   :  { %v348_v24 = vrot.slane %v4961_v19, %v4432_v31  ;;  %v344_v41 = vrot.slane %v4961_v19, %v4444_v35 }
  0x80   :  { %3810 = vmatpush3.bf16.msra.mxu0 %v4172_v21  ;;  %v53_v21 = vunpack.c.l.bf16 %v29_v17  ;;  %v4224_v17 = vld [vmem:[%s5382_s3 + $0x518] sm:$0xff]  }
  0x81   :  { %3832 = vmatpush3.bf16.msra.mxu1 %v4173_v27  ;;  %3839 = vmatprep.subr.bf16.mxu0 %v4174_v0  ;;  %v4205_v27 = vld [vmem:[%s5382_s3 + $0x480] sm:$0xff]   ;;  %v356_v0 = vrot.slane %v4961_v19, %v4438_v33  ;;  %v454_v48 = vadd.f32 %v348_v24, %v254_v32  ;;  %v4229_v24 = vld [vmem:[%s5382_s3 + $0x590] sm:$0xff]  }
  0x82   :  { %3861 = vmatprep.subr.bf16.mxu1 %v4175_v36  ;;  %v144_v36 = vrot.slane %v4956_v18, %v4444_v35  ;;  %v4234_v32 = vld [vmem:[%s5382_s3 + $0x540] sm:$0xff]  }
  0x83   :  { %2918 = vmatmul.mubr.bf16.vlgmr.msra.gmra.mxu0 %v577_v55  ;;  %v456_v50 = vadd.f32 %v356_v0, %v256_v45  ;;  %vm486_vm0 = vcmp.gt.f32.partialorder %v454_v48, 0.0  ;;  %v518_v52 = vmul.f32 0.2, %v454_v48  ;;  %v4233_v0 = vld [vmem:[%s5382_s3 + $0x588] sm:$0xff]  }
  0x84   :  { %2958 = vmatmul.mubr.bf16.vlgmr.msra.gmra.mxu1 %v579_v56  ;;  %3840 = vmatpush3.bf16.msra.mxu0 %v4176_v47  ;;  %v352_v47 = vrot.slane %v4961_v19, %v4450_v37 }
  0x85   :  { %3862 = vmatpush3.bf16.msra.mxu1 %v4177_v49  ;;  %3841 = vmatprep.subr.bf16.mxu0 %v4178_v54  ;;  %v253_v49 = vmul.f32 %v144_v36, %v53_v21  ;;  %vm488_vm1 = vcmp.gt.f32.partialorder %v456_v50, 0.0  ;;  %v520_v54 = vmul.f32 0.2, %v456_v50  ;;  %v550_v56 = vsel %vm486_vm0, %v454_v48, %v518_v52  ;;  %v4226_v21 = vld [vmem:[%s5382_s3 + $0x550] sm:$0xff]  }
  0x86   :  { %3863 = vmatprep.subr.bf16.mxu1 %v4179_v57  ;;  %v455_v55 = vadd.f32 %v352_v47, %v255_v51  ;;  %v31_v36 = vld [vmem:[%s5383_s0 + $0x50] sm:$0xff]  ;;  %v364_v47 = vrot.slane %v4961_v19, %v4548_v34  ;;  %v360_v48 = vrot.slane %v4961_v19, %v4560_v42  ;;  %v372_v51 = vrot.slane %v4961_v19, %v4554_v38 }
  0x87   :  { %v453_v53 = vadd.f32 %v344_v41, %v253_v49  ;;  %v172_v41 = vrot.slane %v4956_v18, %v4554_v38  ;;  %v57_v45 = vunpack.c.l.bf16 %v31_v36  ;;  %v58_v46 = vunpack.c.h.bf16 %v31_v36  ;;  %v4235_v49 = vld [vmem:[%s5382_s3 + $0x5c0] sm:$0xff]   ;;  %v4259_v36 = vld [vmem:[%s5382_s3 + $0x6d0] sm:$0xff]  }
  0x88   :  { %3842 = vmatpush3.bf16.msra.mxu0 %v4180_v58  ;;  %v4208_v58 = vld [vmem:[%s5382_s3 + $0x538] sm:$0xff]   ;;  %vm487_vm3 = vcmp.gt.f32.partialorder %v455_v55, 0.0  ;;  %v368_v52 = vrot.slane %v4961_v19, %v4566_v44  ;;  %vm4311_vm0 = vmmov 0  }
  0x89   :  { %3864 = vmatpush3.bf16.msra.mxu1 %v4181_v59  ;;  %3843 = vmatprep.subr.bf16.mxu0 %v4182_v39  ;;  %vm485_vm2 = vcmp.gt.f32.partialorder %v453_v53, 0.0  ;;  %v517_v57 = vmul.f32 0.2, %v453_v53  ;;  %v582_v59 = vpack.c.bf16 %v550_v56, %v550_v56  ;;  %v552_v39 = vsel %vm488_vm1, %v456_v50, %v520_v54  ;;  %v4237_v56 = vld [vmem:[%s5382_s3 + $0x580] sm:$0xff]   ;;  %v4238_v19 = vld [vmem:[%s5382_s3 + $0x678] sm:$0xff]  }
  0x8a   :  { %3865 = vmatprep.subr.bf16.mxu1 %v4183_v61  ;;  %v519_v61 = vmul.f32 0.2, %v455_v55  ;;  %v258_v54 = vmul.f32 %v164_v29, %v58_v46  ;;  %v4255_v29 = vld [vmem:[%s5382_s3 + $0x6d8] sm:$0xff]   ;;  %v4263_v46 = vld [vmem:[%s5382_s3 + $0x6c8] sm:$0xff]  }
  0x8b   :  { %2997 = vmatprep.mubr.bf16.mxu0 %v582_v59 }
  0x8c   :  { %3844 = vmatpush3.bf16.msra.mxu0 %v4184_v62  ;;  %v4209_v62 = vld [vmem:[%s5382_s3 + $0x5b8] sm:$0xff]   ;;  %v458_v59 = vadd.f32 %v364_v47, %v258_v54  ;;  %v4264_v47 = vld [vmem:[%s5382_s3 + $0x608] sm:$0xff]  }
  0x8d   :  { %3866 = vmatpush3.bf16.msra.mxu1 %v4185_v63  ;;  %3845 = vmatprep.subr.bf16.mxu0 %v4186_v1  ;;  %v4210_v63 = vld [vmem:[%s5382_s3 + $0x570] sm:$0xff]   ;;  %v584_v1 = vpack.c.bf16 %v552_v39, %v552_v39 }
  0x8e   :  { %3867 = vmatprep.subr.bf16.mxu1 %v4187_v2  ;;  %v549_v2 = vsel %vm485_vm2, %v453_v53, %v517_v57  ;;  %v4236_v53 = vld [vmem:[%s5382_s3 + $0x500] sm:$0xff]   ;;  %vm490_vm4 = vcmp.gt.f32.partialorder %v458_v59, 0.0  ;;  %vm3393_vm2 = vcmask 23552  }
  0x8f   :  { %3037 = vmatprep.mubr.bf16.mxu1 %v584_v1  ;;  %v522_v1 = vmul.f32 0.2, %v458_v59 }
  0x90   :  { %3846 = vmatpush3.bf16.msra.mxu0 %v4188_v3  ;;  %v581_v3 = vpack.c.bf16 %v549_v2, %v549_v2 }
  0x91   :  { %3868 = vmatpush3.bf16.msra.mxu1 %v4189_v4  ;;  %3847 = vmatprep.subr.bf16.mxu0 %v4190_v5  ;;  %v551_v4 = vsel %vm487_vm3, %v455_v55, %v519_v61  ;;  %v4211_v5 = vld [vmem:[%s5382_s3 + $0x5f0] sm:$0xff]   ;;  %v257_v55 = vmul.f32 %v160_v30, %v57_v45  ;;  %v4256_v30 = vld [vmem:[%s5382_s3 + $0x618] sm:$0xff]   ;;  %v4262_v45 = vld [vmem:[%s5382_s3 + $0x648] sm:$0xff]  }
  0x92   :  { %3869 = vmatprep.subr.bf16.mxu1 %v4191_v6  ;;  %v583_v6 = vpack.c.bf16 %v551_v4, %v551_v4 }
  0x93   :  { %v457_v39 = vadd.f32 %v360_v48, %v257_v55 }
  0x94   :  { %3848 = vmatpush3.bf16.msra.mxu0 %v4192_v40  ;;  %v4212_v40 = vld [vmem:[%s5382_s3 + $0x530] sm:$0xff]  }
  0x95   :  { %3870 = vmatpush3.bf16.msra.mxu1 %v4193_v7  ;;  %3849 = vmatprep.subr.bf16.mxu0 %v4194_v8  ;;  %v4213_v7 = vld [vmem:[%s5382_s3 + $0x5b0] sm:$0xff]   ;;  %v4214_v8 = vld [vmem:[%s5382_s3 + $0x568] sm:$0xff]   ;;  %vm489_vm5 = vcmp.gt.f32.partialorder %v457_v39, 0.0  ;;  %v521_v2 = vmul.f32 0.2, %v457_v39 }
  0x96   :  { %3871 = vmatprep.subr.bf16.mxu1 %v4195_v9  ;;  %v4215_v9 = vld [vmem:[%s5382_s3 + $0x5e8] sm:$0xff]  }
  0x98   :  { %3850 = vmatpush3.bf16.msra.mxu0 %v4196_v10  ;;  %v4216_v10 = vld [vmem:[%s5382_s3 + $0x528] sm:$0xff]  }
  0x99   :  { %3872 = vmatpush3.bf16.msra.mxu1 %v4197_v11  ;;  %3851 = vmatprep.subr.bf16.mxu0 %v4198_v12  ;;  %v4217_v11 = vld [vmem:[%s5382_s3 + $0x5a8] sm:$0xff]   ;;  %v4218_v12 = vld [vmem:[%s5382_s3 + $0x560] sm:$0xff]  }
  0x9a   :  { %3873 = vmatprep.subr.bf16.mxu1 %v4199_v13  ;;  %v4219_v13 = vld [vmem:[%s5382_s3 + $0x5e0] sm:$0xff]  }
  0x9c   :  { %3852 = vmatpush3.bf16.msra.mxu0 %v4200_v60  ;;  %v4220_v60 = vld [vmem:[%s5382_s3 + $0x520] sm:$0xff]  }
  0x9d   :  { %3874 = vmatpush3.bf16.msra.mxu1 %v4201_v14  ;;  %3853 = vmatprep.subr.bf16.mxu0 %v4202_v15  ;;  %v4221_v14 = vld [vmem:[%s5382_s3 + $0x5a0] sm:$0xff]   ;;  %v4222_v15 = vld [vmem:[%s5382_s3 + $0x558] sm:$0xff]  }
  0x9e   :  { %3875 = vmatprep.subr.bf16.mxu1 %v4203_v16  ;;  %v4223_v16 = vld [vmem:[%s5382_s3 + $0x5d8] sm:$0xff]  }
  0xa0   :  { %3854 = vmatpush3.bf16.msra.mxu0 %v4204_v20  ;;  %v4225_v20 = vld [vmem:[%s5382_s3 + $0x598] sm:$0xff]  }
  0xa1   :  { %3876 = vmatpush3.bf16.msra.mxu1 %v4205_v27  ;;  %3883 = vmatprep.subr.bf16.mxu0 %v4206_v43  ;;  %v4231_v27 = vld [vmem:[%s5382_s3 + $0x5c8] sm:$0xff]   ;;  %v168_v43 = vrot.slane %v4956_v18, %v4566_v44 }
  0xa2   :  { %3905 = vmatprep.subr.bf16.mxu1 %v4207_v26  ;;  %v32_v26 = vld [vmem:[%s5383_s0 + $0x58] sm:$0xff] }
  0xa3   :  { %2998 = vmatmul.mubr.bf16.vlgmr.msra.gmra.mxu0 %v581_v3  ;;  %v59_v18 = vunpack.c.l.bf16 %v32_v26  ;;  %v60_v50 = vunpack.c.h.bf16 %v32_v26  ;;  %v4265_v26 = vld [vmem:[%s5382_s3 + $0x688] sm:$0xff]  }
  0xa4   :  { %3038 = vmatmul.mubr.bf16.vlgmr.msra.gmra.mxu1 %v583_v6  ;;  %3884 = vmatpush3.bf16.msra.mxu0 %v4208_v58  ;;  %v554_v6 = vsel %vm490_vm4, %v458_v59, %v522_v1 }
  0xa5   :  { %3906 = vmatpush3.bf16.msra.mxu1 %v4209_v62  ;;  %3885 = vmatprep.subr.bf16.mxu0 %v4210_v63  ;;  %v260_v57 = vmul.f32 %v172_v41, %v60_v50  ;;  %v259_v58 = vmul.f32 %v168_v43, %v59_v18  ;;  %v4239_v63 = vld [vmem:[%s5382_s3 + $0x6f8] sm:$0xff]   ;;  %v4260_v41 = vld [vmem:[%s5382_s3 + $0x610] sm:$0xff]   ;;  %v4267_v50 = vld [vmem:[%s5382_s3 + $0x6c0] sm:$0xff]  }
  0xa6   :  { %3907 = vmatprep.subr.bf16.mxu1 %v4211_v5  ;;  %v4240_v5 = vld [vmem:[%s5382_s3 + $0x638] sm:$0xff]   ;;  %v4261_v43 = vld [vmem:[%s5382_s3 + $0x690] sm:$0xff]  }
  0xa7   :  { %v460_v61 = vadd.f32 %v372_v51, %v260_v57  ;;  %v459_v62 = vadd.f32 %v368_v52, %v259_v58  ;;  %v33_v51 = vld [vmem:[%s5383_s0 + $0x60] sm:$0xff]  ;;  %v5202_v52 = vld [vmem:[%s5384_s1 + $0x18] sm:$0xff]  ;;  %v34_v58 = vld [vmem:[%s5383_s0 + $0x68] sm:$0xff] }
  0xa8   :  { %3886 = vmatpush3.bf16.msra.mxu0 %v4212_v40  ;;  %v553_v40 = vsel %vm489_vm5, %v457_v39, %v521_v2  ;;  %v61_v54 = vunpack.c.l.bf16 %v33_v51  ;;  %v62_v55 = vunpack.c.h.bf16 %v33_v51  ;;  %v5209_v57 = vld [vmem:[%s5385_s2 + $0x18] sm:$0xff]  ;;  %v188_v59 = vrot.slane %v5202_v52, %v4438_v33  ;;  %v4283_v51 = vld [vmem:[%s5382_s3 + $0x7e0] sm:$0xff]  }
  0xa9   :  { %3908 = vmatpush3.bf16.msra.mxu1 %v4213_v7  ;;  %3887 = vmatprep.subr.bf16.mxu0 %v4214_v8  ;;  %vm492_vm6 = vcmp.gt.f32.partialorder %v460_v61, 0.0  ;;  %v524_v3 = vmul.f32 0.2, %v460_v61  ;;  %vm491_vm7 = vcmp.gt.f32.partialorder %v459_v62, 0.0  ;;  %v523_v4 = vmul.f32 0.2, %v459_v62 }
  0xaa   :  { %3909 = vmatprep.subr.bf16.mxu1 %v4215_v9  ;;  %v4241_v7 = vld [vmem:[%s5382_s3 + $0x6b8] sm:$0xff]   ;;  %v586_v8 = vpack.c.bf16 %v554_v6, %v554_v6  ;;  %v388_v1 = vrot.slane %v5209_v57, %v4438_v33  ;;  %v376_v6 = vrot.slane %v5209_v57, %v4444_v35 }
  0xab   :  { %v556_v9 = vsel %vm492_vm6, %v460_v61, %v524_v3  ;;  %v380_v61 = vrot.slane %v5209_v57, %v4432_v31  ;;  %v4269_v3 = vld [vmem:[%s5382_s3 + $0x680] sm:$0xff]  }
  0xac   :  { %3888 = vmatpush3.bf16.msra.mxu0 %v4216_v10  ;;  %v585_v10 = vpack.c.bf16 %v553_v40, %v553_v40  ;;  %3077 = vmatprep.mubr.bf16.mxu0 %v586_v8  ;;  %v4270_v8 = vld [vmem:[%s5382_s3 + $0x778] sm:$0xff]  }
  0xad   :  { %3910 = vmatpush3.bf16.msra.mxu1 %v4217_v11  ;;  %3889 = vmatprep.subr.bf16.mxu0 %v4218_v12  ;;  %v555_v11 = vsel %vm491_vm7, %v459_v62, %v523_v4  ;;  %v4242_v12 = vld [vmem:[%s5382_s3 + $0x670] sm:$0xff]   ;;  %v63_v62 = vunpack.c.l.bf16 %v34_v58 }
  0xae   :  { %3911 = vmatprep.subr.bf16.mxu1 %v4219_v13  ;;  %v588_v13 = vpack.c.bf16 %v556_v9, %v556_v9 }
  0xb0   :  { %3890 = vmatpush3.bf16.msra.mxu0 %v4220_v60  ;;  %v587_v60 = vpack.c.bf16 %v555_v11, %v555_v11  ;;  %3117 = vmatprep.mubr.bf16.mxu1 %v588_v13  ;;  %v4271_v13 = vld [vmem:[%s5382_s3 + $0x7f8] sm:$0xff]  }
  0xb1   :  { %3912 = vmatpush3.bf16.msra.mxu1 %v4221_v14  ;;  %3891 = vmatprep.subr.bf16.mxu0 %v4222_v15  ;;  %v4243_v14 = vld [vmem:[%s5382_s3 + $0x6f0] sm:$0xff]  }
  0xb2   :  { %3913 = vmatprep.subr.bf16.mxu1 %v4223_v16  ;;  %v4244_v15 = vld [vmem:[%s5382_s3 + $0x630] sm:$0xff]  }
  0xb3   :  { %v4245_v16 = vld [vmem:[%s5382_s3 + $0x6b0] sm:$0xff]  }
  0xb4   :  { %3892 = vmatpush3.bf16.msra.mxu0 %v4224_v17  ;;  %v4246_v17 = vld [vmem:[%s5382_s3 + $0x668] sm:$0xff]  }
  0xb5   :  { %3914 = vmatpush3.bf16.msra.mxu1 %v4225_v20  ;;  %3893 = vmatprep.subr.bf16.mxu0 %v4226_v21  ;;  %v4247_v20 = vld [vmem:[%s5382_s3 + $0x6e8] sm:$0xff]  }
  0xb6   :  { %3915 = vmatprep.subr.bf16.mxu1 %v4227_v22  ;;  %v4248_v21 = vld [vmem:[%s5382_s3 + $0x628] sm:$0xff]  }
  0xb7   :  { %v4249_v22 = vld [vmem:[%s5382_s3 + $0x6a8] sm:$0xff]  }
  0xb8   :  { %3894 = vmatpush3.bf16.msra.mxu0 %v4228_v23  ;;  %v4250_v23 = vld [vmem:[%s5382_s3 + $0x660] sm:$0xff]  }
  0xb9   :  { %3916 = vmatpush3.bf16.msra.mxu1 %v4229_v24  ;;  %3895 = vmatprep.subr.bf16.mxu0 %v4230_v25  ;;  %v4251_v24 = vld [vmem:[%s5382_s3 + $0x6e0] sm:$0xff]  }
  0xba   :  { %3917 = vmatprep.subr.bf16.mxu1 %v4231_v27  ;;  %v4252_v25 = vld [vmem:[%s5382_s3 + $0x620] sm:$0xff]  }
  0xbb   :  { %v4253_v27 = vld [vmem:[%s5382_s3 + $0x6a0] sm:$0xff]  }
  0xbc   :  { %3896 = vmatpush3.bf16.msra.mxu0 %v4232_v28  ;;  %v4254_v28 = vld [vmem:[%s5382_s3 + $0x658] sm:$0xff]  }
  0xbd   :  { %3918 = vmatpush3.bf16.msra.mxu1 %v4233_v0  ;;  %3897 = vmatprep.subr.bf16.mxu0 %v4234_v32  ;;  %v4257_v0 = vld [vmem:[%s5382_s3 + $0x698] sm:$0xff]   ;;  %v4258_v32 = vld [vmem:[%s5382_s3 + $0x650] sm:$0xff]  }
  0xbe   :  { %3919 = vmatprep.subr.bf16.mxu1 %v4235_v49  ;;  %v4266_v49 = vld [vmem:[%s5382_s3 + $0x640] sm:$0xff]  }
  0xc0   :  { %3898 = vmatpush3.bf16.msra.mxu0 %v4236_v53 }
  0xc1   :  { %3920 = vmatpush3.bf16.msra.mxu1 %v4237_v56  ;;  %3927 = vmatprep.subr.bf16.mxu0 %v4238_v19  ;;  %v180_v56 = vrot.slane %v5202_v52, %v4432_v31  ;;  %v4268_v19 = vld [vmem:[%s5382_s3 + $0x600] sm:$0xff]   ;;  %v184_v31 = vrot.slane %v5202_v52, %v4450_v37 }
  0xc2   :  { %3949 = vmatprep.subr.bf16.mxu1 %v4239_v63  ;;  %v64_v63 = vunpack.c.h.bf16 %v34_v58  ;;  %v4288_v58 = vld [vmem:[%s5382_s3 + $0x718] sm:$0xff]  }
  0xc3   :  { %3078 = vmatmul.mubr.bf16.vlgmr.msra.gmra.mxu0 %v585_v10  ;;  %v262_v4 = vmul.f32 %v180_v56, %v62_v55  ;;  %v4286_v55 = vld [vmem:[%s5382_s3 + $0x758] sm:$0xff]  }
  0xc4   :  { %3118 = vmatmul.mubr.bf16.vlgmr.msra.gmra.mxu1 %v587_v60  ;;  %3928 = vmatpush3.bf16.msra.mxu0 %v4240_v5  ;;  %v176_v5 = vrot.slane %v5202_v52, %v4444_v35  ;;  %v264_v33 = vmul.f32 %v188_v59, %v64_v63  ;;  %v263_v35 = vmul.f32 %v184_v31, %v63_v62  ;;  %v4287_v56 = vld [vmem:[%s5382_s3 + $0x7d8] sm:$0xff]   ;;  %v4293_v62 = vld [vmem:[%s5382_s3 + $0x790] sm:$0xff]  }
  0xc5   :  { %3950 = vmatpush3.bf16.msra.mxu1 %v4241_v7  ;;  %3929 = vmatprep.subr.bf16.mxu0 %v4242_v12  ;;  %v384_v7 = vrot.slane %v5209_v57, %v4450_v37  ;;  %v462_v11 = vadd.f32 %v380_v61, %v262_v4  ;;  %v4289_v59 = vld [vmem:[%s5382_s3 + $0x798] sm:$0xff]   ;;  %v4292_v61 = vld [vmem:[%s5382_s3 + $0x710] sm:$0xff]   ;;  %v196_v4 = vrot.slane %v5202_v52, %v4548_v34 }
  0xc6   :  { %3951 = vmatprep.subr.bf16.mxu1 %v4243_v14  ;;  %v261_v12 = vmul.f32 %v176_v5, %v61_v54  ;;  %v4285_v54 = vld [vmem:[%s5382_s3 + $0x7a0] sm:$0xff]   ;;  %v192_v31 = vrot.slane %v5202_v52, %v4560_v42 }
  0xc7   :  { %vm494_vm8 = vcmp.gt.f32.partialorder %v462_v11, 0.0  ;;  %v526_v37 = vmul.f32 0.2, %v462_v11 }
  0xc8   :  { %3930 = vmatpush3.bf16.msra.mxu0 %v4244_v15  ;;  %v464_v15 = vadd.f32 %v388_v1, %v264_v33  ;;  %v4294_v1 = vld [vmem:[%s5382_s3 + $0x748] sm:$0xff]  }
  0xc9   :  { %3952 = vmatpush3.bf16.msra.mxu1 %v4245_v16  ;;  %3931 = vmatprep.subr.bf16.mxu0 %v4246_v17  ;;  %v461_v16 = vadd.f32 %v376_v6, %v261_v12  ;;  %v463_v17 = vadd.f32 %v384_v7, %v263_v35  ;;  %v204_v6 = vrot.slane %v5202_v52, %v4554_v38 }
  0xca   :  { %3953 = vmatprep.subr.bf16.mxu1 %v4247_v20  ;;  %vm496_vm9 = vcmp.gt.f32.partialorder %v464_v15, 0.0  ;;  %v528_v20 = vmul.f32 0.2, %v464_v15  ;;  %v392_v12 = vrot.slane %v5209_v57, %v4560_v42  ;;  %v4299_v42 = vld [vmem:[%s5382_s3 + $0x7c0] sm:$0xff]  }
  0xcb   :  { %vm493_vm10 = vcmp.gt.f32.partialorder %v461_v16, 0.0  ;;  %vm495_vm11 = vcmp.gt.f32.partialorder %v463_v17, 0.0 }
  0xcc   :  { %3932 = vmatpush3.bf16.msra.mxu0 %v4248_v21 }
  0xcd   :  { %3954 = vmatpush3.bf16.msra.mxu1 %v4249_v22  ;;  %3933 = vmatprep.subr.bf16.mxu0 %v4250_v23  ;;  %v558_v22 = vsel %vm494_vm8, %v462_v11, %v526_v37  ;;  %v525_v23 = vmul.f32 0.2, %v461_v16  ;;  %v36_v11 = vld [vmem:[%s5383_s0 + $0x78] sm:$0xff] }
  0xce   :  { %3955 = vmatprep.subr.bf16.mxu1 %v4251_v24  ;;  %v4272_v24 = vld [vmem:[%s5382_s3 + $0x738] sm:$0xff]   ;;  %v67_v37 = vunpack.c.l.bf16 %v36_v11 }
  0xd0   :  { %3934 = vmatpush3.bf16.msra.mxu0 %v4252_v25  ;;  %v590_v25 = vpack.c.bf16 %v558_v22, %v558_v22 }
  0xd1   :  { %3956 = vmatpush3.bf16.msra.mxu1 %v4253_v27  ;;  %3935 = vmatprep.subr.bf16.mxu0 %v4254_v28  ;;  %v560_v27 = vsel %vm496_vm9, %v464_v15, %v528_v20  ;;  %v527_v28 = vmul.f32 0.2, %v463_v17 }
  0xd2   :  { %3957 = vmatprep.subr.bf16.mxu1 %v4255_v29  ;;  %v592_v29 = vpack.c.bf16 %v560_v27, %v560_v27  ;;  %3157 = vmatprep.mubr.bf16.mxu0 %v590_v25 }
  0xd4   :  { %3936 = vmatpush3.bf16.msra.mxu0 %v4256_v30  ;;  %v557_v30 = vsel %vm493_vm10, %v461_v16, %v525_v23  ;;  %3197 = vmatprep.mubr.bf16.mxu1 %v592_v29  ;;  %v68_v16 = vunpack.c.h.bf16 %v36_v11  ;;  %v4300_v29 = vld [vmem:[%s5382_s3 + $0x700] sm:$0xff]  }
  0xd5   :  { %3958 = vmatpush3.bf16.msra.mxu1 %v4257_v0  ;;  %3937 = vmatprep.subr.bf16.mxu0 %v4258_v32  ;;  %v4273_v0 = vld [vmem:[%s5382_s3 + $0x7b8] sm:$0xff]   ;;  %v589_v32 = vpack.c.bf16 %v557_v30, %v557_v30 }
  0xd6   :  { %3959 = vmatprep.subr.bf16.mxu1 %v4259_v36  ;;  %v559_v36 = vsel %vm495_vm11, %v463_v17, %v527_v28  ;;  %v400_v17 = vrot.slane %v5209_v57, %v4566_v44 }
  0xd8   :  { %3938 = vmatpush3.bf16.msra.mxu0 %v4260_v41  ;;  %v4274_v41 = vld [vmem:[%s5382_s3 + $0x770] sm:$0xff]  }
  0xd9   :  { %3960 = vmatpush3.bf16.msra.mxu1 %v4261_v43  ;;  %3939 = vmatprep.subr.bf16.mxu0 %v4262_v45  ;;  %v591_v43 = vpack.c.bf16 %v559_v36, %v559_v36  ;;  %v4275_v45 = vld [vmem:[%s5382_s3 + $0x7f0] sm:$0xff]  }
  0xda   :  { %3961 = vmatprep.subr.bf16.mxu1 %v4263_v46  ;;  %v4276_v46 = vld [vmem:[%s5382_s3 + $0x730] sm:$0xff]  }
  0xdc   :  { %3940 = vmatpush3.bf16.msra.mxu0 %v4264_v47  ;;  %v4277_v47 = vld [vmem:[%s5382_s3 + $0x7b0] sm:$0xff]  }
  0xdd   :  { %3962 = vmatpush3.bf16.msra.mxu1 %v4265_v26  ;;  %3941 = vmatprep.subr.bf16.mxu0 %v4266_v49  ;;  %v4278_v26 = vld [vmem:[%s5382_s3 + $0x768] sm:$0xff]  }
  0xde   :  { %3963 = vmatprep.subr.bf16.mxu1 %v4267_v50  ;;  %v4280_v49 = vld [vmem:[%s5382_s3 + $0x728] sm:$0xff]   ;;  %v4282_v50 = vld [vmem:[%s5382_s3 + $0x760] sm:$0xff]  }
  0xe0   :  { %3942 = vmatpush3.bf16.msra.mxu0 %v4268_v19  ;;  %v4291_v19 = vld [vmem:[%s5382_s3 + $0x7d0] sm:$0xff]  }
  0xe1   :  { %3964 = vmatpush3.bf16.msra.mxu1 %v4269_v3  ;;  %3971 = vmatprep.subr.bf16.mxu0 %v4270_v8  ;;  %v4295_v3 = vld [vmem:[%s5382_s3 + $0x7c8] sm:$0xff]  }
  0xe2   :  { %3993 = vmatprep.subr.bf16.mxu1 %v4271_v13  ;;  %v4296_v8 = vld [vmem:[%s5382_s3 + $0x708] sm:$0xff]  }
  0xe3   :  { %v3679_v48 = vpop.f32.mrf.mxu0  ;;  %3158 = vmatmul.mubr.bf16.vlgmr.msra.gmra.mxu0 %v589_v32 }
  0xe4   :  { %v3701_v18 = vpop.f32.mrf.mxu1  ;;  %3198 = vmatmul.mubr.bf16.vlgmr.msra.gmra.mxu1 %v591_v43  ;;  %3972 = vmatpush3.bf16.msra.mxu0 %v4272_v24  ;;  %v268_v24 = vmul.f32 %v204_v6, %v68_v16  ;;  %v4305_v6 = vld [vmem:[%s5386_s4 + $0x20] sm:$0xff]  }
  0xe5   :  { %v3680_v53 = vpop.f32.mrf.mxu0  ;;  %3994 = vmatpush3.bf16.msra.mxu1 %v4273_v0  ;;  %3973 = vmatprep.subr.bf16.mxu0 %v4274_v41 }
  0xe6   :  { %v3702_v39 = vpop.f32.mrf.mxu1  ;;  %v3681_v9 = vadd.f32 %v3680_v53, %v3679_v48  ;;  %3995 = vmatprep.subr.bf16.mxu1 %v4275_v45  ;;  %v4279_v48 = vld [vmem:[%s5382_s3 + $0x7e8] sm:$0xff]   ;;  %v4284_v53 = vld [vmem:[%s5382_s3 + $0x720] sm:$0xff]  }
  0xe7   :  { %v3682_v2 = vpop.f32.mrf.mxu0  ;;  %v3703_v60 = vadd.f32 %v3702_v39, %v3701_v18  ;;  %v4281_v18 = vld [vmem:[%s5382_s3 + $0x7a8] sm:$0xff]   ;;  %v4290_v39 = vld [vmem:[%s5382_s3 + $0x750] sm:$0xff]  }
  0xe8   :  { %v3704_v40 = vpop.f32.mrf.mxu1  ;;  %3974 = vmatpush3.bf16.msra.mxu0 %v4276_v46 }
  0xe9   :  { %v3683_v10 = vpop.f32.mrf.mxu0  ;;  %v5240_v21 = vadd.f32 %v3703_v60, %v3681_v9  ;;  %3996 = vmatpush3.bf16.msra.mxu1 %v4277_v47  ;;  %3975 = vmatprep.subr.bf16.mxu0 %v4278_v26  ;;  %v200_v40 = vrot.slane %v5202_v52, %v4566_v44  ;;  %v35_v9 = vld [vmem:[%s5383_s0 + $0x70] sm:$0xff]  ;;  %v404_v52 = vrot.slane %v5209_v57, %v4554_v38  ;;  %v4297_v60 = vld [vmem:[%s5382_s3 + $0x788] sm:$0xff]   ;;  %v4301_v44 = vld [vmem:[%s5382_s3 + $0x780] sm:$0xff]  }
  0xea   :  { %v3705_v14 = vpop.f32.mrf.mxu1  ;;  %3997 = vmatprep.subr.bf16.mxu1 %v4279_v48  ;;  %v396_v10 = vrot.slane %v5209_v57, %v4548_v34  ;;  %v4298_v34 = vld [vmem:[%s5382_s3 + $0x740] sm:$0xff]   ;;  %v66_v15 = vunpack.c.h.bf16 %v35_v9 }
  0xeb   :  { %v65_v14 = vunpack.c.l.bf16 %v35_v9  ;;  %v267_v27 = vmul.f32 %v200_v40, %v67_v37 }
  0xec   :  { %3976 = vmatpush3.bf16.msra.mxu0 %v4280_v49  ;;  %v266_v23 = vmul.f32 %v196_v4, %v66_v15  ;;  %v4303_v4 = vld [vmem:[%s5386_s4 + $0x30] sm:$0xff]   ;;  %v4309_v15 = vld [vmem:[%s5386_s4] sm:$0xff]  }
  0xed   :  { %3998 = vmatpush3.bf16.msra.mxu1 %v4281_v18  ;;  %3977 = vmatprep.subr.bf16.mxu0 %v4282_v50  ;;  %v265_v25 = vmul.f32 %v192_v31, %v65_v14  ;;  %v467_v32 = vadd.f32 %v400_v17, %v267_v27  ;;  %v4306_v31 = vld [vmem:[%s5386_s4 + $0x18] sm:$0xff]   ;;  %v4308_v14 = vld [vmem:[%s5386_s4 + $0x8] sm:$0xff]  }
  0xee   :  { %3999 = vmatprep.subr.bf16.mxu1 %v4283_v51  ;;  %v466_v57 = vadd.f32 %v396_v10, %v266_v23 }
  0xef   :  { %v465_v0 = vadd.f32 %v392_v12, %v265_v25  ;;  %vm499_vm15 = vcmp.gt.f32.partialorder %v467_v32, 0.0  ;;  %v531_v45 = vmul.f32 0.2, %v467_v32 }
  0xf0   :  { %3978 = vmatpush3.bf16.msra.mxu0 %v4284_v53  ;;  %vm498_vm12 = vcmp.gt.f32.partialorder %v466_v57, 0.0  ;;  %v530_v36 = vmul.f32 0.2, %v466_v57 }
  0xf1   :  { %4000 = vmatpush3.bf16.msra.mxu1 %v4285_v54  ;;  %3979 = vmatprep.subr.bf16.mxu0 %v4286_v55  ;;  %vm497_vm14 = vcmp.gt.f32.partialorder %v465_v0, 0.0  ;;  %v529_v43 = vmul.f32 0.2, %v465_v0  ;;  %v563_v18 = vsel %vm499_vm15, %v467_v32, %v531_v45 }
  0xf2   :  { %4001 = vmatprep.subr.bf16.mxu1 %v4287_v56  ;;  %v562_v46 = vsel %vm498_vm12, %v466_v57, %v530_v36  ;;  %v595_v51 = vpack.c.bf16 %v563_v18, %v563_v18 }
  0xf3   :  { %v594_v26 = vpack.c.bf16 %v562_v46, %v562_v46  ;;  %v561_v49 = vsel %vm497_vm14, %v465_v0, %v529_v43 }
  0xf4   :  { %3980 = vmatpush3.bf16.msra.mxu0 %v4288_v58  ;;  %v593_v50 = vpack.c.bf16 %v561_v49, %v561_v49 }
  0xf5   :  { %4002 = vmatpush3.bf16.msra.mxu1 %v4289_v59  ;;  %3981 = vmatprep.subr.bf16.mxu0 %v4290_v39 }
  0xf6   :  { %4003 = vmatprep.subr.bf16.mxu1 %v4291_v19  ;;  %3237 = vmatprep.mubr.bf16.mxu0 %v594_v26 }
  0xf8   :  { %3982 = vmatpush3.bf16.msra.mxu0 %v4292_v61 }
  0xf9   :  { %4004 = vmatpush3.bf16.msra.mxu1 %v4293_v62  ;;  %3983 = vmatprep.subr.bf16.mxu0 %v4294_v1 }
  0xfa   :  { %4005 = vmatprep.subr.bf16.mxu1 %v4295_v3  ;;  %v4302_v3 = vld [vmem:[%s5386_s4 + $0x38] sm:$0xff]  }
  0xfc   :  { %3984 = vmatpush3.bf16.msra.mxu0 %v4296_v8 }
  0xfd   :  { %4006 = vmatpush3.bf16.msra.mxu1 %v4297_v60  ;;  %3985 = vmatprep.subr.bf16.mxu0 %v4298_v34  ;;  %v4307_v34 = vld [vmem:[%s5386_s4 + $0x10] sm:$0xff]  }
  0xfe   :  { %4007 = vmatprep.subr.bf16.mxu1 %v4299_v42 }
 0x100   :  { %3986 = vmatpush3.bf16.msra.mxu0 %v4300_v29 }
 0x101   :  { %4008 = vmatpush3.bf16.msra.mxu1 %v4301_v44 }
 0x103   :  { %v3723_v63 = vpop.f32.mrf.mxu0  ;;  %3238 = vmatmul.mubr.bf16.vlgmr.msra.gmra.mxu0 %v593_v50 }
 0x104   :  { %v3745_v2 = vpop.f32.mrf.mxu1 }
 0x105   :  { %v3724_v5 = vpop.f32.mrf.mxu0 }
 0x106   :  { %v3725_v33 = vadd.f32 %v3724_v5, %v3723_v63  ;;  %v3746_v7 = vpop.f32.mrf.mxu1  ;;  %v4304_v5 = vld [vmem:[%s5386_s4 + $0x28] sm:$0xff]  }
 0x107   :  { %v3747_v35 = vadd.f32 %v3746_v7, %v3745_v2  ;;  %v3726_v13 = vpop.f32.mrf.mxu0  ;;  %v4310_v2 = vmov 0.0  }
 0x108   :  { %v3748_v38 = vpop.f32.mrf.mxu1  ;;  %v2760_v20 = vadd.f32 %v3725_v33, %v5240_v21  ;;  %v468_v21 = vadd.f32 %v404_v52, %v268_v24  ;;  %4024 = vmatprep.subr.bf16.mxu0 %v4310_v2  ;;  %4040 = vmatprep.mubr.msk.bf16.mxu0 %vm4311_vm0, %v4310_v2 }
 0x109   :  { %v3727_v22 = vpop.f32.mrf.mxu0  ;;  %4025 = vmatpush3.bf16.msra.mxu0 %v4302_v3 }
 0x10a   :  { %v3749_v28 = vpop.f32.mrf.mxu1  ;;  %v2800_v30 = vadd.f32 %v3747_v35, %v2760_v20  ;;  %vm500_vm13 = vcmp.gt.f32.partialorder %v468_v21, 0.0  ;;  %v532_v41 = vmul.f32 0.2, %v468_v21  ;;  %4026 = vmatprep.subr.bf16.mxu0 %v4310_v2 }
 0x10c   :  { %v564_v47 = vsel %vm500_vm13, %v468_v21, %v532_v41 }
 0x10d   :  { %v596_v48 = vpack.c.bf16 %v564_v47, %v564_v47  ;;  %4027 = vmatpush3.bf16.msra.mxu0 %v4303_v4 }
 0x10e   :  { %4028 = vmatprep.subr.bf16.mxu0 %v4310_v2 }
 0x10f   :  { %3277 = vmatprep.mubr.bf16.mxu1 %v596_v48 }
 0x110   :  { %3278 = vmatmul.mubr.bf16.vlgmr.msra.gmra.mxu1 %v595_v51 }
 0x111   :  { %4029 = vmatpush3.bf16.msra.mxu0 %v4304_v5 }
 0x112   :  { %4030 = vmatprep.subr.bf16.mxu0 %v4310_v2 }
 0x115   :  { %4031 = vmatpush3.bf16.msra.mxu0 %v4305_v6 }
 0x116   :  { %4032 = vmatprep.subr.bf16.mxu0 %v4310_v2 }
 0x119   :  { %4033 = vmatpush3.bf16.msra.mxu0 %v4306_v31 }
 0x11a   :  { %4034 = vmatprep.subr.bf16.mxu0 %v4310_v2 }
 0x11d   :  { %4035 = vmatpush3.bf16.msra.mxu0 %v4307_v34 }
 0x11e   :  { %4036 = vmatprep.subr.bf16.mxu0 %v4310_v2 }
 0x121   :  { %4037 = vmatpush3.bf16.msra.mxu0 %v4308_v14 }
 0x122   :  { %4038 = vmatprep.subr.bf16.mxu0 %v4310_v2 }
 0x123   :  { %v3767_v53 = vpop.f32.mrf.mxu0 }
 0x124   :  { %v3789_v54 = vpop.f32.mrf.mxu1 }
 0x125   :  { %v3768_v55 = vpop.f32.mrf.mxu0  ;;  %4039 = vmatpush3.bf16.msra.mxu0 %v4309_v15 }
 0x126   :  { %v3769_v56 = vadd.f32 %v3768_v55, %v3767_v53  ;;  %v3790_v58 = vpop.f32.mrf.mxu1 }
 0x127   :  { %v3791_v59 = vadd.f32 %v3790_v58, %v3789_v54  ;;  %v3770_v39 = vpop.f32.mrf.mxu0 }
 0x128   :  { %v2840_v19 = vadd.f32 %v3769_v56, %v2800_v30  ;;  %v3792_v61 = vpop.f32.mrf.mxu1 }
 0x129   :  { %v3771_v62 = vpop.f32.mrf.mxu0 }
 0x12a   :  { %v2880_v63 = vadd.f32 %v3791_v59, %v2840_v19  ;;  %v3793_v1 = vpop.f32.mrf.mxu1 }
 0x143   :  { %v3811_v40 = vpop.f32.mrf.mxu0 }
 0x144   :  { %v3833_v33 = vpop.f32.mrf.mxu1 }
 0x145   :  { %v3812_v7 = vpop.f32.mrf.mxu0 }
 0x146   :  { %v3834_v8 = vpop.f32.mrf.mxu1  ;;  %v3813_v9 = vadd.f32 %v3812_v7, %v3811_v40 }
 0x147   :  { %v3835_v10 = vadd.f32 %v3834_v8, %v3833_v33  ;;  %v3814_v11 = vpop.f32.mrf.mxu0 }
 0x148   :  { %v3836_v52 = vpop.f32.mrf.mxu1  ;;  %v2920_v12 = vadd.f32 %v3813_v9, %v2880_v63 }
 0x149   :  { %v3815_v35 = vpop.f32.mrf.mxu0 }
 0x14a   :  { %v3837_v13 = vpop.f32.mrf.mxu1  ;;  %v2960_v60 = vadd.f32 %v3835_v10, %v2920_v12 }
 0x163   :  { %v3855_v37 = vpop.f32.mrf.mxu0 }
 0x164   :  { %v3877_v16 = vpop.f32.mrf.mxu1 }
 0x165   :  { %v3856_v38 = vpop.f32.mrf.mxu0 }
 0x166   :  { %v3857_v42 = vadd.f32 %v3856_v38, %v3855_v37  ;;  %v3878_v17 = vpop.f32.mrf.mxu1 }
 0x167   :  { %v3879_v20 = vadd.f32 %v3878_v17, %v3877_v16  ;;  %v3858_v22 = vpop.f32.mrf.mxu0 }
 0x168   :  { %v3000_v23 = vadd.f32 %v3857_v42, %v2960_v60  ;;  %v3880_v24 = vpop.f32.mrf.mxu1 }
 0x169   :  { %v3859_v25 = vpop.f32.mrf.mxu0 }
 0x16a   :  { %v3040_v27 = vadd.f32 %v3879_v20, %v3000_v23  ;;  %v3881_v28 = vpop.f32.mrf.mxu1 }
 0x183   :  { %v3899_v29 = vpop.f32.mrf.mxu0 }
 0x184   :  { %v3921_v30 = vpop.f32.mrf.mxu1 }
 0x185   :  { %v3900_v44 = vpop.f32.mrf.mxu0 }
 0x186   :  { %v3901_v57 = vadd.f32 %v3900_v44, %v3899_v29  ;;  %v3922_v21 = vpop.f32.mrf.mxu1 }
 0x187   :  { %v3923_v0 = vadd.f32 %v3922_v21, %v3921_v30  ;;  %v3902_v32 = vpop.f32.mrf.mxu0 }
 0x188   :  { %v3080_v36 = vadd.f32 %v3901_v57, %v3040_v27  ;;  %v3924_v41 = vpop.f32.mrf.mxu1 }
 0x189   :  { %v3903_v43 = vpop.f32.mrf.mxu0 }
 0x18a   :  { %v3120_v45 = vadd.f32 %v3923_v0, %v3080_v36  ;;  %v3925_v46 = vpop.f32.mrf.mxu1 }
 0x1a3   :  { %v3943_v47 = vpop.f32.mrf.mxu0 }
 0x1a4   :  { %v3965_v26 = vpop.f32.mrf.mxu1 }
 0x1a5   :  { %v3944_v48 = vpop.f32.mrf.mxu0 }
 0x1a6   :  { %v3966_v49 = vpop.f32.mrf.mxu1  ;;  %v3945_v54 = vadd.f32 %v3944_v48, %v3943_v47 }
 0x1a7   :  { %v3946_v18 = vpop.f32.mrf.mxu0  ;;  %v3967_v56 = vadd.f32 %v3966_v49, %v3965_v26 }
 0x1a8   :  { %v3968_v50 = vpop.f32.mrf.mxu1  ;;  %v3160_v55 = vadd.f32 %v3945_v54, %v3120_v45 }
 0x1a9   :  { %v3947_v51 = vpop.f32.mrf.mxu0 }
 0x1aa   :  { %v3969_v53 = vpop.f32.mrf.mxu1  ;;  %v3200_v61 = vadd.f32 %v3967_v56, %v3160_v55 }
 0x1c3   :  { %v3987_v58 = vpop.f32.mrf.mxu0 }
 0x1c5   :  { %v3988_v39 = vpop.f32.mrf.mxu0 }
 0x1c6   :  { %v3989_v62 = vadd.f32 %v3988_v39, %v3987_v58 }
 0x1c7   :  { %v3990_v63 = vpop.f32.mrf.mxu0 }
 0x1c8   :  { %v3240_v2 = vadd.f32 %v3989_v62, %v3200_v61 }
 0x1c9   :  { %v3991_v4 = vpop.f32.mrf.mxu0 }
 0x1d0   :  { %v4009_v59 = vpop.f32.mrf.mxu1 }
 0x1d2   :  { %v4010_v19 = vpop.f32.mrf.mxu1 }
 0x1d3   :  { %v4011_v3 = vadd.f32 %v4010_v19, %v4009_v59 }
 0x1d4   :  { %v4012_v1 = vpop.f32.mrf.mxu1 }
 0x1d5   :  { %v3280_v6 = vadd.f32 %v4011_v3, %v3240_v2 }
 0x1d6   :  { %v4013_v5 = vpop.f32.mrf.mxu1 }
 0x1d7   :  { %vm3285_vm1 = vcmp.gt.f32.partialorder %v3280_v6, 0.0  ;;  %v3286_v31 = vmul.f32 0.2, %v3280_v6 }
 0x1d9   :  { %v3287_v40 = vsel %vm3285_vm1, %v3280_v6, %v3286_v31 }
 0x1da   :  { %v3288_v33 = vpack.c.bf16 %v3287_v40, %v3287_v40 }
 0x1dc   :  { %4041 = vmatmul.mubr.bf16.vlgmr.msra.gmra.mxu0 %v3288_v33 }
 0x29c   :  { %v3387_v7 = vpop.f32.mrf.mxu0 }
 0x29d   :  { %3394 = vst.msk [vmem:[%s5387_s5] sm:$0xff] %vm3393_vm2, %v3387_v7 }
 0x29e   :  { %v4042_v8 = vpop.f32.mrf.mxu0 }
 0x2a0   :  { %v3390_v9 = vpop.f32.mrf.mxu0 }
 0x2a2   :  { %v4043_v10 = vpop.f32.mrf.mxu0 }

</bundles_post_ra>
